<compile_context>
chip_gen: v5e
topology: v5e:2x2
jax: 0.10.0
libtpu: 0.0.40
codegen_flags: <defaults>
</compile_context>

<pallas_src>
import math

import jax
import jax.numpy as jnp
import numpy as np
from jax import lax
from jax.experimental import pallas as pl
from jax.experimental.pallas import tpu as pltpu


# ----------------------------------------------------------------------------
# Gaussian window (matches torch `gaussian` / `create_window`, sigma=1.5)
# ----------------------------------------------------------------------------
def gaussian_window_1d(window_size, sigma=1.5):
    g = np.array(
        [math.exp(-((x - window_size // 2) ** 2) / float(2 * sigma ** 2))
         for x in range(window_size)],
        dtype=np.float64)
    return (g / g.sum()).astype(np.float32)


def _round_up(x, m):
    return (x + m - 1) // m * m


def _choose_tile_h(C, H, W, K, budget_bytes):
    """Largest multiple-of-8 strip height whose working set fits the budget.

    Rough per-output-row cost: 2 images x 2 pipeline buffers of the input strip
    plus ~12 f32 working planes inside the kernel -> 16 * C * W * 4 bytes.
    """
    per_row = 16 * C * W * 4
    th = max(8, (budget_bytes // per_row) // 8 * 8)
    return int(min(th, _round_up(H, 8)))


# ----------------------------------------------------------------------------
# Fused SSIM strip kernel: one grid step per (image, row strip).
# ----------------------------------------------------------------------------
def _make_ssim_strip_kernel(C, TH, THp, W, K, taps, H, need_mask,
                            use_mxu, mxu_precision):
    C1 = 0.01 ** 2
    C2 = 0.03 ** 2
    pad = K // 2
    rows = C * TH

    def body(x1_ref, x2_ref, o_ref, t):
        # ---- fused vertical Gaussian pass -----------------------------------
        # Shift-load only the two raw planes from the pipelined VMEM block and
        # build the squared / cross moments from the already-shifted slices.
        s1 = x1_ref[:, 0:TH, :]
        s2 = x2_ref[:, 0:TH, :]
        w = taps[0]
        a1, a2 = w * s1, w * s2
        a11, a22, a12 = w * (s1 * s1), w * (s2 * s2), w * (s1 * s2)
        for dy in range(1, K):
            s1 = x1_ref[:, dy:dy + TH, :]
            s2 = x2_ref[:, dy:dy + TH, :]
            w = taps[dy]
            a1 = a1 + w * s1
            a2 = a2 + w * s2
            a11 = a11 + w * (s1 * s1)
            a22 = a22 + w * (s2 * s2)
            a12 = a12 + w * (s1 * s2)

        # ---- horizontal Gaussian pass ---------------------------------------
        if use_mxu:
            # Banded Toeplitz matmul on the MXU; T encodes taps + zero padding.
            def hblur(a):
                return jnp.dot(a.reshape(rows, W), t,
                               preferred_element_type=jnp.float32,
                               precision=mxu_precision)
        else:
            # Exact-f32 VPU fallback (shifted multiply-adds).
            zeros = jnp.zeros((rows, pad), jnp.float32)

            def hblur(a):
                ap = jnp.concatenate([zeros, a.reshape(rows, W), zeros], axis=1)
                out = taps[0] * ap[:, 0:W]
                for dx in range(1, K):
                    out = out + taps[dx] * ap[:, dx:dx + W]
                return out

        mu1, mu2 = hblur(a1), hblur(a2)
        e11, e22, e12 = hblur(a11), hblur(a22), hblur(a12)

        mu1_sq, mu2_sq, mu12 = mu1 * mu1, mu2 * mu2, mu1 * mu2
        sig1 = e11 - mu1_sq
        sig2 = e22 - mu2_sq
        sig12 = e12 - mu12

        num = (2.0 * mu12 + C1) * (2.0 * sig12 + C2)
        den = (mu1_sq + mu2_sq + C1) * (sig1 + sig2 + C2)
        ssim_map = num / den

        if need_mask:
            # The last strip may run past the true image height; zero its
            # out-of-range rows before summing.
            s_idx = pl.program_id(1)
            valid = jnp.minimum(H - s_idx * TH, TH)
            row = lax.broadcasted_iota(jnp.int32, (C, TH, W), 1)
            mask = (row < valid).astype(jnp.float32).reshape(rows, W)
            ssim_map = ssim_map * mask

        o_ref[...] = jnp.sum(ssim_map).reshape(1, 1)

    if use_mxu:
        def kernel(t_ref, x1_ref, x2_ref, o_ref):
            body(x1_ref, x2_ref, o_ref, t_ref[...])
    else:
        def kernel(x1_ref, x2_ref, o_ref):
            body(x1_ref, x2_ref, o_ref, None)
    return kernel


# ----------------------------------------------------------------------------
# Wrapper
# ----------------------------------------------------------------------------
def ssim(img1, img2, window_size=11, sigma=1.5, size_average=True,
         tile_h=None, use_mxu=True,
         mxu_precision=jax.lax.Precision.HIGHEST,
         vmem_budget_bytes=16 * 1024 * 1024):
    """Pallas-TPU SSIM. img1/img2: (B, C, H, W). Matches SSIM().forward."""
    B, C, H, W = img1.shape
    K = window_size
    pad = K // 2
    g = gaussian_window_1d(K, sigma)
    taps = tuple(float(t) for t in g)

    if tile_h is None:
        tile_h = _choose_tile_h(C, H, W, K, vmem_budget_bytes)
    TH = min(_round_up(max(8, int(tile_h)), 8), _round_up(H, 8))
    S = -(-H // TH)                      # number of row strips
    THp = TH + K - 1                     # strip height + vertical halo
    Hpad = S * TH + K - 1                # padded height covering all strips

    x1 = img1.astype(jnp.float32)
    x2 = img2.astype(jnp.float32)
    x1p = jnp.pad(x1, ((0, 0), (0, 0), (pad, Hpad - H - pad), (0, 0)))
    x2p = jnp.pad(x2, ((0, 0), (0, 0), (pad, Hpad - H - pad), (0, 0)))
    if S == 1:
        x1s = x1p[:, :, None]                              # (B, C, 1, THp, W)
        x2s = x2p[:, :, None]
    else:
        # Overlapping strips (K-1 row halo) gathered once so the kernel can use
        # plain Blocked specs; HBM overhead vs. the raw input is ~(K-1)/TH.
        idx = jnp.asarray(np.arange(S)[:, None] * TH
                          + np.arange(THp)[None, :], jnp.int32)
        x1s = jnp.take(x1p, idx, axis=2)                   # (B, C, S, THp, W)
        x2s = jnp.take(x2p, idx, axis=2)

    kernel = _make_ssim_strip_kernel(
        C, TH, THp, W, K, taps, H,
        need_mask=(S * TH != H), use_mxu=use_mxu, mxu_precision=mxu_precision)

    strip_spec = pl.BlockSpec((None, C, None, THp, W),
                              lambda b, s: (b, 0, s, 0, 0))
    in_specs = [strip_spec, strip_spec]
    args = [x1s, x2s]
    if use_mxu:
        # Banded Toeplitz matrix: horizontal Gaussian blur with zero 'same'
        # padding as a single MXU matmul (out = rows @ T).
        t_np = np.zeros((W, W), dtype=np.float32)
        for wo in range(W):
            for dx in range(K):
                wi = wo + dx - pad
                if 0 <= wi < W:
                    t_np[wi, wo] = g[dx]
        in_specs = [pl.BlockSpec((W, W), lambda b, s: (0, 0))] + in_specs
        args = [jnp.asarray(t_np)] + args

    partial = pl.pallas_call(
        kernel,
        out_shape=jax.ShapeDtypeStruct((B, S, 1, 1), jnp.float32),
        grid=(B, S),
        in_specs=in_specs,
        out_specs=pl.BlockSpec((None, None, 1, 1), lambda b, s: (b, s, 0, 0)),
        compiler_params=pltpu.CompilerParams(
            dimension_semantics=("parallel", "parallel"),
            vmem_limit_bytes=48 * 1024 * 1024),
    )(*args)

    per_image = jnp.sum(partial.reshape(B, S), axis=1) / float(C * H * W)
    if size_average:
        return jnp.mean(per_image)        # == ssim_map.mean()
    return per_image                      # == mean(1).mean(1).mean(1)


# ----------------------------------------------------------------------------
# Pure-JAX reference (independent: full 2D depthwise conv at f32 precision)
# ----------------------------------------------------------------------------
def ssim_ref(img1, img2, window_size=11, sigma=1.5, size_average=True):
    B, C, H, W = img1.shape
    g = gaussian_window_1d(window_size, sigma)
    w2d = jnp.asarray(np.outer(g, g), jnp.float32)
    w = jnp.tile(w2d[None, None], (C, 1, 1, 1))            # (C, 1, K, K) OIHW
    pad = window_size // 2

    def blur(z):
        return lax.conv_general_dilated(
            z, w, window_strides=(1, 1),
            padding=[(pad, pad), (pad, pad)],
            dimension_numbers=("NCHW", "OIHW", "NCHW"),
            feature_group_count=C,
            precision=lax.Precision.HIGHEST)

    mu1, mu2 = blur(img1), blur(img2)
    mu1_sq, mu2_sq, mu12 = mu1 * mu1, mu2 * mu2, mu1 * mu2
    s1 = blur(img1 * img1) - mu1_sq
    s2 = blur(img2 * img2) - mu2_sq
    s12 = blur(img1 * img2) - mu12
    C1, C2 = 0.01 ** 2, 0.03 ** 2
    m = ((2 * mu12 + C1) * (2 * s12 + C2)) / \
        ((mu1_sq + mu2_sq + C1) * (s1 + s2 + C2))
    if size_average:
        return jnp.mean(m)
    return jnp.mean(m, axis=(1, 2, 3))


if __name__ == "__main__":
    key = jax.random.PRNGKey(0)
    k1, k2 = jax.random.split(key)
    B, C, H, W = 2, 3, 16, 16            # SSIM module default channel count = 3
    img1 = jax.random.uniform(k1, (B, C, H, W), dtype=jnp.float32)
    img2 = jax.random.uniform(k2, (B, C, H, W), dtype=jnp.float32)

    ref = np.asarray(jax.block_until_ready(ssim_ref(img1, img2)))

    # Preferred config first: MXU horizontal pass at full-f32 matmul precision.
    # The fallbacks only guard against Mosaic builds that reject an explicit
    # matmul precision; the last one is the exact VPU shifted-MAC path.
    configs = (
        dict(),
        dict(mxu_precision=None),
        dict(use_mxu=False),
    )
    out, last_err = None, None
    for cfg in configs:
        try:
            out = np.asarray(jax.block_until_ready(ssim(img1, img2, **cfg)))
            np.testing.assert_allclose(out, ref, atol=1e-4, rtol=1e-4)
            break
        except Exception as e:  # feature-detect fallback; re-raised if all fail
            out, last_err = None, e
    if out is None:
        raise last_err
    print("KERNEL_OK")
</pallas_src>

<mosaic_0001>
module attributes {stable_mosaic.version = 11 : i64} {
  func.func @kernel(%arg0: i32, %arg1: i32, %arg2: memref<16x16xf32, #tpu.memory_space<vmem>>, %arg3: memref<1x3x1x26x16xf32, #tpu.memory_space<vmem>>, %arg4: memref<1x3x1x26x16xf32, #tpu.memory_space<vmem>>, %arg5: memref<1x1x1x1xf32, #tpu.memory_space<vmem>>) attributes {dimension_semantics = [#tpu.dimension_semantics<parallel>, #tpu.dimension_semantics<parallel>], iteration_bounds = array<i64: 2, 1>, scalar_prefetch = 0 : i64, scratch_operands = 0 : i64, tpu.core_type = #tpu.core_type<tc>, window_params = [{pipeline_mode = #tpu.pipeline_mode<synchronous>, transform_indices = @transform_0, window_bounds = array<i64: 16, 16>}, {transform_indices = @transform_1, window_bounds = array<i64: 1, 3, 1, 26, 16>}, {transform_indices = @transform_2, window_bounds = array<i64: 1, 3, 1, 26, 16>}, {transform_indices = @transform_3, window_bounds = array<i64: 1, 1, 1, 1>}]} {
    %c0 = arith.constant 0 : index
    %c0_0 = arith.constant 0 : index
    %0 = vector.load %arg2[%c0, %c0_0] : memref<16x16xf32, #tpu.memory_space<vmem>>, vector<16x16xf32>
    %c0_1 = arith.constant 0 : index
    %c0_2 = arith.constant 0 : index
    %c0_3 = arith.constant 0 : index
    %c0_4 = arith.constant 0 : index
    %c0_5 = arith.constant 0 : index
    %1 = vector.load %arg3[%c0_1, %c0_2, %c0_3, %c0_4, %c0_5] : memref<1x3x1x26x16xf32, #tpu.memory_space<vmem>>, vector<1x3x1x16x16xf32>
    %2 = vector.shape_cast %1 : vector<1x3x1x16x16xf32> to vector<3x16x16xf32>
    %c0_6 = arith.constant 0 : index
    %c0_7 = arith.constant 0 : index
    %c0_8 = arith.constant 0 : index
    %c0_9 = arith.constant 0 : index
    %c0_10 = arith.constant 0 : index
    %3 = vector.load %arg4[%c0_6, %c0_7, %c0_8, %c0_9, %c0_10] : memref<1x3x1x26x16xf32, #tpu.memory_space<vmem>>, vector<1x3x1x16x16xf32>
    %4 = vector.shape_cast %3 : vector<1x3x1x16x16xf32> to vector<3x16x16xf32>
    %cst = arith.constant 0.00102838012 : f32
    %5 = vector.broadcast %cst : f32 to vector<3x16x16xf32>
    %6 = arith.mulf %5, %2 : vector<3x16x16xf32>
    %cst_11 = arith.constant 0.00102838012 : f32
    %7 = vector.broadcast %cst_11 : f32 to vector<3x16x16xf32>
    %8 = arith.mulf %7, %4 : vector<3x16x16xf32>
    %9 = arith.mulf %2, %2 : vector<3x16x16xf32>
    %cst_12 = arith.constant 0.00102838012 : f32
    %10 = vector.broadcast %cst_12 : f32 to vector<3x16x16xf32>
    %11 = arith.mulf %10, %9 : vector<3x16x16xf32>
    %12 = arith.mulf %4, %4 : vector<3x16x16xf32>
    %cst_13 = arith.constant 0.00102838012 : f32
    %13 = vector.broadcast %cst_13 : f32 to vector<3x16x16xf32>
    %14 = arith.mulf %13, %12 : vector<3x16x16xf32>
    %15 = arith.mulf %2, %4 : vector<3x16x16xf32>
    %cst_14 = arith.constant 0.00102838012 : f32
    %16 = vector.broadcast %cst_14 : f32 to vector<3x16x16xf32>
    %17 = arith.mulf %16, %15 : vector<3x16x16xf32>
    %c0_15 = arith.constant 0 : index
    %c0_16 = arith.constant 0 : index
    %c0_17 = arith.constant 0 : index
    %c1 = arith.constant 1 : index
    %c0_18 = arith.constant 0 : index
    %18 = vector.load %arg3[%c0_15, %c0_16, %c0_17, %c1, %c0_18] : memref<1x3x1x26x16xf32, #tpu.memory_space<vmem>>, vector<1x3x1x16x16xf32>
    %19 = vector.shape_cast %18 : vector<1x3x1x16x16xf32> to vector<3x16x16xf32>
    %c0_19 = arith.constant 0 : index
    %c0_20 = arith.constant 0 : index
    %c0_21 = arith.constant 0 : index
    %c1_22 = arith.constant 1 : index
    %c0_23 = arith.constant 0 : index
    %20 = vector.load %arg4[%c0_19, %c0_20, %c0_21, %c1_22, %c0_23] : memref<1x3x1x26x16xf32, #tpu.memory_space<vmem>>, vector<1x3x1x16x16xf32>
    %21 = vector.shape_cast %20 : vector<1x3x1x16x16xf32> to vector<3x16x16xf32>
    %cst_24 = arith.constant 0.00759875821 : f32
    %22 = vector.broadcast %cst_24 : f32 to vector<3x16x16xf32>
    %23 = arith.mulf %22, %19 : vector<3x16x16xf32>
    %24 = arith.addf %6, %23 : vector<3x16x16xf32>
    %cst_25 = arith.constant 0.00759875821 : f32
    %25 = vector.broadcast %cst_25 : f32 to vector<3x16x16xf32>
    %26 = arith.mulf %25, %21 : vector<3x16x16xf32>
    %27 = arith.addf %8, %26 : vector<3x16x16xf32>
    %28 = arith.mulf %19, %19 : vector<3x16x16xf32>
    %cst_26 = arith.constant 0.00759875821 : f32
    %29 = vector.broadcast %cst_26 : f32 to vector<3x16x16xf32>
    %30 = arith.mulf %29, %28 : vector<3x16x16xf32>
    %31 = arith.addf %11, %30 : vector<3x16x16xf32>
    %32 = arith.mulf %21, %21 : vector<3x16x16xf32>
    %cst_27 = arith.constant 0.00759875821 : f32
    %33 = vector.broadcast %cst_27 : f32 to vector<3x16x16xf32>
    %34 = arith.mulf %33, %32 : vector<3x16x16xf32>
    %35 = arith.addf %14, %34 : vector<3x16x16xf32>
    %36 = arith.mulf %19, %21 : vector<3x16x16xf32>
    %cst_28 = arith.constant 0.00759875821 : f32
    %37 = vector.broadcast %cst_28 : f32 to vector<3x16x16xf32>
    %38 = arith.mulf %37, %36 : vector<3x16x16xf32>
    %39 = arith.addf %17, %38 : vector<3x16x16xf32>
    %c0_29 = arith.constant 0 : index
    %c0_30 = arith.constant 0 : index
    %c0_31 = arith.constant 0 : index
    %c2 = arith.constant 2 : index
    %c0_32 = arith.constant 0 : index
    %40 = vector.load %arg3[%c0_29, %c0_30, %c0_31, %c2, %c0_32] : memref<1x3x1x26x16xf32, #tpu.memory_space<vmem>>, vector<1x3x1x16x16xf32>
    %41 = vector.shape_cast %40 : vector<1x3x1x16x16xf32> to vector<3x16x16xf32>
    %c0_33 = arith.constant 0 : index
    %c0_34 = arith.constant 0 : index
    %c0_35 = arith.constant 0 : index
    %c2_36 = arith.constant 2 : index
    %c0_37 = arith.constant 0 : index
    %42 = vector.load %arg4[%c0_33, %c0_34, %c0_35, %c2_36, %c0_37] : memref<1x3x1x26x16xf32, #tpu.memory_space<vmem>>, vector<1x3x1x16x16xf32>
    %43 = vector.shape_cast %42 : vector<1x3x1x16x16xf32> to vector<3x16x16xf32>
    %cst_38 = arith.constant 0.0360007733 : f32
    %44 = vector.broadcast %cst_38 : f32 to vector<3x16x16xf32>
    %45 = arith.mulf %44, %41 : vector<3x16x16xf32>
    %46 = arith.addf %24, %45 : vector<3x16x16xf32>
    %cst_39 = arith.constant 0.0360007733 : f32
    %47 = vector.broadcast %cst_39 : f32 to vector<3x16x16xf32>
    %48 = arith.mulf %47, %43 : vector<3x16x16xf32>
    %49 = arith.addf %27, %48 : vector<3x16x16xf32>
    %50 = arith.mulf %41, %41 : vector<3x16x16xf32>
    %cst_40 = arith.constant 0.0360007733 : f32
    %51 = vector.broadcast %cst_40 : f32 to vector<3x16x16xf32>
    %52 = arith.mulf %51, %50 : vector<3x16x16xf32>
    %53 = arith.addf %31, %52 : vector<3x16x16xf32>
    %54 = arith.mulf %43, %43 : vector<3x16x16xf32>
    %cst_41 = arith.constant 0.0360007733 : f32
    %55 = vector.broadcast %cst_41 : f32 to vector<3x16x16xf32>
    %56 = arith.mulf %55, %54 : vector<3x16x16xf32>
    %57 = arith.addf %35, %56 : vector<3x16x16xf32>
    %58 = arith.mulf %41, %43 : vector<3x16x16xf32>
    %cst_42 = arith.constant 0.0360007733 : f32
    %59 = vector.broadcast %cst_42 : f32 to vector<3x16x16xf32>
    %60 = arith.mulf %59, %58 : vector<3x16x16xf32>
    %61 = arith.addf %39, %60 : vector<3x16x16xf32>
    %c0_43 = arith.constant 0 : index
    %c0_44 = arith.constant 0 : index
    %c0_45 = arith.constant 0 : index
    %c3 = arith.constant 3 : index
    %c0_46 = arith.constant 0 : index
    %62 = vector.load %arg3[%c0_43, %c0_44, %c0_45, %c3, %c0_46] : memref<1x3x1x26x16xf32, #tpu.memory_space<vmem>>, vector<1x3x1x16x16xf32>
    %63 = vector.shape_cast %62 : vector<1x3x1x16x16xf32> to vector<3x16x16xf32>
    %c0_47 = arith.constant 0 : index
    %c0_48 = arith.constant 0 : index
    %c0_49 = arith.constant 0 : index
    %c3_50 = arith.constant 3 : index
    %c0_51 = arith.constant 0 : index
    %64 = vector.load %arg4[%c0_47, %c0_48, %c0_49, %c3_50, %c0_51] : memref<1x3x1x26x16xf32, #tpu.memory_space<vmem>>, vector<1x3x1x16x16xf32>
    %65 = vector.shape_cast %64 : vector<1x3x1x16x16xf32> to vector<3x16x16xf32>
    %cst_52 = arith.constant 0.109360687 : f32
    %66 = vector.broadcast %cst_52 : f32 to vector<3x16x16xf32>
    %67 = arith.mulf %66, %63 : vector<3x16x16xf32>
    %68 = arith.addf %46, %67 : vector<3x16x16xf32>
    %cst_53 = arith.constant 0.109360687 : f32
    %69 = vector.broadcast %cst_53 : f32 to vector<3x16x16xf32>
    %70 = arith.mulf %69, %65 : vector<3x16x16xf32>
    %71 = arith.addf %49, %70 : vector<3x16x16xf32>
    %72 = arith.mulf %63, %63 : vector<3x16x16xf32>
    %cst_54 = arith.constant 0.109360687 : f32
    %73 = vector.broadcast %cst_54 : f32 to vector<3x16x16xf32>
    %74 = arith.mulf %73, %72 : vector<3x16x16xf32>
    %75 = arith.addf %53, %74 : vector<3x16x16xf32>
    %76 = arith.mulf %65, %65 : vector<3x16x16xf32>
    %cst_55 = arith.constant 0.109360687 : f32
    %77 = vector.broadcast %cst_55 : f32 to vector<3x16x16xf32>
    %78 = arith.mulf %77, %76 : vector<3x16x16xf32>
    %79 = arith.addf %57, %78 : vector<3x16x16xf32>
    %80 = arith.mulf %63, %65 : vector<3x16x16xf32>
    %cst_56 = arith.constant 0.109360687 : f32
    %81 = vector.broadcast %cst_56 : f32 to vector<3x16x16xf32>
    %82 = arith.mulf %81, %80 : vector<3x16x16xf32>
    %83 = arith.addf %61, %82 : vector<3x16x16xf32>
    %c0_57 = arith.constant 0 : index
    %c0_58 = arith.constant 0 : index
    %c0_59 = arith.constant 0 : index
    %c4 = arith.constant 4 : index
    %c0_60 = arith.constant 0 : index
    %84 = vector.load %arg3[%c0_57, %c0_58, %c0_59, %c4, %c0_60] : memref<1x3x1x26x16xf32, #tpu.memory_space<vmem>>, vector<1x3x1x16x16xf32>
    %85 = vector.shape_cast %84 : vector<1x3x1x16x16xf32> to vector<3x16x16xf32>
    %c0_61 = arith.constant 0 : index
    %c0_62 = arith.constant 0 : index
    %c0_63 = arith.constant 0 : index
    %c4_64 = arith.constant 4 : index
    %c0_65 = arith.constant 0 : index
    %86 = vector.load %arg4[%c0_61, %c0_62, %c0_63, %c4_64, %c0_65] : memref<1x3x1x26x16xf32, #tpu.memory_space<vmem>>, vector<1x3x1x16x16xf32>
    %87 = vector.shape_cast %86 : vector<1x3x1x16x16xf32> to vector<3x16x16xf32>
    %cst_66 = arith.constant 0.213005543 : f32
    %88 = vector.broadcast %cst_66 : f32 to vector<3x16x16xf32>
    %89 = arith.mulf %88, %85 : vector<3x16x16xf32>
    %90 = arith.addf %68, %89 : vector<3x16x16xf32>
    %cst_67 = arith.constant 0.213005543 : f32
    %91 = vector.broadcast %cst_67 : f32 to vector<3x16x16xf32>
    %92 = arith.mulf %91, %87 : vector<3x16x16xf32>
    %93 = arith.addf %71, %92 : vector<3x16x16xf32>
    %94 = arith.mulf %85, %85 : vector<3x16x16xf32>
    %cst_68 = arith.constant 0.213005543 : f32
    %95 = vector.broadcast %cst_68 : f32 to vector<3x16x16xf32>
    %96 = arith.mulf %95, %94 : vector<3x16x16xf32>
    %97 = arith.addf %75, %96 : vector<3x16x16xf32>
    %98 = arith.mulf %87, %87 : vector<3x16x16xf32>
    %cst_69 = arith.constant 0.213005543 : f32
    %99 = vector.broadcast %cst_69 : f32 to vector<3x16x16xf32>
    %100 = arith.mulf %99, %98 : vector<3x16x16xf32>
    %101 = arith.addf %79, %100 : vector<3x16x16xf32>
    %102 = arith.mulf %85, %87 : vector<3x16x16xf32>
    %cst_70 = arith.constant 0.213005543 : f32
    %103 = vector.broadcast %cst_70 : f32 to vector<3x16x16xf32>
    %104 = arith.mulf %103, %102 : vector<3x16x16xf32>
    %105 = arith.addf %83, %104 : vector<3x16x16xf32>
    %c0_71 = arith.constant 0 : index
    %c0_72 = arith.constant 0 : index
    %c0_73 = arith.constant 0 : index
    %c5 = arith.constant 5 : index
    %c0_74 = arith.constant 0 : index
    %106 = vector.load %arg3[%c0_71, %c0_72, %c0_73, %c5, %c0_74] : memref<1x3x1x26x16xf32, #tpu.memory_space<vmem>>, vector<1x3x1x16x16xf32>
    %107 = vector.shape_cast %106 : vector<1x3x1x16x16xf32> to vector<3x16x16xf32>
    %c0_75 = arith.constant 0 : index
    %c0_76 = arith.constant 0 : index
    %c0_77 = arith.constant 0 : index
    %c5_78 = arith.constant 5 : index
    %c0_79 = arith.constant 0 : index
    %108 = vector.load %arg4[%c0_75, %c0_76, %c0_77, %c5_78, %c0_79] : memref<1x3x1x26x16xf32, #tpu.memory_space<vmem>>, vector<1x3x1x16x16xf32>
    %109 = vector.shape_cast %108 : vector<1x3x1x16x16xf32> to vector<3x16x16xf32>
    %cst_80 = arith.constant 0.266011715 : f32
    %110 = vector.broadcast %cst_80 : f32 to vector<3x16x16xf32>
    %111 = arith.mulf %110, %107 : vector<3x16x16xf32>
    %112 = arith.addf %90, %111 : vector<3x16x16xf32>
    %cst_81 = arith.constant 0.266011715 : f32
    %113 = vector.broadcast %cst_81 : f32 to vector<3x16x16xf32>
    %114 = arith.mulf %113, %109 : vector<3x16x16xf32>
    %115 = arith.addf %93, %114 : vector<3x16x16xf32>
    %116 = arith.mulf %107, %107 : vector<3x16x16xf32>
    %cst_82 = arith.constant 0.266011715 : f32
    %117 = vector.broadcast %cst_82 : f32 to vector<3x16x16xf32>
    %118 = arith.mulf %117, %116 : vector<3x16x16xf32>
    %119 = arith.addf %97, %118 : vector<3x16x16xf32>
    %120 = arith.mulf %109, %109 : vector<3x16x16xf32>
    %cst_83 = arith.constant 0.266011715 : f32
    %121 = vector.broadcast %cst_83 : f32 to vector<3x16x16xf32>
    %122 = arith.mulf %121, %120 : vector<3x16x16xf32>
    %123 = arith.addf %101, %122 : vector<3x16x16xf32>
    %124 = arith.mulf %107, %109 : vector<3x16x16xf32>
    %cst_84 = arith.constant 0.266011715 : f32
    %125 = vector.broadcast %cst_84 : f32 to vector<3x16x16xf32>
    %126 = arith.mulf %125, %124 : vector<3x16x16xf32>
    %127 = arith.addf %105, %126 : vector<3x16x16xf32>
    %c0_85 = arith.constant 0 : index
    %c0_86 = arith.constant 0 : index
    %c0_87 = arith.constant 0 : index
    %c6 = arith.constant 6 : index
    %c0_88 = arith.constant 0 : index
    %128 = vector.load %arg3[%c0_85, %c0_86, %c0_87, %c6, %c0_88] : memref<1x3x1x26x16xf32, #tpu.memory_space<vmem>>, vector<1x3x1x16x16xf32>
    %129 = vector.shape_cast %128 : vector<1x3x1x16x16xf32> to vector<3x16x16xf32>
    %c0_89 = arith.constant 0 : index
    %c0_90 = arith.constant 0 : index
    %c0_91 = arith.constant 0 : index
    %c6_92 = arith.constant 6 : index
    %c0_93 = arith.constant 0 : index
    %130 = vector.load %arg4[%c0_89, %c0_90, %c0_91, %c6_92, %c0_93] : memref<1x3x1x26x16xf32, #tpu.memory_space<vmem>>, vector<1x3x1x16x16xf32>
    %131 = vector.shape_cast %130 : vector<1x3x1x16x16xf32> to vector<3x16x16xf32>
    %cst_94 = arith.constant 0.213005543 : f32
    %132 = vector.broadcast %cst_94 : f32 to vector<3x16x16xf32>
    %133 = arith.mulf %132, %129 : vector<3x16x16xf32>
    %134 = arith.addf %112, %133 : vector<3x16x16xf32>
    %cst_95 = arith.constant 0.213005543 : f32
    %135 = vector.broadcast %cst_95 : f32 to vector<3x16x16xf32>
    %136 = arith.mulf %135, %131 : vector<3x16x16xf32>
    %137 = arith.addf %115, %136 : vector<3x16x16xf32>
    %138 = arith.mulf %129, %129 : vector<3x16x16xf32>
    %cst_96 = arith.constant 0.213005543 : f32
    %139 = vector.broadcast %cst_96 : f32 to vector<3x16x16xf32>
    %140 = arith.mulf %139, %138 : vector<3x16x16xf32>
    %141 = arith.addf %119, %140 : vector<3x16x16xf32>
    %142 = arith.mulf %131, %131 : vector<3x16x16xf32>
    %cst_97 = arith.constant 0.213005543 : f32
    %143 = vector.broadcast %cst_97 : f32 to vector<3x16x16xf32>
    %144 = arith.mulf %143, %142 : vector<3x16x16xf32>
    %145 = arith.addf %123, %144 : vector<3x16x16xf32>
    %146 = arith.mulf %129, %131 : vector<3x16x16xf32>
    %cst_98 = arith.constant 0.213005543 : f32
    %147 = vector.broadcast %cst_98 : f32 to vector<3x16x16xf32>
    %148 = arith.mulf %147, %146 : vector<3x16x16xf32>
    %149 = arith.addf %127, %148 : vector<3x16x16xf32>
    %c0_99 = arith.constant 0 : index
    %c0_100 = arith.constant 0 : index
    %c0_101 = arith.constant 0 : index
    %c7 = arith.constant 7 : index
    %c0_102 = arith.constant 0 : index
    %150 = vector.load %arg3[%c0_99, %c0_100, %c0_101, %c7, %c0_102] : memref<1x3x1x26x16xf32, #tpu.memory_space<vmem>>, vector<1x3x1x16x16xf32>
    %151 = vector.shape_cast %150 : vector<1x3x1x16x16xf32> to vector<3x16x16xf32>
    %c0_103 = arith.constant 0 : index
    %c0_104 = arith.constant 0 : index
    %c0_105 = arith.constant 0 : index
    %c7_106 = arith.constant 7 : index
    %c0_107 = arith.constant 0 : index
    %152 = vector.load %arg4[%c0_103, %c0_104, %c0_105, %c7_106, %c0_107] : memref<1x3x1x26x16xf32, #tpu.memory_space<vmem>>, vector<1x3x1x16x16xf32>
    %153 = vector.shape_cast %152 : vector<1x3x1x16x16xf32> to vector<3x16x16xf32>
    %cst_108 = arith.constant 0.109360687 : f32
    %154 = vector.broadcast %cst_108 : f32 to vector<3x16x16xf32>
    %155 = arith.mulf %154, %151 : vector<3x16x16xf32>
    %156 = arith.addf %134, %155 : vector<3x16x16xf32>
    %cst_109 = arith.constant 0.109360687 : f32
    %157 = vector.broadcast %cst_109 : f32 to vector<3x16x16xf32>
    %158 = arith.mulf %157, %153 : vector<3x16x16xf32>
    %159 = arith.addf %137, %158 : vector<3x16x16xf32>
    %160 = arith.mulf %151, %151 : vector<3x16x16xf32>
    %cst_110 = arith.constant 0.109360687 : f32
    %161 = vector.broadcast %cst_110 : f32 to vector<3x16x16xf32>
    %162 = arith.mulf %161, %160 : vector<3x16x16xf32>
    %163 = arith.addf %141, %162 : vector<3x16x16xf32>
    %164 = arith.mulf %153, %153 : vector<3x16x16xf32>
    %cst_111 = arith.constant 0.109360687 : f32
    %165 = vector.broadcast %cst_111 : f32 to vector<3x16x16xf32>
    %166 = arith.mulf %165, %164 : vector<3x16x16xf32>
    %167 = arith.addf %145, %166 : vector<3x16x16xf32>
    %168 = arith.mulf %151, %153 : vector<3x16x16xf32>
    %cst_112 = arith.constant 0.109360687 : f32
    %169 = vector.broadcast %cst_112 : f32 to vector<3x16x16xf32>
    %170 = arith.mulf %169, %168 : vector<3x16x16xf32>
    %171 = arith.addf %149, %170 : vector<3x16x16xf32>
    %c0_113 = arith.constant 0 : index
    %c0_114 = arith.constant 0 : index
    %c0_115 = arith.constant 0 : index
    %c8 = arith.constant 8 : index
    %c0_116 = arith.constant 0 : index
    %172 = vector.load %arg3[%c0_113, %c0_114, %c0_115, %c8, %c0_116] : memref<1x3x1x26x16xf32, #tpu.memory_space<vmem>>, vector<1x3x1x16x16xf32>
    %173 = vector.shape_cast %172 : vector<1x3x1x16x16xf32> to vector<3x16x16xf32>
    %c0_117 = arith.constant 0 : index
    %c0_118 = arith.constant 0 : index
    %c0_119 = arith.constant 0 : index
    %c8_120 = arith.constant 8 : index
    %c0_121 = arith.constant 0 : index
    %174 = vector.load %arg4[%c0_117, %c0_118, %c0_119, %c8_120, %c0_121] : memref<1x3x1x26x16xf32, #tpu.memory_space<vmem>>, vector<1x3x1x16x16xf32>
    %175 = vector.shape_cast %174 : vector<1x3x1x16x16xf32> to vector<3x16x16xf32>
    %cst_122 = arith.constant 0.0360007733 : f32
    %176 = vector.broadcast %cst_122 : f32 to vector<3x16x16xf32>
    %177 = arith.mulf %176, %173 : vector<3x16x16xf32>
    %178 = arith.addf %156, %177 : vector<3x16x16xf32>
    %cst_123 = arith.constant 0.0360007733 : f32
    %179 = vector.broadcast %cst_123 : f32 to vector<3x16x16xf32>
    %180 = arith.mulf %179, %175 : vector<3x16x16xf32>
    %181 = arith.addf %159, %180 : vector<3x16x16xf32>
    %182 = arith.mulf %173, %173 : vector<3x16x16xf32>
    %cst_124 = arith.constant 0.0360007733 : f32
    %183 = vector.broadcast %cst_124 : f32 to vector<3x16x16xf32>
    %184 = arith.mulf %183, %182 : vector<3x16x16xf32>
    %185 = arith.addf %163, %184 : vector<3x16x16xf32>
    %186 = arith.mulf %175, %175 : vector<3x16x16xf32>
    %cst_125 = arith.constant 0.0360007733 : f32
    %187 = vector.broadcast %cst_125 : f32 to vector<3x16x16xf32>
    %188 = arith.mulf %187, %186 : vector<3x16x16xf32>
    %189 = arith.addf %167, %188 : vector<3x16x16xf32>
    %190 = arith.mulf %173, %175 : vector<3x16x16xf32>
    %cst_126 = arith.constant 0.0360007733 : f32
    %191 = vector.broadcast %cst_126 : f32 to vector<3x16x16xf32>
    %192 = arith.mulf %191, %190 : vector<3x16x16xf32>
    %193 = arith.addf %171, %192 : vector<3x16x16xf32>
    %c0_127 = arith.constant 0 : index
    %c0_128 = arith.constant 0 : index
    %c0_129 = arith.constant 0 : index
    %c9 = arith.constant 9 : index
    %c0_130 = arith.constant 0 : index
    %194 = vector.load %arg3[%c0_127, %c0_128, %c0_129, %c9, %c0_130] : memref<1x3x1x26x16xf32, #tpu.memory_space<vmem>>, vector<1x3x1x16x16xf32>
    %195 = vector.shape_cast %194 : vector<1x3x1x16x16xf32> to vector<3x16x16xf32>
    %c0_131 = arith.constant 0 : index
    %c0_132 = arith.constant 0 : index
    %c0_133 = arith.constant 0 : index
    %c9_134 = arith.constant 9 : index
    %c0_135 = arith.constant 0 : index
    %196 = vector.load %arg4[%c0_131, %c0_132, %c0_133, %c9_134, %c0_135] : memref<1x3x1x26x16xf32, #tpu.memory_space<vmem>>, vector<1x3x1x16x16xf32>
    %197 = vector.shape_cast %196 : vector<1x3x1x16x16xf32> to vector<3x16x16xf32>
    %cst_136 = arith.constant 0.00759875821 : f32
    %198 = vector.broadcast %cst_136 : f32 to vector<3x16x16xf32>
    %199 = arith.mulf %198, %195 : vector<3x16x16xf32>
    %200 = arith.addf %178, %199 : vector<3x16x16xf32>
    %cst_137 = arith.constant 0.00759875821 : f32
    %201 = vector.broadcast %cst_137 : f32 to vector<3x16x16xf32>
    %202 = arith.mulf %201, %197 : vector<3x16x16xf32>
    %203 = arith.addf %181, %202 : vector<3x16x16xf32>
    %204 = arith.mulf %195, %195 : vector<3x16x16xf32>
    %cst_138 = arith.constant 0.00759875821 : f32
    %205 = vector.broadcast %cst_138 : f32 to vector<3x16x16xf32>
    %206 = arith.mulf %205, %204 : vector<3x16x16xf32>
    %207 = arith.addf %185, %206 : vector<3x16x16xf32>
    %208 = arith.mulf %197, %197 : vector<3x16x16xf32>
    %cst_139 = arith.constant 0.00759875821 : f32
    %209 = vector.broadcast %cst_139 : f32 to vector<3x16x16xf32>
    %210 = arith.mulf %209, %208 : vector<3x16x16xf32>
    %211 = arith.addf %189, %210 : vector<3x16x16xf32>
    %212 = arith.mulf %195, %197 : vector<3x16x16xf32>
    %cst_140 = arith.constant 0.00759875821 : f32
    %213 = vector.broadcast %cst_140 : f32 to vector<3x16x16xf32>
    %214 = arith.mulf %213, %212 : vector<3x16x16xf32>
    %215 = arith.addf %193, %214 : vector<3x16x16xf32>
    %c0_141 = arith.constant 0 : index
    %c0_142 = arith.constant 0 : index
    %c0_143 = arith.constant 0 : index
    %c10 = arith.constant 10 : index
    %c0_144 = arith.constant 0 : index
    %216 = vector.load %arg3[%c0_141, %c0_142, %c0_143, %c10, %c0_144] : memref<1x3x1x26x16xf32, #tpu.memory_space<vmem>>, vector<1x3x1x16x16xf32>
    %217 = vector.shape_cast %216 : vector<1x3x1x16x16xf32> to vector<3x16x16xf32>
    %c0_145 = arith.constant 0 : index
    %c0_146 = arith.constant 0 : index
    %c0_147 = arith.constant 0 : index
    %c10_148 = arith.constant 10 : index
    %c0_149 = arith.constant 0 : index
    %218 = vector.load %arg4[%c0_145, %c0_146, %c0_147, %c10_148, %c0_149] : memref<1x3x1x26x16xf32, #tpu.memory_space<vmem>>, vector<1x3x1x16x16xf32>
    %219 = vector.shape_cast %218 : vector<1x3x1x16x16xf32> to vector<3x16x16xf32>
    %cst_150 = arith.constant 0.00102838012 : f32
    %220 = vector.broadcast %cst_150 : f32 to vector<3x16x16xf32>
    %221 = arith.mulf %220, %217 : vector<3x16x16xf32>
    %222 = arith.addf %200, %221 : vector<3x16x16xf32>
    %cst_151 = arith.constant 0.00102838012 : f32
    %223 = vector.broadcast %cst_151 : f32 to vector<3x16x16xf32>
    %224 = arith.mulf %223, %219 : vector<3x16x16xf32>
    %225 = arith.addf %203, %224 : vector<3x16x16xf32>
    %226 = arith.mulf %217, %217 : vector<3x16x16xf32>
    %cst_152 = arith.constant 0.00102838012 : f32
    %227 = vector.broadcast %cst_152 : f32 to vector<3x16x16xf32>
    %228 = arith.mulf %227, %226 : vector<3x16x16xf32>
    %229 = arith.addf %207, %228 : vector<3x16x16xf32>
    %230 = arith.mulf %219, %219 : vector<3x16x16xf32>
    %cst_153 = arith.constant 0.00102838012 : f32
    %231 = vector.broadcast %cst_153 : f32 to vector<3x16x16xf32>
    %232 = arith.mulf %231, %230 : vector<3x16x16xf32>
    %233 = arith.addf %211, %232 : vector<3x16x16xf32>
    %234 = arith.mulf %217, %219 : vector<3x16x16xf32>
    %cst_154 = arith.constant 0.00102838012 : f32
    %235 = vector.broadcast %cst_154 : f32 to vector<3x16x16xf32>
    %236 = arith.mulf %235, %234 : vector<3x16x16xf32>
    %237 = arith.addf %215, %236 : vector<3x16x16xf32>
    %238 = vector.shape_cast %222 : vector<3x16x16xf32> to vector<48x16xf32>
    %cst_155 = arith.constant dense<0.000000e+00> : vector<48x16xf32>
    %239 = tpu.matmul %238, %0, %cst_155 {dimension_numbers = #tpu.dot_dimension_numbers<[1], [0], [0], [1], [0, 0, 1, 1], [], []>, precision = #tpu.contract_precision<fp32>} : vector<48x16xf32>, vector<16x16xf32>, vector<48x16xf32> -> vector<48x16xf32>
    %240 = vector.shape_cast %225 : vector<3x16x16xf32> to vector<48x16xf32>
    %cst_156 = arith.constant dense<0.000000e+00> : vector<48x16xf32>
    %241 = tpu.matmul %240, %0, %cst_156 {dimension_numbers = #tpu.dot_dimension_numbers<[1], [0], [0], [1], [0, 0, 1, 1], [], []>, precision = #tpu.contract_precision<fp32>} : vector<48x16xf32>, vector<16x16xf32>, vector<48x16xf32> -> vector<48x16xf32>
    %242 = vector.shape_cast %229 : vector<3x16x16xf32> to vector<48x16xf32>
    %cst_157 = arith.constant dense<0.000000e+00> : vector<48x16xf32>
    %243 = tpu.matmul %242, %0, %cst_157 {dimension_numbers = #tpu.dot_dimension_numbers<[1], [0], [0], [1], [0, 0, 1, 1], [], []>, precision = #tpu.contract_precision<fp32>} : vector<48x16xf32>, vector<16x16xf32>, vector<48x16xf32> -> vector<48x16xf32>
    %244 = vector.shape_cast %233 : vector<3x16x16xf32> to vector<48x16xf32>
    %cst_158 = arith.constant dense<0.000000e+00> : vector<48x16xf32>
    %245 = tpu.matmul %244, %0, %cst_158 {dimension_numbers = #tpu.dot_dimension_numbers<[1], [0], [0], [1], [0, 0, 1, 1], [], []>, precision = #tpu.contract_precision<fp32>} : vector<48x16xf32>, vector<16x16xf32>, vector<48x16xf32> -> vector<48x16xf32>
    %246 = vector.shape_cast %237 : vector<3x16x16xf32> to vector<48x16xf32>
    %cst_159 = arith.constant dense<0.000000e+00> : vector<48x16xf32>
    %247 = tpu.matmul %246, %0, %cst_159 {dimension_numbers = #tpu.dot_dimension_numbers<[1], [0], [0], [1], [0, 0, 1, 1], [], []>, precision = #tpu.contract_precision<fp32>} : vector<48x16xf32>, vector<16x16xf32>, vector<48x16xf32> -> vector<48x16xf32>
    %248 = arith.mulf %239, %239 : vector<48x16xf32>
    %249 = arith.mulf %241, %241 : vector<48x16xf32>
    %250 = arith.mulf %239, %241 : vector<48x16xf32>
    %251 = arith.subf %243, %248 : vector<48x16xf32>
    %252 = arith.subf %245, %249 : vector<48x16xf32>
    %253 = arith.subf %247, %250 : vector<48x16xf32>
    %cst_160 = arith.constant 2.000000e+00 : f32
    %254 = vector.broadcast %cst_160 : f32 to vector<48x16xf32>
    %255 = arith.mulf %254, %250 : vector<48x16xf32>
    %cst_161 = arith.constant 9.99999974E-5 : f32
    %256 = vector.broadcast %cst_161 : f32 to vector<48x16xf32>
    %257 = arith.addf %255, %256 : vector<48x16xf32>
    %cst_162 = arith.constant 2.000000e+00 : f32
    %258 = vector.broadcast %cst_162 : f32 to vector<48x16xf32>
    %259 = arith.mulf %258, %253 : vector<48x16xf32>
    %cst_163 = arith.constant 8.99999984E-4 : f32
    %260 = vector.broadcast %cst_163 : f32 to vector<48x16xf32>
    %261 = arith.addf %259, %260 : vector<48x16xf32>
    %262 = arith.mulf %257, %261 : vector<48x16xf32>
    %263 = arith.addf %248, %249 : vector<48x16xf32>
    %cst_164 = arith.constant 9.99999974E-5 : f32
    %264 = vector.broadcast %cst_164 : f32 to vector<48x16xf32>
    %265 = arith.addf %263, %264 : vector<48x16xf32>
    %266 = arith.addf %251, %252 : vector<48x16xf32>
    %cst_165 = arith.constant 8.99999984E-4 : f32
    %267 = vector.broadcast %cst_165 : f32 to vector<48x16xf32>
    %268 = arith.addf %266, %267 : vector<48x16xf32>
    %269 = arith.mulf %265, %268 : vector<48x16xf32>
    %270 = arith.divf %262, %269 : vector<48x16xf32>
    %271 = vector.shape_cast %270 : vector<48x16xf32> to vector<1x48x16xf32>
    %cst_166 = arith.constant dense<0.000000e+00> : vector<1xf32>
    %272 = vector.multi_reduction <add>, %271, %cst_166 [1, 2] : vector<1x48x16xf32> to vector<1xf32>
    %273 = vector.shape_cast %272 : vector<1xf32> to vector<1x1x1xf32>
    %274 = vector.extract %273[0, 0, 0] : f32 from vector<1x1x1xf32>
    %275 = vector.broadcast %274 : f32 to vector<1x1xf32>
    %c0_167 = arith.constant 0 : index
    %c0_168 = arith.constant 0 : index
    %c0_169 = arith.constant 0 : index
    %c0_170 = arith.constant 0 : index
    %276 = vector.load %arg5[%c0_167, %c0_168, %c0_169, %c0_170] : memref<1x1x1x1xf32, #tpu.memory_space<vmem>>, vector<1x1x1x1xf32>
    %277 = vector.shape_cast %276 : vector<1x1x1x1xf32> to vector<1x1xf32>
    %278 = vector.shape_cast %275 : vector<1x1xf32> to vector<1x1x1x1xf32>
    tpu.vector_store %arg5[%c0_167, %c0_168, %c0_169, %c0_170], %278 {strides = array<i32>} : memref<1x1x1x1xf32, #tpu.memory_space<vmem>>, vector<1x1x1x1xf32>,
    return
  }
  func.func @transform_0(%arg0: i32, %arg1: i32) -> (i32, i32) {
    %c0_i32 = arith.constant 0 : i32
    %c0_i32_0 = arith.constant 0 : i32
    %c0_i32_1 = arith.constant 0 : i32
    return %c0_i32, %c0_i32_0 : i32, i32
  }
  func.func @transform_1(%arg0: i32, %arg1: i32) -> (i32, i32, i32, i32, i32) {
    %c0_i32 = arith.constant 0 : i32
    %c0_i32_0 = arith.constant 0 : i32
    %c0_i32_1 = arith.constant 0 : i32
    %c0_i32_2 = arith.constant 0 : i32
    return %arg0, %c0_i32, %arg1, %c0_i32_0, %c0_i32_1 : i32, i32, i32, i32, i32
  }
  func.func @transform_2(%arg0: i32, %arg1: i32) -> (i32, i32, i32, i32, i32) {
    %c0_i32 = arith.constant 0 : i32
    %c0_i32_0 = arith.constant 0 : i32
    %c0_i32_1 = arith.constant 0 : i32
    %c0_i32_2 = arith.constant 0 : i32
    return %arg0, %c0_i32, %arg1, %c0_i32_0, %c0_i32_1 : i32, i32, i32, i32, i32
  }
  func.func @transform_3(%arg0: i32, %arg1: i32) -> (i32, i32, i32, i32) {
    %c0_i32 = arith.constant 0 : i32
    %c0_i32_0 = arith.constant 0 : i32
    %c0_i32_1 = arith.constant 0 : i32
    return %arg0, %arg1, %c0_i32, %c0_i32_0 : i32, i32, i32, i32
  }
}

module attributes {stable_mosaic.version = 11 : i64} {
  func.func @kernel(%arg0: i32, %arg1: i32, %arg2: memref<16x16xf32, #tpu.memory_space<vmem>>, %arg3: memref<1x3x1x26x16xf32, #tpu.memory_space<vmem>>, %arg4: memref<1x3x1x26x16xf32, #tpu.memory_space<vmem>>, %arg5: memref<1x1x1x1xf32, #tpu.memory_space<vmem>>) attributes {dimension_semantics = [#tpu.dimension_semantics<parallel>, #tpu.dimension_semantics<parallel>], iteration_bounds = array<i64: 2, 1>, scalar_prefetch = 0 : i64, scratch_operands = 0 : i64, tpu.core_type = #tpu.core_type<tc>, window_params = [{pipeline_mode = #tpu.pipeline_mode<synchronous>, transform_indices = @transform_0, window_bounds = array<i64: 16, 16>}, {transform_indices = @transform_1, window_bounds = array<i64: 1, 3, 1, 26, 16>}, {transform_indices = @transform_2, window_bounds = array<i64: 1, 3, 1, 26, 16>}, {transform_indices = @transform_3, window_bounds = array<i64: 1, 1, 1, 1>}]} {
    %c0 = arith.constant 0 : index
    %c0_0 = arith.constant 0 : index
    %0 = vector.load %arg2[%c0, %c0_0] : memref<16x16xf32, #tpu.memory_space<vmem>>, vector<16x16xf32>
    %c0_1 = arith.constant 0 : index
    %c0_2 = arith.constant 0 : index
    %c0_3 = arith.constant 0 : index
    %c0_4 = arith.constant 0 : index
    %c0_5 = arith.constant 0 : index
    %1 = vector.load %arg3[%c0_1, %c0_2, %c0_3, %c0_4, %c0_5] : memref<1x3x1x26x16xf32, #tpu.memory_space<vmem>>, vector<1x3x1x16x16xf32>
    %2 = vector.shape_cast %1 : vector<1x3x1x16x16xf32> to vector<3x16x16xf32>
    %c0_6 = arith.constant 0 : index
    %c0_7 = arith.constant 0 : index
    %c0_8 = arith.constant 0 : index
    %c0_9 = arith.constant 0 : index
    %c0_10 = arith.constant 0 : index
    %3 = vector.load %arg4[%c0_6, %c0_7, %c0_8, %c0_9, %c0_10] : memref<1x3x1x26x16xf32, #tpu.memory_space<vmem>>, vector<1x3x1x16x16xf32>
    %4 = vector.shape_cast %3 : vector<1x3x1x16x16xf32> to vector<3x16x16xf32>
    %cst = arith.constant 0.00102838012 : f32
    %5 = vector.broadcast %cst : f32 to vector<3x16x16xf32>
    %6 = arith.mulf %5, %2 : vector<3x16x16xf32>
    %cst_11 = arith.constant 0.00102838012 : f32
    %7 = vector.broadcast %cst_11 : f32 to vector<3x16x16xf32>
    %8 = arith.mulf %7, %4 : vector<3x16x16xf32>
    %9 = arith.mulf %2, %2 : vector<3x16x16xf32>
    %cst_12 = arith.constant 0.00102838012 : f32
    %10 = vector.broadcast %cst_12 : f32 to vector<3x16x16xf32>
    %11 = arith.mulf %10, %9 : vector<3x16x16xf32>
    %12 = arith.mulf %4, %4 : vector<3x16x16xf32>
    %cst_13 = arith.constant 0.00102838012 : f32
    %13 = vector.broadcast %cst_13 : f32 to vector<3x16x16xf32>
    %14 = arith.mulf %13, %12 : vector<3x16x16xf32>
    %15 = arith.mulf %2, %4 : vector<3x16x16xf32>
    %cst_14 = arith.constant 0.00102838012 : f32
    %16 = vector.broadcast %cst_14 : f32 to vector<3x16x16xf32>
    %17 = arith.mulf %16, %15 : vector<3x16x16xf32>
    %c0_15 = arith.constant 0 : index
    %c0_16 = arith.constant 0 : index
    %c0_17 = arith.constant 0 : index
    %c1 = arith.constant 1 : index
    %c0_18 = arith.constant 0 : index
    %18 = vector.load %arg3[%c0_15, %c0_16, %c0_17, %c1, %c0_18] : memref<1x3x1x26x16xf32, #tpu.memory_space<vmem>>, vector<1x3x1x16x16xf32>
    %19 = vector.shape_cast %18 : vector<1x3x1x16x16xf32> to vector<3x16x16xf32>
    %c0_19 = arith.constant 0 : index
    %c0_20 = arith.constant 0 : index
    %c0_21 = arith.constant 0 : index
    %c1_22 = arith.constant 1 : index
    %c0_23 = arith.constant 0 : index
    %20 = vector.load %arg4[%c0_19, %c0_20, %c0_21, %c1_22, %c0_23] : memref<1x3x1x26x16xf32, #tpu.memory_space<vmem>>, vector<1x3x1x16x16xf32>
    %21 = vector.shape_cast %20 : vector<1x3x1x16x16xf32> to vector<3x16x16xf32>
    %cst_24 = arith.constant 0.00759875821 : f32
    %22 = vector.broadcast %cst_24 : f32 to vector<3x16x16xf32>
    %23 = arith.mulf %22, %19 : vector<3x16x16xf32>
    %24 = arith.addf %6, %23 : vector<3x16x16xf32>
    %cst_25 = arith.constant 0.00759875821 : f32
    %25 = vector.broadcast %cst_25 : f32 to vector<3x16x16xf32>
    %26 = arith.mulf %25, %21 : vector<3x16x16xf32>
    %27 = arith.addf %8, %26 : vector<3x16x16xf32>
    %28 = arith.mulf %19, %19 : vector<3x16x16xf32>
    %cst_26 = arith.constant 0.00759875821 : f32
    %29 = vector.broadcast %cst_26 : f32 to vector<3x16x16xf32>
    %30 = arith.mulf %29, %28 : vector<3x16x16xf32>
    %31 = arith.addf %11, %30 : vector<3x16x16xf32>
    %32 = arith.mulf %21, %21 : vector<3x16x16xf32>
    %cst_27 = arith.constant 0.00759875821 : f32
    %33 = vector.broadcast %cst_27 : f32 to vector<3x16x16xf32>
    %34 = arith.mulf %33, %32 : vector<3x16x16xf32>
    %35 = arith.addf %14, %34 : vector<3x16x16xf32>
    %36 = arith.mulf %19, %21 : vector<3x16x16xf32>
    %cst_28 = arith.constant 0.00759875821 : f32
    %37 = vector.broadcast %cst_28 : f32 to vector<3x16x16xf32>
    %38 = arith.mulf %37, %36 : vector<3x16x16xf32>
    %39 = arith.addf %17, %38 : vector<3x16x16xf32>
    %c0_29 = arith.constant 0 : index
    %c0_30 = arith.constant 0 : index
    %c0_31 = arith.constant 0 : index
    %c2 = arith.constant 2 : index
    %c0_32 = arith.constant 0 : index
    %40 = vector.load %arg3[%c0_29, %c0_30, %c0_31, %c2, %c0_32] : memref<1x3x1x26x16xf32, #tpu.memory_space<vmem>>, vector<1x3x1x16x16xf32>
    %41 = vector.shape_cast %40 : vector<1x3x1x16x16xf32> to vector<3x16x16xf32>
    %c0_33 = arith.constant 0 : index
    %c0_34 = arith.constant 0 : index
    %c0_35 = arith.constant 0 : index
    %c2_36 = arith.constant 2 : index
    %c0_37 = arith.constant 0 : index
    %42 = vector.load %arg4[%c0_33, %c0_34, %c0_35, %c2_36, %c0_37] : memref<1x3x1x26x16xf32, #tpu.memory_space<vmem>>, vector<1x3x1x16x16xf32>
    %43 = vector.shape_cast %42 : vector<1x3x1x16x16xf32> to vector<3x16x16xf32>
    %cst_38 = arith.constant 0.0360007733 : f32
    %44 = vector.broadcast %cst_38 : f32 to vector<3x16x16xf32>
    %45 = arith.mulf %44, %41 : vector<3x16x16xf32>
    %46 = arith.addf %24, %45 : vector<3x16x16xf32>
    %cst_39 = arith.constant 0.0360007733 : f32
    %47 = vector.broadcast %cst_39 : f32 to vector<3x16x16xf32>
    %48 = arith.mulf %47, %43 : vector<3x16x16xf32>
    %49 = arith.addf %27, %48 : vector<3x16x16xf32>
    %50 = arith.mulf %41, %41 : vector<3x16x16xf32>
    %cst_40 = arith.constant 0.0360007733 : f32
    %51 = vector.broadcast %cst_40 : f32 to vector<3x16x16xf32>
    %52 = arith.mulf %51, %50 : vector<3x16x16xf32>
    %53 = arith.addf %31, %52 : vector<3x16x16xf32>
    %54 = arith.mulf %43, %43 : vector<3x16x16xf32>
    %cst_41 = arith.constant 0.0360007733 : f32
    %55 = vector.broadcast %cst_41 : f32 to vector<3x16x16xf32>
    %56 = arith.mulf %55, %54 : vector<3x16x16xf32>
    %57 = arith.addf %35, %56 : vector<3x16x16xf32>
    %58 = arith.mulf %41, %43 : vector<3x16x16xf32>
    %cst_42 = arith.constant 0.0360007733 : f32
    %59 = vector.broadcast %cst_42 : f32 to vector<3x16x16xf32>
    %60 = arith.mulf %59, %58 : vector<3x16x16xf32>
    %61 = arith.addf %39, %60 : vector<3x16x16xf32>
    %c0_43 = arith.constant 0 : index
    %c0_44 = arith.constant 0 : index
    %c0_45 = arith.constant 0 : index
    %c3 = arith.constant 3 : index
    %c0_46 = arith.constant 0 : index
    %62 = vector.load %arg3[%c0_43, %c0_44, %c0_45, %c3, %c0_46] : memref<1x3x1x26x16xf32, #tpu.memory_space<vmem>>, vector<1x3x1x16x16xf32>
    %63 = vector.shape_cast %62 : vector<1x3x1x16x16xf32> to vector<3x16x16xf32>
    %c0_47 = arith.constant 0 : index
    %c0_48 = arith.constant 0 : index
    %c0_49 = arith.constant 0 : index
    %c3_50 = arith.constant 3 : index
    %c0_51 = arith.constant 0 : index
    %64 = vector.load %arg4[%c0_47, %c0_48, %c0_49, %c3_50, %c0_51] : memref<1x3x1x26x16xf32, #tpu.memory_space<vmem>>, vector<1x3x1x16x16xf32>
    %65 = vector.shape_cast %64 : vector<1x3x1x16x16xf32> to vector<3x16x16xf32>
    %cst_52 = arith.constant 0.109360687 : f32
    %66 = vector.broadcast %cst_52 : f32 to vector<3x16x16xf32>
    %67 = arith.mulf %66, %63 : vector<3x16x16xf32>
    %68 = arith.addf %46, %67 : vector<3x16x16xf32>
    %cst_53 = arith.constant 0.109360687 : f32
    %69 = vector.broadcast %cst_53 : f32 to vector<3x16x16xf32>
    %70 = arith.mulf %69, %65 : vector<3x16x16xf32>
    %71 = arith.addf %49, %70 : vector<3x16x16xf32>
    %72 = arith.mulf %63, %63 : vector<3x16x16xf32>
    %cst_54 = arith.constant 0.109360687 : f32
    %73 = vector.broadcast %cst_54 : f32 to vector<3x16x16xf32>
    %74 = arith.mulf %73, %72 : vector<3x16x16xf32>
    %75 = arith.addf %53, %74 : vector<3x16x16xf32>
    %76 = arith.mulf %65, %65 : vector<3x16x16xf32>
    %cst_55 = arith.constant 0.109360687 : f32
    %77 = vector.broadcast %cst_55 : f32 to vector<3x16x16xf32>
    %78 = arith.mulf %77, %76 : vector<3x16x16xf32>
    %79 = arith.addf %57, %78 : vector<3x16x16xf32>
    %80 = arith.mulf %63, %65 : vector<3x16x16xf32>
    %cst_56 = arith.constant 0.109360687 : f32
    %81 = vector.broadcast %cst_56 : f32 to vector<3x16x16xf32>
    %82 = arith.mulf %81, %80 : vector<3x16x16xf32>
    %83 = arith.addf %61, %82 : vector<3x16x16xf32>
    %c0_57 = arith.constant 0 : index
    %c0_58 = arith.constant 0 : index
    %c0_59 = arith.constant 0 : index
    %c4 = arith.constant 4 : index
    %c0_60 = arith.constant 0 : index
    %84 = vector.load %arg3[%c0_57, %c0_58, %c0_59, %c4, %c0_60] : memref<1x3x1x26x16xf32, #tpu.memory_space<vmem>>, vector<1x3x1x16x16xf32>
    %85 = vector.shape_cast %84 : vector<1x3x1x16x16xf32> to vector<3x16x16xf32>
    %c0_61 = arith.constant 0 : index
    %c0_62 = arith.constant 0 : index
    %c0_63 = arith.constant 0 : index
    %c4_64 = arith.constant 4 : index
    %c0_65 = arith.constant 0 : index
    %86 = vector.load %arg4[%c0_61, %c0_62, %c0_63, %c4_64, %c0_65] : memref<1x3x1x26x16xf32, #tpu.memory_space<vmem>>, vector<1x3x1x16x16xf32>
    %87 = vector.shape_cast %86 : vector<1x3x1x16x16xf32> to vector<3x16x16xf32>
    %cst_66 = arith.constant 0.213005543 : f32
    %88 = vector.broadcast %cst_66 : f32 to vector<3x16x16xf32>
    %89 = arith.mulf %88, %85 : vector<3x16x16xf32>
    %90 = arith.addf %68, %89 : vector<3x16x16xf32>
    %cst_67 = arith.constant 0.213005543 : f32
    %91 = vector.broadcast %cst_67 : f32 to vector<3x16x16xf32>
    %92 = arith.mulf %91, %87 : vector<3x16x16xf32>
    %93 = arith.addf %71, %92 : vector<3x16x16xf32>
    %94 = arith.mulf %85, %85 : vector<3x16x16xf32>
    %cst_68 = arith.constant 0.213005543 : f32
    %95 = vector.broadcast %cst_68 : f32 to vector<3x16x16xf32>
    %96 = arith.mulf %95, %94 : vector<3x16x16xf32>
    %97 = arith.addf %75, %96 : vector<3x16x16xf32>
    %98 = arith.mulf %87, %87 : vector<3x16x16xf32>
    %cst_69 = arith.constant 0.213005543 : f32
    %99 = vector.broadcast %cst_69 : f32 to vector<3x16x16xf32>
    %100 = arith.mulf %99, %98 : vector<3x16x16xf32>
    %101 = arith.addf %79, %100 : vector<3x16x16xf32>
    %102 = arith.mulf %85, %87 : vector<3x16x16xf32>
    %cst_70 = arith.constant 0.213005543 : f32
    %103 = vector.broadcast %cst_70 : f32 to vector<3x16x16xf32>
    %104 = arith.mulf %103, %102 : vector<3x16x16xf32>
    %105 = arith.addf %83, %104 : vector<3x16x16xf32>
    %c0_71 = arith.constant 0 : index
    %c0_72 = arith.constant 0 : index
    %c0_73 = arith.constant 0 : index
    %c5 = arith.constant 5 : index
    %c0_74 = arith.constant 0 : index
    %106 = vector.load %arg3[%c0_71, %c0_72, %c0_73, %c5, %c0_74] : memref<1x3x1x26x16xf32, #tpu.memory_space<vmem>>, vector<1x3x1x16x16xf32>
    %107 = vector.shape_cast %106 : vector<1x3x1x16x16xf32> to vector<3x16x16xf32>
    %c0_75 = arith.constant 0 : index
    %c0_76 = arith.constant 0 : index
    %c0_77 = arith.constant 0 : index
    %c5_78 = arith.constant 5 : index
    %c0_79 = arith.constant 0 : index
    %108 = vector.load %arg4[%c0_75, %c0_76, %c0_77, %c5_78, %c0_79] : memref<1x3x1x26x16xf32, #tpu.memory_space<vmem>>, vector<1x3x1x16x16xf32>
    %109 = vector.shape_cast %108 : vector<1x3x1x16x16xf32> to vector<3x16x16xf32>
    %cst_80 = arith.constant 0.266011715 : f32
    %110 = vector.broadcast %cst_80 : f32 to vector<3x16x16xf32>
    %111 = arith.mulf %110, %107 : vector<3x16x16xf32>
    %112 = arith.addf %90, %111 : vector<3x16x16xf32>
    %cst_81 = arith.constant 0.266011715 : f32
    %113 = vector.broadcast %cst_81 : f32 to vector<3x16x16xf32>
    %114 = arith.mulf %113, %109 : vector<3x16x16xf32>
    %115 = arith.addf %93, %114 : vector<3x16x16xf32>
    %116 = arith.mulf %107, %107 : vector<3x16x16xf32>
    %cst_82 = arith.constant 0.266011715 : f32
    %117 = vector.broadcast %cst_82 : f32 to vector<3x16x16xf32>
    %118 = arith.mulf %117, %116 : vector<3x16x16xf32>
    %119 = arith.addf %97, %118 : vector<3x16x16xf32>
    %120 = arith.mulf %109, %109 : vector<3x16x16xf32>
    %cst_83 = arith.constant 0.266011715 : f32
    %121 = vector.broadcast %cst_83 : f32 to vector<3x16x16xf32>
    %122 = arith.mulf %121, %120 : vector<3x16x16xf32>
    %123 = arith.addf %101, %122 : vector<3x16x16xf32>
    %124 = arith.mulf %107, %109 : vector<3x16x16xf32>
    %cst_84 = arith.constant 0.266011715 : f32
    %125 = vector.broadcast %cst_84 : f32 to vector<3x16x16xf32>
    %126 = arith.mulf %125, %124 : vector<3x16x16xf32>
    %127 = arith.addf %105, %126 : vector<3x16x16xf32>
    %c0_85 = arith.constant 0 : index
    %c0_86 = arith.constant 0 : index
    %c0_87 = arith.constant 0 : index
    %c6 = arith.constant 6 : index
    %c0_88 = arith.constant 0 : index
    %128 = vector.load %arg3[%c0_85, %c0_86, %c0_87, %c6, %c0_88] : memref<1x3x1x26x16xf32, #tpu.memory_space<vmem>>, vector<1x3x1x16x16xf32>
    %129 = vector.shape_cast %128 : vector<1x3x1x16x16xf32> to vector<3x16x16xf32>
    %c0_89 = arith.constant 0 : index
    %c0_90 = arith.constant 0 : index
    %c0_91 = arith.constant 0 : index
    %c6_92 = arith.constant 6 : index
    %c0_93 = arith.constant 0 : index
    %130 = vector.load %arg4[%c0_89, %c0_90, %c0_91, %c6_92, %c0_93] : memref<1x3x1x26x16xf32, #tpu.memory_space<vmem>>, vector<1x3x1x16x16xf32>
    %131 = vector.shape_cast %130 : vector<1x3x1x16x16xf32> to vector<3x16x16xf32>
    %cst_94 = arith.constant 0.213005543 : f32
    %132 = vector.broadcast %cst_94 : f32 to vector<3x16x16xf32>
    %133 = arith.mulf %132, %129 : vector<3x16x16xf32>
    %134 = arith.addf %112, %133 : vector<3x16x16xf32>
    %cst_95 = arith.constant 0.213005543 : f32
    %135 = vector.broadcast %cst_95 : f32 to vector<3x16x16xf32>
    %136 = arith.mulf %135, %131 : vector<3x16x16xf32>
    %137 = arith.addf %115, %136 : vector<3x16x16xf32>
    %138 = arith.mulf %129, %129 : vector<3x16x16xf32>
    %cst_96 = arith.constant 0.213005543 : f32
    %139 = vector.broadcast %cst_96 : f32 to vector<3x16x16xf32>
    %140 = arith.mulf %139, %138 : vector<3x16x16xf32>
    %141 = arith.addf %119, %140 : vector<3x16x16xf32>
    %142 = arith.mulf %131, %131 : vector<3x16x16xf32>
    %cst_97 = arith.constant 0.213005543 : f32
    %143 = vector.broadcast %cst_97 : f32 to vector<3x16x16xf32>
    %144 = arith.mulf %143, %142 : vector<3x16x16xf32>
    %145 = arith.addf %123, %144 : vector<3x16x16xf32>
    %146 = arith.mulf %129, %131 : vector<3x16x16xf32>
    %cst_98 = arith.constant 0.213005543 : f32
    %147 = vector.broadcast %cst_98 : f32 to vector<3x16x16xf32>
    %148 = arith.mulf %147, %146 : vector<3x16x16xf32>
    %149 = arith.addf %127, %148 : vector<3x16x16xf32>
    %c0_99 = arith.constant 0 : index
    %c0_100 = arith.constant 0 : index
    %c0_101 = arith.constant 0 : index
    %c7 = arith.constant 7 : index
    %c0_102 = arith.constant 0 : index
    %150 = vector.load %arg3[%c0_99, %c0_100, %c0_101, %c7, %c0_102] : memref<1x3x1x26x16xf32, #tpu.memory_space<vmem>>, vector<1x3x1x16x16xf32>
    %151 = vector.shape_cast %150 : vector<1x3x1x16x16xf32> to vector<3x16x16xf32>
    %c0_103 = arith.constant 0 : index
    %c0_104 = arith.constant 0 : index
    %c0_105 = arith.constant 0 : index
    %c7_106 = arith.constant 7 : index
    %c0_107 = arith.constant 0 : index
    %152 = vector.load %arg4[%c0_103, %c0_104, %c0_105, %c7_106, %c0_107] : memref<1x3x1x26x16xf32, #tpu.memory_space<vmem>>, vector<1x3x1x16x16xf32>
    %153 = vector.shape_cast %152 : vector<1x3x1x16x16xf32> to vector<3x16x16xf32>
    %cst_108 = arith.constant 0.109360687 : f32
    %154 = vector.broadcast %cst_108 : f32 to vector<3x16x16xf32>
    %155 = arith.mulf %154, %151 : vector<3x16x16xf32>
    %156 = arith.addf %134, %155 : vector<3x16x16xf32>
    %cst_109 = arith.constant 0.109360687 : f32
    %157 = vector.broadcast %cst_109 : f32 to vector<3x16x16xf32>
    %158 = arith.mulf %157, %153 : vector<3x16x16xf32>
    %159 = arith.addf %137, %158 : vector<3x16x16xf32>
    %160 = arith.mulf %151, %151 : vector<3x16x16xf32>
    %cst_110 = arith.constant 0.109360687 : f32
    %161 = vector.broadcast %cst_110 : f32 to vector<3x16x16xf32>
    %162 = arith.mulf %161, %160 : vector<3x16x16xf32>
    %163 = arith.addf %141, %162 : vector<3x16x16xf32>
    %164 = arith.mulf %153, %153 : vector<3x16x16xf32>
    %cst_111 = arith.constant 0.109360687 : f32
    %165 = vector.broadcast %cst_111 : f32 to vector<3x16x16xf32>
    %166 = arith.mulf %165, %164 : vector<3x16x16xf32>
    %167 = arith.addf %145, %166 : vector<3x16x16xf32>
    %168 = arith.mulf %151, %153 : vector<3x16x16xf32>
    %cst_112 = arith.constant 0.109360687 : f32
    %169 = vector.broadcast %cst_112 : f32 to vector<3x16x16xf32>
    %170 = arith.mulf %169, %168 : vector<3x16x16xf32>
    %171 = arith.addf %149, %170 : vector<3x16x16xf32>
    %c0_113 = arith.constant 0 : index
    %c0_114 = arith.constant 0 : index
    %c0_115 = arith.constant 0 : index
    %c8 = arith.constant 8 : index
    %c0_116 = arith.constant 0 : index
    %172 = vector.load %arg3[%c0_113, %c0_114, %c0_115, %c8, %c0_116] : memref<1x3x1x26x16xf32, #tpu.memory_space<vmem>>, vector<1x3x1x16x16xf32>
    %173 = vector.shape_cast %172 : vector<1x3x1x16x16xf32> to vector<3x16x16xf32>
    %c0_117 = arith.constant 0 : index
    %c0_118 = arith.constant 0 : index
    %c0_119 = arith.constant 0 : index
    %c8_120 = arith.constant 8 : index
    %c0_121 = arith.constant 0 : index
    %174 = vector.load %arg4[%c0_117, %c0_118, %c0_119, %c8_120, %c0_121] : memref<1x3x1x26x16xf32, #tpu.memory_space<vmem>>, vector<1x3x1x16x16xf32>
    %175 = vector.shape_cast %174 : vector<1x3x1x16x16xf32> to vector<3x16x16xf32>
    %cst_122 = arith.constant 0.0360007733 : f32
    %176 = vector.broadcast %cst_122 : f32 to vector<3x16x16xf32>
    %177 = arith.mulf %176, %173 : vector<3x16x16xf32>
    %178 = arith.addf %156, %177 : vector<3x16x16xf32>
    %cst_123 = arith.constant 0.0360007733 : f32
    %179 = vector.broadcast %cst_123 : f32 to vector<3x16x16xf32>
    %180 = arith.mulf %179, %175 : vector<3x16x16xf32>
    %181 = arith.addf %159, %180 : vector<3x16x16xf32>
    %182 = arith.mulf %173, %173 : vector<3x16x16xf32>
    %cst_124 = arith.constant 0.0360007733 : f32
    %183 = vector.broadcast %cst_124 : f32 to vector<3x16x16xf32>
    %184 = arith.mulf %183, %182 : vector<3x16x16xf32>
    %185 = arith.addf %163, %184 : vector<3x16x16xf32>
    %186 = arith.mulf %175, %175 : vector<3x16x16xf32>
    %cst_125 = arith.constant 0.0360007733 : f32
    %187 = vector.broadcast %cst_125 : f32 to vector<3x16x16xf32>
    %188 = arith.mulf %187, %186 : vector<3x16x16xf32>
    %189 = arith.addf %167, %188 : vector<3x16x16xf32>
    %190 = arith.mulf %173, %175 : vector<3x16x16xf32>
    %cst_126 = arith.constant 0.0360007733 : f32
    %191 = vector.broadcast %cst_126 : f32 to vector<3x16x16xf32>
    %192 = arith.mulf %191, %190 : vector<3x16x16xf32>
    %193 = arith.addf %171, %192 : vector<3x16x16xf32>
    %c0_127 = arith.constant 0 : index
    %c0_128 = arith.constant 0 : index
    %c0_129 = arith.constant 0 : index
    %c9 = arith.constant 9 : index
    %c0_130 = arith.constant 0 : index
    %194 = vector.load %arg3[%c0_127, %c0_128, %c0_129, %c9, %c0_130] : memref<1x3x1x26x16xf32, #tpu.memory_space<vmem>>, vector<1x3x1x16x16xf32>
    %195 = vector.shape_cast %194 : vector<1x3x1x16x16xf32> to vector<3x16x16xf32>
    %c0_131 = arith.constant 0 : index
    %c0_132 = arith.constant 0 : index
    %c0_133 = arith.constant 0 : index
    %c9_134 = arith.constant 9 : index
    %c0_135 = arith.constant 0 : index
    %196 = vector.load %arg4[%c0_131, %c0_132, %c0_133, %c9_134, %c0_135] : memref<1x3x1x26x16xf32, #tpu.memory_space<vmem>>, vector<1x3x1x16x16xf32>
    %197 = vector.shape_cast %196 : vector<1x3x1x16x16xf32> to vector<3x16x16xf32>
    %cst_136 = arith.constant 0.00759875821 : f32
    %198 = vector.broadcast %cst_136 : f32 to vector<3x16x16xf32>
    %199 = arith.mulf %198, %195 : vector<3x16x16xf32>
    %200 = arith.addf %178, %199 : vector<3x16x16xf32>
    %cst_137 = arith.constant 0.00759875821 : f32
    %201 = vector.broadcast %cst_137 : f32 to vector<3x16x16xf32>
    %202 = arith.mulf %201, %197 : vector<3x16x16xf32>
    %203 = arith.addf %181, %202 : vector<3x16x16xf32>
    %204 = arith.mulf %195, %195 : vector<3x16x16xf32>
    %cst_138 = arith.constant 0.00759875821 : f32
    %205 = vector.broadcast %cst_138 : f32 to vector<3x16x16xf32>
    %206 = arith.mulf %205, %204 : vector<3x16x16xf32>
    %207 = arith.addf %185, %206 : vector<3x16x16xf32>
    %208 = arith.mulf %197, %197 : vector<3x16x16xf32>
    %cst_139 = arith.constant 0.00759875821 : f32
    %209 = vector.broadcast %cst_139 : f32 to vector<3x16x16xf32>
    %210 = arith.mulf %209, %208 : vector<3x16x16xf32>
    %211 = arith.addf %189, %210 : vector<3x16x16xf32>
    %212 = arith.mulf %195, %197 : vector<3x16x16xf32>
    %cst_140 = arith.constant 0.00759875821 : f32
    %213 = vector.broadcast %cst_140 : f32 to vector<3x16x16xf32>
    %214 = arith.mulf %213, %212 : vector<3x16x16xf32>
    %215 = arith.addf %193, %214 : vector<3x16x16xf32>
    %c0_141 = arith.constant 0 : index
    %c0_142 = arith.constant 0 : index
    %c0_143 = arith.constant 0 : index
    %c10 = arith.constant 10 : index
    %c0_144 = arith.constant 0 : index
    %216 = vector.load %arg3[%c0_141, %c0_142, %c0_143, %c10, %c0_144] : memref<1x3x1x26x16xf32, #tpu.memory_space<vmem>>, vector<1x3x1x16x16xf32>
    %217 = vector.shape_cast %216 : vector<1x3x1x16x16xf32> to vector<3x16x16xf32>
    %c0_145 = arith.constant 0 : index
    %c0_146 = arith.constant 0 : index
    %c0_147 = arith.constant 0 : index
    %c10_148 = arith.constant 10 : index
    %c0_149 = arith.constant 0 : index
    %218 = vector.load %arg4[%c0_145, %c0_146, %c0_147, %c10_148, %c0_149] : memref<1x3x1x26x16xf32, #tpu.memory_space<vmem>>, vector<1x3x1x16x16xf32>
    %219 = vector.shape_cast %218 : vector<1x3x1x16x16xf32> to vector<3x16x16xf32>
    %cst_150 = arith.constant 0.00102838012 : f32
    %220 = vector.broadcast %cst_150 : f32 to vector<3x16x16xf32>
    %221 = arith.mulf %220, %217 : vector<3x16x16xf32>
    %222 = arith.addf %200, %221 : vector<3x16x16xf32>
    %cst_151 = arith.constant 0.00102838012 : f32
    %223 = vector.broadcast %cst_151 : f32 to vector<3x16x16xf32>
    %224 = arith.mulf %223, %219 : vector<3x16x16xf32>
    %225 = arith.addf %203, %224 : vector<3x16x16xf32>
    %226 = arith.mulf %217, %217 : vector<3x16x16xf32>
    %cst_152 = arith.constant 0.00102838012 : f32
    %227 = vector.broadcast %cst_152 : f32 to vector<3x16x16xf32>
    %228 = arith.mulf %227, %226 : vector<3x16x16xf32>
    %229 = arith.addf %207, %228 : vector<3x16x16xf32>
    %230 = arith.mulf %219, %219 : vector<3x16x16xf32>
    %cst_153 = arith.constant 0.00102838012 : f32
    %231 = vector.broadcast %cst_153 : f32 to vector<3x16x16xf32>
    %232 = arith.mulf %231, %230 : vector<3x16x16xf32>
    %233 = arith.addf %211, %232 : vector<3x16x16xf32>
    %234 = arith.mulf %217, %219 : vector<3x16x16xf32>
    %cst_154 = arith.constant 0.00102838012 : f32
    %235 = vector.broadcast %cst_154 : f32 to vector<3x16x16xf32>
    %236 = arith.mulf %235, %234 : vector<3x16x16xf32>
    %237 = arith.addf %215, %236 : vector<3x16x16xf32>
    %238 = vector.shape_cast %222 : vector<3x16x16xf32> to vector<48x16xf32>
    %cst_155 = arith.constant dense<0.000000e+00> : vector<48x16xf32>
    %239 = tpu.matmul %238, %0, %cst_155 {dimension_numbers = #tpu.dot_dimension_numbers<[1], [0], [0], [1], [0, 0, 1, 1], [], []>} : vector<48x16xf32>, vector<16x16xf32>, vector<48x16xf32> -> vector<48x16xf32>
    %240 = vector.shape_cast %225 : vector<3x16x16xf32> to vector<48x16xf32>
    %cst_156 = arith.constant dense<0.000000e+00> : vector<48x16xf32>
    %241 = tpu.matmul %240, %0, %cst_156 {dimension_numbers = #tpu.dot_dimension_numbers<[1], [0], [0], [1], [0, 0, 1, 1], [], []>} : vector<48x16xf32>, vector<16x16xf32>, vector<48x16xf32> -> vector<48x16xf32>
    %242 = vector.shape_cast %229 : vector<3x16x16xf32> to vector<48x16xf32>
    %cst_157 = arith.constant dense<0.000000e+00> : vector<48x16xf32>
    %243 = tpu.matmul %242, %0, %cst_157 {dimension_numbers = #tpu.dot_dimension_numbers<[1], [0], [0], [1], [0, 0, 1, 1], [], []>} : vector<48x16xf32>, vector<16x16xf32>, vector<48x16xf32> -> vector<48x16xf32>
    %244 = vector.shape_cast %233 : vector<3x16x16xf32> to vector<48x16xf32>
    %cst_158 = arith.constant dense<0.000000e+00> : vector<48x16xf32>
    %245 = tpu.matmul %244, %0, %cst_158 {dimension_numbers = #tpu.dot_dimension_numbers<[1], [0], [0], [1], [0, 0, 1, 1], [], []>} : vector<48x16xf32>, vector<16x16xf32>, vector<48x16xf32> -> vector<48x16xf32>
    %246 = vector.shape_cast %237 : vector<3x16x16xf32> to vector<48x16xf32>
    %cst_159 = arith.constant dense<0.000000e+00> : vector<48x16xf32>
    %247 = tpu.matmul %246, %0, %cst_159 {dimension_numbers = #tpu.dot_dimension_numbers<[1], [0], [0], [1], [0, 0, 1, 1], [], []>} : vector<48x16xf32>, vector<16x16xf32>, vector<48x16xf32> -> vector<48x16xf32>
    %248 = arith.mulf %239, %239 : vector<48x16xf32>
    %249 = arith.mulf %241, %241 : vector<48x16xf32>
    %250 = arith.mulf %239, %241 : vector<48x16xf32>
    %251 = arith.subf %243, %248 : vector<48x16xf32>
    %252 = arith.subf %245, %249 : vector<48x16xf32>
    %253 = arith.subf %247, %250 : vector<48x16xf32>
    %cst_160 = arith.constant 2.000000e+00 : f32
    %254 = vector.broadcast %cst_160 : f32 to vector<48x16xf32>
    %255 = arith.mulf %254, %250 : vector<48x16xf32>
    %cst_161 = arith.constant 9.99999974E-5 : f32
    %256 = vector.broadcast %cst_161 : f32 to vector<48x16xf32>
    %257 = arith.addf %255, %256 : vector<48x16xf32>
    %cst_162 = arith.constant 2.000000e+00 : f32
    %258 = vector.broadcast %cst_162 : f32 to vector<48x16xf32>
    %259 = arith.mulf %258, %253 : vector<48x16xf32>
    %cst_163 = arith.constant 8.99999984E-4 : f32
    %260 = vector.broadcast %cst_163 : f32 to vector<48x16xf32>
    %261 = arith.addf %259, %260 : vector<48x16xf32>
    %262 = arith.mulf %257, %261 : vector<48x16xf32>
    %263 = arith.addf %248, %249 : vector<48x16xf32>
    %cst_164 = arith.constant 9.99999974E-5 : f32
    %264 = vector.broadcast %cst_164 : f32 to vector<48x16xf32>
    %265 = arith.addf %263, %264 : vector<48x16xf32>
    %266 = arith.addf %251, %252 : vector<48x16xf32>
    %cst_165 = arith.constant 8.99999984E-4 : f32
    %267 = vector.broadcast %cst_165 : f32 to vector<48x16xf32>
    %268 = arith.addf %266, %267 : vector<48x16xf32>
    %269 = arith.mulf %265, %268 : vector<48x16xf32>
    %270 = arith.divf %262, %269 : vector<48x16xf32>
    %271 = vector.shape_cast %270 : vector<48x16xf32> to vector<1x48x16xf32>
    %cst_166 = arith.constant dense<0.000000e+00> : vector<1xf32>
    %272 = vector.multi_reduction <add>, %271, %cst_166 [1, 2] : vector<1x48x16xf32> to vector<1xf32>
    %273 = vector.shape_cast %272 : vector<1xf32> to vector<1x1x1xf32>
    %274 = vector.extract %273[0, 0, 0] : f32 from vector<1x1x1xf32>
    %275 = vector.broadcast %274 : f32 to vector<1x1xf32>
    %c0_167 = arith.constant 0 : index
    %c0_168 = arith.constant 0 : index
    %c0_169 = arith.constant 0 : index
    %c0_170 = arith.constant 0 : index
    %276 = vector.load %arg5[%c0_167, %c0_168, %c0_169, %c0_170] : memref<1x1x1x1xf32, #tpu.memory_space<vmem>>, vector<1x1x1x1xf32>
    %277 = vector.shape_cast %276 : vector<1x1x1x1xf32> to vector<1x1xf32>
    %278 = vector.shape_cast %275 : vector<1x1xf32> to vector<1x1x1x1xf32>
    tpu.vector_store %arg5[%c0_167, %c0_168, %c0_169, %c0_170], %278 {strides = array<i32>} : memref<1x1x1x1xf32, #tpu.memory_space<vmem>>, vector<1x1x1x1xf32>,
    return
  }
  func.func @transform_0(%arg0: i32, %arg1: i32) -> (i32, i32) {
    %c0_i32 = arith.constant 0 : i32
    %c0_i32_0 = arith.constant 0 : i32
    %c0_i32_1 = arith.constant 0 : i32
    return %c0_i32, %c0_i32_0 : i32, i32
  }
  func.func @transform_1(%arg0: i32, %arg1: i32) -> (i32, i32, i32, i32, i32) {
    %c0_i32 = arith.constant 0 : i32
    %c0_i32_0 = arith.constant 0 : i32
    %c0_i32_1 = arith.constant 0 : i32
    %c0_i32_2 = arith.constant 0 : i32
    return %arg0, %c0_i32, %arg1, %c0_i32_0, %c0_i32_1 : i32, i32, i32, i32, i32
  }
  func.func @transform_2(%arg0: i32, %arg1: i32) -> (i32, i32, i32, i32, i32) {
    %c0_i32 = arith.constant 0 : i32
    %c0_i32_0 = arith.constant 0 : i32
    %c0_i32_1 = arith.constant 0 : i32
    %c0_i32_2 = arith.constant 0 : i32
    return %arg0, %c0_i32, %arg1, %c0_i32_0, %c0_i32_1 : i32, i32, i32, i32, i32
  }
  func.func @transform_3(%arg0: i32, %arg1: i32) -> (i32, i32, i32, i32) {
    %c0_i32 = arith.constant 0 : i32
    %c0_i32_0 = arith.constant 0 : i32
    %c0_i32_1 = arith.constant 0 : i32
    return %arg0, %arg1, %c0_i32, %c0_i32_0 : i32, i32, i32, i32
  }
}

module attributes {stable_mosaic.version = 11 : i64} {
  func.func @kernel(%arg0: i32, %arg1: i32, %arg2: memref<1x3x1x26x16xf32, #tpu.memory_space<vmem>>, %arg3: memref<1x3x1x26x16xf32, #tpu.memory_space<vmem>>, %arg4: memref<1x1x1x1xf32, #tpu.memory_space<vmem>>) attributes {dimension_semantics = [#tpu.dimension_semantics<parallel>, #tpu.dimension_semantics<parallel>], iteration_bounds = array<i64: 2, 1>, scalar_prefetch = 0 : i64, scratch_operands = 0 : i64, tpu.core_type = #tpu.core_type<tc>, window_params = [{transform_indices = @transform_0, window_bounds = array<i64: 1, 3, 1, 26, 16>}, {transform_indices = @transform_1, window_bounds = array<i64: 1, 3, 1, 26, 16>}, {transform_indices = @transform_2, window_bounds = array<i64: 1, 1, 1, 1>}]} {
    %c0 = arith.constant 0 : index
    %c0_0 = arith.constant 0 : index
    %c0_1 = arith.constant 0 : index
    %c0_2 = arith.constant 0 : index
    %c0_3 = arith.constant 0 : index
    %0 = vector.load %arg2[%c0, %c0_0, %c0_1, %c0_2, %c0_3] : memref<1x3x1x26x16xf32, #tpu.memory_space<vmem>>, vector<1x3x1x16x16xf32>
    %1 = vector.shape_cast %0 : vector<1x3x1x16x16xf32> to vector<3x16x16xf32>
    %c0_4 = arith.constant 0 : index
    %c0_5 = arith.constant 0 : index
    %c0_6 = arith.constant 0 : index
    %c0_7 = arith.constant 0 : index
    %c0_8 = arith.constant 0 : index
    %2 = vector.load %arg3[%c0_4, %c0_5, %c0_6, %c0_7, %c0_8] : memref<1x3x1x26x16xf32, #tpu.memory_space<vmem>>, vector<1x3x1x16x16xf32>
    %3 = vector.shape_cast %2 : vector<1x3x1x16x16xf32> to vector<3x16x16xf32>
    %cst = arith.constant 0.00102838012 : f32
    %4 = vector.broadcast %cst : f32 to vector<3x16x16xf32>
    %5 = arith.mulf %4, %1 : vector<3x16x16xf32>
    %cst_9 = arith.constant 0.00102838012 : f32
    %6 = vector.broadcast %cst_9 : f32 to vector<3x16x16xf32>
    %7 = arith.mulf %6, %3 : vector<3x16x16xf32>
    %8 = arith.mulf %1, %1 : vector<3x16x16xf32>
    %cst_10 = arith.constant 0.00102838012 : f32
    %9 = vector.broadcast %cst_10 : f32 to vector<3x16x16xf32>
    %10 = arith.mulf %9, %8 : vector<3x16x16xf32>
    %11 = arith.mulf %3, %3 : vector<3x16x16xf32>
    %cst_11 = arith.constant 0.00102838012 : f32
    %12 = vector.broadcast %cst_11 : f32 to vector<3x16x16xf32>
    %13 = arith.mulf %12, %11 : vector<3x16x16xf32>
    %14 = arith.mulf %1, %3 : vector<3x16x16xf32>
    %cst_12 = arith.constant 0.00102838012 : f32
    %15 = vector.broadcast %cst_12 : f32 to vector<3x16x16xf32>
    %16 = arith.mulf %15, %14 : vector<3x16x16xf32>
    %c0_13 = arith.constant 0 : index
    %c0_14 = arith.constant 0 : index
    %c0_15 = arith.constant 0 : index
    %c1 = arith.constant 1 : index
    %c0_16 = arith.constant 0 : index
    %17 = vector.load %arg2[%c0_13, %c0_14, %c0_15, %c1, %c0_16] : memref<1x3x1x26x16xf32, #tpu.memory_space<vmem>>, vector<1x3x1x16x16xf32>
    %18 = vector.shape_cast %17 : vector<1x3x1x16x16xf32> to vector<3x16x16xf32>
    %c0_17 = arith.constant 0 : index
    %c0_18 = arith.constant 0 : index
    %c0_19 = arith.constant 0 : index
    %c1_20 = arith.constant 1 : index
    %c0_21 = arith.constant 0 : index
    %19 = vector.load %arg3[%c0_17, %c0_18, %c0_19, %c1_20, %c0_21] : memref<1x3x1x26x16xf32, #tpu.memory_space<vmem>>, vector<1x3x1x16x16xf32>
    %20 = vector.shape_cast %19 : vector<1x3x1x16x16xf32> to vector<3x16x16xf32>
    %cst_22 = arith.constant 0.00759875821 : f32
    %21 = vector.broadcast %cst_22 : f32 to vector<3x16x16xf32>
    %22 = arith.mulf %21, %18 : vector<3x16x16xf32>
    %23 = arith.addf %5, %22 : vector<3x16x16xf32>
    %cst_23 = arith.constant 0.00759875821 : f32
    %24 = vector.broadcast %cst_23 : f32 to vector<3x16x16xf32>
    %25 = arith.mulf %24, %20 : vector<3x16x16xf32>
    %26 = arith.addf %7, %25 : vector<3x16x16xf32>
    %27 = arith.mulf %18, %18 : vector<3x16x16xf32>
    %cst_24 = arith.constant 0.00759875821 : f32
    %28 = vector.broadcast %cst_24 : f32 to vector<3x16x16xf32>
    %29 = arith.mulf %28, %27 : vector<3x16x16xf32>
    %30 = arith.addf %10, %29 : vector<3x16x16xf32>
    %31 = arith.mulf %20, %20 : vector<3x16x16xf32>
    %cst_25 = arith.constant 0.00759875821 : f32
    %32 = vector.broadcast %cst_25 : f32 to vector<3x16x16xf32>
    %33 = arith.mulf %32, %31 : vector<3x16x16xf32>
    %34 = arith.addf %13, %33 : vector<3x16x16xf32>
    %35 = arith.mulf %18, %20 : vector<3x16x16xf32>
    %cst_26 = arith.constant 0.00759875821 : f32
    %36 = vector.broadcast %cst_26 : f32 to vector<3x16x16xf32>
    %37 = arith.mulf %36, %35 : vector<3x16x16xf32>
    %38 = arith.addf %16, %37 : vector<3x16x16xf32>
    %c0_27 = arith.constant 0 : index
    %c0_28 = arith.constant 0 : index
    %c0_29 = arith.constant 0 : index
    %c2 = arith.constant 2 : index
    %c0_30 = arith.constant 0 : index
    %39 = vector.load %arg2[%c0_27, %c0_28, %c0_29, %c2, %c0_30] : memref<1x3x1x26x16xf32, #tpu.memory_space<vmem>>, vector<1x3x1x16x16xf32>
    %40 = vector.shape_cast %39 : vector<1x3x1x16x16xf32> to vector<3x16x16xf32>
    %c0_31 = arith.constant 0 : index
    %c0_32 = arith.constant 0 : index
    %c0_33 = arith.constant 0 : index
    %c2_34 = arith.constant 2 : index
    %c0_35 = arith.constant 0 : index
    %41 = vector.load %arg3[%c0_31, %c0_32, %c0_33, %c2_34, %c0_35] : memref<1x3x1x26x16xf32, #tpu.memory_space<vmem>>, vector<1x3x1x16x16xf32>
    %42 = vector.shape_cast %41 : vector<1x3x1x16x16xf32> to vector<3x16x16xf32>
    %cst_36 = arith.constant 0.0360007733 : f32
    %43 = vector.broadcast %cst_36 : f32 to vector<3x16x16xf32>
    %44 = arith.mulf %43, %40 : vector<3x16x16xf32>
    %45 = arith.addf %23, %44 : vector<3x16x16xf32>
    %cst_37 = arith.constant 0.0360007733 : f32
    %46 = vector.broadcast %cst_37 : f32 to vector<3x16x16xf32>
    %47 = arith.mulf %46, %42 : vector<3x16x16xf32>
    %48 = arith.addf %26, %47 : vector<3x16x16xf32>
    %49 = arith.mulf %40, %40 : vector<3x16x16xf32>
    %cst_38 = arith.constant 0.0360007733 : f32
    %50 = vector.broadcast %cst_38 : f32 to vector<3x16x16xf32>
    %51 = arith.mulf %50, %49 : vector<3x16x16xf32>
    %52 = arith.addf %30, %51 : vector<3x16x16xf32>
    %53 = arith.mulf %42, %42 : vector<3x16x16xf32>
    %cst_39 = arith.constant 0.0360007733 : f32
    %54 = vector.broadcast %cst_39 : f32 to vector<3x16x16xf32>
    %55 = arith.mulf %54, %53 : vector<3x16x16xf32>
    %56 = arith.addf %34, %55 : vector<3x16x16xf32>
    %57 = arith.mulf %40, %42 : vector<3x16x16xf32>
    %cst_40 = arith.constant 0.0360007733 : f32
    %58 = vector.broadcast %cst_40 : f32 to vector<3x16x16xf32>
    %59 = arith.mulf %58, %57 : vector<3x16x16xf32>
    %60 = arith.addf %38, %59 : vector<3x16x16xf32>
    %c0_41 = arith.constant 0 : index
    %c0_42 = arith.constant 0 : index
    %c0_43 = arith.constant 0 : index
    %c3 = arith.constant 3 : index
    %c0_44 = arith.constant 0 : index
    %61 = vector.load %arg2[%c0_41, %c0_42, %c0_43, %c3, %c0_44] : memref<1x3x1x26x16xf32, #tpu.memory_space<vmem>>, vector<1x3x1x16x16xf32>
    %62 = vector.shape_cast %61 : vector<1x3x1x16x16xf32> to vector<3x16x16xf32>
    %c0_45 = arith.constant 0 : index
    %c0_46 = arith.constant 0 : index
    %c0_47 = arith.constant 0 : index
    %c3_48 = arith.constant 3 : index
    %c0_49 = arith.constant 0 : index
    %63 = vector.load %arg3[%c0_45, %c0_46, %c0_47, %c3_48, %c0_49] : memref<1x3x1x26x16xf32, #tpu.memory_space<vmem>>, vector<1x3x1x16x16xf32>
    %64 = vector.shape_cast %63 : vector<1x3x1x16x16xf32> to vector<3x16x16xf32>
    %cst_50 = arith.constant 0.109360687 : f32
    %65 = vector.broadcast %cst_50 : f32 to vector<3x16x16xf32>
    %66 = arith.mulf %65, %62 : vector<3x16x16xf32>
    %67 = arith.addf %45, %66 : vector<3x16x16xf32>
    %cst_51 = arith.constant 0.109360687 : f32
    %68 = vector.broadcast %cst_51 : f32 to vector<3x16x16xf32>
    %69 = arith.mulf %68, %64 : vector<3x16x16xf32>
    %70 = arith.addf %48, %69 : vector<3x16x16xf32>
    %71 = arith.mulf %62, %62 : vector<3x16x16xf32>
    %cst_52 = arith.constant 0.109360687 : f32
    %72 = vector.broadcast %cst_52 : f32 to vector<3x16x16xf32>
    %73 = arith.mulf %72, %71 : vector<3x16x16xf32>
    %74 = arith.addf %52, %73 : vector<3x16x16xf32>
    %75 = arith.mulf %64, %64 : vector<3x16x16xf32>
    %cst_53 = arith.constant 0.109360687 : f32
    %76 = vector.broadcast %cst_53 : f32 to vector<3x16x16xf32>
    %77 = arith.mulf %76, %75 : vector<3x16x16xf32>
    %78 = arith.addf %56, %77 : vector<3x16x16xf32>
    %79 = arith.mulf %62, %64 : vector<3x16x16xf32>
    %cst_54 = arith.constant 0.109360687 : f32
    %80 = vector.broadcast %cst_54 : f32 to vector<3x16x16xf32>
    %81 = arith.mulf %80, %79 : vector<3x16x16xf32>
    %82 = arith.addf %60, %81 : vector<3x16x16xf32>
    %c0_55 = arith.constant 0 : index
    %c0_56 = arith.constant 0 : index
    %c0_57 = arith.constant 0 : index
    %c4 = arith.constant 4 : index
    %c0_58 = arith.constant 0 : index
    %83 = vector.load %arg2[%c0_55, %c0_56, %c0_57, %c4, %c0_58] : memref<1x3x1x26x16xf32, #tpu.memory_space<vmem>>, vector<1x3x1x16x16xf32>
    %84 = vector.shape_cast %83 : vector<1x3x1x16x16xf32> to vector<3x16x16xf32>
    %c0_59 = arith.constant 0 : index
    %c0_60 = arith.constant 0 : index
    %c0_61 = arith.constant 0 : index
    %c4_62 = arith.constant 4 : index
    %c0_63 = arith.constant 0 : index
    %85 = vector.load %arg3[%c0_59, %c0_60, %c0_61, %c4_62, %c0_63] : memref<1x3x1x26x16xf32, #tpu.memory_space<vmem>>, vector<1x3x1x16x16xf32>
    %86 = vector.shape_cast %85 : vector<1x3x1x16x16xf32> to vector<3x16x16xf32>
    %cst_64 = arith.constant 0.213005543 : f32
    %87 = vector.broadcast %cst_64 : f32 to vector<3x16x16xf32>
    %88 = arith.mulf %87, %84 : vector<3x16x16xf32>
    %89 = arith.addf %67, %88 : vector<3x16x16xf32>
    %cst_65 = arith.constant 0.213005543 : f32
    %90 = vector.broadcast %cst_65 : f32 to vector<3x16x16xf32>
    %91 = arith.mulf %90, %86 : vector<3x16x16xf32>
    %92 = arith.addf %70, %91 : vector<3x16x16xf32>
    %93 = arith.mulf %84, %84 : vector<3x16x16xf32>
    %cst_66 = arith.constant 0.213005543 : f32
    %94 = vector.broadcast %cst_66 : f32 to vector<3x16x16xf32>
    %95 = arith.mulf %94, %93 : vector<3x16x16xf32>
    %96 = arith.addf %74, %95 : vector<3x16x16xf32>
    %97 = arith.mulf %86, %86 : vector<3x16x16xf32>
    %cst_67 = arith.constant 0.213005543 : f32
    %98 = vector.broadcast %cst_67 : f32 to vector<3x16x16xf32>
    %99 = arith.mulf %98, %97 : vector<3x16x16xf32>
    %100 = arith.addf %78, %99 : vector<3x16x16xf32>
    %101 = arith.mulf %84, %86 : vector<3x16x16xf32>
    %cst_68 = arith.constant 0.213005543 : f32
    %102 = vector.broadcast %cst_68 : f32 to vector<3x16x16xf32>
    %103 = arith.mulf %102, %101 : vector<3x16x16xf32>
    %104 = arith.addf %82, %103 : vector<3x16x16xf32>
    %c0_69 = arith.constant 0 : index
    %c0_70 = arith.constant 0 : index
    %c0_71 = arith.constant 0 : index
    %c5 = arith.constant 5 : index
    %c0_72 = arith.constant 0 : index
    %105 = vector.load %arg2[%c0_69, %c0_70, %c0_71, %c5, %c0_72] : memref<1x3x1x26x16xf32, #tpu.memory_space<vmem>>, vector<1x3x1x16x16xf32>
    %106 = vector.shape_cast %105 : vector<1x3x1x16x16xf32> to vector<3x16x16xf32>
    %c0_73 = arith.constant 0 : index
    %c0_74 = arith.constant 0 : index
    %c0_75 = arith.constant 0 : index
    %c5_76 = arith.constant 5 : index
    %c0_77 = arith.constant 0 : index
    %107 = vector.load %arg3[%c0_73, %c0_74, %c0_75, %c5_76, %c0_77] : memref<1x3x1x26x16xf32, #tpu.memory_space<vmem>>, vector<1x3x1x16x16xf32>
    %108 = vector.shape_cast %107 : vector<1x3x1x16x16xf32> to vector<3x16x16xf32>
    %cst_78 = arith.constant 0.266011715 : f32
    %109 = vector.broadcast %cst_78 : f32 to vector<3x16x16xf32>
    %110 = arith.mulf %109, %106 : vector<3x16x16xf32>
    %111 = arith.addf %89, %110 : vector<3x16x16xf32>
    %cst_79 = arith.constant 0.266011715 : f32
    %112 = vector.broadcast %cst_79 : f32 to vector<3x16x16xf32>
    %113 = arith.mulf %112, %108 : vector<3x16x16xf32>
    %114 = arith.addf %92, %113 : vector<3x16x16xf32>
    %115 = arith.mulf %106, %106 : vector<3x16x16xf32>
    %cst_80 = arith.constant 0.266011715 : f32
    %116 = vector.broadcast %cst_80 : f32 to vector<3x16x16xf32>
    %117 = arith.mulf %116, %115 : vector<3x16x16xf32>
    %118 = arith.addf %96, %117 : vector<3x16x16xf32>
    %119 = arith.mulf %108, %108 : vector<3x16x16xf32>
    %cst_81 = arith.constant 0.266011715 : f32
    %120 = vector.broadcast %cst_81 : f32 to vector<3x16x16xf32>
    %121 = arith.mulf %120, %119 : vector<3x16x16xf32>
    %122 = arith.addf %100, %121 : vector<3x16x16xf32>
    %123 = arith.mulf %106, %108 : vector<3x16x16xf32>
    %cst_82 = arith.constant 0.266011715 : f32
    %124 = vector.broadcast %cst_82 : f32 to vector<3x16x16xf32>
    %125 = arith.mulf %124, %123 : vector<3x16x16xf32>
    %126 = arith.addf %104, %125 : vector<3x16x16xf32>
    %c0_83 = arith.constant 0 : index
    %c0_84 = arith.constant 0 : index
    %c0_85 = arith.constant 0 : index
    %c6 = arith.constant 6 : index
    %c0_86 = arith.constant 0 : index
    %127 = vector.load %arg2[%c0_83, %c0_84, %c0_85, %c6, %c0_86] : memref<1x3x1x26x16xf32, #tpu.memory_space<vmem>>, vector<1x3x1x16x16xf32>
    %128 = vector.shape_cast %127 : vector<1x3x1x16x16xf32> to vector<3x16x16xf32>
    %c0_87 = arith.constant 0 : index
    %c0_88 = arith.constant 0 : index
    %c0_89 = arith.constant 0 : index
    %c6_90 = arith.constant 6 : index
    %c0_91 = arith.constant 0 : index
    %129 = vector.load %arg3[%c0_87, %c0_88, %c0_89, %c6_90, %c0_91] : memref<1x3x1x26x16xf32, #tpu.memory_space<vmem>>, vector<1x3x1x16x16xf32>
    %130 = vector.shape_cast %129 : vector<1x3x1x16x16xf32> to vector<3x16x16xf32>
    %cst_92 = arith.constant 0.213005543 : f32
    %131 = vector.broadcast %cst_92 : f32 to vector<3x16x16xf32>
    %132 = arith.mulf %131, %128 : vector<3x16x16xf32>
    %133 = arith.addf %111, %132 : vector<3x16x16xf32>
    %cst_93 = arith.constant 0.213005543 : f32
    %134 = vector.broadcast %cst_93 : f32 to vector<3x16x16xf32>
    %135 = arith.mulf %134, %130 : vector<3x16x16xf32>
    %136 = arith.addf %114, %135 : vector<3x16x16xf32>
    %137 = arith.mulf %128, %128 : vector<3x16x16xf32>
    %cst_94 = arith.constant 0.213005543 : f32
    %138 = vector.broadcast %cst_94 : f32 to vector<3x16x16xf32>
    %139 = arith.mulf %138, %137 : vector<3x16x16xf32>
    %140 = arith.addf %118, %139 : vector<3x16x16xf32>
    %141 = arith.mulf %130, %130 : vector<3x16x16xf32>
    %cst_95 = arith.constant 0.213005543 : f32
    %142 = vector.broadcast %cst_95 : f32 to vector<3x16x16xf32>
    %143 = arith.mulf %142, %141 : vector<3x16x16xf32>
    %144 = arith.addf %122, %143 : vector<3x16x16xf32>
    %145 = arith.mulf %128, %130 : vector<3x16x16xf32>
    %cst_96 = arith.constant 0.213005543 : f32
    %146 = vector.broadcast %cst_96 : f32 to vector<3x16x16xf32>
    %147 = arith.mulf %146, %145 : vector<3x16x16xf32>
    %148 = arith.addf %126, %147 : vector<3x16x16xf32>
    %c0_97 = arith.constant 0 : index
    %c0_98 = arith.constant 0 : index
    %c0_99 = arith.constant 0 : index
    %c7 = arith.constant 7 : index
    %c0_100 = arith.constant 0 : index
    %149 = vector.load %arg2[%c0_97, %c0_98, %c0_99, %c7, %c0_100] : memref<1x3x1x26x16xf32, #tpu.memory_space<vmem>>, vector<1x3x1x16x16xf32>
    %150 = vector.shape_cast %149 : vector<1x3x1x16x16xf32> to vector<3x16x16xf32>
    %c0_101 = arith.constant 0 : index
    %c0_102 = arith.constant 0 : index
    %c0_103 = arith.constant 0 : index
    %c7_104 = arith.constant 7 : index
    %c0_105 = arith.constant 0 : index
    %151 = vector.load %arg3[%c0_101, %c0_102, %c0_103, %c7_104, %c0_105] : memref<1x3x1x26x16xf32, #tpu.memory_space<vmem>>, vector<1x3x1x16x16xf32>
    %152 = vector.shape_cast %151 : vector<1x3x1x16x16xf32> to vector<3x16x16xf32>
    %cst_106 = arith.constant 0.109360687 : f32
    %153 = vector.broadcast %cst_106 : f32 to vector<3x16x16xf32>
    %154 = arith.mulf %153, %150 : vector<3x16x16xf32>
    %155 = arith.addf %133, %154 : vector<3x16x16xf32>
    %cst_107 = arith.constant 0.109360687 : f32
    %156 = vector.broadcast %cst_107 : f32 to vector<3x16x16xf32>
    %157 = arith.mulf %156, %152 : vector<3x16x16xf32>
    %158 = arith.addf %136, %157 : vector<3x16x16xf32>
    %159 = arith.mulf %150, %150 : vector<3x16x16xf32>
    %cst_108 = arith.constant 0.109360687 : f32
    %160 = vector.broadcast %cst_108 : f32 to vector<3x16x16xf32>
    %161 = arith.mulf %160, %159 : vector<3x16x16xf32>
    %162 = arith.addf %140, %161 : vector<3x16x16xf32>
    %163 = arith.mulf %152, %152 : vector<3x16x16xf32>
    %cst_109 = arith.constant 0.109360687 : f32
    %164 = vector.broadcast %cst_109 : f32 to vector<3x16x16xf32>
    %165 = arith.mulf %164, %163 : vector<3x16x16xf32>
    %166 = arith.addf %144, %165 : vector<3x16x16xf32>
    %167 = arith.mulf %150, %152 : vector<3x16x16xf32>
    %cst_110 = arith.constant 0.109360687 : f32
    %168 = vector.broadcast %cst_110 : f32 to vector<3x16x16xf32>
    %169 = arith.mulf %168, %167 : vector<3x16x16xf32>
    %170 = arith.addf %148, %169 : vector<3x16x16xf32>
    %c0_111 = arith.constant 0 : index
    %c0_112 = arith.constant 0 : index
    %c0_113 = arith.constant 0 : index
    %c8 = arith.constant 8 : index
    %c0_114 = arith.constant 0 : index
    %171 = vector.load %arg2[%c0_111, %c0_112, %c0_113, %c8, %c0_114] : memref<1x3x1x26x16xf32, #tpu.memory_space<vmem>>, vector<1x3x1x16x16xf32>
    %172 = vector.shape_cast %171 : vector<1x3x1x16x16xf32> to vector<3x16x16xf32>
    %c0_115 = arith.constant 0 : index
    %c0_116 = arith.constant 0 : index
    %c0_117 = arith.constant 0 : index
    %c8_118 = arith.constant 8 : index
    %c0_119 = arith.constant 0 : index
    %173 = vector.load %arg3[%c0_115, %c0_116, %c0_117, %c8_118, %c0_119] : memref<1x3x1x26x16xf32, #tpu.memory_space<vmem>>, vector<1x3x1x16x16xf32>
    %174 = vector.shape_cast %173 : vector<1x3x1x16x16xf32> to vector<3x16x16xf32>
    %cst_120 = arith.constant 0.0360007733 : f32
    %175 = vector.broadcast %cst_120 : f32 to vector<3x16x16xf32>
    %176 = arith.mulf %175, %172 : vector<3x16x16xf32>
    %177 = arith.addf %155, %176 : vector<3x16x16xf32>
    %cst_121 = arith.constant 0.0360007733 : f32
    %178 = vector.broadcast %cst_121 : f32 to vector<3x16x16xf32>
    %179 = arith.mulf %178, %174 : vector<3x16x16xf32>
    %180 = arith.addf %158, %179 : vector<3x16x16xf32>
    %181 = arith.mulf %172, %172 : vector<3x16x16xf32>
    %cst_122 = arith.constant 0.0360007733 : f32
    %182 = vector.broadcast %cst_122 : f32 to vector<3x16x16xf32>
    %183 = arith.mulf %182, %181 : vector<3x16x16xf32>
    %184 = arith.addf %162, %183 : vector<3x16x16xf32>
    %185 = arith.mulf %174, %174 : vector<3x16x16xf32>
    %cst_123 = arith.constant 0.0360007733 : f32
    %186 = vector.broadcast %cst_123 : f32 to vector<3x16x16xf32>
    %187 = arith.mulf %186, %185 : vector<3x16x16xf32>
    %188 = arith.addf %166, %187 : vector<3x16x16xf32>
    %189 = arith.mulf %172, %174 : vector<3x16x16xf32>
    %cst_124 = arith.constant 0.0360007733 : f32
    %190 = vector.broadcast %cst_124 : f32 to vector<3x16x16xf32>
    %191 = arith.mulf %190, %189 : vector<3x16x16xf32>
    %192 = arith.addf %170, %191 : vector<3x16x16xf32>
    %c0_125 = arith.constant 0 : index
    %c0_126 = arith.constant 0 : index
    %c0_127 = arith.constant 0 : index
    %c9 = arith.constant 9 : index
    %c0_128 = arith.constant 0 : index
    %193 = vector.load %arg2[%c0_125, %c0_126, %c0_127, %c9, %c0_128] : memref<1x3x1x26x16xf32, #tpu.memory_space<vmem>>, vector<1x3x1x16x16xf32>
    %194 = vector.shape_cast %193 : vector<1x3x1x16x16xf32> to vector<3x16x16xf32>
    %c0_129 = arith.constant 0 : index
    %c0_130 = arith.constant 0 : index
    %c0_131 = arith.constant 0 : index
    %c9_132 = arith.constant 9 : index
    %c0_133 = arith.constant 0 : index
    %195 = vector.load %arg3[%c0_129, %c0_130, %c0_131, %c9_132, %c0_133] : memref<1x3x1x26x16xf32, #tpu.memory_space<vmem>>, vector<1x3x1x16x16xf32>
    %196 = vector.shape_cast %195 : vector<1x3x1x16x16xf32> to vector<3x16x16xf32>
    %cst_134 = arith.constant 0.00759875821 : f32
    %197 = vector.broadcast %cst_134 : f32 to vector<3x16x16xf32>
    %198 = arith.mulf %197, %194 : vector<3x16x16xf32>
    %199 = arith.addf %177, %198 : vector<3x16x16xf32>
    %cst_135 = arith.constant 0.00759875821 : f32
    %200 = vector.broadcast %cst_135 : f32 to vector<3x16x16xf32>
    %201 = arith.mulf %200, %196 : vector<3x16x16xf32>
    %202 = arith.addf %180, %201 : vector<3x16x16xf32>
    %203 = arith.mulf %194, %194 : vector<3x16x16xf32>
    %cst_136 = arith.constant 0.00759875821 : f32
    %204 = vector.broadcast %cst_136 : f32 to vector<3x16x16xf32>
    %205 = arith.mulf %204, %203 : vector<3x16x16xf32>
    %206 = arith.addf %184, %205 : vector<3x16x16xf32>
    %207 = arith.mulf %196, %196 : vector<3x16x16xf32>
    %cst_137 = arith.constant 0.00759875821 : f32
    %208 = vector.broadcast %cst_137 : f32 to vector<3x16x16xf32>
    %209 = arith.mulf %208, %207 : vector<3x16x16xf32>
    %210 = arith.addf %188, %209 : vector<3x16x16xf32>
    %211 = arith.mulf %194, %196 : vector<3x16x16xf32>
    %cst_138 = arith.constant 0.00759875821 : f32
    %212 = vector.broadcast %cst_138 : f32 to vector<3x16x16xf32>
    %213 = arith.mulf %212, %211 : vector<3x16x16xf32>
    %214 = arith.addf %192, %213 : vector<3x16x16xf32>
    %c0_139 = arith.constant 0 : index
    %c0_140 = arith.constant 0 : index
    %c0_141 = arith.constant 0 : index
    %c10 = arith.constant 10 : index
    %c0_142 = arith.constant 0 : index
    %215 = vector.load %arg2[%c0_139, %c0_140, %c0_141, %c10, %c0_142] : memref<1x3x1x26x16xf32, #tpu.memory_space<vmem>>, vector<1x3x1x16x16xf32>
    %216 = vector.shape_cast %215 : vector<1x3x1x16x16xf32> to vector<3x16x16xf32>
    %c0_143 = arith.constant 0 : index
    %c0_144 = arith.constant 0 : index
    %c0_145 = arith.constant 0 : index
    %c10_146 = arith.constant 10 : index
    %c0_147 = arith.constant 0 : index
    %217 = vector.load %arg3[%c0_143, %c0_144, %c0_145, %c10_146, %c0_147] : memref<1x3x1x26x16xf32, #tpu.memory_space<vmem>>, vector<1x3x1x16x16xf32>
    %218 = vector.shape_cast %217 : vector<1x3x1x16x16xf32> to vector<3x16x16xf32>
    %cst_148 = arith.constant 0.00102838012 : f32
    %219 = vector.broadcast %cst_148 : f32 to vector<3x16x16xf32>
    %220 = arith.mulf %219, %216 : vector<3x16x16xf32>
    %221 = arith.addf %199, %220 : vector<3x16x16xf32>
    %cst_149 = arith.constant 0.00102838012 : f32
    %222 = vector.broadcast %cst_149 : f32 to vector<3x16x16xf32>
    %223 = arith.mulf %222, %218 : vector<3x16x16xf32>
    %224 = arith.addf %202, %223 : vector<3x16x16xf32>
    %225 = arith.mulf %216, %216 : vector<3x16x16xf32>
    %cst_150 = arith.constant 0.00102838012 : f32
    %226 = vector.broadcast %cst_150 : f32 to vector<3x16x16xf32>
    %227 = arith.mulf %226, %225 : vector<3x16x16xf32>
    %228 = arith.addf %206, %227 : vector<3x16x16xf32>
    %229 = arith.mulf %218, %218 : vector<3x16x16xf32>
    %cst_151 = arith.constant 0.00102838012 : f32
    %230 = vector.broadcast %cst_151 : f32 to vector<3x16x16xf32>
    %231 = arith.mulf %230, %229 : vector<3x16x16xf32>
    %232 = arith.addf %210, %231 : vector<3x16x16xf32>
    %233 = arith.mulf %216, %218 : vector<3x16x16xf32>
    %cst_152 = arith.constant 0.00102838012 : f32
    %234 = vector.broadcast %cst_152 : f32 to vector<3x16x16xf32>
    %235 = arith.mulf %234, %233 : vector<3x16x16xf32>
    %236 = arith.addf %214, %235 : vector<3x16x16xf32>
    %cst_153 = arith.constant 0.000000e+00 : f32
    %237 = vector.broadcast %cst_153 : f32 to vector<48x5xf32>
    %238 = vector.shape_cast %221 : vector<3x16x16xf32> to vector<48x16xf32>
    %239 = tpu.concatenate %237, %238, %237 in 1 : vector<48x5xf32>, vector<48x16xf32>, vector<48x5xf32> -> vector<48x26xf32>
    %240 = vector.extract_strided_slice %239 {offsets = [0, 0], sizes = [48, 16], strides = [1, 1]} : vector<48x26xf32> to vector<48x16xf32>
    %cst_154 = arith.constant 0.00102838012 : f32
    %241 = vector.broadcast %cst_154 : f32 to vector<48x16xf32>
    %242 = arith.mulf %241, %240 : vector<48x16xf32>
    %243 = vector.extract_strided_slice %239 {offsets = [0, 1], sizes = [48, 16], strides = [1, 1]} : vector<48x26xf32> to vector<48x16xf32>
    %cst_155 = arith.constant 0.00759875821 : f32
    %244 = vector.broadcast %cst_155 : f32 to vector<48x16xf32>
    %245 = arith.mulf %244, %243 : vector<48x16xf32>
    %246 = arith.addf %242, %245 : vector<48x16xf32>
    %247 = vector.extract_strided_slice %239 {offsets = [0, 2], sizes = [48, 16], strides = [1, 1]} : vector<48x26xf32> to vector<48x16xf32>
    %cst_156 = arith.constant 0.0360007733 : f32
    %248 = vector.broadcast %cst_156 : f32 to vector<48x16xf32>
    %249 = arith.mulf %248, %247 : vector<48x16xf32>
    %250 = arith.addf %246, %249 : vector<48x16xf32>
    %251 = vector.extract_strided_slice %239 {offsets = [0, 3], sizes = [48, 16], strides = [1, 1]} : vector<48x26xf32> to vector<48x16xf32>
    %cst_157 = arith.constant 0.109360687 : f32
    %252 = vector.broadcast %cst_157 : f32 to vector<48x16xf32>
    %253 = arith.mulf %252, %251 : vector<48x16xf32>
    %254 = arith.addf %250, %253 : vector<48x16xf32>
    %255 = vector.extract_strided_slice %239 {offsets = [0, 4], sizes = [48, 16], strides = [1, 1]} : vector<48x26xf32> to vector<48x16xf32>
    %cst_158 = arith.constant 0.213005543 : f32
    %256 = vector.broadcast %cst_158 : f32 to vector<48x16xf32>
    %257 = arith.mulf %256, %255 : vector<48x16xf32>
    %258 = arith.addf %254, %257 : vector<48x16xf32>
    %259 = vector.extract_strided_slice %239 {offsets = [0, 5], sizes = [48, 16], strides = [1, 1]} : vector<48x26xf32> to vector<48x16xf32>
    %cst_159 = arith.constant 0.266011715 : f32
    %260 = vector.broadcast %cst_159 : f32 to vector<48x16xf32>
    %261 = arith.mulf %260, %259 : vector<48x16xf32>
    %262 = arith.addf %258, %261 : vector<48x16xf32>
    %263 = vector.extract_strided_slice %239 {offsets = [0, 6], sizes = [48, 16], strides = [1, 1]} : vector<48x26xf32> to vector<48x16xf32>
    %cst_160 = arith.constant 0.213005543 : f32
    %264 = vector.broadcast %cst_160 : f32 to vector<48x16xf32>
    %265 = arith.mulf %264, %263 : vector<48x16xf32>
    %266 = arith.addf %262, %265 : vector<48x16xf32>
    %267 = vector.extract_strided_slice %239 {offsets = [0, 7], sizes = [48, 16], strides = [1, 1]} : vector<48x26xf32> to vector<48x16xf32>
    %cst_161 = arith.constant 0.109360687 : f32
    %268 = vector.broadcast %cst_161 : f32 to vector<48x16xf32>
    %269 = arith.mulf %268, %267 : vector<48x16xf32>
    %270 = arith.addf %266, %269 : vector<48x16xf32>
    %271 = vector.extract_strided_slice %239 {offsets = [0, 8], sizes = [48, 16], strides = [1, 1]} : vector<48x26xf32> to vector<48x16xf32>
    %cst_162 = arith.constant 0.0360007733 : f32
    %272 = vector.broadcast %cst_162 : f32 to vector<48x16xf32>
    %273 = arith.mulf %272, %271 : vector<48x16xf32>
    %274 = arith.addf %270, %273 : vector<48x16xf32>
    %275 = vector.extract_strided_slice %239 {offsets = [0, 9], sizes = [48, 16], strides = [1, 1]} : vector<48x26xf32> to vector<48x16xf32>
    %cst_163 = arith.constant 0.00759875821 : f32
    %276 = vector.broadcast %cst_163 : f32 to vector<48x16xf32>
    %277 = arith.mulf %276, %275 : vector<48x16xf32>
    %278 = arith.addf %274, %277 : vector<48x16xf32>
    %279 = vector.extract_strided_slice %239 {offsets = [0, 10], sizes = [48, 16], strides = [1, 1]} : vector<48x26xf32> to vector<48x16xf32>
    %cst_164 = arith.constant 0.00102838012 : f32
    %280 = vector.broadcast %cst_164 : f32 to vector<48x16xf32>
    %281 = arith.mulf %280, %279 : vector<48x16xf32>
    %282 = arith.addf %278, %281 : vector<48x16xf32>
    %283 = vector.shape_cast %224 : vector<3x16x16xf32> to vector<48x16xf32>
    %284 = tpu.concatenate %237, %283, %237 in 1 : vector<48x5xf32>, vector<48x16xf32>, vector<48x5xf32> -> vector<48x26xf32>
    %285 = vector.extract_strided_slice %284 {offsets = [0, 0], sizes = [48, 16], strides = [1, 1]} : vector<48x26xf32> to vector<48x16xf32>
    %cst_165 = arith.constant 0.00102838012 : f32
    %286 = vector.broadcast %cst_165 : f32 to vector<48x16xf32>
    %287 = arith.mulf %286, %285 : vector<48x16xf32>
    %288 = vector.extract_strided_slice %284 {offsets = [0, 1], sizes = [48, 16], strides = [1, 1]} : vector<48x26xf32> to vector<48x16xf32>
    %cst_166 = arith.constant 0.00759875821 : f32
    %289 = vector.broadcast %cst_166 : f32 to vector<48x16xf32>
    %290 = arith.mulf %289, %288 : vector<48x16xf32>
    %291 = arith.addf %287, %290 : vector<48x16xf32>
    %292 = vector.extract_strided_slice %284 {offsets = [0, 2], sizes = [48, 16], strides = [1, 1]} : vector<48x26xf32> to vector<48x16xf32>
    %cst_167 = arith.constant 0.0360007733 : f32
    %293 = vector.broadcast %cst_167 : f32 to vector<48x16xf32>
    %294 = arith.mulf %293, %292 : vector<48x16xf32>
    %295 = arith.addf %291, %294 : vector<48x16xf32>
    %296 = vector.extract_strided_slice %284 {offsets = [0, 3], sizes = [48, 16], strides = [1, 1]} : vector<48x26xf32> to vector<48x16xf32>
    %cst_168 = arith.constant 0.109360687 : f32
    %297 = vector.broadcast %cst_168 : f32 to vector<48x16xf32>
    %298 = arith.mulf %297, %296 : vector<48x16xf32>
    %299 = arith.addf %295, %298 : vector<48x16xf32>
    %300 = vector.extract_strided_slice %284 {offsets = [0, 4], sizes = [48, 16], strides = [1, 1]} : vector<48x26xf32> to vector<48x16xf32>
    %cst_169 = arith.constant 0.213005543 : f32
    %301 = vector.broadcast %cst_169 : f32 to vector<48x16xf32>
    %302 = arith.mulf %301, %300 : vector<48x16xf32>
    %303 = arith.addf %299, %302 : vector<48x16xf32>
    %304 = vector.extract_strided_slice %284 {offsets = [0, 5], sizes = [48, 16], strides = [1, 1]} : vector<48x26xf32> to vector<48x16xf32>
    %cst_170 = arith.constant 0.266011715 : f32
    %305 = vector.broadcast %cst_170 : f32 to vector<48x16xf32>
    %306 = arith.mulf %305, %304 : vector<48x16xf32>
    %307 = arith.addf %303, %306 : vector<48x16xf32>
    %308 = vector.extract_strided_slice %284 {offsets = [0, 6], sizes = [48, 16], strides = [1, 1]} : vector<48x26xf32> to vector<48x16xf32>
    %cst_171 = arith.constant 0.213005543 : f32
    %309 = vector.broadcast %cst_171 : f32 to vector<48x16xf32>
    %310 = arith.mulf %309, %308 : vector<48x16xf32>
    %311 = arith.addf %307, %310 : vector<48x16xf32>
    %312 = vector.extract_strided_slice %284 {offsets = [0, 7], sizes = [48, 16], strides = [1, 1]} : vector<48x26xf32> to vector<48x16xf32>
    %cst_172 = arith.constant 0.109360687 : f32
    %313 = vector.broadcast %cst_172 : f32 to vector<48x16xf32>
    %314 = arith.mulf %313, %312 : vector<48x16xf32>
    %315 = arith.addf %311, %314 : vector<48x16xf32>
    %316 = vector.extract_strided_slice %284 {offsets = [0, 8], sizes = [48, 16], strides = [1, 1]} : vector<48x26xf32> to vector<48x16xf32>
    %cst_173 = arith.constant 0.0360007733 : f32
    %317 = vector.broadcast %cst_173 : f32 to vector<48x16xf32>
    %318 = arith.mulf %317, %316 : vector<48x16xf32>
    %319 = arith.addf %315, %318 : vector<48x16xf32>
    %320 = vector.extract_strided_slice %284 {offsets = [0, 9], sizes = [48, 16], strides = [1, 1]} : vector<48x26xf32> to vector<48x16xf32>
    %cst_174 = arith.constant 0.00759875821 : f32
    %321 = vector.broadcast %cst_174 : f32 to vector<48x16xf32>
    %322 = arith.mulf %321, %320 : vector<48x16xf32>
    %323 = arith.addf %319, %322 : vector<48x16xf32>
    %324 = vector.extract_strided_slice %284 {offsets = [0, 10], sizes = [48, 16], strides = [1, 1]} : vector<48x26xf32> to vector<48x16xf32>
    %cst_175 = arith.constant 0.00102838012 : f32
    %325 = vector.broadcast %cst_175 : f32 to vector<48x16xf32>
    %326 = arith.mulf %325, %324 : vector<48x16xf32>
    %327 = arith.addf %323, %326 : vector<48x16xf32>
    %328 = vector.shape_cast %228 : vector<3x16x16xf32> to vector<48x16xf32>
    %329 = tpu.concatenate %237, %328, %237 in 1 : vector<48x5xf32>, vector<48x16xf32>, vector<48x5xf32> -> vector<48x26xf32>
    %330 = vector.extract_strided_slice %329 {offsets = [0, 0], sizes = [48, 16], strides = [1, 1]} : vector<48x26xf32> to vector<48x16xf32>
    %cst_176 = arith.constant 0.00102838012 : f32
    %331 = vector.broadcast %cst_176 : f32 to vector<48x16xf32>
    %332 = arith.mulf %331, %330 : vector<48x16xf32>
    %333 = vector.extract_strided_slice %329 {offsets = [0, 1], sizes = [48, 16], strides = [1, 1]} : vector<48x26xf32> to vector<48x16xf32>
    %cst_177 = arith.constant 0.00759875821 : f32
    %334 = vector.broadcast %cst_177 : f32 to vector<48x16xf32>
    %335 = arith.mulf %334, %333 : vector<48x16xf32>
    %336 = arith.addf %332, %335 : vector<48x16xf32>
    %337 = vector.extract_strided_slice %329 {offsets = [0, 2], sizes = [48, 16], strides = [1, 1]} : vector<48x26xf32> to vector<48x16xf32>
    %cst_178 = arith.constant 0.0360007733 : f32
    %338 = vector.broadcast %cst_178 : f32 to vector<48x16xf32>
    %339 = arith.mulf %338, %337 : vector<48x16xf32>
    %340 = arith.addf %336, %339 : vector<48x16xf32>
    %341 = vector.extract_strided_slice %329 {offsets = [0, 3], sizes = [48, 16], strides = [1, 1]} : vector<48x26xf32> to vector<48x16xf32>
    %cst_179 = arith.constant 0.109360687 : f32
    %342 = vector.broadcast %cst_179 : f32 to vector<48x16xf32>
    %343 = arith.mulf %342, %341 : vector<48x16xf32>
    %344 = arith.addf %340, %343 : vector<48x16xf32>
    %345 = vector.extract_strided_slice %329 {offsets = [0, 4], sizes = [48, 16], strides = [1, 1]} : vector<48x26xf32> to vector<48x16xf32>
    %cst_180 = arith.constant 0.213005543 : f32
    %346 = vector.broadcast %cst_180 : f32 to vector<48x16xf32>
    %347 = arith.mulf %346, %345 : vector<48x16xf32>
    %348 = arith.addf %344, %347 : vector<48x16xf32>
    %349 = vector.extract_strided_slice %329 {offsets = [0, 5], sizes = [48, 16], strides = [1, 1]} : vector<48x26xf32> to vector<48x16xf32>
    %cst_181 = arith.constant 0.266011715 : f32
    %350 = vector.broadcast %cst_181 : f32 to vector<48x16xf32>
    %351 = arith.mulf %350, %349 : vector<48x16xf32>
    %352 = arith.addf %348, %351 : vector<48x16xf32>
    %353 = vector.extract_strided_slice %329 {offsets = [0, 6], sizes = [48, 16], strides = [1, 1]} : vector<48x26xf32> to vector<48x16xf32>
    %cst_182 = arith.constant 0.213005543 : f32
    %354 = vector.broadcast %cst_182 : f32 to vector<48x16xf32>
    %355 = arith.mulf %354, %353 : vector<48x16xf32>
    %356 = arith.addf %352, %355 : vector<48x16xf32>
    %357 = vector.extract_strided_slice %329 {offsets = [0, 7], sizes = [48, 16], strides = [1, 1]} : vector<48x26xf32> to vector<48x16xf32>
    %cst_183 = arith.constant 0.109360687 : f32
    %358 = vector.broadcast %cst_183 : f32 to vector<48x16xf32>
    %359 = arith.mulf %358, %357 : vector<48x16xf32>
    %360 = arith.addf %356, %359 : vector<48x16xf32>
    %361 = vector.extract_strided_slice %329 {offsets = [0, 8], sizes = [48, 16], strides = [1, 1]} : vector<48x26xf32> to vector<48x16xf32>
    %cst_184 = arith.constant 0.0360007733 : f32
    %362 = vector.broadcast %cst_184 : f32 to vector<48x16xf32>
    %363 = arith.mulf %362, %361 : vector<48x16xf32>
    %364 = arith.addf %360, %363 : vector<48x16xf32>
    %365 = vector.extract_strided_slice %329 {offsets = [0, 9], sizes = [48, 16], strides = [1, 1]} : vector<48x26xf32> to vector<48x16xf32>
    %cst_185 = arith.constant 0.00759875821 : f32
    %366 = vector.broadcast %cst_185 : f32 to vector<48x16xf32>
    %367 = arith.mulf %366, %365 : vector<48x16xf32>
    %368 = arith.addf %364, %367 : vector<48x16xf32>
    %369 = vector.extract_strided_slice %329 {offsets = [0, 10], sizes = [48, 16], strides = [1, 1]} : vector<48x26xf32> to vector<48x16xf32>
    %cst_186 = arith.constant 0.00102838012 : f32
    %370 = vector.broadcast %cst_186 : f32 to vector<48x16xf32>
    %371 = arith.mulf %370, %369 : vector<48x16xf32>
    %372 = arith.addf %368, %371 : vector<48x16xf32>
    %373 = vector.shape_cast %232 : vector<3x16x16xf32> to vector<48x16xf32>
    %374 = tpu.concatenate %237, %373, %237 in 1 : vector<48x5xf32>, vector<48x16xf32>, vector<48x5xf32> -> vector<48x26xf32>
    %375 = vector.extract_strided_slice %374 {offsets = [0, 0], sizes = [48, 16], strides = [1, 1]} : vector<48x26xf32> to vector<48x16xf32>
    %cst_187 = arith.constant 0.00102838012 : f32
    %376 = vector.broadcast %cst_187 : f32 to vector<48x16xf32>
    %377 = arith.mulf %376, %375 : vector<48x16xf32>
    %378 = vector.extract_strided_slice %374 {offsets = [0, 1], sizes = [48, 16], strides = [1, 1]} : vector<48x26xf32> to vector<48x16xf32>
    %cst_188 = arith.constant 0.00759875821 : f32
    %379 = vector.broadcast %cst_188 : f32 to vector<48x16xf32>
    %380 = arith.mulf %379, %378 : vector<48x16xf32>
    %381 = arith.addf %377, %380 : vector<48x16xf32>
    %382 = vector.extract_strided_slice %374 {offsets = [0, 2], sizes = [48, 16], strides = [1, 1]} : vector<48x26xf32> to vector<48x16xf32>
    %cst_189 = arith.constant 0.0360007733 : f32
    %383 = vector.broadcast %cst_189 : f32 to vector<48x16xf32>
    %384 = arith.mulf %383, %382 : vector<48x16xf32>
    %385 = arith.addf %381, %384 : vector<48x16xf32>
    %386 = vector.extract_strided_slice %374 {offsets = [0, 3], sizes = [48, 16], strides = [1, 1]} : vector<48x26xf32> to vector<48x16xf32>
    %cst_190 = arith.constant 0.109360687 : f32
    %387 = vector.broadcast %cst_190 : f32 to vector<48x16xf32>
    %388 = arith.mulf %387, %386 : vector<48x16xf32>
    %389 = arith.addf %385, %388 : vector<48x16xf32>
    %390 = vector.extract_strided_slice %374 {offsets = [0, 4], sizes = [48, 16], strides = [1, 1]} : vector<48x26xf32> to vector<48x16xf32>
    %cst_191 = arith.constant 0.213005543 : f32
    %391 = vector.broadcast %cst_191 : f32 to vector<48x16xf32>
    %392 = arith.mulf %391, %390 : vector<48x16xf32>
    %393 = arith.addf %389, %392 : vector<48x16xf32>
    %394 = vector.extract_strided_slice %374 {offsets = [0, 5], sizes = [48, 16], strides = [1, 1]} : vector<48x26xf32> to vector<48x16xf32>
    %cst_192 = arith.constant 0.266011715 : f32
    %395 = vector.broadcast %cst_192 : f32 to vector<48x16xf32>
    %396 = arith.mulf %395, %394 : vector<48x16xf32>
    %397 = arith.addf %393, %396 : vector<48x16xf32>
    %398 = vector.extract_strided_slice %374 {offsets = [0, 6], sizes = [48, 16], strides = [1, 1]} : vector<48x26xf32> to vector<48x16xf32>
    %cst_193 = arith.constant 0.213005543 : f32
    %399 = vector.broadcast %cst_193 : f32 to vector<48x16xf32>
    %400 = arith.mulf %399, %398 : vector<48x16xf32>
    %401 = arith.addf %397, %400 : vector<48x16xf32>
    %402 = vector.extract_strided_slice %374 {offsets = [0, 7], sizes = [48, 16], strides = [1, 1]} : vector<48x26xf32> to vector<48x16xf32>
    %cst_194 = arith.constant 0.109360687 : f32
    %403 = vector.broadcast %cst_194 : f32 to vector<48x16xf32>
    %404 = arith.mulf %403, %402 : vector<48x16xf32>
    %405 = arith.addf %401, %404 : vector<48x16xf32>
    %406 = vector.extract_strided_slice %374 {offsets = [0, 8], sizes = [48, 16], strides = [1, 1]} : vector<48x26xf32> to vector<48x16xf32>
    %cst_195 = arith.constant 0.0360007733 : f32
    %407 = vector.broadcast %cst_195 : f32 to vector<48x16xf32>
    %408 = arith.mulf %407, %406 : vector<48x16xf32>
    %409 = arith.addf %405, %408 : vector<48x16xf32>
    %410 = vector.extract_strided_slice %374 {offsets = [0, 9], sizes = [48, 16], strides = [1, 1]} : vector<48x26xf32> to vector<48x16xf32>
    %cst_196 = arith.constant 0.00759875821 : f32
    %411 = vector.broadcast %cst_196 : f32 to vector<48x16xf32>
    %412 = arith.mulf %411, %410 : vector<48x16xf32>
    %413 = arith.addf %409, %412 : vector<48x16xf32>
    %414 = vector.extract_strided_slice %374 {offsets = [0, 10], sizes = [48, 16], strides = [1, 1]} : vector<48x26xf32> to vector<48x16xf32>
    %cst_197 = arith.constant 0.00102838012 : f32
    %415 = vector.broadcast %cst_197 : f32 to vector<48x16xf32>
    %416 = arith.mulf %415, %414 : vector<48x16xf32>
    %417 = arith.addf %413, %416 : vector<48x16xf32>
    %418 = vector.shape_cast %236 : vector<3x16x16xf32> to vector<48x16xf32>
    %419 = tpu.concatenate %237, %418, %237 in 1 : vector<48x5xf32>, vector<48x16xf32>, vector<48x5xf32> -> vector<48x26xf32>
    %420 = vector.extract_strided_slice %419 {offsets = [0, 0], sizes = [48, 16], strides = [1, 1]} : vector<48x26xf32> to vector<48x16xf32>
    %cst_198 = arith.constant 0.00102838012 : f32
    %421 = vector.broadcast %cst_198 : f32 to vector<48x16xf32>
    %422 = arith.mulf %421, %420 : vector<48x16xf32>
    %423 = vector.extract_strided_slice %419 {offsets = [0, 1], sizes = [48, 16], strides = [1, 1]} : vector<48x26xf32> to vector<48x16xf32>
    %cst_199 = arith.constant 0.00759875821 : f32
    %424 = vector.broadcast %cst_199 : f32 to vector<48x16xf32>
    %425 = arith.mulf %424, %423 : vector<48x16xf32>
    %426 = arith.addf %422, %425 : vector<48x16xf32>
    %427 = vector.extract_strided_slice %419 {offsets = [0, 2], sizes = [48, 16], strides = [1, 1]} : vector<48x26xf32> to vector<48x16xf32>
    %cst_200 = arith.constant 0.0360007733 : f32
    %428 = vector.broadcast %cst_200 : f32 to vector<48x16xf32>
    %429 = arith.mulf %428, %427 : vector<48x16xf32>
    %430 = arith.addf %426, %429 : vector<48x16xf32>
    %431 = vector.extract_strided_slice %419 {offsets = [0, 3], sizes = [48, 16], strides = [1, 1]} : vector<48x26xf32> to vector<48x16xf32>
    %cst_201 = arith.constant 0.109360687 : f32
    %432 = vector.broadcast %cst_201 : f32 to vector<48x16xf32>
    %433 = arith.mulf %432, %431 : vector<48x16xf32>
    %434 = arith.addf %430, %433 : vector<48x16xf32>
    %435 = vector.extract_strided_slice %419 {offsets = [0, 4], sizes = [48, 16], strides = [1, 1]} : vector<48x26xf32> to vector<48x16xf32>
    %cst_202 = arith.constant 0.213005543 : f32
    %436 = vector.broadcast %cst_202 : f32 to vector<48x16xf32>
    %437 = arith.mulf %436, %435 : vector<48x16xf32>
    %438 = arith.addf %434, %437 : vector<48x16xf32>
    %439 = vector.extract_strided_slice %419 {offsets = [0, 5], sizes = [48, 16], strides = [1, 1]} : vector<48x26xf32> to vector<48x16xf32>
    %cst_203 = arith.constant 0.266011715 : f32
    %440 = vector.broadcast %cst_203 : f32 to vector<48x16xf32>
    %441 = arith.mulf %440, %439 : vector<48x16xf32>
    %442 = arith.addf %438, %441 : vector<48x16xf32>
    %443 = vector.extract_strided_slice %419 {offsets = [0, 6], sizes = [48, 16], strides = [1, 1]} : vector<48x26xf32> to vector<48x16xf32>
    %cst_204 = arith.constant 0.213005543 : f32
    %444 = vector.broadcast %cst_204 : f32 to vector<48x16xf32>
    %445 = arith.mulf %444, %443 : vector<48x16xf32>
    %446 = arith.addf %442, %445 : vector<48x16xf32>
    %447 = vector.extract_strided_slice %419 {offsets = [0, 7], sizes = [48, 16], strides = [1, 1]} : vector<48x26xf32> to vector<48x16xf32>
    %cst_205 = arith.constant 0.109360687 : f32
    %448 = vector.broadcast %cst_205 : f32 to vector<48x16xf32>
    %449 = arith.mulf %448, %447 : vector<48x16xf32>
    %450 = arith.addf %446, %449 : vector<48x16xf32>
    %451 = vector.extract_strided_slice %419 {offsets = [0, 8], sizes = [48, 16], strides = [1, 1]} : vector<48x26xf32> to vector<48x16xf32>
    %cst_206 = arith.constant 0.0360007733 : f32
    %452 = vector.broadcast %cst_206 : f32 to vector<48x16xf32>
    %453 = arith.mulf %452, %451 : vector<48x16xf32>
    %454 = arith.addf %450, %453 : vector<48x16xf32>
    %455 = vector.extract_strided_slice %419 {offsets = [0, 9], sizes = [48, 16], strides = [1, 1]} : vector<48x26xf32> to vector<48x16xf32>
    %cst_207 = arith.constant 0.00759875821 : f32
    %456 = vector.broadcast %cst_207 : f32 to vector<48x16xf32>
    %457 = arith.mulf %456, %455 : vector<48x16xf32>
    %458 = arith.addf %454, %457 : vector<48x16xf32>
    %459 = vector.extract_strided_slice %419 {offsets = [0, 10], sizes = [48, 16], strides = [1, 1]} : vector<48x26xf32> to vector<48x16xf32>
    %cst_208 = arith.constant 0.00102838012 : f32
    %460 = vector.broadcast %cst_208 : f32 to vector<48x16xf32>
    %461 = arith.mulf %460, %459 : vector<48x16xf32>
    %462 = arith.addf %458, %461 : vector<48x16xf32>
    %463 = arith.mulf %282, %282 : vector<48x16xf32>
    %464 = arith.mulf %327, %327 : vector<48x16xf32>
    %465 = arith.mulf %282, %327 : vector<48x16xf32>
    %466 = arith.subf %372, %463 : vector<48x16xf32>
    %467 = arith.subf %417, %464 : vector<48x16xf32>
    %468 = arith.subf %462, %465 : vector<48x16xf32>
    %cst_209 = arith.constant 2.000000e+00 : f32
    %469 = vector.broadcast %cst_209 : f32 to vector<48x16xf32>
    %470 = arith.mulf %469, %465 : vector<48x16xf32>
    %cst_210 = arith.constant 9.99999974E-5 : f32
    %471 = vector.broadcast %cst_210 : f32 to vector<48x16xf32>
    %472 = arith.addf %470, %471 : vector<48x16xf32>
    %cst_211 = arith.constant 2.000000e+00 : f32
    %473 = vector.broadcast %cst_211 : f32 to vector<48x16xf32>
    %474 = arith.mulf %473, %468 : vector<48x16xf32>
    %cst_212 = arith.constant 8.99999984E-4 : f32
    %475 = vector.broadcast %cst_212 : f32 to vector<48x16xf32>
    %476 = arith.addf %474, %475 : vector<48x16xf32>
    %477 = arith.mulf %472, %476 : vector<48x16xf32>
    %478 = arith.addf %463, %464 : vector<48x16xf32>
    %cst_213 = arith.constant 9.99999974E-5 : f32
    %479 = vector.broadcast %cst_213 : f32 to vector<48x16xf32>
    %480 = arith.addf %478, %479 : vector<48x16xf32>
    %481 = arith.addf %466, %467 : vector<48x16xf32>
    %cst_214 = arith.constant 8.99999984E-4 : f32
    %482 = vector.broadcast %cst_214 : f32 to vector<48x16xf32>
    %483 = arith.addf %481, %482 : vector<48x16xf32>
    %484 = arith.mulf %480, %483 : vector<48x16xf32>
    %485 = arith.divf %477, %484 : vector<48x16xf32>
    %486 = vector.shape_cast %485 : vector<48x16xf32> to vector<1x48x16xf32>
    %cst_215 = arith.constant dense<0.000000e+00> : vector<1xf32>
    %487 = vector.multi_reduction <add>, %486, %cst_215 [1, 2] : vector<1x48x16xf32> to vector<1xf32>
    %488 = vector.shape_cast %487 : vector<1xf32> to vector<1x1x1xf32>
    %489 = vector.extract %488[0, 0, 0] : f32 from vector<1x1x1xf32>
    %490 = vector.broadcast %489 : f32 to vector<1x1xf32>
    %c0_216 = arith.constant 0 : index
    %c0_217 = arith.constant 0 : index
    %c0_218 = arith.constant 0 : index
    %c0_219 = arith.constant 0 : index
    %491 = vector.load %arg4[%c0_216, %c0_217, %c0_218, %c0_219] : memref<1x1x1x1xf32, #tpu.memory_space<vmem>>, vector<1x1x1x1xf32>
    %492 = vector.shape_cast %491 : vector<1x1x1x1xf32> to vector<1x1xf32>
    %493 = vector.shape_cast %490 : vector<1x1xf32> to vector<1x1x1x1xf32>
    tpu.vector_store %arg4[%c0_216, %c0_217, %c0_218, %c0_219], %493 {strides = array<i32>} : memref<1x1x1x1xf32, #tpu.memory_space<vmem>>, vector<1x1x1x1xf32>,
    return
  }
  func.func @transform_0(%arg0: i32, %arg1: i32) -> (i32, i32, i32, i32, i32) {
    %c0_i32 = arith.constant 0 : i32
    %c0_i32_0 = arith.constant 0 : i32
    %c0_i32_1 = arith.constant 0 : i32
    %c0_i32_2 = arith.constant 0 : i32
    return %arg0, %c0_i32, %arg1, %c0_i32_0, %c0_i32_1 : i32, i32, i32, i32, i32
  }
  func.func @transform_1(%arg0: i32, %arg1: i32) -> (i32, i32, i32, i32, i32) {
    %c0_i32 = arith.constant 0 : i32
    %c0_i32_0 = arith.constant 0 : i32
    %c0_i32_1 = arith.constant 0 : i32
    %c0_i32_2 = arith.constant 0 : i32
    return %arg0, %c0_i32, %arg1, %c0_i32_0, %c0_i32_1 : i32, i32, i32, i32, i32
  }
  func.func @transform_2(%arg0: i32, %arg1: i32) -> (i32, i32, i32, i32) {
    %c0_i32 = arith.constant 0 : i32
    %c0_i32_0 = arith.constant 0 : i32
    %c0_i32_1 = arith.constant 0 : i32
    return %arg0, %arg1, %c0_i32, %c0_i32_0 : i32, i32, i32, i32
  }
}

</mosaic_0001>

<bundles_post_ra>
// kernel: tpu_custom_call.1
= control target key start
LH: loop header
LB: loop body
LE: loop exit
PB: predicated region body
PF: predicated region fallthrough
CT: control target
= control target key end

     0   :  { %s3332_s12 = smov 0   ;;  %s3334_s13 = smov 0   ;;  %s5161_s0 = inlined_call_operand.vmem [shape: f32[16,16], index: 0, kind: input, shape index: {}]   ;;  %s5162_s1 = inlined_call_operand.vmem [shape: f32[2,3,1,26,16], index: 1, kind: input, shape index: {}]   ;;  %s5163_s2 = inlined_call_operand.vmem [shape: f32[2,3,1,26,16], index: 2, kind: input, shape index: {}]   ;;  %s5164_s3 = inlined_call_operand.vmem [shape: f32[2,1,1,1], index: 3, kind: output, shape index: {}]  }
   0x1   :  { %s3336_s14 = smov 0  }
   0x2 LB: > { %s25_s15 = sadd.s32 1, %s3306_s13  ;;  %p3106_p0 = scmp.ge.s32.totalorder %s3310_s14, 1  ;;  %s3310_s14 = sphi %s3336_s14, %s13_s14   ;;  %s3306_s13 = sphi %s3334_s13, %s5337_s13   ;;  %s3302_s12 = sphi %s3332_s12, %s5336_s12  }
   0x3   : > { %p27_p1 = scmp.ge.s32.totalorder %s25_s15, 2  ;;  %p173_p2 = scmp.lt.s32.totalorder %s3310_s14, 3 }
   0x5   : > { %s5339_s15 = smov (%p27_p1, %s25_s15), 0  ;;  %p174_p3 = pnand %p3106_p0, %p173_p2 }
   0x7   : > { %177 = sbr.rel (%p174_p3) target bundleno = 761 (0x2f9), region = 32 }
   0xc   : > { %v236_v0 = vld [vmem:[%s5161_s0 + $0x8] sm:$0xff]  ;;  %v235_v1 = vld [vmem:[%s5161_s0] sm:$0xff]  ;;  %p211_p4 = scmp.lt.s32.totalorder %s3302_s12, 1  ;;  %vm1137_vm0 = vcmask 130048  }
   0xd   : > { %v3356_v2 = vand.u32 4294901760, %v236_v0  ;;  %v3358_v3 = vand.u32 4294901760, %v235_v1 }
   0xe   : > { %s5341_s12 = smov (!%p211_p4, %s3302_s12), 1 }
   0xf   : > { %3111 = vmatpush.msra.mxu2 %v3356_v2  ;;  %v3364_v4 = vsub.f32 %v236_v0, %v3356_v2  ;;  %v3367_v5 = vsub.f32 %v235_v1, %v3358_v3  ;;  %1171 = vmatpush.msra.mxu0 %v3356_v2  ;;  %s3115_s20 = smul.u32 96, %s5341_s12  ;;  %s234_s29 = scalar_lea.vmem %s5164_s3, %s5341_s12 }
  0x11   : > { %v3372_v6 = vand.u32 4294901760, %v3364_v4  ;;  %3112 = vmatpush.msra.mxu2 %v3358_v3  ;;  %v3376_v7 = vand.u32 4294901760, %v3367_v5  ;;  %1173 = vmatpush.msra.mxu0 %v3358_v3  ;;  %s3382_s23 = scalar_lea.vmem %s5162_s1, %s3115_s20  ;;  %s3416_s26 = scalar_lea.vmem %s5163_s2, %s3115_s20 }
  0x12   : > { %v3390_v10 = vld [vmem:[%s3382_s23 + $0x28] sm:$0xff]  ;;  %v3423_v28 = vld [vmem:[%s3382_s23] sm:$0xff]  ;;  %v928_v36 = vld [vmem:[%s3382_s23 + $0x30] sm:$0xff] }
  0x13   : > { %1290 = vmatpush.msrb.mxu2 %v3364_v4  ;;  %v1240_v8 = vsub.f32 %v3364_v4, %v3372_v6  ;;  %v1246_v9 = vsub.f32 %v3367_v5, %v3376_v7  ;;  %v300_v11 = vld [vmem:[%s3382_s23 + $0x29] sm:$0xff]  ;;  %1397 = vmatpush.msrb.mxu0 %v3372_v6  ;;  %v252_v13 = vmul.f32 0.0010283801, %v3390_v10  ;;  %v3431_v31 = vld [vmem:[%s3416_s26] sm:$0xff]  ;;  %v249_v39 = vmul.f32 0.0010283801, %v3423_v28 }
  0x14   : > { %v3394_v12 = vld [vmem:[%s3382_s23 + $0x2a] sm:$0xff]  ;;  %v3398_v14 = vmul.f32 0.007598758, %v300_v11  ;;  %v3438_v33 = vld [vmem:[%s3382_s23 + $0x1] sm:$0xff]  ;;  %v285_v38 = vmul.f32 %v3431_v31, %v3423_v28  ;;  %v936_v45 = vmul.f32 0.036000773, %v928_v36 }
  0x15   : > { %v402_v15 = vmul.f32 0.036000773, %v3394_v12  ;;  %1293 = vmatpush.msrb.mxu2 %v3367_v5  ;;  %v3402_v16 = vand.u32 4294901760, %v1240_v8  ;;  %v3404_v17 = vand.u32 4294901760, %v1246_v9  ;;  %v480_v18 = vld [vmem:[%s3382_s23 + $0x2b] sm:$0xff]  ;;  %1401 = vmatpush.msrb.mxu0 %v3376_v7  ;;  %v3458_v49 = vld [vmem:[%s3382_s23 + $0x2] sm:$0xff] }
  0x16   : > { %v570_v19 = vld [vmem:[%s3382_s23 + $0x2c] sm:$0xff]  ;;  %v318_v20 = vadd.f32 %v3398_v14, %v252_v13  ;;  %v492_v21 = vmul.f32 0.10936069, %v480_v18  ;;  %v309_v41 = vmul.f32 0.007598758, %v3438_v33  ;;  %v3462_v53 = vld [vmem:[%s3416_s26 + $0x1] sm:$0xff] }
  0x17   : > { %3113 = vmatpush.msra.mxu3 %v3402_v16  ;;  %v660_v22 = vld [vmem:[%s3382_s23 + $0x2d] sm:$0xff]  ;;  %1242 = vmatpush.msra.mxu1 %v3402_v16  ;;  %v582_v24 = vmul.f32 0.21300554, %v570_v19  ;;  %v291_v51 = vmul.f32 0.0010283801, %v285_v38  ;;  %v369_v58 = vmul.f32 %v3462_v53, %v3438_v33  ;;  %v3480_v11 = vld [vmem:[%s3382_s23 + $0x3] sm:$0xff] }
  0x18   : > { %v408_v23 = vadd.f32 %v402_v15, %v318_v20  ;;  %v750_v25 = vld [vmem:[%s3382_s23 + $0x2e] sm:$0xff]  ;;  %v672_v27 = vmul.f32 0.26601171, %v660_v22  ;;  %v315_v56 = vadd.f32 %v309_v41, %v249_v39  ;;  %v399_v62 = vmul.f32 0.036000773, %v3458_v49  ;;  %v3486_v18 = vld [vmem:[%s3416_s26 + $0x2] sm:$0xff] }
  0x19   : > { %3114 = vmatpush.msra.mxu3 %v3404_v17  ;;  %1248 = vmatpush.msra.mxu1 %v3404_v17  ;;  %v3426_v29 = vld [vmem:[%s3382_s23 + $0x8] sm:$0xff]  ;;  %v762_v35 = vmul.f32 0.21300554, %v750_v25  ;;  %v1003_v46 = vld [vmem:[%s3382_s23 + $0x31] sm:$0xff]  ;;  %v375_v0 = vmul.f32 0.007598758, %v369_v58 }
  0x1a   : > { %v498_v26 = vadd.f32 %v492_v21, %v408_v23  ;;  %v840_v30 = vld [vmem:[%s3382_s23 + $0x2f] sm:$0xff]  ;;  %v3435_v32 = vmul.f32 %v3426_v29, %v3426_v29  ;;  %v1009_v61 = vmul.f32 0.007598758, %v1003_v46  ;;  %v405_v19 = vadd.f32 %v399_v62, %v315_v56  ;;  %v3492_v25 = vld [vmem:[%s3416_s26 + $0x3] sm:$0xff] }
  0x1b   : > { %1340 = vmatpush.msrb.mxu3 %v3356_v2  ;;  %1442 = vmatpush.msrb.mxu1 %v3356_v2  ;;  %v3442_v37 = vld [vmem:[%s3416_s26 + $0x8] sm:$0xff]  ;;  %v852_v43 = vmul.f32 0.10936069, %v840_v30  ;;  %v1063_v55 = vld [vmem:[%s3382_s23 + $0x32] sm:$0xff]  ;;  %v381_v13 = vadd.f32 %v375_v0, %v291_v51  ;;  %v459_v21 = vmul.f32 %v3486_v18, %v3458_v49  ;;  %v489_v22 = vmul.f32 0.10936069, %v3480_v11 }
  0x1c   : > { %5222 = vst [vmem:[#allocation2_spill] sm:$0xff] %v3435_v32  ;;  %v588_v34 = vadd.f32 %v582_v24, %v498_v26  ;;  %v3451_v40 = vmul.f32 %v3442_v37, %v3426_v29  ;;  %v298_v44 = vld [vmem:[%s3382_s23 + $0x9] sm:$0xff]  ;;  %v268_v47 = vmul.f32 0.0010283801, %v3435_v32  ;;  %v1071_v9 = vmul.f32 0.0010283801, %v1063_v55 }
  0x1d   : > { %1342 = vmatpush.msrb.mxu3 %v3358_v3  ;;  %1444 = vmatpush.msrb.mxu1 %v3358_v3  ;;  %v334_v48 = vmul.f32 %v298_v44, %v298_v44  ;;  %v3465_v54 = vld [vmem:[%s3416_s26 + $0x9] sm:$0xff]  ;;  %v465_v24 = vmul.f32 0.036000773, %v459_v21  ;;  %v549_v30 = vmul.f32 %v3492_v25, %v3480_v11 }
  0x1e   : > { %v678_v42 = vadd.f32 %v672_v27, %v588_v34  ;;  %v292_v52 = vmul.f32 0.0010283801, %v3451_v40  ;;  %v370_v59 = vmul.f32 %v3465_v54, %v298_v44  ;;  %v3495_v26 = vld [vmem:[%s3382_s23 + $0x4] sm:$0xff]  ;;  %v495_v27 = vadd.f32 %v489_v22, %v405_v19 }
  0x1f   : > { %v3468_v57 = vmul.f32 0.007598758, %v334_v48  ;;  %v3500_v34 = vld [vmem:[%s3382_s23 + $0x5] sm:$0xff]  ;;  %v471_v36 = vadd.f32 %v465_v24, %v381_v13  ;;  %v555_v39 = vmul.f32 0.10936069, %v549_v30 }
  0x20   : > { %v768_v50 = vadd.f32 %v762_v35, %v678_v42  ;;  %v3477_v1 = vmul.f32 0.007598758, %v370_v59  ;;  %5226 = vst [vmem:[#allocation6_spill] sm:$0xff] %v3500_v34  ;;  %v3506_v41 = vld [vmem:[%s3416_s26 + $0x4] sm:$0xff]  ;;  %v579_v42 = vmul.f32 0.21300554, %v3495_v26 }
  0x21   : > { %5223 = vst [vmem:[#allocation3_spill] sm:$0xff] %v3468_v57  ;;  %v3475_v63 = vadd.f32 %v3468_v57, %v268_v47  ;;  %v669_v46 = vmul.f32 0.26601171, %v3500_v34  ;;  %v310_v48 = vmul.f32 0.007598758, %v298_v44  ;;  %v3521_v55 = vld [vmem:[%s3382_s23 + $0xa] sm:$0xff] }
  0x22   : > { %v858_v60 = vadd.f32 %v852_v43, %v768_v50  ;;  %v3483_v15 = vadd.f32 %v3477_v1, %v292_v52  ;;  %v250_v43 = vmul.f32 0.0010283801, %v3426_v29  ;;  %v561_v50 = vadd.f32 %v555_v39, %v471_v36  ;;  %v3518_v52 = vld [vmem:[%s3382_s23 + $0x6] sm:$0xff]  ;;  %5228 = vst [vmem:[#allocation8_spill] sm:$0xff] %v3521_v55 }
  0x23   : > { %5224 = vst [vmem:[#allocation4_spill] sm:$0xff] %v3475_v63  ;;  %v585_v51 = vadd.f32 %v579_v42, %v495_v27  ;;  %v3526_v59 = vld [vmem:[%s3416_s26 + $0x5] sm:$0xff]  ;;  %v759_v0 = vmul.f32 0.21300554, %v3518_v52  ;;  %v400_v13 = vmul.f32 0.036000773, %v3521_v55 }
  0x24   : > { %v942_v8 = vadd.f32 %v936_v45, %v858_v60  ;;  %5225 = vst [vmem:[#allocation5_spill] sm:$0xff] %v3483_v15  ;;  %v639_v45 = vmul.f32 %v3506_v41, %v3495_v26  ;;  %v729_v62 = vmul.f32 %v3526_v59, %v3500_v34  ;;  %v3540_v19 = vld [vmem:[%s3382_s23 + $0xb] sm:$0xff] }
  0x25   : > { %5227 = vst [vmem:[#allocation7_spill] sm:$0xff] %v3518_v52  ;;  %v675_v60 = vadd.f32 %v669_v46, %v585_v51  ;;  %v3549_v30 = vld [vmem:[%s3416_s26 + $0x7] sm:$0xff]  ;;  %v490_v36 = vmul.f32 0.10936069, %v3540_v19  ;;  %v933_v51 = vmul.f32 0.036000773, %v3426_v29 }
  0x26   : > { %v1014_v20 = vadd.f32 %v1009_v61, %v942_v8  ;;  %v645_v56 = vmul.f32 0.21300554, %v639_v45  ;;  %v3529_v61 = vld [vmem:[%s3382_s23 + $0x7] sm:$0xff]  ;;  %5230 = vst [vmem:[#allocation10_spill] sm:$0xff] %v3540_v19  ;;  %v735_v21 = vmul.f32 0.26601171, %v729_v62 }
  0x27   : > { %5229 = vst [vmem:[#allocation9_spill] sm:$0xff] %v3529_v61  ;;  %v765_v22 = vadd.f32 %v759_v0, %v675_v60  ;;  %v849_v24 = vmul.f32 0.10936069, %v3529_v61  ;;  %v3554_v45 = vld [vmem:[%s3382_s23 + $0x48] sm:$0xff] }
  0x28   : > { %v1077_v23 = vadd.f32 %v1071_v9, %v1014_v20  ;;  %v651_v44 = vadd.f32 %v645_v56, %v561_v50  ;;  %v316_v9 = vadd.f32 %v310_v48, %v250_v43  ;;  %v3543_v20 = vld [vmem:[%s3416_s26 + $0x6] sm:$0xff]  ;;  %v909_v50 = vmul.f32 %v3549_v30, %v3529_v61 }
  0x29   : > { %v855_v43 = vadd.f32 %v849_v24, %v765_v22  ;;  %v301_v46 = vld [vmem:[%s3382_s23 + $0x41] sm:$0xff]  ;;  %v302_v56 = vld [vmem:[%s3382_s23 + $0x49] sm:$0xff]  ;;  %v254_v29 = vmul.f32 0.0010283801, %v3554_v45 }
  0x2a   : > { %v1148_v35 = vsel %vm1137_vm0, %v1077_v23, 0  ;;  %v819_v23 = vmul.f32 %v3543_v20, %v3518_v52  ;;  %v741_v39 = vadd.f32 %v735_v21, %v651_v44  ;;  %v391_v60 = vld [vmem:[%s3382_s23 + $0x42] sm:$0xff]  ;;  %v3563_v62 = vld [vmem:[%s3382_s23 + $0x4a] sm:$0xff]  ;;  %v406_v0 = vadd.f32 %v400_v13, %v316_v9 }
  0x2b   : > { %v3503_v38 = vand.u32 4294901760, %v1148_v35  ;;  %v990_v44 = vmul.f32 0.036000773, %v3451_v40  ;;  %v1068_v21 = vmul.f32 0.0010283801, %v3521_v55  ;;  %v481_v22 = vld [vmem:[%s3382_s23 + $0x43] sm:$0xff] }
  0x2c   : > { %v825_v42 = vmul.f32 0.21300554, %v819_v23  ;;  %v482_v23 = vld [vmem:[%s3382_s23 + $0x4b] sm:$0xff]  ;;  %v915_v24 = vmul.f32 0.10936069, %v909_v50 }
  0x2d   : > { %v3514_v47 = vsub.f32 %v1148_v35, %v3503_v38  ;;  %1262 = vmatmul.f32.vlgmr.msra.gmra.mxu3 %v3503_v38  ;;  %v241_v35 = vld [vmem:[%s3382_s23 + $0x40] sm:$0xff]  ;;  %v313_v15 = vmul.f32 0.007598758, %v301_v46  ;;  %v3571_v57 = vmul.f32 0.007598758, %v302_v56  ;;  %v3578_v46 = vld [vmem:[%s3382_s23 + $0xc] sm:$0xff] }
  0x2e   : > { %1574 = vmatpush.msra.mxu3 %v3402_v16  ;;  %v403_v9 = vmul.f32 0.036000773, %v391_v60  ;;  %5231 = vst [vmem:[#allocation11_spill] sm:$0xff] %v3578_v46  ;;  %v494_v32 = vmul.f32 0.10936069, %v482_v23  ;;  %v572_v23 = vld [vmem:[%s3382_s23 + $0x4c] sm:$0xff] }
  0x2f   : > { %v5165_v58 = vand.u32 4294901760, %v3514_v47 }
  0x30   : > { %1580 = vmatpush.msra.mxu3 %v3404_v17 }
  0x31   : > { %v1201_v8 = vsub.f32 %v3514_v47, %v5165_v58  ;;  %v253_v58 = vmul.f32 0.0010283801, %v241_v35  ;;  %v320_v35 = vadd.f32 %v3571_v57, %v254_v29 }
  0x33   : > { %v1202_v27 = vand.u32 4294901760, %v1201_v8  ;;  %v831_v8 = vadd.f32 %v825_v42, %v741_v39  ;;  %v404_v39 = vmul.f32 0.036000773, %v3563_v62  ;;  %v571_v42 = vld [vmem:[%s3382_s23 + $0x44] sm:$0xff]  ;;  %v319_v50 = vadd.f32 %v313_v15, %v253_v58  ;;  %v3586_v58 = vld [vmem:[%s3382_s23 + $0xe] sm:$0xff] }
  0x34   : > { %v583_v63 = vmul.f32 0.21300554, %v571_v42  ;;  %v751_v15 = vld [vmem:[%s3382_s23 + $0x46] sm:$0xff]  ;;  %5233 = vst [vmem:[#allocation13_spill] sm:$0xff] %v3586_v58 }
  0x35   : > { %1203 = vmatmul.f32.vlgmr.msra.gmra.mxu2 %v1202_v27  ;;  %v939_v27 = vadd.f32 %v933_v51, %v855_v43  ;;  %v921_v40 = vadd.f32 %v915_v24, %v831_v8  ;;  %v493_v43 = vmul.f32 0.10936069, %v481_v22  ;;  %v496_v51 = vadd.f32 %v490_v36, %v406_v0  ;;  %v661_v8 = vld [vmem:[%s3382_s23 + $0x45] sm:$0xff] }
  0x36   : > { %1503 = vmatpush.msra.mxu2 %v3356_v2  ;;  %v409_v24 = vadd.f32 %v403_v9, %v319_v50  ;;  %v841_v0 = vld [vmem:[%s3382_s23 + $0x47] sm:$0xff]  ;;  %v760_v50 = vmul.f32 0.21300554, %v3586_v58 }
  0x37   : > { %v1011_v13 = vadd.f32 %v939_v27, %v310_v48  ;;  %v996_v56 = vadd.f32 %v990_v44, %v921_v40  ;;  %v3582_v48 = vld [vmem:[%s3382_s23 + $0xd] sm:$0xff]  ;;  %v410_v27 = vadd.f32 %v404_v39, %v320_v35  ;;  %v580_v44 = vmul.f32 0.21300554, %v3578_v46 }
  0x38   : > { %1505 = vmatpush.msra.mxu2 %v3358_v3  ;;  %5232 = vst [vmem:[#allocation12_spill] sm:$0xff] %v3582_v48  ;;  %v499_v9 = vadd.f32 %v493_v43, %v409_v24  ;;  %v673_v40 = vmul.f32 0.26601171, %v661_v8  ;;  %v3604_v35 = vld [vmem:[%s3382_s23 + $0x10] sm:$0xff]  ;;  %v763_v43 = vmul.f32 0.21300554, %v751_v15 }
  0x39   : > { %v1074_v60 = vadd.f32 %v1068_v21, %v1011_v13  ;;  %v3589_v22 = vadd.f32 %v996_v56, %v3477_v1  ;;  %v3595_v21 = vld [vmem:[%s3382_s23 + $0xf] sm:$0xff]  ;;  %v670_v13 = vmul.f32 0.26601171, %v3582_v48  ;;  %v500_v39 = vadd.f32 %v494_v32, %v410_v27  ;;  %5236 = vst [vmem:[#allocation16_spill] sm:$0xff] %v3604_v35  ;;  %v3616_v48 = vld [vmem:[%s3382_s23 + $0x20] sm:$0xff] }
  0x3a   : > { %5235 = vst [vmem:[#allocation15_spill] sm:$0xff] %v3595_v21  ;;  %v662_v1 = vld [vmem:[%s3382_s23 + $0x4d] sm:$0xff]  ;;  %v586_v42 = vadd.f32 %v580_v44, %v496_v51  ;;  %v589_v46 = vadd.f32 %v583_v63, %v499_v9  ;;  %v853_v8 = vmul.f32 0.10936069, %v841_v0  ;;  %v3619_v32 = vld [vmem:[%s3382_s23 + $0x21] sm:$0xff] }
  0x3b   : > { %5234 = vst [vmem:[#allocation14_spill] sm:$0xff] %v3589_v22  ;;  %v1139_v36 = vsel %vm1137_vm0, %v1074_v60, 0  ;;  %v3607_v56 = vld [vmem:[%s3382_s23 + $0x11] sm:$0xff]  ;;  %v850_v27 = vmul.f32 0.10936069, %v3595_v21  ;;  %v3627_v9 = vld [vmem:[%s3382_s23 + $0x22] sm:$0xff] }
  0x3c   : > { %v3598_v29 = vand.u32 4294901760, %v1139_v36  ;;  %5237 = vst [vmem:[#allocation17_spill] sm:$0xff] %v3607_v56  ;;  %v752_v60 = vld [vmem:[%s3382_s23 + $0x4e] sm:$0xff]  ;;  %v676_v51 = vadd.f32 %v670_v13, %v586_v42  ;;  %v584_v44 = vmul.f32 0.21300554, %v572_v23  ;;  %v679_v15 = vadd.f32 %v673_v40, %v589_v46  ;;  %v3645_v21 = vld [vmem:[%s3382_s23 + $0x24] sm:$0xff] }
  0x3d   : > { %v842_v24 = vld [vmem:[%s3382_s23 + $0x4f] sm:$0xff]  ;;  %5238 = vst [vmem:[#allocation18_spill] sm:$0xff] %v3616_v48  ;;  %v674_v58 = vmul.f32 0.26601171, %v662_v1  ;;  %v934_v0 = vmul.f32 0.036000773, %v3604_v35 }
  0x3e   : > { %v3611_v22 = vsub.f32 %v1139_v36, %v3598_v29  ;;  %1250 = vmatmul.f32.vlgmr.msra.gmra.mxu1 %v3598_v29  ;;  %5239 = vst [vmem:[#allocation19_spill] sm:$0xff] %v3619_v32  ;;  %v937_v36 = vmul.f32 0.036000773, %v3554_v45  ;;  %v766_v19 = vadd.f32 %v760_v50, %v676_v51  ;;  %v1008_v13 = vmul.f32 0.007598758, %v3607_v56  ;;  %v3631_v1 = vld [vmem:[%s3382_s23 + $0x23] sm:$0xff] }
  0x3f   : > { %1672 = vmatpush.msra.mxu1 %v3356_v2  ;;  %v590_v42 = vadd.f32 %v584_v44, %v500_v39  ;;  %v764_v23 = vmul.f32 0.21300554, %v752_v60  ;;  %v769_v45 = vadd.f32 %v763_v43, %v679_v15  ;;  %v3638_v40 = vld [vmem:[%s3382_s23 + $0x12] sm:$0xff]  ;;  %v251_v50 = vmul.f32 0.0010283801, %v3616_v48 }
  0x40   : > { %v5177_v63 = vand.u32 4294901760, %v3611_v22  ;;  %v929_v35 = vld [vmem:[%s3382_s23 + $0x50] sm:$0xff]  ;;  %v311_v51 = vmul.f32 0.007598758, %v3619_v32  ;;  %v856_v39 = vadd.f32 %v850_v27, %v766_v19  ;;  %v854_v44 = vmul.f32 0.10936069, %v842_v24 }
  0x41   : > { %1674 = vmatpush.msra.mxu1 %v3358_v3  ;;  %v680_v60 = vadd.f32 %v674_v58, %v590_v42  ;;  %v401_v56 = vmul.f32 0.036000773, %v3627_v9  ;;  %v859_v61 = vadd.f32 %v853_v8, %v769_v45  ;;  %v491_v15 = vmul.f32 0.10936069, %v3631_v1  ;;  %v3651_v19 = vld [vmem:[%s3382_s23 + $0x25] sm:$0xff]  ;;  %v1064_v27 = vld [vmem:[%s3382_s23 + $0x52] sm:$0xff] }
  0x42   : > { %v1177_v46 = vsub.f32 %v3611_v22, %v5177_v63  ;;  %v1004_v63 = vld [vmem:[%s3382_s23 + $0x51] sm:$0xff]  ;;  %v317_v43 = vadd.f32 %v311_v51, %v251_v50  ;;  %v940_v52 = vadd.f32 %v934_v0, %v856_v39  ;;  %v1069_v48 = vmul.f32 0.0010283801, %v3638_v40  ;;  %v3657_v51 = vld [vmem:[%s3382_s23 + $0x26] sm:$0xff] }
  0x43   : > { %v770_v34 = vadd.f32 %v764_v23, %v680_v60  ;;  %v938_v32 = vmul.f32 0.036000773, %v929_v35  ;;  %v943_v58 = vadd.f32 %v937_v36, %v859_v61  ;;  %v1072_v24 = vmul.f32 0.0010283801, %v3563_v62  ;;  %v3663_v62 = vld [vmem:[%s3382_s23 + $0x27] sm:$0xff] }
  0x44   : > { %v1178_v55 = vand.u32 4294901760, %v1177_v46  ;;  %v407_v42 = vadd.f32 %v401_v56, %v317_v43  ;;  %v581_v8 = vmul.f32 0.21300554, %v3645_v21  ;;  %v1012_v46 = vadd.f32 %v1008_v13, %v940_v52 }
  0x45   : > { %v860_v45 = vadd.f32 %v854_v44, %v770_v34  ;;  %v1010_v50 = vmul.f32 0.007598758, %v1004_v63  ;;  %v1015_v35 = vadd.f32 %v943_v58, %v3571_v57  ;;  %v1073_v23 = vmul.f32 0.0010283801, %v1064_v27 }
  0x46   : > { %1179 = vmatmul.f32.vlgmr.msra.gmra.mxu0 %v1178_v55  ;;  %v497_v0 = vadd.f32 %v491_v15, %v407_v42  ;;  %v671_v55 = vmul.f32 0.26601171, %v3651_v19  ;;  %v1075_v61 = vadd.f32 %v1069_v48, %v1012_v46  ;;  %v761_v34 = vmul.f32 0.21300554, %v3657_v51 }
  0x47   : > { %1622 = vmatpush.msra.mxu0 %v3364_v4  ;;  %v944_v36 = vadd.f32 %v938_v32, %v860_v45  ;;  %v1078_v56 = vadd.f32 %v1072_v24, %v1015_v35  ;;  %v851_v48 = vmul.f32 0.10936069, %v3663_v62  ;;  %v935_v58 = vmul.f32 0.036000773, %v3390_v10 }
  0x48   : > { %v587_v52 = vadd.f32 %v581_v8, %v497_v0  ;;  %v1142_v63 = vsel %vm1137_vm0, %v1075_v61, 0  ;;  %v1070_v0 = vmul.f32 0.0010283801, %v3394_v12 }
  0x49   : > { %1625 = vmatpush.msra.mxu0 %v3367_v5  ;;  %v1016_v13 = vadd.f32 %v1010_v50, %v944_v36  ;;  %v1151_v39 = vsel %vm1137_vm0, %v1078_v56, 0  ;;  %v3669_v57 = vand.u32 4294901760, %v1142_v63 }
  0x4a   : > { %v677_v60 = vadd.f32 %v671_v55, %v587_v52  ;;  %v3672_v32 = vand.u32 4294901760, %v1151_v39 }
  0x4b   : > { %v1079_v44 = vadd.f32 %v1073_v23, %v1016_v13  ;;  %v3675_v43 = vsub.f32 %v1142_v63, %v3669_v57  ;;  %1254 = vmatmul.f32.gmra.mxu1 %v3669_v57  ;;  %v321_v63 = vmul.f32 0.007598758, %v3462_v53 }
  0x4c   : > { %v767_v15 = vadd.f32 %v761_v34, %v677_v60  ;;  %v3680_v24 = vsub.f32 %v1151_v39, %v3672_v32  ;;  %1266 = vmatmul.f32.gmra.mxu3 %v3672_v32  ;;  %v255_v34 = vmul.f32 0.0010283801, %v3431_v31  ;;  %v501_v31 = vmul.f32 0.10936069, %v3492_v25 }
  0x4d   : > { %v1154_v27 = vsel %vm1137_vm0, %v1079_v44, 0  ;;  %v1184_v42 = vand.u32 4294901760, %v3675_v43 }
  0x4e   : > { %v3685_v8 = vand.u32 4294901760, %v1154_v27  ;;  %v857_v46 = vadd.f32 %v851_v48, %v767_v15  ;;  %v1208_v45 = vand.u32 4294901760, %v3680_v24  ;;  %v327_v39 = vadd.f32 %v321_v63, %v255_v34  ;;  %v3714_v15 = vld [vmem:[%s3416_s26 + $0xa] sm:$0xff] }
  0x4f   : > { %v1185_v50 = vsub.f32 %v3675_v43, %v1184_v42  ;;  %v574_v34 = vld [vmem:[%s3416_s26 + $0xc] sm:$0xff] }
  0x50   : > { %v3690_v35 = vsub.f32 %v1154_v27, %v3685_v8  ;;  %v941_v10 = vadd.f32 %v935_v58, %v857_v46  ;;  %v1209_v55 = vsub.f32 %v3680_v24, %v1208_v45  ;;  %v591_v46 = vmul.f32 0.21300554, %v3506_v41 }
  0x51   : > { %v1186_v61 = vand.u32 4294901760, %v1185_v50  ;;  %v3720_v50 = vmul.f32 0.007598758, %v3465_v54  ;;  %v681_v54 = vmul.f32 0.26601171, %v3526_v59 }
  0x52   : > { %v1216_v36 = vand.u32 4294901760, %v3690_v35  ;;  %v1013_v23 = vadd.f32 %v941_v10, %v3398_v14  ;;  %v1210_v56 = vand.u32 4294901760, %v1209_v55  ;;  %v411_v14 = vmul.f32 0.036000773, %v3486_v18 }
  0x53   : > { %1187 = vmatmul.f32.gmra.mxu0 %v1186_v61  ;;  %v256_v18 = vmul.f32 0.0010283801, %v3442_v37  ;;  %v5240_v10 = vand.u32 4294901760, %v3611_v22  ;;  %v412_v61 = vmul.f32 0.036000773, %v3714_v15 }
  0x54   : > { %v1076_v52 = vadd.f32 %v1070_v0, %v1013_v23  ;;  %1211 = vmatmul.f32.gmra.mxu2 %v1210_v56  ;;  %v1217_v12 = vsub.f32 %v3690_v35, %v1216_v36  ;;  %1270 = vmatmul.f32.gmra.mxu3 %v3685_v8  ;;  %v417_v48 = vadd.f32 %v411_v14, %v327_v39  ;;  %v484_v0 = vld [vmem:[%s3416_s26 + $0xb] sm:$0xff]  ;;  %v305_v39 = vld [vmem:[%s3416_s26 + $0x21] sm:$0xff] }
  0x55   : > { %v328_v55 = vadd.f32 %v3720_v50, %v256_v18 }
  0x56   : > { %v1145_v13 = vsel %vm1137_vm0, %v1076_v52, 0  ;;  %v1218_v44 = vand.u32 4294901760, %v1217_v12  ;;  %v507_v27 = vadd.f32 %v501_v31, %v417_v48  ;;  %v502_v52 = vmul.f32 0.10936069, %v484_v0 }
  0x57   : > { %v3706_v60 = vand.u32 4294901760, %v1145_v13  ;;  %v418_v56 = vadd.f32 %v412_v61, %v328_v55  ;;  %v771_v12 = vmul.f32 0.21300554, %v3543_v20  ;;  %v592_v48 = vmul.f32 0.21300554, %v574_v34  ;;  %v575_v61 = vld [vmem:[%s3416_s26 + $0x24] sm:$0xff] }
  0x58   : > { %v597_v23 = vadd.f32 %v591_v46, %v507_v27  ;;  %v323_v31 = vmul.f32 0.007598758, %v305_v39  ;;  %v664_v27 = vld [vmem:[%s3416_s26 + $0xd] sm:$0xff]  ;;  %v861_v20 = vmul.f32 0.10936069, %v3549_v30 }
  0x59   : > { %v3710_v53 = vsub.f32 %v1145_v13, %v3706_v60  ;;  %1258 = vmatmul.f32.gmra.mxu1 %v3706_v60  ;;  %v245_v13 = vld [vmem:[%s3416_s26 + $0x20] sm:$0xff]  ;;  %v508_v59 = vadd.f32 %v502_v52, %v418_v56  ;;  %v593_v30 = vmul.f32 0.21300554, %v575_v61  ;;  %v246_v56 = vld [vmem:[%s3416_s26 + $0x28] sm:$0xff] }
  0x5a   : > { %v687_v63 = vadd.f32 %v681_v54, %v597_v23  ;;  %v257_v14 = vmul.f32 0.0010283801, %v245_v13  ;;  %v945_v54 = vmul.f32 0.036000773, %v3442_v37  ;;  %v306_v52 = vld [vmem:[%s3416_s26 + $0x29] sm:$0xff] }
  0x5b   : > { %v1192_v58 = vand.u32 4294901760, %v3710_v53  ;;  %v258_v34 = vmul.f32 0.0010283801, %v246_v56  ;;  %v3758_v39 = vld [vmem:[%s3416_s26 + $0x2a] sm:$0xff] }
  0x5c   : > { %1219 = vmatmul.f32.gmra.mxu2 %v1218_v44  ;;  %1346 = vmatmul.f32.vlgmr.msrb.gmra.mxu3 %v5240_v10  ;;  %v395_v44 = vld [vmem:[%s3416_s26 + $0x22] sm:$0xff]  ;;  %v777_v46 = vadd.f32 %v771_v12, %v687_v63  ;;  %v329_v18 = vadd.f32 %v323_v31, %v257_v14  ;;  %v3753_v63 = vmul.f32 0.007598758, %v306_v52  ;;  %v414_v31 = vmul.f32 0.036000773, %v3758_v39 }
  0x5d   : > { %v1193_v25 = vsub.f32 %v3710_v53, %v1192_v58  ;;  %1774 = vmatpush.msrb.mxu3 %v3356_v2  ;;  %v485_v10 = vld [vmem:[%s3416_s26 + $0x23] sm:$0xff] }
  0x5e   : > { %v503_v0 = vmul.f32 0.10936069, %v485_v10  ;;  %v867_v23 = vadd.f32 %v861_v20, %v777_v46  ;;  %v665_v37 = vld [vmem:[%s3416_s26 + $0x25] sm:$0xff] }
  0x5f   : > { %v1194_v41 = vand.u32 4294901760, %v1193_v25  ;;  %1776 = vmatpush.msrb.mxu3 %v3358_v3  ;;  %v413_v25 = vmul.f32 0.036000773, %v395_v44  ;;  %v755_v44 = vld [vmem:[%s3416_s26 + $0x26] sm:$0xff]  ;;  %v683_v20 = vmul.f32 0.26601171, %v665_v37 }
  0x60   : > { %v486_v46 = vld [vmem:[%s3416_s26 + $0x2b] sm:$0xff] }
  0x61   : > { %1195 = vmatmul.f32.gmra.mxu0 %v1194_v41  ;;  %1446 = vmatmul.f32.vlgmr.msrb.gmra.mxu1 %v3598_v29  ;;  %v419_v55 = vadd.f32 %v413_v25, %v329_v18  ;;  %v754_v41 = vld [vmem:[%s3416_s26 + $0xe] sm:$0xff]  ;;  %v504_v18 = vmul.f32 0.10936069, %v486_v46 }
  0x62   : > { %1906 = vmatpush.msrb.mxu1 %v3402_v16  ;;  %v772_v13 = vmul.f32 0.21300554, %v754_v41  ;;  %v845_v25 = vld [vmem:[%s3416_s26 + $0x27] sm:$0xff] }
  0x63   : > { %v863_v41 = vmul.f32 0.10936069, %v845_v25 }
  0x64   : > { %1912 = vmatpush.msrb.mxu1 %v3404_v17  ;;  %1296 = vmatmul.f32.vlgmr.msrb.gmra.mxu2 %v3611_v22  ;;  %v598_v22 = vadd.f32 %v592_v48, %v508_v59  ;;  %v844_v59 = vld [vmem:[%s3416_s26 + $0xf] sm:$0xff]  ;;  %v330_v48 = vadd.f32 %v3753_v63, %v258_v34  ;;  %v307_v34 = vld [vmem:[%s3416_s26 + $0x41] sm:$0xff] }
  0x65   : > { %1352 = vmatmul.f32.gmra.mxu3 %v1184_v42  ;;  %1729 = vmatpush.msrb.mxu2 %v3372_v6  ;;  %v682_v42 = vmul.f32 0.26601171, %v664_v27  ;;  %v951_v27 = vadd.f32 %v945_v54, %v867_v23  ;;  %v1080_v54 = vmul.f32 0.0010283801, %v3714_v15  ;;  %v756_v15 = vld [vmem:[%s3416_s26 + $0x2e] sm:$0xff] }
  0x67   : > { %1733 = vmatpush.msrb.mxu2 %v3376_v7  ;;  %v688_v12 = vadd.f32 %v682_v42, %v598_v22  ;;  %v576_v42 = vld [vmem:[%s3416_s26 + $0x2c] sm:$0xff]  ;;  %v1020_v23 = vadd.f32 %v951_v27, %v3720_v50 }
  0x68   : > { %v1005_v27 = vld [vmem:[%s3416_s26 + $0x11] sm:$0xff] }
  0x69   : > { %1403 = vmatmul.f32.vlgmr.msrb.gmra.mxu0 %v3598_v29  ;;  %1450 = vmatmul.f32.gmra.mxu1 %v3669_v57  ;;  %v509_v29 = vadd.f32 %v503_v0, %v419_v55  ;;  %v778_v10 = vadd.f32 %v772_v13, %v688_v12  ;;  %v862_v0 = vmul.f32 0.10936069, %v844_v59  ;;  %v930_v55 = vld [vmem:[%s3416_s26 + $0x10] sm:$0xff]  ;;  %v5241_v59 = vand.u32 4294901760, %v3514_v47 }
  0x6a   : > { %1835 = vmatpush.msrb.mxu0 %v3356_v2 }
  0x6b   : > { %v599_v14 = vadd.f32 %v593_v30, %v509_v29  ;;  %v594_v30 = vmul.f32 0.21300554, %v576_v42  ;;  %v666_v29 = vld [vmem:[%s3416_s26 + $0x2d] sm:$0xff]  ;;  %v868_v50 = vadd.f32 %v862_v0, %v778_v10  ;;  %v1017_v10 = vmul.f32 0.007598758, %v1005_v27 }
  0x6c   : > { %1837 = vmatpush.msrb.mxu0 %v3358_v3  ;;  %1301 = vmatmul.f32.gmra.mxu2 %v3675_v43  ;;  %v773_v43 = vmul.f32 0.21300554, %v755_v44  ;;  %v684_v12 = vmul.f32 0.26601171, %v666_v29  ;;  %v397_v44 = vld [vmem:[%s3416_s26 + $0x42] sm:$0xff] }
  0x6d   : > { %1358 = vmatmul.f32.gmra.mxu3 %v1192_v58  ;;  %v420_v58 = vadd.f32 %v414_v31, %v330_v48  ;;  %v689_v22 = vadd.f32 %v683_v20, %v599_v14  ;;  %v325_v14 = vmul.f32 0.007598758, %v307_v34  ;;  %v946_v48 = vmul.f32 0.036000773, %v930_v55  ;;  %v577_v55 = vld [vmem:[%s3416_s26 + $0x44] sm:$0xff] }
  0x6e   : > { %v947_v31 = vmul.f32 0.036000773, %v246_v56  ;;  %v415_v25 = vmul.f32 0.036000773, %v397_v44  ;;  %v595_v29 = vmul.f32 0.21300554, %v577_v55 }
  0x6f   : > { %v510_v61 = vadd.f32 %v504_v18, %v420_v58  ;;  %v779_v52 = vadd.f32 %v773_v43, %v689_v22  ;;  %v774_v43 = vmul.f32 0.21300554, %v756_v15  ;;  %v846_v18 = vld [vmem:[%s3416_s26 + $0x2f] sm:$0xff]  ;;  %v1086_v22 = vadd.f32 %v1080_v54, %v1020_v23 }
  0x70   : > { %v952_v56 = vadd.f32 %v946_v48, %v868_v50  ;;  %v248_v34 = vld [vmem:[%s3416_s26 + $0x48] sm:$0xff] }
  0x71   : > { %1407 = vmatmul.f32.gmra.mxu0 %v3669_v57  ;;  %1454 = vmatmul.f32.gmra.mxu1 %v3706_v60  ;;  %v247_v57 = vld [vmem:[%s3416_s26 + $0x40] sm:$0xff]  ;;  %v600_v37 = vadd.f32 %v594_v30, %v510_v61  ;;  %v869_v46 = vadd.f32 %v863_v41, %v779_v52  ;;  %v1065_v61 = vld [vmem:[%s3416_s26 + $0x12] sm:$0xff]  ;;  %v864_v52 = vmul.f32 0.10936069, %v846_v18  ;;  %v260_v54 = vmul.f32 0.0010283801, %v248_v34 }
  0x72   : > { %v259_v13 = vmul.f32 0.0010283801, %v247_v57  ;;  %v931_v57 = vld [vmem:[%s3416_s26 + $0x30] sm:$0xff] }
  0x73   : > { %v690_v20 = vadd.f32 %v684_v12, %v600_v37  ;;  %v953_v41 = vadd.f32 %v947_v31, %v869_v46  ;;  %v308_v37 = vld [vmem:[%s3416_s26 + $0x49] sm:$0xff]  ;;  %v948_v27 = vmul.f32 0.036000773, %v931_v57 }
  0x74   : > { %1306 = vmatmul.f32.gmra.mxu2 %v3710_v53  ;;  %v331_v58 = vadd.f32 %v325_v14, %v259_v13  ;;  %v487_v53 = vld [vmem:[%s3416_s26 + $0x43] sm:$0xff]  ;;  %v3792_v12 = vmul.f32 0.007598758, %v308_v37  ;;  %v1021_v13 = vadd.f32 %v1017_v10, %v952_v56  ;;  %v1081_v14 = vmul.f32 0.0010283801, %v1065_v61  ;;  %v578_v56 = vld [vmem:[%s3416_s26 + $0x4c] sm:$0xff] }
  0x75   : > { %1364 = vmatmul.f32.gmra.mxu3 %v5241_v59  ;;  %v505_v42 = vmul.f32 0.10936069, %v487_v53  ;;  %v780_v30 = vadd.f32 %v774_v43, %v690_v20  ;;  %v1082_v59 = vmul.f32 0.0010283801, %v3758_v39  ;;  %v3799_v50 = vld [vmem:[%s3416_s26 + $0x4a] sm:$0xff]  ;;  %v1022_v15 = vadd.f32 %v953_v41, %v3753_v63  ;;  %v1066_v41 = vld [vmem:[%s3416_s26 + $0x32] sm:$0xff] }
  0x76   : > { %v421_v0 = vadd.f32 %v415_v25, %v331_v58  ;;  %v667_v31 = vld [vmem:[%s3416_s26 + $0x45] sm:$0xff]  ;;  %v332_v46 = vadd.f32 %v3792_v12, %v260_v54  ;;  %v1006_v20 = vld [vmem:[%s3416_s26 + $0x31] sm:$0xff]  ;;  %v1087_v53 = vadd.f32 %v1081_v14, %v1021_v13  ;;  %v596_v61 = vmul.f32 0.21300554, %v578_v56 }
  0x77   : > { %v870_v44 = vadd.f32 %v864_v52, %v780_v30  ;;  %v488_v43 = vld [vmem:[%s3416_s26 + $0x4b] sm:$0xff]  ;;  %v685_v58 = vmul.f32 0.26601171, %v667_v31  ;;  %v1088_v10 = vadd.f32 %v1082_v59, %v1022_v15  ;;  %v1018_v55 = vmul.f32 0.007598758, %v1006_v20 }
  0x78   : > { %v511_v23 = vadd.f32 %v505_v42, %v421_v0  ;;  %v506_v18 = vmul.f32 0.10936069, %v488_v43  ;;  %v847_v25 = vld [vmem:[%s3416_s26 + $0x47] sm:$0xff]  ;;  %v1474_v13 = vsel %vm1137_vm0, %v1087_v53, 0  ;;  %v1083_v31 = vmul.f32 0.0010283801, %v1066_v41 }
  0x79   : > { %1411 = vmatmul.f32.gmra.mxu0 %v3706_v60  ;;  %1458 = vmatmul.f32.gmra.mxu1 %v3503_v38  ;;  %v1471_v60 = vsel %vm1137_vm0, %v1086_v22, 0  ;;  %v954_v0 = vadd.f32 %v948_v27, %v870_v44  ;;  %v668_v57 = vld [vmem:[%s3416_s26 + $0x4d] sm:$0xff] }
  0x7a   : > { %v601_v48 = vadd.f32 %v595_v29, %v511_v23  ;;  %v3811_v63 = vand.u32 4294901760, %v1471_v60  ;;  %v865_v29 = vmul.f32 0.10936069, %v847_v25  ;;  %v686_v37 = vmul.f32 0.26601171, %v668_v57  ;;  %v758_v59 = vld [vmem:[%s3416_s26 + $0x4e] sm:$0xff] }
  0x7b   : > { %v333_v23 = vmul.f32 %v3438_v33, %v3438_v33  ;;  %v776_v15 = vmul.f32 0.21300554, %v758_v59  ;;  %v949_v33 = vmul.f32 0.036000773, %v248_v34  ;;  %v932_v43 = vld [vmem:[%s3416_s26 + $0x50] sm:$0xff]  ;;  %v5243_v41 = vld [vmem:[#allocation7_spill] sm:$0xff] }
  0x7c   : > { %1311 = vmatmul.f32.gmra.mxu2 %v3514_v47  ;;  %v757_v47 = vld [vmem:[%s3416_s26 + $0x46] sm:$0xff]  ;;  %v691_v42 = vadd.f32 %v685_v58, %v601_v48  ;;  %v3824_v54 = vsub.f32 %v1471_v60, %v3811_v63  ;;  %v1477_v48 = vsel %vm1137_vm0, %v1088_v10, 0 }
  0x7d   : > { %1370 = vmatmul.f32.gmra.mxu3 %v1208_v45  ;;  %v416_v45 = vmul.f32 0.036000773, %v3799_v50  ;;  %v775_v39 = vmul.f32 0.21300554, %v757_v47  ;;  %v3835_v47 = vand.u32 4294901760, %v1474_v13  ;;  %v3837_v20 = vand.u32 4294901760, %v1477_v48 }
  0x7e   : > { %v1508_v60 = vand.u32 4294901760, %v3824_v54  ;;  %v339_v58 = vmul.f32 0.007598758, %v333_v23 }
  0x7f   : > { %v422_v22 = vadd.f32 %v416_v45, %v332_v46  ;;  %v781_v52 = vadd.f32 %v775_v39, %v691_v42  ;;  %v3848_v56 = vsub.f32 %v1474_v13, %v3835_v47  ;;  %v3851_v10 = vsub.f32 %v1477_v48, %v3837_v20 }
  0x80   : > { %v1509_v42 = vsub.f32 %v3824_v54, %v1508_v60 }
  0x81   : > { %1415 = vmatmul.f32.gmra.mxu0 %v3503_v38  ;;  %1462 = vmatmul.f32.gmra.mxu1 %v3672_v32  ;;  %v512_v30 = vadd.f32 %v506_v18, %v422_v22  ;;  %v261_v38 = vmul.f32 %v3423_v28, %v3423_v28  ;;  %v1023_v28 = vadd.f32 %v1018_v55, %v954_v0  ;;  %v950_v22 = vmul.f32 0.036000773, %v932_v43  ;;  %v5242_v55 = vld [vmem:[#allocation6_spill] sm:$0xff] }
  0x82   : > { %v871_v44 = vadd.f32 %v865_v29, %v781_v52  ;;  %v513_v18 = vmul.f32 %v3480_v11, %v3480_v11  ;;  %v1007_v11 = vld [vmem:[%s3416_s26 + $0x51] sm:$0xff]  ;;  %v1084_v29 = vmul.f32 0.0010283801, %v3799_v50  ;;  %v1510_v13 = vand.u32 4294901760, %v1509_v42 }
  0x83   : > { %v602_v14 = vadd.f32 %v596_v61, %v512_v30  ;;  %v267_v34 = vmul.f32 0.0010283801, %v261_v38  ;;  %v693_v61 = vmul.f32 %v5242_v55, %v5242_v55  ;;  %v783_v30 = vmul.f32 %v5243_v41, %v5243_v41 }
  0x84   : > { %1316 = vmatmul.f32.gmra.mxu2 %v3680_v24  ;;  %v848_v24 = vld [vmem:[%s3416_s26 + $0x4f] sm:$0xff]  ;;  %v955_v39 = vadd.f32 %v949_v33, %v871_v44  ;;  %v519_v0 = vmul.f32 0.10936069, %v513_v18  ;;  %v1524_v59 = vand.u32 4294901760, %v3851_v10 }
  0x85   : > { %1376 = vmatmul.f32.gmra.mxu3 %v1216_v36  ;;  %v692_v27 = vadd.f32 %v686_v37, %v602_v14  ;;  %v423_v36 = vmul.f32 %v3458_v49, %v3458_v49  ;;  %v866_v46 = vmul.f32 0.10936069, %v848_v24  ;;  %v1089_v49 = vadd.f32 %v1083_v31, %v1023_v28  ;;  %v1067_v28 = vld [vmem:[%s3416_s26 + $0x52] sm:$0xff] }
  0x86   : > { %v1024_v52 = vadd.f32 %v955_v39, %v3792_v12  ;;  %v1019_v37 = vmul.f32 0.007598758, %v1007_v11  ;;  %v1516_v14 = vand.u32 4294901760, %v3848_v56  ;;  %v699_v12 = vmul.f32 0.26601171, %v693_v61  ;;  %v5244_v31 = vld [vmem:[#allocation9_spill] sm:$0xff] }
  0x87   : > { %v782_v45 = vadd.f32 %v776_v15, %v692_v27  ;;  %v429_v25 = vmul.f32 0.036000773, %v423_v36  ;;  %v873_v50 = vmul.f32 %v5244_v31, %v5244_v31  ;;  %v789_v44 = vmul.f32 0.21300554, %v783_v30  ;;  %v5245_v24 = vld [vmem:[#allocation8_spill] sm:$0xff]  ;;  %v5246_v39 = vld [vmem:[#allocation10_spill] sm:$0xff] }
  0x88   : > { %v1090_v33 = vadd.f32 %v1084_v29, %v1024_v52  ;;  %v424_v36 = vmul.f32 %v5245_v24, %v5245_v24  ;;  %v5248_v11 = vld [vmem:[#allocation11_spill] sm:$0xff]  ;;  %v5249_v52 = vld [vmem:[#allocation2_spill] sm:$0xff] }
  0x89   : > { %1419 = vmatmul.f32.gmra.mxu0 %v3672_v32  ;;  %1466 = vmatmul.f32.gmra.mxu1 %v3685_v8  ;;  %v603_v32 = vmul.f32 %v3495_v26, %v3495_v26  ;;  %v872_v53 = vadd.f32 %v866_v46, %v782_v45  ;;  %v1480_v26 = vsel %vm1137_vm0, %v1089_v49, 0  ;;  %v3880_v45 = vsub.f32 %v3851_v10, %v1524_v59 }
  0x8a   : > { %v3866_v48 = vand.u32 4294901760, %v1480_v26  ;;  %v1483_v49 = vsel %vm1137_vm0, %v1090_v33, 0  ;;  %v960_v29 = vmul.f32 0.036000773, %v5249_v52 }
  0x8b   : > { %v609_v57 = vmul.f32 0.21300554, %v603_v32  ;;  %v956_v38 = vadd.f32 %v950_v22, %v872_v53  ;;  %v5247_v53 = vld [vmem:[#allocation4_spill] sm:$0xff]  ;;  %v1526_v61 = vand.u32 4294901760, %v3880_v45  ;;  %v3896_v41 = vand.u32 4294901760, %v1483_v49 }
  0x8c   : > { %1321 = vmatmul.f32.gmra.mxu2 %v3690_v35  ;;  %v345_v35 = vadd.f32 %v339_v58, %v267_v34  ;;  %v3883_v43 = vsub.f32 %v1480_v26, %v3866_v48  ;;  %v879_v34 = vmul.f32 0.10936069, %v873_v50  ;;  %v430_v58 = vmul.f32 0.036000773, %v424_v36  ;;  %v5253_v50 = vld [vmem:[#allocation13_spill] sm:$0xff] }
  0x8d   : > { %1582 = vmatmul.f32.vlgmr.msra.gmra.mxu3 %v3811_v63  ;;  %v1025_v27 = vadd.f32 %v1019_v37, %v956_v38  ;;  %v5250_v37 = vld [vmem:[#allocation12_spill] sm:$0xff] }
  0x8e   : > { %2004 = vmatpush.msra.mxu3 %v3356_v2  ;;  %v435_v23 = vadd.f32 %v429_v25, %v345_v35  ;;  %v514_v25 = vmul.f32 %v5246_v39, %v5246_v39  ;;  %v436_v22 = vadd.f32 %v430_v58, %v5247_v53  ;;  %v1532_v26 = vand.u32 4294901760, %v3883_v43  ;;  %v5255_v58 = vld [vmem:[#allocation15_spill] sm:$0xff] }
  0x90   : > { %2006 = vmatpush.msra.mxu3 %v3358_v3  ;;  %v525_v15 = vadd.f32 %v519_v0, %v435_v23  ;;  %v604_v0 = vmul.f32 %v5248_v11, %v5248_v11  ;;  %v520_v35 = vmul.f32 0.10936069, %v514_v25  ;;  %v694_v23 = vmul.f32 %v5250_v37, %v5250_v37  ;;  %v3155_v37 = vld [vmem:[%s3382_s23 + $0x29] sm:$0xff] }
  0x91   : > { %1423 = vmatmul.f32.gmra.mxu0 %v3685_v8  ;;  %1678 = vmatmul.f32.vlgmr.msra.gmra.mxu1 %v1508_v60  ;;  %v1085_v8 = vmul.f32 0.0010283801, %v1067_v28  ;;  %v1517_v60 = vsub.f32 %v3848_v56, %v1516_v14  ;;  %v5252_v28 = vld [vmem:[#allocation19_spill] sm:$0xff] }
  0x92   : > { %2106 = vmatpush.msra.mxu1 %v3356_v2  ;;  %v615_v46 = vadd.f32 %v609_v57, %v525_v15  ;;  %v610_v57 = vmul.f32 0.21300554, %v604_v0  ;;  %v526_v38 = vadd.f32 %v520_v35, %v436_v22  ;;  %v784_v15 = vmul.f32 %v5253_v50, %v5253_v50 }
  0x93   : > { %v1091_v32 = vadd.f32 %v1085_v8, %v1025_v27  ;;  %v1518_v55 = vand.u32 4294901760, %v1517_v60  ;;  %v700_v27 = vmul.f32 0.26601171, %v694_v23  ;;  %v5254_v60 = vld [vmem:[#allocation3_spill] sm:$0xff]  ;;  %v1095_v22 = vmul.f32 0.0010283801, %v424_v36 }
  0x94   : > { %2108 = vmatpush.msra.mxu1 %v3358_v3  ;;  %1511 = vmatmul.f32.vlgmr.msra.gmra.mxu2 %v1510_v13  ;;  %v705_v18 = vadd.f32 %v699_v12, %v615_v46  ;;  %v5251_v13 = vld [vmem:[#allocation18_spill] sm:$0xff]  ;;  %v616_v33 = vadd.f32 %v610_v57, %v526_v38  ;;  %v3914_v46 = vsub.f32 %v1483_v49, %v3896_v41  ;;  %v5256_v49 = vld [vmem:[#allocation16_spill] sm:$0xff]  ;;  %v3154_v36 = vld [vmem:[%s3382_s23 + $0x28] sm:$0xff] }
  0x95   : > { %1586 = vmatmul.f32.gmra.mxu3 %v3835_v47  ;;  %1954 = vmatpush.msra.mxu2 %v3364_v4  ;;  %v1486_v12 = vsel %vm1137_vm0, %v1091_v32, 0  ;;  %v515_v32 = vmul.f32 %v3631_v1, %v3631_v1  ;;  %v957_v11 = vmul.f32 %v5256_v49, %v5256_v49  ;;  %v605_v1 = vmul.f32 %v3645_v21, %v3645_v21  ;;  %v3158_v49 = vld [vmem:[%s3382_s23 + $0x2c] sm:$0xff] }
  0x96   : > { %v795_v42 = vadd.f32 %v789_v44, %v705_v18  ;;  %v425_v44 = vmul.f32 %v3627_v9, %v3627_v9  ;;  %v874_v18 = vmul.f32 %v5255_v58, %v5255_v58  ;;  %v706_v9 = vadd.f32 %v700_v27, %v616_v33  ;;  %v3157_v27 = vld [vmem:[%s3382_s23 + $0x2b] sm:$0xff] }
  0x97   : > { %1957 = vmatpush.msra.mxu2 %v3367_v5  ;;  %v3921_v53 = vand.u32 4294901760, %v1486_v12  ;;  %v521_v35 = vmul.f32 0.10936069, %v515_v32  ;;  %v961_v38 = vmul.f32 0.036000773, %v957_v11  ;;  %v606_v11 = vmul.f32 %v3158_v49, %v3158_v49 }
  0x98   : > { %v885_v30 = vadd.f32 %v879_v34, %v795_v42  ;;  %v790_v34 = vmul.f32 0.21300554, %v784_v15  ;;  %v431_v25 = vmul.f32 0.036000773, %v425_v44  ;;  %v880_v42 = vmul.f32 0.10936069, %v874_v18 }
  0x99   : > { %1628 = vmatmul.f32.vlgmr.msra.gmra.mxu0 %v3824_v54  ;;  %1684 = vmatmul.f32.gmra.mxu1 %v1516_v14  ;;  %v263_v54 = vmul.f32 %v5251_v13, %v5251_v13  ;;  %v335_v14 = vmul.f32 %v5252_v28, %v5252_v28  ;;  %v1540_v13 = vand.u32 4294901760, %v3914_v46  ;;  %v3156_v28 = vld [vmem:[%s3382_s23 + $0x2a] sm:$0xff]  ;;  %v611_v15 = vmul.f32 0.21300554, %v605_v1 }
  0x9a   : > { %2061 = vmatpush.msra.mxu0 %v3372_v6  ;;  %v966_v31 = vadd.f32 %v960_v29, %v885_v30  ;;  %v796_v0 = vadd.f32 %v790_v34, %v706_v9  ;;  %v5257_v30 = vld [vmem:[#allocation17_spill] sm:$0xff]  ;;  %v264_v29 = vmul.f32 %v3154_v36, %v3154_v36  ;;  %v3939_v21 = vmul.f32 %v3156_v28, %v3156_v28  ;;  %v3161_v36 = vld [vmem:[%s3382_s23 + $0x40] sm:$0xff] }
  0x9b   : > { %v269_v8 = vmul.f32 0.0010283801, %v263_v54  ;;  %v341_v24 = vmul.f32 0.007598758, %v335_v14  ;;  %v1026_v52 = vmul.f32 %v5257_v30, %v5257_v30  ;;  %v3943_v14 = vsub.f32 %v1486_v12, %v3921_v53  ;;  %v3160_v30 = vld [vmem:[%s3382_s23 + $0x2e] sm:$0xff] }
  0x9c   : > { %2065 = vmatpush.msra.mxu0 %v3376_v7  ;;  %1519 = vmatmul.f32.gmra.mxu2 %v1518_v55  ;;  %v1032_v45 = vadd.f32 %v966_v31, %v5254_v60  ;;  %v886_v57 = vadd.f32 %v880_v42, %v796_v0  ;;  %v270_v54 = vmul.f32 0.0010283801, %v264_v29  ;;  %v432_v33 = vmul.f32 0.036000773, %v3939_v21 }
  0x9d   : > { %1590 = vmatmul.f32.gmra.mxu3 %v3837_v20  ;;  %v347_v39 = vadd.f32 %v341_v24, %v269_v8  ;;  %v1029_v44 = vmul.f32 0.007598758, %v1026_v52  ;;  %v516_v8 = vmul.f32 %v3157_v27, %v3157_v27  ;;  %v695_v24 = vmul.f32 %v3651_v19, %v3651_v19 }
  0x9e   : > { %v1101_v31 = vadd.f32 %v1095_v22, %v1032_v45  ;;  %v967_v60 = vadd.f32 %v961_v38, %v886_v57  ;;  %v785_v18 = vmul.f32 %v3657_v51, %v3657_v51  ;;  %v875_v9 = vmul.f32 %v3663_v62, %v3663_v62  ;;  %v3162_v38 = vld [vmem:[%s3382_s23 + $0x41] sm:$0xff] }
  0x9f   : > { %v437_v55 = vadd.f32 %v431_v25, %v347_v39  ;;  %v522_v45 = vmul.f32 0.10936069, %v516_v8  ;;  %v701_v58 = vmul.f32 0.26601171, %v695_v24  ;;  %v1541_v19 = vsub.f32 %v3914_v46, %v1540_v13 }
  0xa0   : > { %v791_v32 = vmul.f32 0.21300554, %v785_v18  ;;  %v881_v22 = vmul.f32 0.10936069, %v875_v9  ;;  %v1548_v51 = vand.u32 4294901760, %v3943_v14  ;;  %v1803_v42 = vsel %vm1137_vm0, %v1101_v31, 0 }
  0xa1   : > { %1633 = vmatmul.f32.gmra.mxu0 %v3848_v56  ;;  %1690 = vmatmul.f32.gmra.mxu1 %v1524_v59  ;;  %v336_v56 = vmul.f32 %v3155_v37, %v3155_v37  ;;  %v527_v23 = vadd.f32 %v521_v35, %v437_v55  ;;  %v1533_v59 = vsub.f32 %v3883_v43, %v1532_v26  ;;  %v3159_v55 = vld [vmem:[%s3382_s23 + $0x2d] sm:$0xff]  ;;  %v612_v1 = vmul.f32 0.21300554, %v606_v11 }
  0xa2   : > { %v696_v35 = vmul.f32 %v3159_v55, %v3159_v55  ;;  %v786_v52 = vmul.f32 %v3160_v30, %v3160_v30  ;;  %v265_v57 = vmul.f32 %v3161_v36, %v3161_v36  ;;  %v337_v37 = vmul.f32 %v3162_v38, %v3162_v38  ;;  %v3166_v9 = vld [vmem:[%s3382_s23 + $0x48] sm:$0xff] }
  0xa3   : > { %v3945_v50 = vmul.f32 0.007598758, %v336_v56  ;;  %v617_v12 = vadd.f32 %v611_v15, %v527_v23  ;;  %v1534_v39 = vand.u32 4294901760, %v1533_v59  ;;  %v962_v23 = vmul.f32 0.036000773, %v264_v29  ;;  %v3170_v36 = vld [vmem:[%s3382_s23 + $0x4b] sm:$0xff] }
  0xa4   : > { %1527 = vmatmul.f32.gmra.mxu2 %v1526_v61  ;;  %v1092_v61 = vmul.f32 %v3638_v40, %v3638_v40  ;;  %v702_v59 = vmul.f32 0.26601171, %v696_v35  ;;  %v271_v15 = vmul.f32 0.0010283801, %v265_v57  ;;  %v343_v27 = vmul.f32 0.007598758, %v337_v37 }
  0xa5   : > { %1594 = vmatmul.f32.gmra.mxu3 %v3866_v48  ;;  %v348_v34 = vadd.f32 %v3945_v50, %v270_v54  ;;  %v707_v25 = vadd.f32 %v701_v58, %v617_v12  ;;  %v3163_v54 = vld [vmem:[%s3382_s23 + $0x42] sm:$0xff]  ;;  %v1542_v8 = vand.u32 4294901760, %v1541_v19  ;;  %v792_v24 = vmul.f32 0.21300554, %v786_v52  ;;  %v3165_v58 = vld [vmem:[%s3382_s23 + $0x30] sm:$0xff] }
  0xa6   : > { %v1096_v0 = vmul.f32 0.0010283801, %v1092_v61  ;;  %v427_v28 = vmul.f32 %v3163_v54, %v3163_v54  ;;  %v958_v18 = vmul.f32 %v3165_v58, %v3165_v58  ;;  %v349_v19 = vadd.f32 %v343_v27, %v271_v15  ;;  %v3173_v54 = vld [vmem:[%s3382_s23 + $0x31] sm:$0xff]  ;;  %v3174_v15 = vld [vmem:[%s3382_s23 + $0x46] sm:$0xff] }
  0xa7   : > { %v438_v40 = vadd.f32 %v432_v33, %v348_v34  ;;  %v3976_v33 = vand.u32 4294901760, %v1803_v42  ;;  %v518_v57 = vmul.f32 %v3170_v36, %v3170_v36 }
  0xa8   : > { %v963_v30 = vmul.f32 0.036000773, %v958_v18  ;;  %v3176_v18 = vld [vmem:[%s3382_s23 + $0x4c] sm:$0xff] }
  0xa9   : > { %1638 = vmatmul.f32.gmra.mxu0 %v3851_v10  ;;  %1696 = vmatmul.f32.gmra.mxu1 %v1532_v26  ;;  %v528_v62 = vadd.f32 %v522_v45, %v438_v40  ;;  %v1033_v10 = vadd.f32 %v1029_v44, %v967_v60  ;;  %v797_v26 = vadd.f32 %v791_v32, %v707_v25  ;;  %v3164_v60 = vld [vmem:[%s3382_s23 + $0x2f] sm:$0xff]  ;;  %v433_v45 = vmul.f32 0.036000773, %v427_v28  ;;  %v3168_v32 = vld [vmem:[%s3382_s23 + $0x43] sm:$0xff] }
  0xaa   : > { %v3974_v44 = vsub.f32 %v3943_v14, %v1548_v51  ;;  %v876_v61 = vmul.f32 %v3164_v60, %v3164_v60  ;;  %v3167_v40 = vld [vmem:[%s3382_s23 + $0x49] sm:$0xff]  ;;  %v1027_v28 = vmul.f32 %v3173_v54, %v3173_v54 }
  0xab   : > { %v887_v56 = vadd.f32 %v881_v22, %v797_v26  ;;  %v618_v31 = vadd.f32 %v612_v1, %v528_v62  ;;  %v1102_v34 = vadd.f32 %v1096_v0, %v1033_v10  ;;  %v338_v25 = vmul.f32 %v3167_v40, %v3167_v40 }
  0xac   : > { %1535 = vmatmul.f32.gmra.mxu2 %v1534_v39  ;;  %v3982_v39 = vmul.f32 %v3166_v9, %v3166_v9  ;;  %v517_v22 = vmul.f32 %v3168_v32, %v3168_v32  ;;  %v882_v49 = vmul.f32 0.10936069, %v876_v61  ;;  %v1097_v26 = vmul.f32 0.0010283801, %v3939_v21 }
  0xad   : > { %1598 = vmatmul.f32.gmra.mxu3 %v3896_v41  ;;  %v708_v29 = vadd.f32 %v702_v59, %v618_v31  ;;  %v968_v12 = vadd.f32 %v962_v23, %v887_v56  ;;  %v3992_v10 = vmul.f32 0.007598758, %v338_v25  ;;  %v1806_v0 = vsel %vm1137_vm0, %v1102_v34, 0  ;;  %v3171_v56 = vld [vmem:[%s3382_s23 + $0x44] sm:$0xff] }
  0xae   : > { %v272_v11 = vmul.f32 0.0010283801, %v3982_v39  ;;  %v439_v35 = vadd.f32 %v433_v45, %v349_v19  ;;  %v523_v37 = vmul.f32 0.10936069, %v517_v22  ;;  %v607_v23 = vmul.f32 %v3171_v56, %v3171_v56  ;;  %v3172_v59 = vld [vmem:[%s3382_s23 + $0x45] sm:$0xff]  ;;  %v3177_v19 = vld [vmem:[%s3382_s23 + $0x32] sm:$0xff] }
  0xaf   : > { %v798_v62 = vadd.f32 %v792_v24, %v708_v29  ;;  %v1034_v1 = vadd.f32 %v968_v12, %v3945_v50  ;;  %v697_v21 = vmul.f32 %v3172_v59, %v3172_v59  ;;  %v524_v31 = vmul.f32 0.10936069, %v518_v57  ;;  %v3175_v34 = vld [vmem:[%s3382_s23 + $0x47] sm:$0xff] }
  0xb0   : > { %v350_v52 = vadd.f32 %v3992_v10, %v272_v11  ;;  %v613_v29 = vmul.f32 0.21300554, %v607_v23  ;;  %v4011_v61 = vand.u32 4294901760, %v1806_v0  ;;  %v608_v9 = vmul.f32 %v3176_v18, %v3176_v18  ;;  %v3178_v22 = vld [vmem:[%s3382_s23 + $0x4d] sm:$0xff] }
  0xb1   : > { %1643 = vmatmul.f32.gmra.mxu0 %v3883_v43  ;;  %1702 = vmatmul.f32.gmra.mxu1 %v1540_v13  ;;  %v1550_v43 = vand.u32 4294901760, %v3974_v44  ;;  %v3987_v13 = vsub.f32 %v1803_v42, %v3976_v33  ;;  %v3169_v42 = vld [vmem:[%s3382_s23 + $0x4a] sm:$0xff]  ;;  %v888_v50 = vadd.f32 %v882_v49, %v798_v62  ;;  %v787_v44 = vmul.f32 %v3174_v15, %v3174_v15  ;;  %v4041_v15 = vpop.f32.mrf.mxu3 }
  0xb2   : > { %v3997_v55 = vmul.f32 %v3169_v42, %v3169_v42  ;;  %v703_v24 = vmul.f32 0.26601171, %v697_v21  ;;  %v1030_v25 = vmul.f32 0.007598758, %v1027_v28  ;;  %v1093_v32 = vmul.f32 %v3177_v19, %v3177_v19 }
  0xb3   : > { %v1840_v60 = vand.u32 4294901760, %v3987_v13  ;;  %v793_v58 = vmul.f32 0.21300554, %v787_v44  ;;  %v969_v40 = vadd.f32 %v963_v30, %v888_v50  ;;  %v698_v62 = vmul.f32 %v3178_v22, %v3178_v22  ;;  %v3180_v50 = vld [vmem:[%s3382_s23 + $0x4f] sm:$0xff] }
  0xb4   : > { %1543 = vmatmul.f32.gmra.mxu2 %v1542_v8  ;;  %v434_v38 = vmul.f32 0.036000773, %v3997_v55  ;;  %v529_v8 = vadd.f32 %v523_v37, %v439_v35  ;;  %v3179_v35 = vld [vmem:[%s3382_s23 + $0x4e] sm:$0xff]  ;;  %v4024_v30 = vsub.f32 %v1806_v0, %v4011_v61  ;;  %v1098_v37 = vmul.f32 0.0010283801, %v1093_v32 }
  0xb5   : > { %1602 = vmatmul.f32.gmra.mxu3 %v3921_v53  ;;  %v704_v42 = vmul.f32 0.26601171, %v698_v62  ;;  %v964_v56 = vmul.f32 0.036000773, %v3982_v39  ;;  %v878_v54 = vmul.f32 %v3180_v50, %v3180_v50 }
  0xb6   : > { %v440_v27 = vadd.f32 %v434_v38, %v350_v52  ;;  %v619_v45 = vadd.f32 %v613_v29, %v529_v8  ;;  %v1035_v38 = vadd.f32 %v1030_v25, %v969_v40  ;;  %v1848_v28 = vand.u32 4294901760, %v4024_v30  ;;  %v3181_v29 = vld [vmem:[%s3382_s23 + $0x50] sm:$0xff] }
  0xb7   : > { %v884_v8 = vmul.f32 0.10936069, %v878_v54 }
  0xb8   : > { %v530_v12 = vadd.f32 %v524_v31, %v440_v27  ;;  %v709_v49 = vadd.f32 %v703_v24, %v619_v45  ;;  %v1104_v31 = vadd.f32 %v1098_v37, %v1035_v38  ;;  %v959_v24 = vmul.f32 %v3181_v29, %v3181_v29 }
  0xb9   : > { %1648 = vmatmul.f32.gmra.mxu0 %v3914_v46  ;;  %1708 = vmatmul.f32.gmra.mxu1 %v1548_v51  ;;  %v1103_v46 = vadd.f32 %v1097_v26, %v1034_v1  ;;  %v877_v51 = vmul.f32 %v3175_v34, %v3175_v34  ;;  %v614_v26 = vmul.f32 0.21300554, %v608_v9  ;;  %v788_v1 = vmul.f32 %v3179_v35, %v3179_v35  ;;  %v3182_v9 = vld [vmem:[%s3382_s23 + $0x51] sm:$0xff] }
  0xba   : > { %v799_v52 = vadd.f32 %v793_v58, %v709_v49  ;;  %v1812_v34 = vsel %vm1137_vm0, %v1104_v31, 0  ;;  %v965_v18 = vmul.f32 0.036000773, %v959_v24  ;;  %v1028_v40 = vmul.f32 %v3182_v9, %v3182_v9  ;;  %v3185_v24 = vld [vmem:[%s3416_s26 + $0x1] sm:$0xff] }
  0xbb   : > { %v883_v11 = vmul.f32 0.10936069, %v877_v51  ;;  %v620_v36 = vadd.f32 %v614_v26, %v530_v12  ;;  %v1809_v57 = vsel %vm1137_vm0, %v1103_v46, 0  ;;  %v4031_v23 = vpop.f32.mrf.mxu1  ;;  %v794_v0 = vmul.f32 0.21300554, %v788_v1 }
  0xbc   : > { %1551 = vmatmul.f32.gmra.mxu2 %v1550_v43  ;;  %v1841_v43 = vsub.f32 %v3987_v13, %v1840_v60  ;;  %v4039_v39 = vand.u32 4294901760, %v1809_v57  ;;  %v1099_v51 = vmul.f32 0.0010283801, %v3997_v55  ;;  %v4066_v32 = vand.u32 4294901760, %v1812_v34 }
  0xbd   : > { %1778 = vmatmul.f32.vlgmr.msrb.gmra.mxu3 %v3811_v63  ;;  %v889_v59 = vadd.f32 %v883_v11, %v799_v52  ;;  %v710_v21 = vadd.f32 %v704_v42, %v620_v36  ;;  %v1031_v49 = vmul.f32 0.007598758, %v1028_v40  ;;  %v3183_v11 = vld [vmem:[%s3382_s23 + $0x52] sm:$0xff] }
  0xbe   : > { %2238 = vmatpush.msrb.mxu3 %v3402_v16  ;;  %v4051_v46 = vsub.f32 %v1809_v57, %v4039_v39  ;;  %v1094_v26 = vmul.f32 %v3183_v11, %v3183_v11  ;;  %v4076_v35 = vsub.f32 %v1812_v34, %v4066_v32 }
  0xbf   : > { %v970_v44 = vadd.f32 %v964_v56, %v889_v59  ;;  %v800_v27 = vadd.f32 %v794_v0, %v710_v21 }
  0xc0   : > { %2244 = vmatpush.msrb.mxu3 %v3404_v17  ;;  %v1856_v19 = vand.u32 4294901760, %v4051_v46  ;;  %v1100_v52 = vmul.f32 0.0010283801, %v1094_v26  ;;  %v5184_v38 = vand.u32 4294901760, %v4076_v35  ;;  %v3188_v26 = vld [vmem:[%s3416_s26 + $0x8] sm:$0xff] }
  0xc1   : > { %1653 = vmatmul.f32.gmra.mxu0 %v3943_v14  ;;  %1914 = vmatmul.f32.vlgmr.msrb.gmra.mxu1 %v3976_v33  ;;  %v1842_v14 = vand.u32 4294901760, %v1841_v43  ;;  %v1036_v45 = vadd.f32 %v970_v44, %v3992_v10  ;;  %v890_v58 = vadd.f32 %v884_v8, %v800_v27  ;;  %v4068_v10 = vpop.f32.mrf.mxu2  ;;  %v3184_v8 = vld [vmem:[%s3416_s26] sm:$0xff] }
  0xc2   : > { %2336 = vmatpush.msrb.mxu1 %v3356_v2  ;;  %v273_v29 = vmul.f32 %v3184_v8, %v3184_v8 }
  0xc3   : > { %v4055_v12 = vpop.f32.mrf.mxu0  ;;  %v1105_v22 = vadd.f32 %v1099_v51, %v1036_v45  ;;  %v971_v62 = vadd.f32 %v965_v18, %v890_v58  ;;  %v3186_v45 = vld [vmem:[%s3416_s26 + $0x2] sm:$0xff] }
  0xc4   : > { %2338 = vmatpush.msrb.mxu1 %v3358_v3  ;;  %1735 = vmatmul.f32.vlgmr.msrb.gmra.mxu2 %v3811_v63  ;;  %v1849_v63 = vsub.f32 %v4024_v30, %v1848_v28 }
  0xc5   : > { %1782 = vmatmul.f32.gmra.mxu3 %v3835_v47  ;;  %2167 = vmatpush.msrb.mxu2 %v3356_v2  ;;  %v1815_v1 = vsel %vm1137_vm0, %v1105_v22, 0  ;;  %v1037_v43 = vadd.f32 %v1031_v49, %v971_v62  ;;  %v279_v22 = vmul.f32 0.0010283801, %v273_v29  ;;  %v3187_v49 = vld [vmem:[%s3416_s26 + $0x3] sm:$0xff] }
  0xc6   : > { %v1850_v55 = vand.u32 4294901760, %v1849_v63  ;;  %v4084_v37 = vand.u32 4294901760, %v1815_v1  ;;  %v351_v63 = vmul.f32 %v3185_v24, %v3185_v24  ;;  %v531_v11 = vmul.f32 %v3187_v49, %v3187_v49 }
  0xc7   : > { %2169 = vmatpush.msrb.mxu2 %v3358_v3  ;;  %v1106_v59 = vadd.f32 %v1100_v52, %v1037_v43  ;;  %v3190_v52 = vld [vmem:[%s3416_s26 + $0x4] sm:$0xff] }
  0xc8   : > { %v4060_v25 = vpop.f32.mrf.mxu1  ;;  %v4095_v54 = vsub.f32 %v1815_v1, %v4084_v37  ;;  %v357_v62 = vmul.f32 0.007598758, %v351_v63  ;;  %v1252_v63 = vadd.f32 %v4031_v23, %v4055_v12 }
  0xc9   : > { %1843 = vmatmul.f32.vlgmr.msrb.gmra.mxu0 %v1842_v14  ;;  %1918 = vmatmul.f32.gmra.mxu1 %v4011_v61  ;;  %v1818_v14 = vsel %vm1137_vm0, %v1106_v59, 0 }
  0xca   : > { %2286 = vmatpush.msrb.mxu0 %v3364_v4  ;;  %v5183_v44 = vand.u32 4294901760, %v4095_v54  ;;  %v4101_v27 = vand.u32 4294901760, %v1818_v14  ;;  %v363_v29 = vadd.f32 %v357_v62, %v279_v22 }
  0xcc   : > { %2289 = vmatpush.msrb.mxu0 %v3367_v5  ;;  %1739 = vmatmul.f32.gmra.mxu2 %v3835_v47  ;;  %v1857_v47 = vsub.f32 %v4051_v46, %v1856_v19  ;;  %v1873_v40 = vsub.f32 %v4095_v54, %v5183_v44  ;;  %v4266_v44 = vld [vmem:[%s3416_s26 + $0x2b] sm:$0xff] }
  0xcd   : > { %1786 = vmatmul.f32.gmra.mxu3 %v3837_v20  ;;  %5260 = vst [vmem:[#allocation9_spill] sm:$0xff] %v4266_v44 }
  0xce   : > { %v1858_v57 = vand.u32 4294901760, %v1857_v47  ;;  %v3189_v47 = vld [vmem:[%s3416_s26 + $0x9] sm:$0xff]  ;;  %v1874_v59 = vand.u32 4294901760, %v1873_v40 }
  0xcf   : > { %v1267_v42 = vpop.f32.mrf.mxu3  ;;  %v352_v1 = vmul.f32 %v3189_v47, %v3189_v47  ;;  %v3193_v47 = vld [vmem:[%s3416_s26 + $0x7] sm:$0xff] }
  0xd0   : > { %v4079_v36 = vpop.f32.mrf.mxu0  ;;  %v891_v23 = vmul.f32 %v3193_v47, %v3193_v47 }
  0xd1   : > { %1851 = vmatmul.f32.gmra.mxu0 %v1850_v55  ;;  %1922 = vmatmul.f32.gmra.mxu1 %v4039_v39  ;;  %v4117_v55 = vsub.f32 %v1818_v14, %v4101_v27 }
  0xd4   : > { %1743 = vmatmul.f32.gmra.mxu2 %v3837_v20  ;;  %v1865_v20 = vsub.f32 %v4076_v35, %v5184_v38 }
  0xd5   : > { %1790 = vmatmul.f32.gmra.mxu3 %v3866_v48 }
  0xd6   : > { %v4086_v56 = vpop.f32.mrf.mxu1  ;;  %v1866_v31 = vand.u32 4294901760, %v1865_v20  ;;  %v3191_v20 = vld [vmem:[%s3416_s26 + $0x5] sm:$0xff] }
  0xd7   : > { %v1212_v21 = vpop.f32.mrf.mxu2  ;;  %v1271_v0 = vpop.f32.mrf.mxu3  ;;  %v711_v14 = vmul.f32 %v3191_v20, %v3191_v20  ;;  %v4144_v20 = vld [vmem:[%s3416_s26 + $0xa] sm:$0xff] }
  0xd8   : > { %v4088_v50 = vadd.f32 %v1267_v42, %v1212_v21  ;;  %v4121_v42 = vmul.f32 %v3188_v26, %v3188_v26  ;;  %v5182_v21 = vand.u32 4294901760, %v4117_v55 }
  0xd9   : > { %1859 = vmatmul.f32.gmra.mxu0 %v1858_v57  ;;  %1926 = vmatmul.f32.gmra.mxu1 %v4066_v32  ;;  %v621_v57 = vmul.f32 %v3190_v52, %v3190_v52  ;;  %v717_v62 = vmul.f32 0.26601171, %v711_v14 }
  0xda   : > { %v280_v24 = vmul.f32 0.0010283801, %v4121_v42  ;;  %v1881_v22 = vsub.f32 %v4117_v55, %v5182_v21 }
  0xdc   : > { %1747 = vmatmul.f32.gmra.mxu2 %v3866_v48  ;;  %v441_v48 = vmul.f32 %v3186_v45, %v3186_v45  ;;  %v4134_v45 = vmul.f32 0.007598758, %v352_v1 }
  0xdd   : > { %1794 = vmatmul.f32.gmra.mxu3 %v3896_v41 }
  0xde   : > { %v4105_v34 = vpop.f32.mrf.mxu0  ;;  %v4107_v51 = vpop.f32.mrf.mxu1  ;;  %v447_v43 = vmul.f32 0.036000773, %v441_v48  ;;  %v3192_v48 = vld [vmem:[%s3416_s26 + $0x6] sm:$0xff]  ;;  %v364_v52 = vadd.f32 %v4134_v45, %v280_v24 }
  0xdf   : > { %v1220_v58 = vpop.f32.mrf.mxu2  ;;  %v1347_v18 = vpop.f32.mrf.mxu3 }
  0xe0   : > { %v4110_v9 = vadd.f32 %v1271_v0, %v1220_v58  ;;  %v537_v0 = vmul.f32 0.10936069, %v531_v11  ;;  %v801_v58 = vmul.f32 %v3192_v48, %v3192_v48  ;;  %v453_v11 = vadd.f32 %v447_v43, %v363_v29 }
  0xe1   : > { %1867 = vmatmul.f32.gmra.mxu0 %v1866_v31  ;;  %1930 = vmatmul.f32.gmra.mxu1 %v4084_v37  ;;  %v4148_v43 = vmul.f32 %v4144_v20, %v4144_v20 }
  0xe2   : > { %v543_v12 = vadd.f32 %v537_v0, %v453_v11 }
  0xe3   : > { %v448_v24 = vmul.f32 0.036000773, %v4148_v43 }
  0xe4   : > { %1751 = vmatmul.f32.gmra.mxu2 %v3896_v41  ;;  %v627_v41 = vmul.f32 0.21300554, %v621_v57  ;;  %v807_v57 = vmul.f32 0.21300554, %v801_v58  ;;  %v4158_v58 = vld [vmem:[%s3416_s26 + $0xb] sm:$0xff] }
  0xe5   : > { %1798 = vmatmul.f32.gmra.mxu3 %v3921_v53 }
  0xe6   : > { %v1404_v31 = vpop.f32.mrf.mxu0  ;;  %v4129_v8 = vpop.f32.mrf.mxu1 }
  0xe7   : > { %v1297_v40 = vpop.f32.mrf.mxu2 }
  0xe8   : > { %v1353_v49 = vpop.f32.mrf.mxu3  ;;  %v1298_v26 = vadd.f32 %v1297_v40, %v1252_v63  ;;  %v1882_v63 = vand.u32 4294901760, %v1881_v22 }
  0xe9   : > { %1875 = vmatmul.f32.gmra.mxu0 %v1874_v59  ;;  %1934 = vmatmul.f32.gmra.mxu1 %v4101_v27  ;;  %v633_v59 = vadd.f32 %v627_v41, %v543_v12 }
  0xea   : > { %v1348_v1 = vadd.f32 %v1347_v18, %v1298_v26  ;;  %v897_v18 = vmul.f32 0.10936069, %v891_v23  ;;  %v454_v26 = vadd.f32 %v448_v24, %v364_v52  ;;  %v4177_v52 = vld [vmem:[%s3416_s26 + $0xd] sm:$0xff] }
  0xeb   : > { %v723_v48 = vadd.f32 %v717_v62, %v633_v59  ;;  %v4168_v62 = vld [vmem:[%s3416_s26 + $0xc] sm:$0xff]  ;;  %v4182_v59 = vld [vmem:[%s3416_s26 + $0x20] sm:$0xff] }
  0xec   : > { %v1405_v29 = vadd.f32 %v1404_v31, %v1348_v1  ;;  %1755 = vmatmul.f32.gmra.mxu2 %v3921_v53  ;;  %v532_v31 = vmul.f32 %v4158_v58, %v4158_v58  ;;  %v1256_v53 = vadd.f32 %v4060_v25, %v4079_v36  ;;  %v622_v47 = vmul.f32 %v4168_v62, %v4168_v62 }
  0xed   : > { %2010 = vmatmul.f32.vlgmr.msra.gmra.mxu3 %v1840_v60  ;;  %v813_v11 = vadd.f32 %v807_v57, %v723_v48  ;;  %v975_v36 = vmul.f32 0.036000773, %v4121_v42  ;;  %v712_v57 = vmul.f32 %v4177_v52, %v4177_v52 }
  0xee   : > { %v1408_v0 = vpop.f32.mrf.mxu0  ;;  %v4153_v14 = vpop.f32.mrf.mxu1  ;;  %2438 = vmatpush.msra.mxu3 %v3356_v2  ;;  %v4165_v60 = vadd.f32 %v4107_v51, %v1405_v29  ;;  %v538_v22 = vmul.f32 0.10936069, %v532_v31  ;;  %v628_v12 = vmul.f32 0.21300554, %v622_v47  ;;  %v275_v29 = vmul.f32 %v4182_v59, %v4182_v59  ;;  %v4205_v47 = vld [vmem:[%s3416_s26 + $0x22] sm:$0xff] }
  0xef   : > { %v1302_v41 = vpop.f32.mrf.mxu2  ;;  %v903_v25 = vadd.f32 %v897_v18, %v813_v11  ;;  %v718_v31 = vmul.f32 0.26601171, %v712_v57 }
  0xf0   : > { %5258 = vst [vmem:[#allocation6_spill] sm:$0xff] %v4165_v60  ;;  %v1359_v40 = vpop.f32.mrf.mxu3  ;;  %2440 = vmatpush.msra.mxu3 %v3358_v3  ;;  %v1303_v23 = vadd.f32 %v1302_v41, %v1256_v53  ;;  %v544_v51 = vadd.f32 %v538_v22, %v454_v26  ;;  %v281_v26 = vmul.f32 0.0010283801, %v275_v29 }
  0xf1   : > { %1883 = vmatmul.f32.gmra.mxu0 %v1882_v63  ;;  %2110 = vmatmul.f32.vlgmr.msra.gmra.mxu1 %v3976_v33  ;;  %v4187_v63 = vld [vmem:[%s3416_s26 + $0x21] sm:$0xff]  ;;  %v981_v18 = vadd.f32 %v975_v36, %v903_v25 }
  0xf2   : > { %2570 = vmatpush.msra.mxu1 %v3402_v16  ;;  %v1354_v1 = vadd.f32 %v1353_v49, %v1303_v23  ;;  %v353_v42 = vmul.f32 %v4187_v63, %v4187_v63  ;;  %v634_v24 = vadd.f32 %v628_v12, %v544_v51  ;;  %v4192_v16 = vld [vmem:[%s3416_s26 + $0xe] sm:$0xff] }
  0xf3   : > { %v802_v49 = vmul.f32 %v4192_v16, %v4192_v16  ;;  %v1044_v11 = vadd.f32 %v981_v18, %v4134_v45  ;;  %v4232_v18 = vld [vmem:[%s3416_s26 + $0x10] sm:$0xff] }
  0xf4   : > { %2576 = vmatpush.msra.mxu1 %v3404_v17  ;;  %v1409_v48 = vadd.f32 %v1408_v0, %v1354_v1  ;;  %1960 = vmatmul.f32.vlgmr.msra.gmra.mxu2 %v3987_v13  ;;  %v359_v22 = vmul.f32 0.007598758, %v353_v42  ;;  %v443_v17 = vmul.f32 %v4205_v47, %v4205_v47  ;;  %v1260_v13 = vadd.f32 %v4086_v56, %v4105_v34  ;;  %v4215_v0 = vld [vmem:[%s3416_s26 + $0xf] sm:$0xff] }
  0xf5   : > { %2016 = vmatmul.f32.gmra.mxu3 %v1848_v28  ;;  %2393 = vmatpush.msra.mxu2 %v3372_v6  ;;  %v892_v45 = vmul.f32 %v4215_v0, %v4215_v0  ;;  %v724_v36 = vadd.f32 %v718_v31, %v634_v24  ;;  %v808_v51 = vmul.f32 0.21300554, %v802_v49  ;;  %v1110_v56 = vmul.f32 0.0010283801, %v4148_v43  ;;  %v4225_v34 = vld [vmem:[%s3416_s26 + $0x28] sm:$0xff] }
  0xf6   : > { %v1412_v53 = vpop.f32.mrf.mxu0  ;;  %v4200_v41 = vpop.f32.mrf.mxu1  ;;  %v4212_v28 = vadd.f32 %v4129_v8, %v1409_v48  ;;  %v4229_v8 = vmul.f32 %v4225_v34, %v4225_v34  ;;  %v365_v1 = vadd.f32 %v359_v22, %v281_v26  ;;  %v449_v57 = vmul.f32 0.036000773, %v443_v17  ;;  %v4237_v24 = vld [vmem:[%s3416_s26 + $0x29] sm:$0xff] }
  0xf7   : > { %v1307_v23 = vpop.f32.mrf.mxu2  ;;  %2397 = vmatpush.msra.mxu2 %v3376_v7  ;;  %v898_v42 = vmul.f32 0.10936069, %v892_v45  ;;  %v354_v43 = vmul.f32 %v4237_v24, %v4237_v24  ;;  %v814_v49 = vadd.f32 %v808_v51, %v724_v36  ;;  %v4243_v31 = vld [vmem:[%s3416_s26 + $0x2a] sm:$0xff]  ;;  %v1264_v17 = vadd.f32 %v4041_v15, %v4068_v10 }
  0xf8   : > { %5259 = vst [vmem:[#allocation7_spill] sm:$0xff] %v4212_v28  ;;  %v1365_v25 = vpop.f32.mrf.mxu3  ;;  %v1308_v12 = vadd.f32 %v1307_v23, %v1260_v13  ;;  %v282_v48 = vmul.f32 0.0010283801, %v4229_v8  ;;  %v4250_v26 = vld [vmem:[%s3416_s26 + $0x23] sm:$0xff]  ;;  %v1116_v51 = vadd.f32 %v1110_v56, %v1044_v11  ;;  %v455_v21 = vadd.f32 %v449_v57, %v365_v1  ;;  %v4274_v10 = vld [vmem:[%s3416_s26 + $0x11] sm:$0xff] }
  0xf9   : > { %2067 = vmatmul.f32.vlgmr.msra.gmra.mxu0 %v3976_v33  ;;  %2114 = vmatmul.f32.gmra.mxu1 %v4011_v61  ;;  %v972_v33 = vmul.f32 %v4232_v18, %v4232_v18  ;;  %v533_v22 = vmul.f32 %v4250_v26, %v4250_v26  ;;  %v4260_v45 = vmul.f32 0.007598758, %v354_v43  ;;  %v534_v15 = vmul.f32 %v4266_v44, %v4266_v44  ;;  %v4280_v57 = vld [vmem:[%s3416_s26 + $0x24] sm:$0xff] }
  0xfa   : > { %2499 = vmatpush.msra.mxu0 %v3356_v2  ;;  %v1360_v29 = vadd.f32 %v1359_v40, %v1308_v12  ;;  %v4247_v40 = vmul.f32 %v4243_v31, %v4243_v31  ;;  %v904_v43 = vadd.f32 %v898_v42, %v814_v49  ;;  %5262 = vst [vmem:[#allocation10_spill] sm:$0xff] %v4280_v57  ;;  %v2135_v28 = vsel %vm1137_vm0, %v1116_v51, 0 }
  0xfb   : > { %v366_v11 = vadd.f32 %v4260_v45, %v282_v48  ;;  %v539_v1 = vmul.f32 0.10936069, %v533_v22  ;;  %v623_v38 = vmul.f32 %v4280_v57, %v4280_v57  ;;  %v540_v42 = vmul.f32 0.10936069, %v534_v15  ;;  %v4293_v57 = vld [vmem:[%s3416_s26 + $0x26] sm:$0xff] }
  0xfc   : > { %2501 = vmatpush.msra.mxu0 %v3358_v3  ;;  %v1413_v13 = vadd.f32 %v1412_v53, %v1360_v29  ;;  %1965 = vmatmul.f32.gmra.mxu2 %v4024_v30  ;;  %v450_v12 = vmul.f32 0.036000773, %v4247_v40  ;;  %v1038_v53 = vmul.f32 %v4274_v10, %v4274_v10  ;;  %5264 = vst [vmem:[#allocation11_spill] sm:$0xff] %v4293_v57  ;;  %v4306_v15 = vld [vmem:[%s3416_s26 + $0x27] sm:$0xff] }
  0xfd   : > { %2022 = vmatmul.f32.gmra.mxu3 %v1856_v19  ;;  %v976_v19 = vmul.f32 0.036000773, %v972_v33  ;;  %v545_v49 = vadd.f32 %v539_v1, %v455_v21  ;;  %v629_v22 = vmul.f32 0.21300554, %v623_v38  ;;  %v803_v44 = vmul.f32 %v4293_v57, %v4293_v57  ;;  %5266 = vst [vmem:[#allocation2_spill] sm:$0xff] %v4306_v15  ;;  %v4439_v57 = vld [vmem:[%s3416_s26 + $0x45] sm:$0xff] }
  0xfe   : > { %v1416_v23 = vpop.f32.mrf.mxu0  ;;  %v4262_v36 = vpop.f32.mrf.mxu1  ;;  %v4271_v30 = vadd.f32 %v4153_v14, %v1413_v13  ;;  %v4285_v14 = vld [vmem:[%s3416_s26 + $0x25] sm:$0xff]  ;;  %v456_v48 = vadd.f32 %v450_v12, %v366_v11 }
  0xff   : > { %v1312_v56 = vpop.f32.mrf.mxu2  ;;  %5263 = vst [vmem:[#allocation4_spill] sm:$0xff] %v4285_v14  ;;  %v713_v33 = vmul.f32 %v4285_v14, %v4285_v14  ;;  %v982_v14 = vadd.f32 %v976_v19, %v904_v43  ;;  %v635_v21 = vadd.f32 %v629_v22, %v545_v49  ;;  %v809_v51 = vmul.f32 0.21300554, %v803_v44  ;;  %v4323_v44 = vld [vmem:[%s3416_s26 + $0x2d] sm:$0xff] }
 0x100   : > { %5261 = vst [vmem:[#allocation8_spill] sm:$0xff] %v4271_v30  ;;  %v1371_v29 = vpop.f32.mrf.mxu3  ;;  %v1313_v13 = vadd.f32 %v1312_v56, %v1264_v17  ;;  %v1041_v17 = vmul.f32 0.007598758, %v1038_v53  ;;  %v893_v19 = vmul.f32 %v4306_v15, %v4306_v15  ;;  %v4312_v56 = vand.u32 4294901760, %v2135_v28 }
 0x101   : > { %2071 = vmatmul.f32.gmra.mxu0 %v4011_v61  ;;  %2118 = vmatmul.f32.gmra.mxu1 %v4039_v39  ;;  %v719_v60 = vmul.f32 0.26601171, %v713_v33  ;;  %v4298_v61 = vld [vmem:[%s3416_s26 + $0x12] sm:$0xff]  ;;  %v546_v43 = vadd.f32 %v540_v42, %v456_v48  ;;  %5269 = vst [vmem:[#allocation19_spill] sm:$0xff] %v4323_v44  ;;  %v714_v33 = vmul.f32 %v4323_v44, %v4323_v44 }
 0x102   : > { %v1366_v30 = vadd.f32 %v1365_v25, %v1313_v13  ;;  %v1107_v12 = vmul.f32 %v4298_v61, %v4298_v61  ;;  %v5265_v25 = vand.u32 4294901760, %v4076_v35  ;;  %v4328_v13 = vld [vmem:[%s3416_s26 + $0x2e] sm:$0xff]  ;;  %v1045_v49 = vadd.f32 %v1041_v17, %v982_v14 }
 0x103   : > { %v725_v1 = vadd.f32 %v719_v60, %v635_v21  ;;  %5270 = vst [vmem:[#allocation13_spill] sm:$0xff] %v4328_v13  ;;  %v804_v48 = vmul.f32 %v4328_v13, %v4328_v13  ;;  %v4336_v44 = vsub.f32 %v2135_v28, %v4312_v56  ;;  %v4339_v14 = vld [vmem:[%s3416_s26 + $0x2f] sm:$0xff] }
 0x104   : > { %v1417_v38 = vadd.f32 %v1416_v23, %v1366_v30  ;;  %1970 = vmatmul.f32.gmra.mxu2 %v4051_v46  ;;  %v4315_v23 = vld [vmem:[%s3416_s26 + $0x2c] sm:$0xff]  ;;  %v1111_v22 = vmul.f32 0.0010283801, %v1107_v12  ;;  %5271 = vst [vmem:[#allocation3_spill] sm:$0xff] %v4339_v14  ;;  %v894_v17 = vmul.f32 %v4339_v14, %v4339_v14 }
 0x105   : > { %2028 = vmatmul.f32.gmra.mxu3 %v5265_v25  ;;  %5267 = vst [vmem:[#allocation12_spill] sm:$0xff] %v4315_v23  ;;  %v624_v46 = vmul.f32 %v4315_v23, %v4315_v23  ;;  %v899_v25 = vmul.f32 0.10936069, %v893_v19  ;;  %v810_v23 = vmul.f32 0.21300554, %v804_v48  ;;  %v4349_v19 = vld [vmem:[%s3416_s26 + $0x40] sm:$0xff] }
 0x106   : > { %v1420_v53 = vpop.f32.mrf.mxu0  ;;  %v4310_v11 = vpop.f32.mrf.mxu1  ;;  %v4320_v30 = vadd.f32 %v4200_v41, %v1417_v38  ;;  %v815_v38 = vadd.f32 %v809_v51, %v725_v1  ;;  %v1117_v12 = vadd.f32 %v1111_v22, %v1045_v49  ;;  %5273 = vst [vmem:[#allocation16_spill] sm:$0xff] %v4349_v19  ;;  %v277_v28 = vmul.f32 %v4349_v19, %v4349_v19 }
 0x107   : > { %v1317_v60 = vpop.f32.mrf.mxu2  ;;  %v630_v21 = vmul.f32 0.21300554, %v624_v46  ;;  %v5274_v1 = vand.u32 4294901760, %v4095_v54  ;;  %v900_v49 = vmul.f32 0.10936069, %v894_v17 }
 0x108   : > { %5268 = vst [vmem:[#allocation18_spill] sm:$0xff] %v4320_v30  ;;  %v1377_v42 = vpop.f32.mrf.mxu3  ;;  %v1318_v41 = vadd.f32 %v1317_v60, %v4088_v50  ;;  %v720_v30 = vmul.f32 0.26601171, %v714_v33  ;;  %v4358_v33 = vld [vmem:[%s3416_s26 + $0x48] sm:$0xff]  ;;  %v283_v22 = vmul.f32 0.0010283801, %v277_v28 }
 0x109   : > { %2075 = vmatmul.f32.gmra.mxu0 %v4039_v39  ;;  %2122 = vmatmul.f32.gmra.mxu1 %v4066_v32  ;;  %v636_v13 = vadd.f32 %v630_v21, %v546_v43  ;;  %v4344_v39 = vld [vmem:[%s3416_s26 + $0x30] sm:$0xff]  ;;  %5275 = vst [vmem:[#allocation17_spill] sm:$0xff] %v4358_v33  ;;  %v2138_v17 = vsel %vm1137_vm0, %v1117_v12, 0 }
 0x10a   : > { %v1372_v50 = vadd.f32 %v1371_v29, %v1318_v41  ;;  %5272 = vst [vmem:[#allocation15_spill] sm:$0xff] %v4344_v39  ;;  %v973_v51 = vmul.f32 %v4344_v39, %v4344_v39  ;;  %v905_v29 = vadd.f32 %v899_v25, %v815_v38  ;;  %v4372_v41 = vld [vmem:[%s3416_s26 + $0x41] sm:$0xff]  ;;  %v4377_v25 = vld [vmem:[%s3416_s26 + $0x49] sm:$0xff] }
 0x10b   : > { %v726_v46 = vadd.f32 %v720_v30, %v636_v13  ;;  %v977_v30 = vmul.f32 0.036000773, %v4229_v8  ;;  %v4362_v13 = vmul.f32 %v4358_v33, %v4358_v33  ;;  %5277 = vst [vmem:[#allocation21_spill] sm:$0xff] %v4372_v41  ;;  %v355_v38 = vmul.f32 %v4372_v41, %v4372_v41  ;;  %v4400_v41 = vld [vmem:[%s3416_s26 + $0x31] sm:$0xff] }
 0x10c   : > { %v1421_v43 = vadd.f32 %v1420_v53, %v1372_v50  ;;  %1975 = vmatmul.f32.gmra.mxu2 %v4076_v35  ;;  %5278 = vst [vmem:[#allocation22_spill] sm:$0xff] %v4377_v25  ;;  %v356_v50 = vmul.f32 %v4377_v25, %v4377_v25 }
 0x10d   : > { %2034 = vmatmul.f32.gmra.mxu3 %v5274_v1  ;;  %v816_v35 = vadd.f32 %v810_v23, %v726_v46  ;;  %v284_v8 = vmul.f32 0.0010283801, %v4362_v13  ;;  %v978_v46 = vmul.f32 0.036000773, %v973_v51  ;;  %v983_v12 = vadd.f32 %v977_v30, %v905_v29  ;;  %5281 = vst [vmem:[#allocation25_spill] sm:$0xff] %v4400_v41  ;;  %v4409_v30 = vld [vmem:[%s3416_s26 + $0x32] sm:$0xff] }
 0x10e   : > { %v1424_v48 = vpop.f32.mrf.mxu0  ;;  %v4364_v60 = vpop.f32.mrf.mxu1  ;;  %v4368_v21 = vadd.f32 %v4262_v36, %v1421_v43  ;;  %v4383_v36 = vld [vmem:[%s3416_s26 + $0x42] sm:$0xff]  ;;  %v4388_v43 = vld [vmem:[%s3416_s26 + $0x4a] sm:$0xff]  ;;  %v361_v51 = vmul.f32 0.007598758, %v355_v38  ;;  %v4397_v25 = vmul.f32 0.007598758, %v356_v50  ;;  %v1108_v38 = vmul.f32 %v4409_v30, %v4409_v30 }
 0x10f   : > { %v1322_v1 = vpop.f32.mrf.mxu2  ;;  %5279 = vst [vmem:[#allocation23_spill] sm:$0xff] %v4383_v36  ;;  %v445_v28 = vmul.f32 %v4383_v36, %v4383_v36  ;;  %v4392_v53 = vmul.f32 %v4388_v43, %v4388_v43  ;;  %v906_v36 = vadd.f32 %v900_v49, %v816_v35  ;;  %v4414_v35 = vld [vmem:[%s3416_s26 + $0x43] sm:$0xff]  ;;  %v4419_v50 = vld [vmem:[%s3416_s26 + $0x4b] sm:$0xff] }
 0x110   : > { %5276 = vst [vmem:[#allocation20_spill] sm:$0xff] %v4368_v21  ;;  %v1583_v23 = vpop.f32.mrf.mxu3  ;;  %v1323_v21 = vadd.f32 %v1322_v1, %v4110_v9  ;;  %v367_v19 = vadd.f32 %v361_v51, %v283_v22  ;;  %v368_v29 = vadd.f32 %v4397_v25, %v284_v8  ;;  %v535_v49 = vmul.f32 %v4414_v35, %v4414_v35 }
 0x111   : > { %5280 = vst [vmem:[#allocation24_spill] sm:$0xff] %v4388_v43  ;;  %2079 = vmatmul.f32.gmra.mxu0 %v4066_v32  ;;  %2126 = vmatmul.f32.gmra.mxu1 %v4084_v37  ;;  %v1039_v43 = vmul.f32 %v4400_v41, %v4400_v41  ;;  %v451_v33 = vmul.f32 0.036000773, %v445_v28  ;;  %v452_v9 = vmul.f32 0.036000773, %v4392_v53  ;;  %v4405_v32 = vand.u32 4294901760, %v2138_v17 }
 0x112   : > { %v1378_v1 = vadd.f32 %v1377_v42, %v1323_v21  ;;  %5282 = vst [vmem:[#allocation26_spill] sm:$0xff] %v4409_v30  ;;  %v536_v42 = vmul.f32 %v4419_v50, %v4419_v50  ;;  %v4424_v21 = vld [vmem:[%s3416_s26 + $0x44] sm:$0xff]  ;;  %v5286_v28 = vand.u32 4294901760, %v4117_v55  ;;  %v1046_v51 = vadd.f32 %v983_v12, %v4260_v45 }
 0x113   : > { %5283 = vst [vmem:[#allocation27_spill] sm:$0xff] %v4414_v35  ;;  %v625_v22 = vmul.f32 %v4424_v21, %v4424_v21  ;;  %v1112_v35 = vmul.f32 0.0010283801, %v4247_v40  ;;  %v457_v30 = vadd.f32 %v451_v33, %v367_v19  ;;  %v984_v39 = vadd.f32 %v978_v46, %v906_v36  ;;  %v3232_v40 = vld [vmem:[%s3382_s23 + $0xa] sm:$0xff] }
 0x114   : > { %5284 = vst [vmem:[#allocation28_spill] sm:$0xff] %v4419_v50  ;;  %v1425_v8 = vadd.f32 %v1424_v48, %v1378_v1  ;;  %1980 = vmatmul.f32.gmra.mxu2 %v4095_v54  ;;  %v1042_v14 = vmul.f32 0.007598758, %v1039_v43  ;;  %v541_v15 = vmul.f32 0.10936069, %v535_v49  ;;  %v715_v45 = vmul.f32 %v4439_v57, %v4439_v57  ;;  %v4453_v12 = vld [vmem:[%s3416_s26 + $0x46] sm:$0xff] }
 0x115   : > { %5285 = vst [vmem:[#allocation29_spill] sm:$0xff] %v4424_v21  ;;  %2040 = vmatmul.f32.gmra.mxu3 %v5286_v28  ;;  %v458_v21 = vadd.f32 %v452_v9, %v368_v29  ;;  %v542_v54 = vmul.f32 0.10936069, %v536_v42  ;;  %v631_v1 = vmul.f32 0.21300554, %v625_v22  ;;  %v4445_v19 = vmul.f32 %v3232_v40, %v4144_v20 }
 0x116   : > { %v1629_v41 = vpop.f32.mrf.mxu0  ;;  %v4433_v50 = vpop.f32.mrf.mxu1  ;;  %v4436_v48 = vadd.f32 %v4310_v11, %v1425_v8  ;;  %v5288_v36 = vand.u32 4294901760, %v4336_v44  ;;  %v547_v11 = vadd.f32 %v541_v15, %v457_v30  ;;  %v805_v9 = vmul.f32 %v4453_v12, %v4453_v12  ;;  %v4463_v15 = vld [vmem:[%s3416_s26 + $0x47] sm:$0xff] }
 0x117   : > { %v1512_v33 = vpop.f32.mrf.mxu2  ;;  %v4460_v20 = vsub.f32 %v2138_v17, %v4405_v32  ;;  %v1118_v49 = vadd.f32 %v1112_v35, %v1046_v51  ;;  %v721_v22 = vmul.f32 0.26601171, %v715_v45  ;;  %v895_v30 = vmul.f32 %v4463_v15, %v4463_v15  ;;  %v4473_v35 = vld [vmem:[%s3416_s26 + $0x4d] sm:$0xff] }
 0x118   : > { %5287 = vst [vmem:[#allocation30_spill] sm:$0xff] %v4436_v48  ;;  %v1587_v46 = vpop.f32.mrf.mxu3  ;;  %v4450_v43 = vsub.f32 %v4336_v44, %v5288_v36  ;;  %v1584_v29 = vadd.f32 %v1583_v23, %v1512_v33  ;;  %v637_v42 = vadd.f32 %v631_v1, %v547_v11  ;;  %v811_v8 = vmul.f32 0.21300554, %v805_v9  ;;  %v4468_v48 = vld [vmem:[%s3416_s26 + $0x4c] sm:$0xff] }
 0x119   : > { %2083 = vmatmul.f32.gmra.mxu0 %v4084_v37  ;;  %2130 = vmatmul.f32.gmra.mxu1 %v4101_v27  ;;  %v1047_v28 = vadd.f32 %v1042_v14, %v984_v39  ;;  %v1113_v40 = vmul.f32 0.0010283801, %v1108_v38  ;;  %v548_v37 = vadd.f32 %v542_v54, %v458_v21  ;;  %v901_v36 = vmul.f32 0.10936069, %v895_v30  ;;  %5289 = vst [vmem:[#allocation31_spill] sm:$0xff] %v4473_v35  ;;  %v4492_v9 = vld [vmem:[%s3416_s26 + $0x4f] sm:$0xff] }
 0x11a   : > { %v1630_v23 = vadd.f32 %v1629_v41, %v1584_v29  ;;  %v727_v33 = vadd.f32 %v721_v22, %v637_v42  ;;  %v626_v17 = vmul.f32 %v4468_v48, %v4468_v48  ;;  %v716_v51 = vmul.f32 %v4473_v35, %v4473_v35  ;;  %v4485_v41 = vld [vmem:[%s3416_s26 + $0x4e] sm:$0xff]  ;;  %5291 = vst [vmem:[#allocation33_spill] sm:$0xff] %v4492_v9 }
 0x11b   : > { %v2141_v14 = vsel %vm1137_vm0, %v1118_v49, 0  ;;  %v979_v39 = vmul.f32 0.036000773, %v4362_v13  ;;  %5290 = vst [vmem:[#allocation32_spill] sm:$0xff] %v4485_v41  ;;  %v806_v38 = vmul.f32 %v4485_v41, %v4485_v41  ;;  %v466_v13 = vmul.f32 0.036000773, %v4445_v19 }
 0x11c   : > { %v4478_v1 = vadd.f32 %v4364_v60, %v1630_v23  ;;  %1985 = vmatmul.f32.gmra.mxu2 %v4117_v55  ;;  %v817_v45 = vadd.f32 %v811_v8, %v727_v33  ;;  %v632_v60 = vmul.f32 0.21300554, %v626_v17  ;;  %v722_v11 = vmul.f32 0.26601171, %v716_v51  ;;  %v3239_v29 = vld [vmem:[%s3382_s23 + $0xb] sm:$0xff] }
 0x11d   : > { %2246 = vmatmul.f32.vlgmr.msrb.gmra.mxu3 %v4312_v56  ;;  %v896_v55 = vmul.f32 %v4492_v9, %v4492_v9  ;;  %v550_v49 = vmul.f32 %v3239_v29, %v4158_v58  ;;  %v2174_v42 = vand.u32 4294901760, %v4450_v43  ;;  %v1119_v22 = vadd.f32 %v1113_v40, %v1047_v28  ;;  %v4502_v51 = vld [vmem:[%s3416_s26 + $0x50] sm:$0xff] }
 0x11e   : > { %v1634_v21 = vpop.f32.mrf.mxu0  ;;  %v4489_v54 = vpop.f32.mrf.mxu1  ;;  %2668 = vmatpush.msrb.mxu3 %v3356_v2  ;;  %v907_v23 = vadd.f32 %v901_v36, %v817_v45  ;;  %v638_v33 = vadd.f32 %v632_v60, %v548_v37  ;;  %v812_v17 = vmul.f32 0.21300554, %v806_v38  ;;  %5292 = vst [vmem:[#allocation34_spill] sm:$0xff] %v4502_v51  ;;  %v974_v9 = vmul.f32 %v4502_v51, %v4502_v51  ;;  %v4515_v45 = vld [vmem:[%s3416_s26 + $0x51] sm:$0xff] }
 0x11f   : > { %v1520_v30 = vpop.f32.mrf.mxu2  ;;  %v2180_v58 = vand.u32 4294901760, %v4460_v20  ;;  %v5293_v43 = vand.u32 4294901760, %v4336_v44  ;;  %v4511_v28 = vand.u32 4294901760, %v2141_v14  ;;  %v1114_v40 = vmul.f32 0.0010283801, %v4392_v53  ;;  %v4524_v53 = vld [vmem:[%s3416_s26 + $0x52] sm:$0xff] }
 0x120   : > { %v1591_v8 = vpop.f32.mrf.mxu3  ;;  %2670 = vmatpush.msrb.mxu3 %v3358_v3  ;;  %v1588_v41 = vadd.f32 %v1587_v46, %v1520_v30  ;;  %v985_v37 = vadd.f32 %v979_v39, %v907_v23  ;;  %v728_v36 = vadd.f32 %v722_v11, %v638_v33  ;;  %v902_v38 = vmul.f32 0.10936069, %v896_v55 }
 0x121   : > { %2087 = vmatmul.f32.gmra.mxu0 %v4101_v27  ;;  %2342 = vmatmul.f32.vlgmr.msrb.gmra.mxu1 %v5293_v43  ;;  %v1040_v46 = vmul.f32 %v4515_v45, %v4515_v45  ;;  %v5294_v27 = vld [vmem:[#allocation5_spill] sm:$0xff]  ;;  %v2144_v30 = vsel %vm1137_vm0, %v1119_v22, 0  ;;  %v980_v35 = vmul.f32 0.036000773, %v974_v9  ;;  %v1109_v39 = vmul.f32 %v4524_v53, %v4524_v53 }
 0x122   : > { %2770 = vmatpush.msrb.mxu1 %v3356_v2  ;;  %v472_v60 = vadd.f32 %v466_v13, %v5294_v27  ;;  %v1635_v29 = vadd.f32 %v1634_v21, %v1588_v41  ;;  %v1048_v43 = vadd.f32 %v985_v37, %v4397_v25  ;;  %v818_v51 = vadd.f32 %v812_v17, %v728_v36  ;;  %v3243_v37 = vld [vmem:[%s3382_s23 + $0xc] sm:$0xff] }
 0x123   : > { %v2181_v2 = vsub.f32 %v4460_v20, %v2180_v58  ;;  %v4535_v41 = vsub.f32 %v2141_v14, %v4511_v28  ;;  %v556_v25 = vmul.f32 0.10936069, %v550_v49  ;;  %v1043_v22 = vmul.f32 0.007598758, %v1040_v46  ;;  %v3245_v46 = vld [vmem:[%s3382_s23 + $0x20] sm:$0xff] }
 0x124   : > { %2772 = vmatpush.msrb.mxu1 %v3358_v3  ;;  %v4530_v11 = vadd.f32 %v4433_v50, %v1635_v29  ;;  %2175 = vmatmul.f32.vlgmr.msrb.gmra.mxu2 %v2174_v42  ;;  %v1120_v55 = vadd.f32 %v1114_v40, %v1048_v43  ;;  %v908_v13 = vadd.f32 %v902_v38, %v818_v51  ;;  %v4540_v3 = vand.u32 4294901760, %v2144_v30  ;;  %v3246_v29 = vld [vmem:[%s3382_s23 + $0x21] sm:$0xff] }
 0x125   : > { %2250 = vmatmul.f32.gmra.mxu3 %v4405_v32  ;;  %2618 = vmatpush.msrb.mxu2 %v3364_v4  ;;  %v1115_v33 = vmul.f32 0.0010283801, %v1109_v39  ;;  %v2182_v49 = vand.u32 4294901760, %v2181_v2  ;;  %v2188_v17 = vand.u32 4294901760, %v4535_v41  ;;  %v562_v51 = vadd.f32 %v556_v25, %v472_v60  ;;  %v3247_v39 = vld [vmem:[%s3382_s23 + $0xe] sm:$0xff] }
 0x126   : > { %v1639_v21 = vpop.f32.mrf.mxu0  ;;  %v4537_v9 = vpop.f32.mrf.mxu1  ;;  %v986_v23 = vadd.f32 %v980_v35, %v908_v13  ;;  %v2147_v4 = vsel %vm1137_vm0, %v1120_v55, 0  ;;  %v640_v35 = vmul.f32 %v3243_v37, %v4168_v62  ;;  %v287_v27 = vmul.f32 %v3245_v46, %v4182_v59 }
 0x127   : > { %v1528_v50 = vpop.f32.mrf.mxu2  ;;  %2621 = vmatpush.msrb.mxu2 %v3367_v5  ;;  %v2189_v62 = vsub.f32 %v4535_v41, %v2188_v17  ;;  %v4562_v60 = vand.u32 4294901760, %v2147_v4  ;;  %v1125_v37 = vmul.f32 0.0010283801, %v4445_v19 }
 0x128   : > { %v1595_v42 = vpop.f32.mrf.mxu3  ;;  %v1592_v14 = vadd.f32 %v1591_v8, %v1528_v50  ;;  %v1049_v40 = vadd.f32 %v1043_v22, %v986_v23  ;;  %v4550_v8 = vsub.f32 %v2144_v30, %v4540_v3  ;;  %v646_v38 = vmul.f32 0.21300554, %v640_v35  ;;  %v3248_v23 = vld [vmem:[%s3382_s23 + $0xf] sm:$0xff] }
 0x129   : > { %2292 = vmatmul.f32.vlgmr.msrb.gmra.mxu0 %v4336_v44  ;;  %2348 = vmatmul.f32.gmra.mxu1 %v2180_v58  ;;  %v3244_v44 = vld [vmem:[%s3382_s23 + $0xd] sm:$0xff]  ;;  %v371_v30 = vmul.f32 %v3246_v29, %v4187_v63  ;;  %v3253_v29 = vld [vmem:[%s3382_s23 + $0x23] sm:$0xff] }
 0x12a   : > { %2725 = vmatpush.msrb.mxu0 %v3372_v6  ;;  %v1640_v5 = vadd.f32 %v1639_v21, %v1592_v14  ;;  %v1121_v36 = vadd.f32 %v1115_v33, %v1049_v40  ;;  %v730_v58 = vmul.f32 %v3244_v44, %v4177_v52  ;;  %v652_v59 = vadd.f32 %v646_v38, %v562_v51  ;;  %v3249_v14 = vld [vmem:[%s3382_s23 + $0x22] sm:$0xff] }
 0x12b   : > { %v2196_v2 = vand.u32 4294901760, %v4550_v8  ;;  %v293_v21 = vmul.f32 0.0010283801, %v287_v27  ;;  %v377_v55 = vmul.f32 0.007598758, %v371_v30  ;;  %v910_v33 = vmul.f32 %v3248_v23, %v4215_v0  ;;  %v3252_v27 = vld [vmem:[%s3382_s23 + $0x28] sm:$0xff] }
 0x12c   : > { %2729 = vmatpush.msrb.mxu0 %v3376_v7  ;;  %v4558_v6 = vadd.f32 %v4489_v54, %v1640_v5  ;;  %2183 = vmatmul.f32.gmra.mxu2 %v2182_v49  ;;  %v736_v7 = vmul.f32 0.26601171, %v730_v58  ;;  %v820_v54 = vmul.f32 %v3247_v39, %v4192_v16  ;;  %v2150_v25 = vsel %vm1137_vm0, %v1121_v36, 0  ;;  %v3250_v36 = vld [vmem:[%s3382_s23 + $0x10] sm:$0xff] }
 0x12d   : > { %2254 = vmatmul.f32.gmra.mxu3 %v4511_v28  ;;  %v461_v49 = vmul.f32 %v3249_v14, %v4205_v47  ;;  %v2190_v16 = vand.u32 4294901760, %v2189_v62  ;;  %v4578_v40 = vsub.f32 %v2147_v4, %v4562_v60  ;;  %v916_v5 = vmul.f32 0.10936069, %v910_v33  ;;  %v3251_v4 = vld [vmem:[%s3382_s23 + $0x11] sm:$0xff]  ;;  %v5295_v33 = vld [vmem:[#allocation14_spill] sm:$0xff] }
 0x12e   : > { %v1644_v52 = vpop.f32.mrf.mxu0  ;;  %v4566_v43 = vpop.f32.mrf.mxu1  ;;  %v742_v50 = vadd.f32 %v736_v7, %v652_v59  ;;  %v826_v63 = vmul.f32 0.21300554, %v820_v54  ;;  %v987_v0 = vmul.f32 %v3250_v36, %v4232_v18  ;;  %v2197_v47 = vsub.f32 %v4550_v8, %v2196_v2  ;;  %v3255_v54 = vld [vmem:[%s3382_s23 + $0x29] sm:$0xff] }
 0x12f   : > { %v1536_v13 = vpop.f32.mrf.mxu2  ;;  %v383_v44 = vadd.f32 %v377_v55, %v293_v21  ;;  %v1050_v58 = vmul.f32 %v3251_v4, %v4274_v10  ;;  %v467_v19 = vmul.f32 0.036000773, %v461_v49  ;;  %v2204_v18 = vand.u32 4294901760, %v4578_v40 }
 0x130   : > { %v1599_v22 = vpop.f32.mrf.mxu3  ;;  %v1596_v51 = vadd.f32 %v1595_v42, %v1536_v13  ;;  %v832_v35 = vadd.f32 %v826_v63, %v742_v50  ;;  %v4584_v42 = vand.u32 4294901760, %v2150_v25  ;;  %v4595_v62 = vmul.f32 %v3252_v27, %v4225_v34  ;;  %v3256_v50 = vld [vmem:[%s3382_s23 + $0x2a] sm:$0xff] }
 0x131   : > { %2297 = vmatmul.f32.gmra.mxu0 %v4460_v20  ;;  %2354 = vmatmul.f32.gmra.mxu1 %v2188_v17  ;;  %v991_v17 = vmul.f32 0.036000773, %v987_v0  ;;  %v551_v30 = vmul.f32 %v3253_v29, %v4250_v26  ;;  %v1053_v7 = vmul.f32 0.007598758, %v1050_v58  ;;  %v372_v21 = vmul.f32 %v3255_v54, %v4237_v24 }
 0x132   : > { %v1645_v38 = vadd.f32 %v1644_v52, %v1596_v51  ;;  %v922_v20 = vadd.f32 %v916_v5, %v832_v35  ;;  %v2198_v55 = vand.u32 4294901760, %v2197_v47  ;;  %v4606_v13 = vsub.f32 %v2150_v25, %v4584_v42  ;;  %v3257_v35 = vld [vmem:[%s3382_s23 + $0x2b] sm:$0xff]  ;;  %v5297_v47 = vld [vmem:[#allocation10_spill] sm:$0xff] }
 0x133   : > { %v294_v34 = vmul.f32 0.0010283801, %v4595_v62  ;;  %v4611_v26 = vmul.f32 %v3256_v50, %v4243_v31  ;;  %v1131_v14 = vadd.f32 %v1125_v37, %v5295_v33  ;;  %v4614_v49 = vmul.f32 0.007598758, %v372_v21  ;;  %v5296_v31 = vld [vmem:[#allocation9_spill] sm:$0xff]  ;;  %v3260_v21 = vld [vmem:[%s3382_s23 + $0x26] sm:$0xff] }
 0x134   : > { %v4589_v46 = vadd.f32 %v4537_v9, %v1645_v38  ;;  %2191 = vmatmul.f32.gmra.mxu2 %v2190_v16  ;;  %v997_v59 = vadd.f32 %v991_v17, %v922_v20  ;;  %v3254_v9 = vld [vmem:[%s3382_s23 + $0x12] sm:$0xff]  ;;  %v473_v24 = vadd.f32 %v467_v19, %v383_v44  ;;  %v552_v5 = vmul.f32 %v3257_v35, %v5296_v31  ;;  %v3258_v38 = vld [vmem:[%s3382_s23 + $0x24] sm:$0xff] }
 0x135   : > { %2258 = vmatmul.f32.gmra.mxu3 %v4540_v3  ;;  %v1122_v39 = vmul.f32 %v3254_v9, %v4298_v61  ;;  %v468_v16 = vmul.f32 0.036000773, %v4611_v26  ;;  %v2205_v36 = vsub.f32 %v4578_v40, %v2204_v18  ;;  %v384_v37 = vadd.f32 %v4614_v49, %v294_v34  ;;  %v3259_v20 = vld [vmem:[%s3382_s23 + $0x25] sm:$0xff]  ;;  %v5298_v17 = vld [vmem:[#allocation4_spill] sm:$0xff] }
 0x136   : > { %v1649_v52 = vpop.f32.mrf.mxu0  ;;  %v4599_v10 = vpop.f32.mrf.mxu1  ;;  %v1057_v61 = vadd.f32 %v1053_v7, %v997_v59  ;;  %v557_v0 = vmul.f32 0.10936069, %v551_v30  ;;  %v641_v44 = vmul.f32 %v3258_v38, %v5297_v47  ;;  %v731_v4 = vmul.f32 %v3259_v20, %v5298_v17  ;;  %v5299_v34 = vld [vmem:[#allocation11_spill] sm:$0xff] }
 0x137   : > { %v1544_v63 = vpop.f32.mrf.mxu2  ;;  %v1126_v25 = vmul.f32 0.0010283801, %v1122_v39  ;;  %v474_v58 = vadd.f32 %v468_v16, %v384_v37  ;;  %v2467_v30 = vsel %vm1137_vm0, %v1131_v14, 0  ;;  %v2206_v9 = vand.u32 4294901760, %v2205_v36  ;;  %v3262_v14 = vld [vmem:[%s3382_s23 + $0x2c] sm:$0xff] }
 0x138   : > { %v1603_v23 = vpop.f32.mrf.mxu3  ;;  %v1600_v51 = vadd.f32 %v1599_v22, %v1544_v63  ;;  %v563_v19 = vadd.f32 %v557_v0, %v473_v24  ;;  %v647_v27 = vmul.f32 0.21300554, %v641_v44  ;;  %v737_v59 = vmul.f32 0.26601171, %v731_v4  ;;  %v3261_v63 = vld [vmem:[%s3382_s23 + $0x27] sm:$0xff] }
 0x139   : > { %2302 = vmatmul.f32.gmra.mxu0 %v4535_v41  ;;  %2360 = vmatmul.f32.gmra.mxu1 %v2196_v2  ;;  %v2212_v41 = vand.u32 4294901760, %v4606_v13  ;;  %v558_v2 = vmul.f32 0.10936069, %v552_v5  ;;  %v821_v50 = vmul.f32 %v3260_v21, %v5299_v34  ;;  %v5302_v16 = vld [vmem:[#allocation19_spill] sm:$0xff]  ;;  %v4651_v36 = vand.u32 4294901760, %v2467_v30 }
 0x13a   : > { %v1650_v22 = vadd.f32 %v1649_v52, %v1600_v51  ;;  %v1132_v52 = vadd.f32 %v1126_v25, %v1057_v61  ;;  %v653_v54 = vadd.f32 %v647_v27, %v563_v19  ;;  %v5301_v61 = vld [vmem:[#allocation12_spill] sm:$0xff]  ;;  %v992_v17 = vmul.f32 0.036000773, %v4595_v62  ;;  %v5305_v34 = vld [vmem:[#allocation15_spill] sm:$0xff] }
 0x13b   : > { %v564_v24 = vadd.f32 %v558_v2, %v474_v58  ;;  %v642_v51 = vmul.f32 %v3262_v14, %v5301_v61  ;;  %v3263_v25 = vld [vmem:[%s3382_s23 + $0x2d] sm:$0xff]  ;;  %v827_v0 = vmul.f32 0.21300554, %v821_v50  ;;  %v5303_v58 = vld [vmem:[#allocation13_spill] sm:$0xff]  ;;  %v4670_v62 = vsub.f32 %v2467_v30, %v4651_v36 }
 0x13c   : > { %v4630_v29 = vadd.f32 %v4566_v43, %v1650_v22  ;;  %2199 = vmatmul.f32.gmra.mxu2 %v2198_v55  ;;  %v5300_v43 = vld [vmem:[#allocation2_spill] sm:$0xff]  ;;  %v4643_v55 = vsub.f32 %v4606_v13, %v2212_v41  ;;  %v732_v35 = vmul.f32 %v3263_v25, %v5302_v16  ;;  %v743_v37 = vadd.f32 %v737_v59, %v653_v54  ;;  %v3264_v4 = vld [vmem:[%s3382_s23 + $0x2e] sm:$0xff] }
 0x13d   : > { %2262 = vmatmul.f32.gmra.mxu3 %v4562_v60  ;;  %v911_v33 = vmul.f32 %v3261_v63, %v5300_v43  ;;  %v4657_v44 = vsel %vm1137_vm0, %v1132_v52, 0  ;;  %v648_v22 = vmul.f32 0.21300554, %v642_v51  ;;  %v822_v19 = vmul.f32 %v3264_v4, %v5303_v58  ;;  %v3265_v27 = vld [vmem:[%s3382_s23 + $0x2f] sm:$0xff] }
 0x13e   : > { %v1654_v7 = vpop.f32.mrf.mxu0  ;;  %v4634_v39 = vpop.f32.mrf.mxu1  ;;  %v738_v2 = vmul.f32 0.26601171, %v732_v35  ;;  %v833_v20 = vadd.f32 %v827_v0, %v743_v37  ;;  %v5304_v59 = vld [vmem:[#allocation3_spill] sm:$0xff]  ;;  %v5306_v63 = vld [vmem:[#allocation16_spill] sm:$0xff]  ;;  %v2214_v43 = vand.u32 4294901760, %v4643_v55  ;;  %v5307_v35 = vld [vmem:[#allocation25_spill] sm:$0xff] }
 0x13f   : > { %v1552_v31 = vpop.f32.mrf.mxu2  ;;  %v917_v38 = vmul.f32 0.10936069, %v911_v33  ;;  %v654_v21 = vadd.f32 %v648_v22, %v564_v24  ;;  %v828_v14 = vmul.f32 0.21300554, %v822_v19  ;;  %v1127_v16 = vmul.f32 0.0010283801, %v4611_v26 }
 0x140   : > { %v4649_v5 = vpop.f32.mrf.mxu3  ;;  %v1604_v47 = vadd.f32 %v1603_v23, %v1552_v31  ;;  %v912_v23 = vmul.f32 %v3265_v27, %v5304_v59  ;;  %v3269_v31 = vld [vmem:[%s3382_s23 + $0x48] sm:$0xff]  ;;  %v5308_v37 = vld [vmem:[#allocation17_spill] sm:$0xff]  ;;  %v5310_v27 = vld [vmem:[#allocation26_spill] sm:$0xff] }
 0x141   : > { %2307 = vmatmul.f32.gmra.mxu0 %v4550_v8  ;;  %2366 = vmatmul.f32.gmra.mxu1 %v2204_v18  ;;  %v3266_v8 = vld [vmem:[%s3382_s23 + $0x30] sm:$0xff]  ;;  %v3267_v18 = vld [vmem:[%s3382_s23 + $0x40] sm:$0xff]  ;;  %v923_v33 = vadd.f32 %v917_v38, %v833_v20  ;;  %v744_v24 = vadd.f32 %v738_v2, %v654_v21  ;;  %v4688_v0 = vmul.f32 %v3269_v31, %v5308_v37  ;;  %v5309_v20 = vld [vmem:[#allocation21_spill] sm:$0xff] }
 0x142   : > { %v1655_v54 = vadd.f32 %v1654_v7, %v1604_v47  ;;  %v988_v50 = vmul.f32 %v3266_v8, %v5305_v34  ;;  %v289_v52 = vmul.f32 %v3267_v18, %v5306_v63  ;;  %v4677_v7 = vand.u32 4294901760, %v4657_v44  ;;  %v3270_v2 = vld [vmem:[%s3382_s23 + $0x41] sm:$0xff] }
 0x143   : > { %v918_v51 = vmul.f32 0.10936069, %v912_v23  ;;  %v998_v30 = vadd.f32 %v992_v17, %v923_v33  ;;  %v834_v38 = vadd.f32 %v828_v14, %v744_v24  ;;  %v373_v4 = vmul.f32 %v3270_v2, %v5309_v20  ;;  %v3271_v17 = vld [vmem:[%s3382_s23 + $0x32] sm:$0xff]  ;;  %v5311_v21 = vld [vmem:[#allocation22_spill] sm:$0xff]  ;;  %v3274_v24 = vld [vmem:[%s3382_s23 + $0x4a] sm:$0xff] }
 0x144   : > { %v4673_v61 = vadd.f32 %v4599_v10, %v1655_v54  ;;  %2207 = vmatmul.f32.gmra.mxu2 %v2206_v9  ;;  %v3268_v10 = vld [vmem:[%s3382_s23 + $0x31] sm:$0xff]  ;;  %v993_v47 = vmul.f32 0.036000773, %v988_v50  ;;  %v295_v22 = vmul.f32 0.0010283801, %v289_v52  ;;  %v1123_v59 = vmul.f32 %v3271_v17, %v5310_v27  ;;  %v3272_v54 = vld [vmem:[%s3382_s23 + $0x49] sm:$0xff] }
 0x145   : > { %2266 = vmatmul.f32.gmra.mxu3 %v4584_v42  ;;  %v1051_v9 = vmul.f32 %v3268_v10, %v5307_v35  ;;  %v1058_v26 = vadd.f32 %v998_v30, %v4614_v49  ;;  %v296_v23 = vmul.f32 0.0010283801, %v4688_v0  ;;  %v374_v8 = vmul.f32 %v3272_v54, %v5311_v21  ;;  %v3273_v63 = vld [vmem:[%s3382_s23 + $0x42] sm:$0xff]  ;;  %v5313_v30 = vld [vmem:[#allocation24_spill] sm:$0xff] }
 0x146   : > { %v4679_v25 = vpop.f32.mrf.mxu0  ;;  %v4681_v55 = vpop.f32.mrf.mxu1  ;;  %v924_v50 = vadd.f32 %v918_v51, %v834_v38  ;;  %v379_v18 = vmul.f32 0.007598758, %v373_v4  ;;  %v5312_v49 = vld [vmem:[#allocation23_spill] sm:$0xff]  ;;  %v4708_v10 = vmul.f32 %v3274_v24, %v5313_v30  ;;  %v5315_v38 = vld [vmem:[#allocation6_spill] sm:$0xff]  ;;  %v4720_v20 = vsub.f32 %v4657_v44, %v4677_v7 }
 0x147   : > { %v1736_v58 = vpop.f32.mrf.mxu2  ;;  %v463_v52 = vmul.f32 %v3273_v63, %v5312_v49  ;;  %v1054_v33 = vmul.f32 0.007598758, %v1051_v9  ;;  %v4704_v14 = vmul.f32 0.007598758, %v374_v8  ;;  %v3275_v35 = vld [vmem:[%s3382_s23 + $0x43] sm:$0xff]  ;;  %v4715_v2 = vmul.f32 %v5315_v38, %v5315_v38  ;;  %v3276_v54 = vld [vmem:[%s3382_s23 + $0x4b] sm:$0xff] }
 0x148   : > { %v1783_v19 = vpop.f32.mrf.mxu3  ;;  %v1737_v34 = vadd.f32 %v1736_v58, %v4478_v1  ;;  %v5314_v31 = vld [vmem:[#allocation27_spill] sm:$0xff]  ;;  %v999_v37 = vadd.f32 %v993_v47, %v924_v50  ;;  %v2504_v9 = vand.u32 4294901760, %v4670_v62  ;;  %v1133_v4 = vadd.f32 %v1127_v16, %v1058_v26  ;;  %v5316_v16 = vld [vmem:[#allocation28_spill] sm:$0xff] }
 0x149   : > { %2312 = vmatmul.f32.gmra.mxu0 %v4578_v40  ;;  %2372 = vmatmul.f32.gmra.mxu1 %v2212_v41  ;;  %v553_v1 = vmul.f32 %v3275_v35, %v5314_v31  ;;  %v385_v41 = vadd.f32 %v379_v18, %v295_v22  ;;  %v469_v51 = vmul.f32 0.036000773, %v463_v52  ;;  %v470_v47 = vmul.f32 0.036000773, %v4708_v10  ;;  %v3277_v49 = vld [vmem:[%s3382_s23 + $0x44] sm:$0xff]  ;;  %v5317_v52 = vld [vmem:[#allocation29_spill] sm:$0xff] }
 0x14a   : > { %v1780_v40 = vadd.f32 %v4649_v5, %v1737_v34  ;;  %v386_v5 = vadd.f32 %v4704_v14, %v296_v23  ;;  %v554_v26 = vmul.f32 %v3276_v54, %v5316_v16  ;;  %v1128_v34 = vmul.f32 0.0010283801, %v1123_v59  ;;  %v3280_v54 = vld [vmem:[%s3382_s23 + $0x47] sm:$0xff] }
 0x14b   : > { %v475_v44 = vadd.f32 %v469_v51, %v385_v41  ;;  %v559_v21 = vmul.f32 0.10936069, %v553_v1  ;;  %v2505_v18 = vsub.f32 %v4670_v62, %v2504_v9  ;;  %v643_v24 = vmul.f32 %v3277_v49, %v5317_v52  ;;  %v3279_v41 = vld [vmem:[%s3382_s23 + $0x46] sm:$0xff] }
 0x14c   : > { %v4722_v58 = vmul.f32 %v1780_v40, %v1780_v40  ;;  %v4725_v17 = vmul.f32 %v1780_v40, %v5315_v38  ;;  %2215 = vmatmul.f32.gmra.mxu2 %v2214_v43  ;;  %v1059_v43 = vadd.f32 %v1054_v33, %v999_v37  ;;  %v5216_v59 = vand.u32 4294901760, %v4720_v20  ;;  %v3278_v40 = vld [vmem:[%s3382_s23 + $0x45] sm:$0xff] }
 0x14d   : > { %2442 = vmatmul.f32.vlgmr.msra.gmra.mxu3 %v4312_v56  ;;  %v565_v63 = vadd.f32 %v559_v21, %v475_v44  ;;  %v2473_v33 = vsel %vm1137_vm0, %v1133_v4, 0  ;;  %v476_v35 = vadd.f32 %v470_v47, %v386_v5  ;;  %v560_v31 = vmul.f32 0.10936069, %v554_v26  ;;  %v5318_v38 = vld [vmem:[#allocation7_spill] sm:$0xff] }
 0x14e   : > { %v4730_v22 = vpop.f32.mrf.mxu0  ;;  %v4732_v27 = vpop.f32.mrf.mxu1  ;;  %v4738_v8 = vadd.f32 %v4722_v58, %v4715_v2  ;;  %v649_v1 = vmul.f32 0.21300554, %v643_v24  ;;  %v733_v37 = vmul.f32 %v3278_v40, %v4439_v57  ;;  %v823_v51 = vmul.f32 %v3279_v41, %v4453_v12  ;;  %v3282_v41 = vld [vmem:[%s3382_s23 + $0x4d] sm:$0xff] }
 0x14f   : > { %v1740_v50 = vpop.f32.mrf.mxu2  ;;  %v1134_v44 = vadd.f32 %v1128_v34, %v1059_v43  ;;  %v913_v16 = vmul.f32 %v3280_v54, %v4463_v15  ;;  %v2506_v4 = vand.u32 4294901760, %v2505_v18  ;;  %v2513_v12 = vsub.f32 %v4720_v20, %v5216_v59 }
 0x150   : > { %v1787_v23 = vpop.f32.mrf.mxu3  ;;  %v1741_v30 = vadd.f32 %v1740_v50, %v4530_v11  ;;  %v4756_v11 = vmul.f32 %v5318_v38, %v5318_v38  ;;  %v655_v5 = vadd.f32 %v649_v1, %v565_v63  ;;  %v739_v47 = vmul.f32 0.26601171, %v733_v37  ;;  %v3281_v63 = vld [vmem:[%s3382_s23 + $0x4c] sm:$0xff] }
 0x151   : > { %2317 = vmatmul.f32.gmra.mxu0 %v4606_v13  ;;  %2578 = vmatmul.f32.vlgmr.msra.gmra.mxu1 %v4651_v36  ;;  %v829_v26 = vmul.f32 0.21300554, %v823_v51  ;;  %v4770_v15 = vand.u32 4294901760, %v2473_v33  ;;  %v566_v34 = vadd.f32 %v560_v31, %v476_v35  ;;  %v919_v18 = vmul.f32 0.10936069, %v913_v16  ;;  %v5319_v51 = vld [vmem:[#allocation31_spill] sm:$0xff] }
 0x152   : > { %v1784_v13 = vadd.f32 %v1783_v19, %v1741_v30  ;;  %v745_v50 = vadd.f32 %v739_v47, %v655_v5  ;;  %v2476_v52 = vsel %vm1137_vm0, %v1134_v44, 0  ;;  %v994_v24 = vmul.f32 0.036000773, %v4688_v0  ;;  %v3283_v31 = vld [vmem:[%s3382_s23 + $0x4e] sm:$0xff] }
 0x153   : > { %v734_v35 = vmul.f32 %v3282_v41, %v5319_v51  ;;  %v2514_v0 = vand.u32 4294901760, %v2513_v12  ;;  %v4795_v16 = vsub.f32 %v2473_v33, %v4770_v15  ;;  %v3284_v41 = vld [vmem:[%s3382_s23 + $0x4f] sm:$0xff]  ;;  %v5322_v51 = vld [vmem:[#allocation33_spill] sm:$0xff] }
 0x154   : > { %v4760_v21 = vmul.f32 %v1784_v13, %v1784_v13  ;;  %v4763_v57 = vmul.f32 %v1784_v13, %v5318_v38  ;;  %2399 = vmatmul.f32.vlgmr.msra.gmra.mxu2 %v4312_v56  ;;  %v644_v56 = vmul.f32 %v3281_v63, %v4468_v48  ;;  %v835_v40 = vadd.f32 %v829_v26, %v745_v50  ;;  %v5320_v38 = vld [vmem:[#allocation32_spill] sm:$0xff] }
 0x155   : > { %2446 = vmatmul.f32.gmra.mxu3 %v4405_v32  ;;  %v824_v48 = vmul.f32 %v3283_v31, %v5320_v38  ;;  %v5321_v13 = vld [vmem:[#allocation8_spill] sm:$0xff]  ;;  %v740_v26 = vmul.f32 0.26601171, %v734_v35  ;;  %v914_v31 = vmul.f32 %v3284_v41, %v5322_v51 }
 0x156   : > { %v4772_v19 = vpop.f32.mrf.mxu0  ;;  %v4774_v43 = vpop.f32.mrf.mxu1  ;;  %v4780_v49 = vadd.f32 %v4760_v21, %v4756_v11  ;;  %v650_v37 = vmul.f32 0.21300554, %v644_v56  ;;  %v4790_v54 = vmul.f32 %v5321_v13, %v5321_v13  ;;  %v925_v5 = vadd.f32 %v919_v18, %v835_v40  ;;  %v3285_v38 = vld [vmem:[%s3382_s23 + $0x50] sm:$0xff] }
 0x157   : > { %v1744_v30 = vpop.f32.mrf.mxu2  ;;  %v830_v50 = vmul.f32 0.21300554, %v824_v48  ;;  %v4797_v56 = vand.u32 4294901760, %v2476_v52  ;;  %v3286_v33 = vld [vmem:[%s3382_s23 + $0x51] sm:$0xff]  ;;  %v5219_v40 = vand.u32 4294901760, %v4795_v16 }
 0x158   : > { %v1791_v1 = vpop.f32.mrf.mxu3  ;;  %v1745_v44 = vadd.f32 %v1744_v30, %v4558_v6  ;;  %v656_v47 = vadd.f32 %v650_v37, %v566_v34  ;;  %v5323_v6 = vld [vmem:[#allocation34_spill] sm:$0xff]  ;;  %v1000_v12 = vadd.f32 %v994_v24, %v925_v5  ;;  %v1129_v30 = vmul.f32 0.0010283801, %v4708_v10 }
 0x159   : > { %2507 = vmatmul.f32.vlgmr.msra.gmra.mxu0 %v2506_v4  ;;  %2582 = vmatmul.f32.gmra.mxu1 %v4677_v7  ;;  %v989_v4 = vmul.f32 %v3285_v38, %v5323_v6  ;;  %v1052_v18 = vmul.f32 %v3286_v33, %v4515_v45  ;;  %v920_v37 = vmul.f32 0.10936069, %v914_v31  ;;  %v5324_v6 = vld [vmem:[#allocation18_spill] sm:$0xff] }
 0x15a   : > { %v1788_v63 = vadd.f32 %v1787_v23, %v1745_v44  ;;  %v746_v59 = vadd.f32 %v740_v26, %v656_v47  ;;  %v1060_v10 = vadd.f32 %v1000_v12, %v4704_v14  ;;  %v3287_v44 = vld [vmem:[%s3382_s23 + $0x52] sm:$0xff]  ;;  %v4826_v26 = vsub.f32 %v2476_v52, %v4797_v56 }
 0x15b   : > { %v995_v45 = vmul.f32 0.036000773, %v989_v4  ;;  %v1124_v5 = vmul.f32 %v3287_v44, %v4524_v53  ;;  %v1055_v51 = vmul.f32 0.007598758, %v1052_v18  ;;  %v2521_v14 = vsub.f32 %v4795_v16, %v5219_v40 }
 0x15c   : > { %v4806_v34 = vmul.f32 %v1788_v63, %v1788_v63  ;;  %v4809_v23 = vmul.f32 %v1788_v63, %v5321_v13  ;;  %2403 = vmatmul.f32.gmra.mxu2 %v4405_v32  ;;  %v836_v48 = vadd.f32 %v830_v50, %v746_v59  ;;  %v1135_v63 = vadd.f32 %v1129_v30, %v1060_v10 }
 0x15d   : > { %2450 = vmatmul.f32.gmra.mxu3 %v4511_v28  ;;  %v1130_v50 = vmul.f32 0.0010283801, %v1124_v5  ;;  %v4836_v52 = vmul.f32 %v5324_v6, %v5324_v6  ;;  %v5218_v4 = vand.u32 4294901760, %v4826_v26  ;;  %v2522_v30 = vand.u32 4294901760, %v2521_v14 }
 0x15e   : > { %v4814_v24 = vpop.f32.mrf.mxu0  ;;  %v4816_v35 = vpop.f32.mrf.mxu1  ;;  %v4823_v13 = vadd.f32 %v4806_v34, %v4790_v54  ;;  %v926_v41 = vadd.f32 %v920_v37, %v836_v48  ;;  %v2479_v53 = vsel %vm1137_vm0, %v1135_v63, 0 }
 0x15f   : > { %v1748_v32 = vpop.f32.mrf.mxu2  ;;  %v4846_v33 = vand.u32 4294901760, %v2479_v53 }
 0x160   : > { %v1795_v47 = vpop.f32.mrf.mxu3  ;;  %v1749_v31 = vadd.f32 %v1748_v32, %v4589_v46  ;;  %v1001_v59 = vadd.f32 %v995_v45, %v926_v41  ;;  %v5325_v41 = vld [vmem:[#allocation20_spill] sm:$0xff] }
 0x161   : > { %2515 = vmatmul.f32.gmra.mxu0 %v2514_v0  ;;  %2586 = vmatmul.f32.gmra.mxu1 %v4770_v15  ;;  %v4862_v5 = vsub.f32 %v2479_v53, %v4846_v33 }
 0x162   : > { %v1792_v38 = vadd.f32 %v1791_v1, %v1749_v31  ;;  %v1061_v12 = vadd.f32 %v1055_v51, %v1001_v59  ;;  %v4867_v51 = vmul.f32 %v5325_v41, %v5325_v41 }
 0x164   : > { %v4839_v46 = vmul.f32 %v1792_v38, %v1792_v38  ;;  %v4842_v0 = vmul.f32 %v1792_v38, %v5324_v6  ;;  %2407 = vmatmul.f32.gmra.mxu2 %v4511_v28  ;;  %v1136_v37 = vadd.f32 %v1130_v50, %v1061_v12  ;;  %v2529_v28 = vsub.f32 %v4826_v26, %v5218_v4 }
 0x165   : > { %2454 = vmatmul.f32.gmra.mxu3 %v4540_v3 }
 0x166   : > { %v4848_v1 = vpop.f32.mrf.mxu0  ;;  %v4850_v18 = vpop.f32.mrf.mxu1  ;;  %v4854_v10 = vadd.f32 %v4839_v46, %v4836_v52  ;;  %v2482_v32 = vsel %vm1137_vm0, %v1136_v37, 0  ;;  %v2530_v31 = vand.u32 4294901760, %v2529_v28  ;;  %v5326_v28 = vld [vmem:[#allocation30_spill] sm:$0xff] }
 0x167   : > { %v1752_v48 = vpop.f32.mrf.mxu2  ;;  %v4877_v53 = vand.u32 4294901760, %v2482_v32 }
 0x168   : > { %v1799_v45 = vpop.f32.mrf.mxu3  ;;  %v1753_v44 = vadd.f32 %v1752_v48, %v4630_v29  ;;  %v5217_v29 = vand.u32 4294901760, %v4862_v5 }
 0x169   : > { %2523 = vmatmul.f32.gmra.mxu0 %v2522_v30  ;;  %2590 = vmatmul.f32.gmra.mxu1 %v4797_v56  ;;  %v4891_v37 = vsub.f32 %v2482_v32, %v4877_v53 }
 0x16a   : > { %v1796_v63 = vadd.f32 %v1795_v47, %v1753_v44  ;;  %v4895_v44 = vmul.f32 %v5326_v28, %v5326_v28 }
 0x16c   : > { %v4869_v14 = vmul.f32 %v1796_v63, %v1796_v63  ;;  %v4872_v59 = vmul.f32 %v1796_v63, %v5325_v41  ;;  %2411 = vmatmul.f32.gmra.mxu2 %v4540_v3  ;;  %v2537_v3 = vsub.f32 %v4862_v5, %v5217_v29 }
 0x16d   : > { %2458 = vmatmul.f32.gmra.mxu3 %v4562_v60 }
 0x16e   : > { %v4879_v50 = vpop.f32.mrf.mxu0  ;;  %v2111_v47 = vpop.f32.mrf.mxu1  ;;  %v4883_v38 = vadd.f32 %v4869_v14, %v4867_v51 }
 0x16f   : > { %v1756_v6 = vpop.f32.mrf.mxu2 }
 0x170   : > { %v2011_v12 = vpop.f32.mrf.mxu3  ;;  %v1757_v30 = vadd.f32 %v1756_v6, %v4673_v61  ;;  %v2538_v61 = vand.u32 4294901760, %v2537_v3 }
 0x171   : > { %2531 = vmatmul.f32.gmra.mxu0 %v2530_v31  ;;  %2594 = vmatmul.f32.gmra.mxu1 %v4846_v33  ;;  %v5221_v31 = vand.u32 4294901760, %v4891_v37 }
 0x172   : > { %v1800_v48 = vadd.f32 %v1799_v45, %v1757_v30  ;;  %v1916_v45 = vadd.f32 %v4634_v39, %v4679_v25 }
 0x174   : > { %v4897_v63 = vmul.f32 %v1800_v48, %v1800_v48  ;;  %v4900_v41 = vmul.f32 %v1800_v48, %v5326_v28  ;;  %2415 = vmatmul.f32.gmra.mxu2 %v4562_v60  ;;  %v2545_v60 = vsub.f32 %v4891_v37, %v5221_v31 }
 0x175   : > { %2462 = vmatmul.f32.gmra.mxu3 %v4584_v42 }
 0x176   : > { %5327 = vst [vmem:[#allocation5_spill] sm:$0xff] %v4900_v41  ;;  %v2068_v6 = vpop.f32.mrf.mxu0  ;;  %v2115_v32 = vpop.f32.mrf.mxu1  ;;  %v4909_v30 = vadd.f32 %v4897_v63, %v4895_v44  ;;  %v2546_v40 = vand.u32 4294901760, %v2545_v60 }
 0x177   : > { %v1961_v29 = vpop.f32.mrf.mxu2 }
 0x178   : > { %v2017_v4 = vpop.f32.mrf.mxu3  ;;  %v1962_v48 = vadd.f32 %v1961_v29, %v1916_v45  ;;  %v1920_v29 = vadd.f32 %v4681_v55, %v4730_v22  ;;  %v1924_v22 = vadd.f32 %v4732_v27, %v4772_v19 }
 0x179   : > { %2539 = vmatmul.f32.gmra.mxu0 %v2538_v61  ;;  %2598 = vmatmul.f32.gmra.mxu1 %v4877_v53 }
 0x17a   : > { %v2012_v3 = vadd.f32 %v2011_v12, %v1962_v48 }
 0x17c   : > { %v2069_v28 = vadd.f32 %v2068_v6, %v2012_v3  ;;  %2419 = vmatmul.f32.gmra.mxu2 %v4584_v42 }
 0x17d   : > { %2674 = vmatmul.f32.vlgmr.msrb.gmra.mxu3 %v2504_v9  ;;  %v5328_v9 = vand.u32 4294901760, %v4720_v20 }
 0x17e   : > { %v2072_v39 = vpop.f32.mrf.mxu0  ;;  %v2119_v25 = vpop.f32.mrf.mxu1  ;;  %v4920_v61 = vadd.f32 %v2111_v47, %v2069_v28 }
 0x17f   : > { %v1966_v45 = vpop.f32.mrf.mxu2 }
 0x180   : > { %v2023_v41 = vpop.f32.mrf.mxu3  ;;  %v2816_v31 = vsub.f32 %v4920_v61, %v4715_v2  ;;  %v1967_v12 = vadd.f32 %v1966_v45, %v1920_v29 }
 0x181   : > { %2547 = vmatmul.f32.gmra.mxu0 %v2546_v40  ;;  %2774 = vmatmul.f32.vlgmr.msrb.gmra.mxu1 %v4651_v36 }
 0x182   : > { %v2018_v42 = vadd.f32 %v2017_v4, %v1967_v12 }
 0x184   : > { %v2073_v6 = vadd.f32 %v2072_v39, %v2018_v42  ;;  %2624 = vmatmul.f32.vlgmr.msrb.gmra.mxu2 %v4670_v62  ;;  %v5329_v39 = vand.u32 4294901760, %v4795_v16 }
 0x185   : > { %2680 = vmatmul.f32.gmra.mxu3 %v5328_v9 }
 0x186   : > { %v2076_v48 = vpop.f32.mrf.mxu0  ;;  %v2123_v55 = vpop.f32.mrf.mxu1  ;;  %v4930_v47 = vadd.f32 %v2115_v32, %v2073_v6  ;;  %v1928_v32 = vadd.f32 %v4774_v43, %v4814_v24  ;;  %v5330_v6 = vand.u32 4294901760, %v4826_v26 }
 0x187   : > { %v1971_v60 = vpop.f32.mrf.mxu2 }
 0x188   : > { %v2029_v3 = vpop.f32.mrf.mxu3  ;;  %v2817_v40 = vsub.f32 %v4930_v47, %v4756_v11  ;;  %v1972_v28 = vadd.f32 %v1971_v60, %v1924_v22 }
 0x189   : > { %2731 = vmatmul.f32.vlgmr.msrb.gmra.mxu0 %v4651_v36  ;;  %2778 = vmatmul.f32.gmra.mxu1 %v4677_v7 }
 0x18a   : > { %v2024_v62 = vadd.f32 %v2023_v41, %v1972_v28  ;;  %v5331_v28 = vand.u32 4294901760, %v4862_v5 }
 0x18c   : > { %v2077_v4 = vadd.f32 %v2076_v48, %v2024_v62  ;;  %2629 = vmatmul.f32.gmra.mxu2 %v4720_v20 }
 0x18d   : > { %2686 = vmatmul.f32.gmra.mxu3 %v5329_v39 }
 0x18e   : > { %v2080_v27 = vpop.f32.mrf.mxu0  ;;  %v2127_v19 = vpop.f32.mrf.mxu1  ;;  %v4941_v29 = vadd.f32 %v2119_v25, %v2077_v4  ;;  %v1932_v25 = vadd.f32 %v4816_v35, %v4848_v1 }
 0x18f   : > { %v1976_v45 = vpop.f32.mrf.mxu2 }
 0x190   : > { %v2035_v12 = vpop.f32.mrf.mxu3  ;;  %v2818_v36 = vsub.f32 %v4941_v29, %v4790_v54  ;;  %v1977_v42 = vadd.f32 %v1976_v45, %v1928_v32  ;;  %v5332_v45 = vand.u32 4294901760, %v4891_v37 }
 0x191   : > { %2735 = vmatmul.f32.gmra.mxu0 %v4677_v7  ;;  %2782 = vmatmul.f32.gmra.mxu1 %v4770_v15 }
 0x192   : > { %v2030_v20 = vadd.f32 %v2029_v3, %v1977_v42 }
 0x194   : > { %v2081_v41 = vadd.f32 %v2080_v27, %v2030_v20  ;;  %2634 = vmatmul.f32.gmra.mxu2 %v4795_v16 }
 0x195   : > { %2692 = vmatmul.f32.gmra.mxu3 %v5330_v6 }
 0x196   : > { %v2084_v43 = vpop.f32.mrf.mxu0  ;;  %v2131_v24 = vpop.f32.mrf.mxu1  ;;  %v4952_v9 = vadd.f32 %v2123_v55, %v2081_v41  ;;  %v1936_v55 = vadd.f32 %v4850_v18, %v4879_v50 }
 0x197   : > { %v1981_v48 = vpop.f32.mrf.mxu2 }
 0x198   : > { %v2041_v22 = vpop.f32.mrf.mxu3  ;;  %v2819_v7 = vsub.f32 %v4952_v9, %v4836_v52  ;;  %v1982_v60 = vadd.f32 %v1981_v48, %v1932_v25 }
 0x199   : > { %2739 = vmatmul.f32.gmra.mxu0 %v4770_v15  ;;  %2786 = vmatmul.f32.gmra.mxu1 %v4797_v56 }
 0x19a   : > { %v2036_v16 = vadd.f32 %v2035_v12, %v1982_v60 }
 0x19c   : > { %v2085_v3 = vadd.f32 %v2084_v43, %v2036_v16  ;;  %2639 = vmatmul.f32.gmra.mxu2 %v4826_v26 }
 0x19d   : > { %2698 = vmatmul.f32.gmra.mxu3 %v5331_v28 }
 0x19e   : > { %v2088_v35 = vpop.f32.mrf.mxu0  ;;  %v2343_v1 = vpop.f32.mrf.mxu1  ;;  %v4963_v62 = vadd.f32 %v2127_v19, %v2085_v3 }
 0x19f   : > { %v1986_v4 = vpop.f32.mrf.mxu2 }
 0x1a0   : > { %v2247_v39 = vpop.f32.mrf.mxu3  ;;  %v2820_v15 = vsub.f32 %v4963_v62, %v4867_v51  ;;  %v1987_v27 = vadd.f32 %v1986_v4, %v1936_v55 }
 0x1a1   : > { %2743 = vmatmul.f32.gmra.mxu0 %v4797_v56  ;;  %2790 = vmatmul.f32.gmra.mxu1 %v4846_v33 }
 0x1a2   : > { %v2042_v26 = vadd.f32 %v2041_v22, %v1987_v27 }
 0x1a4   : > { %v2089_v32 = vadd.f32 %v2088_v35, %v2042_v26  ;;  %2644 = vmatmul.f32.gmra.mxu2 %v4862_v5 }
 0x1a5   : > { %2704 = vmatmul.f32.gmra.mxu3 %v5332_v45 }
 0x1a6   : > { %v2293_v18 = vpop.f32.mrf.mxu0  ;;  %v2349_v50 = vpop.f32.mrf.mxu1  ;;  %v4972_v19 = vadd.f32 %v2131_v24, %v2089_v32 }
 0x1a7   : > { %v2176_v12 = vpop.f32.mrf.mxu2 }
 0x1a8   : > { %v2251_v42 = vpop.f32.mrf.mxu3  ;;  %v2821_v20 = vsub.f32 %v4972_v19, %v4895_v44  ;;  %v2248_v41 = vadd.f32 %v2247_v39, %v2176_v12 }
 0x1a9   : > { %2747 = vmatmul.f32.gmra.mxu0 %v4846_v33  ;;  %2794 = vmatmul.f32.gmra.mxu1 %v4877_v53 }
 0x1aa   : > { %v2294_v56 = vadd.f32 %v2293_v18, %v2248_v41 }
 0x1ac   : > { %v2344_v6 = vadd.f32 %v2343_v1, %v2294_v56  ;;  %2649 = vmatmul.f32.gmra.mxu2 %v4891_v37 }
 0x1ae   : > { %v2298_v5 = vpop.f32.mrf.mxu0  ;;  %v2355_v43 = vpop.f32.mrf.mxu1 }
 0x1af   : > { %v2184_v25 = vpop.f32.mrf.mxu2 }
 0x1b0   : > { %v2255_v48 = vpop.f32.mrf.mxu3  ;;  %v2252_v24 = vadd.f32 %v2251_v42, %v2184_v25 }
 0x1b1   : > { %2751 = vmatmul.f32.gmra.mxu0 %v4877_v53 }
 0x1b2   : > { %v2299_v22 = vadd.f32 %v2298_v5, %v2252_v24 }
 0x1b4   : > { %v2350_v60 = vadd.f32 %v2349_v50, %v2299_v22 }
 0x1b6   : > { %v2303_v16 = vpop.f32.mrf.mxu0  ;;  %v2361_v3 = vpop.f32.mrf.mxu1 }
 0x1b7   : > { %v2192_v28 = vpop.f32.mrf.mxu2 }
 0x1b8   : > { %v2259_v35 = vpop.f32.mrf.mxu3  ;;  %v2256_v33 = vadd.f32 %v2255_v48, %v2192_v28 }
 0x1ba   : > { %v2304_v55 = vadd.f32 %v2303_v16, %v2256_v33 }
 0x1bc   : > { %v2356_v4 = vadd.f32 %v2355_v43, %v2304_v55 }
 0x1be   : > { %v2308_v39 = vpop.f32.mrf.mxu0  ;;  %v2367_v1 = vpop.f32.mrf.mxu1 }
 0x1bf   : > { %v2200_v27 = vpop.f32.mrf.mxu2 }
 0x1c0   : > { %v2263_v37 = vpop.f32.mrf.mxu3  ;;  %v2260_v26 = vadd.f32 %v2259_v35, %v2200_v27 }
 0x1c2   : > { %v2309_v32 = vadd.f32 %v2308_v39, %v2260_v26 }
 0x1c4   : > { %v2362_v45 = vadd.f32 %v2361_v3, %v2309_v32 }
 0x1c6   : > { %v2313_v18 = vpop.f32.mrf.mxu0  ;;  %v2373_v12 = vpop.f32.mrf.mxu1 }
 0x1c7   : > { %v2208_v42 = vpop.f32.mrf.mxu2 }
 0x1c8   : > { %v2267_v53 = vpop.f32.mrf.mxu3  ;;  %v2264_v41 = vadd.f32 %v2263_v37, %v2208_v42 }
 0x1ca   : > { %v2314_v50 = vadd.f32 %v2313_v18, %v2264_v41 }
 0x1cc   : > { %v2368_v56 = vadd.f32 %v2367_v1, %v2314_v50 }
 0x1ce   : > { %v2318_v5 = vpop.f32.mrf.mxu0  ;;  %v2579_v25 = vpop.f32.mrf.mxu1 }
 0x1cf   : > { %v2216_v24 = vpop.f32.mrf.mxu2 }
 0x1d0   : > { %v2443_v48 = vpop.f32.mrf.mxu3  ;;  %v2268_v22 = vadd.f32 %v2267_v53, %v2216_v24  ;;  %v2870_v53 = vadd.f32 0.0001, %v4738_v8 }
 0x1d2   : > { %v2319_v43 = vadd.f32 %v2318_v5, %v2268_v22 }
 0x1d4   : > { %v2374_v16 = vadd.f32 %v2373_v12, %v2319_v43 }
 0x1d6   : > { %v2508_v28 = vpop.f32.mrf.mxu0  ;;  %v2583_v33 = vpop.f32.mrf.mxu1 }
 0x1d7   : > { %v4980_v55 = vadd.f32 %v2579_v25, %v2508_v28  ;;  %v2400_v35 = vpop.f32.mrf.mxu2 }
 0x1d8   : > { %v2447_v3 = vpop.f32.mrf.mxu3  ;;  %v2401_v39 = vadd.f32 %v2400_v35, %v2344_v6 }
 0x1da   : > { %v2444_v27 = vadd.f32 %v2443_v48, %v2401_v39  ;;  %v2871_v48 = vadd.f32 0.0001, %v4780_v49 }
 0x1dc   : > { %v2822_v26 = vsub.f32 %v2444_v27, %v4722_v58 }
 0x1de   : > { %v2516_v37 = vpop.f32.mrf.mxu0  ;;  %v4983_v32 = vpop.f32.mrf.mxu1  ;;  %v2876_v1 = vadd.f32 %v2822_v26, %v2816_v31  ;;  %v2873_v26 = vadd.f32 0.0001, %v4854_v10  ;;  %v2874_v10 = vadd.f32 0.0001, %v4883_v38 }
 0x1df   : > { %v4988_v18 = vadd.f32 %v2583_v33, %v2516_v37  ;;  %v2404_v12 = vpop.f32.mrf.mxu2 }
 0x1e0   : > { %v2451_v42 = vpop.f32.mrf.mxu3  ;;  %v2882_v41 = vadd.f32 0.0009, %v2876_v1  ;;  %v2405_v50 = vadd.f32 %v2404_v12, %v2350_v60 }
 0x1e2   : > { %v4991_v5 = vmul.f32 %v2882_v41, %v2870_v53  ;;  %v2448_v6 = vadd.f32 %v2447_v3, %v2405_v50 }
 0x1e4   : > { %v2823_v58 = vsub.f32 %v2448_v6, %v4760_v21  ;;  %3142 = vrcp.f32 %v4991_v5  ;;  %vm2899_vm2 = vweird.f32 %v4991_v5 }
 0x1e6   : > { %v4994_v25 = vpop.f32.mrf.mxu0  ;;  %v4996_v24 = vpop.f32.mrf.mxu1  ;;  %v2877_v2 = vadd.f32 %v2823_v58, %v2817_v40  ;;  %v2872_v40 = vadd.f32 0.0001, %v4823_v13 }
 0x1e7   : > { %v2408_v31 = vpop.f32.mrf.mxu2 }
 0x1e8   : > { %v2455_v61 = vpop.f32.mrf.mxu3  ;;  %v2883_v8 = vadd.f32 0.0009, %v2877_v2  ;;  %v2409_v22 = vadd.f32 %v2408_v31, %v2356_v4 }
 0x1ea   : > { %v5002_v60 = vmul.f32 %v2883_v8, %v2871_v48  ;;  %v2452_v43 = vadd.f32 %v2451_v42, %v2409_v22  ;;  %v3143_v41 = vpop.eup %3142 }
 0x1eb   : > { %vm2900_vm1 = vweird.f32 %v3143_v41 }
 0x1ec   : > { %v2824_v28 = vsub.f32 %v2452_v43, %v4806_v34  ;;  %3144 = vrcp.f32 %v5002_v60  ;;  %vm2901_vm3 = vmor %vm2899_vm2, %vm2900_vm1  ;;  %vm2914_vm6 = vweird.f32 %v5002_v60 }
 0x1ee   : > { %v5005_v21 = vpop.f32.mrf.mxu0  ;;  %v2878_v33 = vadd.f32 %v2824_v28, %v2818_v36  ;;  %v5010_v35 = vpop.f32.mrf.mxu1 }
 0x1ef   : > { %v2412_v11 = vpop.f32.mrf.mxu2 }
 0x1f0   : > { %v2459_v47 = vpop.f32.mrf.mxu3  ;;  %v2884_v49 = vadd.f32 0.0009, %v2878_v33  ;;  %v2413_v3 = vadd.f32 %v2412_v11, %v2362_v45 }
 0x1f2   : > { %v5013_v4 = vmul.f32 %v2884_v49, %v2872_v40  ;;  %v2456_v39 = vadd.f32 %v2455_v61, %v2413_v3  ;;  %v5044_v8 = vpop.eup %3144 }
 0x1f3   : > { %v2910_v44 = vmul.f32 %v5044_v8, %v5002_v60  ;;  %vm2915_vm5 = vweird.f32 %v5044_v8 }
 0x1f4   : > { %v2825_v27 = vsub.f32 %v2456_v39, %v4839_v46  ;;  %3146 = vrcp.f32 %v5013_v4  ;;  %v2905_v39 = vand.u32 2147483648, %v4991_v5  ;;  %vm2916_vm7 = vmor %vm2914_vm6, %vm2915_vm5  ;;  %vm2929_vm10 = vweird.f32 %v5013_v4 }
 0x1f5   : > { %v2911_v3 = vsub.f32 1.0, %v2910_v44 }
 0x1f6   : > { %v5016_v34 = vpop.f32.mrf.mxu0  ;;  %v2879_v54 = vadd.f32 %v2825_v27, %v2819_v7  ;;  %v5022_v13 = vpop.f32.mrf.mxu1 }
 0x1f7   : > { %v2416_v29 = vpop.f32.mrf.mxu2 }
 0x1f8   : > { %v2463_v36 = vpop.f32.mrf.mxu3  ;;  %v2885_v37 = vadd.f32 0.0009, %v2879_v54  ;;  %v2417_v1 = vadd.f32 %v2416_v29, %v2368_v56  ;;  %v2903_v29 = vand.u32 2147483647, %v4991_v5 }
 0x1fa   : > { %v5024_v45 = vmul.f32 %v2885_v37, %v2873_v26  ;;  %v2460_v12 = vadd.f32 %v2459_v47, %v2417_v1  ;;  %v5052_v11 = vpop.eup %3146  ;;  %vm2904_vm4 = vcmp.eq.f32.partialorder %v2903_v29, 8.507059e+37 }
 0x1fb   : > { %v2925_v37 = vmul.f32 %v5052_v11, %v5013_v4  ;;  %vm2930_vm9 = vweird.f32 %v5052_v11 }
 0x1fc   : > { %v2826_v46 = vsub.f32 %v2460_v12, %v4869_v14  ;;  %v2895_v14 = vmul.f32 %v3143_v41, %v4991_v5  ;;  %3148 = vrcp.f32 %v5024_v45  ;;  %v2912_v12 = vmul.f32 %v5044_v8, %v2911_v3  ;;  %vm2931_vm11 = vmor %vm2929_vm10, %vm2930_vm9 }
 0x1fd   : > { %v2588_v5 = vadd.f32 %v4983_v32, %v4994_v25  ;;  %v2920_v32 = vand.u32 2147483648, %v5002_v60  ;;  %vm2944_vm14 = vweird.f32 %v5024_v45  ;;  %vm3005_vm10 = vcmask 0  }
 0x1fe   : > { %v5028_v42 = vpop.f32.mrf.mxu0  ;;  %v2880_v52 = vadd.f32 %v2826_v46, %v2820_v15  ;;  %v2775_v50 = vpop.f32.mrf.mxu1  ;;  %v2875_v15 = vadd.f32 0.0001, %v4909_v30  ;;  %v2896_v48 = vsub.f32 1.0, %v2895_v14  ;;  %v2834_v30 = vmul.f32 2.0, %v4725_v17 }
 0x1ff   : > { %v2420_v9 = vpop.f32.mrf.mxu2  ;;  %v2906_v46 = vor.u32 1.1754944e-38, %v2905_v39  ;;  %v2921_v44 = vor.u32 1.1754944e-38, %v2920_v32 }
 0x200   : > { %v2675_v7 = vpop.f32.mrf.mxu3  ;;  %v2886_v56 = vadd.f32 0.0009, %v2880_v52  ;;  %v2421_v53 = vadd.f32 %v2420_v9, %v2374_v16  ;;  %v2840_v26 = vadd.f32 0.0001, %v2834_v30 }
 0x202   : > { %v5034_v6 = vmul.f32 %v2886_v56, %v2874_v10  ;;  %v2464_v58 = vadd.f32 %v2463_v36, %v2421_v53  ;;  %v2835_v56 = vmul.f32 2.0, %v4763_v57 }
 0x204   : > { %v2827_v2 = vsub.f32 %v2464_v58, %v4897_v63  ;;  %v2926_v58 = vsub.f32 1.0, %v2925_v37  ;;  %3150 = vrcp.f32 %v5034_v6 }
 0x206   : > { %v2732_v31 = vpop.f32.mrf.mxu0  ;;  %v2881_v51 = vadd.f32 %v2827_v2, %v2821_v20  ;;  %v2779_v43 = vpop.f32.mrf.mxu1  ;;  %v2897_v20 = vmul.f32 %v3143_v41, %v2896_v48  ;;  %v2913_v2 = vadd.f32 %v5044_v8, %v2912_v12 }
 0x207   : > { %v2625_v62 = vpop.f32.mrf.mxu2 }
 0x208   : > { %v2681_v38 = vpop.f32.mrf.mxu3  ;;  %v2887_v16 = vadd.f32 0.0009, %v2881_v51  ;;  %v2626_v61 = vadd.f32 %v2625_v62, %v4980_v55  ;;  %v2898_v40 = vadd.f32 %v3143_v41, %v2897_v20  ;;  %v5070_v51 = vpop.eup %3148  ;;  %v2918_v62 = vand.u32 2147483647, %v5002_v60 }
 0x209   : > { %v2917_v48 = vsel %vm2916_vm7, %v5044_v8, %v2913_v2  ;;  %v2592_v60 = vadd.f32 %v4996_v24, %v5005_v21  ;;  %v2933_v24 = vand.u32 2147483647, %v5013_v4  ;;  %v2935_v21 = vand.u32 2147483648, %v5013_v4 }
 0x20a   : > { %v5047_v22 = vmul.f32 %v2887_v16, %v2875_v15  ;;  %v2676_v63 = vadd.f32 %v2675_v7, %v2626_v61  ;;  %v2841_v15 = vadd.f32 0.0001, %v2835_v56  ;;  %vm2919_vm8 = vcmp.eq.f32.partialorder %v2918_v62, 8.507059e+37 }
 0x20b   : > { %v2922_v30 = vsel %vm2919_vm8, %v2921_v44, %v2917_v48  ;;  %vm2934_vm12 = vcmp.eq.f32.partialorder %v2933_v24, 8.507059e+37  ;;  %vm2945_vm13 = vweird.f32 %v5070_v51  ;;  %v2948_v62 = vand.u32 2147483647, %v5024_v45 }
 0x20c   : > { %v2733_v19 = vadd.f32 %v2732_v31, %v2676_v63  ;;  %3152 = vrcp.f32 %v5047_v22  ;;  %vm5116_vm15 = vmor %vm2944_vm14, %vm2945_vm13  ;;  %v2600_v44 = vadd.f32 %v5022_v13, %v5028_v42  ;;  %v2965_v13 = vand.u32 2147483648, %v5034_v6 }
 0x20d   : > { %vm2949_vm1 = vcmp.eq.f32.partialorder %v2948_v62, 8.507059e+37  ;;  %vm2974_vm7 = vweird.f32 %v5047_v22 }
 0x20e   : > { %v2736_v28 = vpop.f32.mrf.mxu0  ;;  %v2776_v33 = vadd.f32 %v2775_v50, %v2733_v19  ;;  %v2783_v9 = vpop.f32.mrf.mxu1 }
 0x20f   : > { %v2630_v55 = vpop.f32.mrf.mxu2 }
 0x210   : > { %v2828_v47 = vsub.f32 %v2776_v33, %v4725_v17  ;;  %v2631_v49 = vadd.f32 %v2630_v55, %v4988_v18  ;;  %v2687_v27 = vpop.f32.mrf.mxu3  ;;  %v2902_v18 = vsel %vm2901_vm3, %v3143_v41, %v2898_v40  ;;  %v2836_v33 = vmul.f32 2.0, %v4809_v23  ;;  %v5087_v40 = vpop.eup %3150 }
 0x211   : > { %v2907_v53 = vsel %vm2904_vm4, %v2906_v46, %v2902_v18  ;;  %v2936_v46 = vor.u32 1.1754944e-38, %v2935_v21  ;;  %vm2960_vm2 = vweird.f32 %v5087_v40  ;;  %vm2959_vm3 = vweird.f32 %v5034_v6 }
 0x212   : > { %v2846_v54 = vmul.f32 2.0, %v2828_v47  ;;  %v2682_v36 = vadd.f32 %v2681_v38, %v2631_v49  ;;  %v2842_v37 = vadd.f32 0.0001, %v2836_v33  ;;  %vm2961_vm4 = vmor %vm2959_vm3, %vm2960_vm2 }
 0x214   : > { %v2852_v17 = vadd.f32 0.0009, %v2846_v54  ;;  %v2737_v1 = vadd.f32 %v2736_v28, %v2682_v36 }
 0x216   : > { %v2740_v52 = vpop.f32.mrf.mxu0  ;;  %v2858_v7 = vmul.f32 %v2852_v17, %v2840_v26  ;;  %v2780_v10 = vadd.f32 %v2779_v43, %v2737_v1  ;;  %v2940_v43 = vmul.f32 %v5070_v51, %v5024_v45  ;;  %v2787_v47 = vpop.f32.mrf.mxu1 }
 0x217   : > { %v2635_v50 = vpop.f32.mrf.mxu2 }
 0x218   : > { %v2908_v41 = vmul.f32 %v2907_v53, %v2858_v7  ;;  %v2829_v14 = vsub.f32 %v2780_v10, %v4763_v57  ;;  %v2636_v31 = vadd.f32 %v2635_v50, %v2588_v5  ;;  %v2927_v57 = vmul.f32 %v5052_v11, %v2926_v58  ;;  %v2693_v16 = vpop.f32.mrf.mxu3 }
 0x219   : > { %v2837_v10 = vmul.f32 2.0, %v4842_v0 }
 0x21a   : > { %v2847_v25 = vmul.f32 2.0, %v2829_v14  ;;  %v2688_v38 = vadd.f32 %v2687_v27, %v2636_v31  ;;  %v2928_v55 = vadd.f32 %v5052_v11, %v2927_v57  ;;  %v2941_v27 = vsub.f32 1.0, %v2940_v43  ;;  %v5108_v31 = vpop.eup %3152 }
 0x21b   : > { %v2984_v36 = vsel %vm1137_vm0, %v2908_v41, 0.0  ;;  %vm2975_vm6 = vweird.f32 %v5108_v31 }
 0x21c   : > { %v2853_v61 = vadd.f32 0.0009, %v2847_v25  ;;  %v2741_v63 = vadd.f32 %v2740_v52, %v2688_v38  ;;  %v2932_v1 = vsel %vm2931_vm11, %v5052_v11, %v2928_v55  ;;  %v2942_v12 = vmul.f32 %v5070_v51, %v2941_v27  ;;  %vm2976_vm8 = vmor %vm2974_vm7, %vm2975_vm6 }
 0x21d   : > { %v2937_v56 = vsel %vm2934_vm12, %v2936_v46, %v2932_v1  ;;  %v2963_v27 = vand.u32 2147483647, %v5034_v6  ;;  %v5335_v1 = vld [vmem:[#allocation5_spill] sm:$0xff] }
 0x21e   : > { %v2744_v19 = vpop.f32.mrf.mxu0  ;;  %v2859_v20 = vmul.f32 %v2853_v61, %v2841_v15  ;;  %v2784_v28 = vadd.f32 %v2783_v9, %v2741_v63  ;;  %v2596_v9 = vadd.f32 %v5010_v35, %v5016_v34  ;;  %v2943_v2 = vadd.f32 %v5070_v51, %v2942_v12  ;;  %v2791_v35 = vpop.f32.mrf.mxu1 }
 0x21f   : > { %v2640_v8 = vpop.f32.mrf.mxu2  ;;  %v2950_v34 = vand.u32 2147483648, %v5024_v45  ;;  %v2843_v15 = vadd.f32 0.0001, %v2837_v10  ;;  %v2970_v45 = vmul.f32 %v5108_v31, %v5047_v22  ;;  %vm2964_vm5 = vcmp.eq.f32.partialorder %v2963_v27, 8.507059e+37 }
 0x220   : > { %v2923_v49 = vmul.f32 %v2922_v30, %v2859_v20  ;;  %v2830_v3 = vsub.f32 %v2784_v28, %v4809_v23  ;;  %v2641_v39 = vadd.f32 %v2640_v8, %v2592_v60  ;;  %v2955_v23 = vmul.f32 %v5087_v40, %v5034_v6  ;;  %v2699_v52 = vpop.f32.mrf.mxu3 }
 0x221   : > { %v2947_v63 = vsel %vm5116_vm15, %v5070_v51, %v2943_v2  ;;  %v2951_v43 = vor.u32 1.1754944e-38, %v2950_v34  ;;  %v2838_v20 = vmul.f32 2.0, %v4872_v59 }
 0x222   : > { %v2848_v54 = vmul.f32 2.0, %v2830_v3  ;;  %v2694_v29 = vadd.f32 %v2693_v16, %v2641_v39  ;;  %v2985_v26 = vsel %vm1137_vm0, %v2923_v49, 0.0  ;;  %v2956_v58 = vsub.f32 1.0, %v2955_v23 }
 0x223   : > { %v2986_v17 = vadd.f32 %v2985_v26, %v2984_v36  ;;  %v2952_v30 = vsel %vm2949_vm1, %v2951_v43, %v2947_v63  ;;  %v2971_v49 = vsub.f32 1.0, %v2970_v45  ;;  %v2844_v21 = vadd.f32 0.0001, %v2838_v20 }
 0x224   : > { %v2854_v18 = vadd.f32 0.0009, %v2848_v54  ;;  %v2745_v4 = vadd.f32 %v2744_v19, %v2694_v29  ;;  %v2957_v57 = vmul.f32 %v5087_v40, %v2956_v58  ;;  %v2966_v23 = vor.u32 1.1754944e-38, %v2965_v13 }
 0x226   : > { %v2860_v5 = vmul.f32 %v2854_v18, %v2842_v37  ;;  %v2788_v7 = vadd.f32 %v2787_v47, %v2745_v4  ;;  %v2748_v50 = vpop.f32.mrf.mxu0  ;;  %v2958_v55 = vadd.f32 %v5087_v40, %v2957_v57  ;;  %v2795_v54 = vpop.f32.mrf.mxu1  ;;  %v2972_v37 = vmul.f32 %v5108_v31, %v2971_v49 }
 0x227   : > { %v2645_v53 = vpop.f32.mrf.mxu2  ;;  %v2839_v4 = vmul.f32 2.0, %v5335_v1 }
 0x228   : > { %v2938_v11 = vmul.f32 %v2937_v56, %v2860_v5  ;;  %v2831_v41 = vsub.f32 %v2788_v7, %v4842_v0  ;;  %v2646_v14 = vadd.f32 %v2645_v53, %v2596_v9  ;;  %v2705_v33 = vpop.f32.mrf.mxu3  ;;  %v2962_v26 = vsel %vm2961_vm4, %v5087_v40, %v2958_v55 }
 0x229   : > { %v2967_v12 = vsel %vm2964_vm5, %v2966_v23, %v2962_v26  ;;  %v2980_v9 = vand.u32 2147483648, %v5047_v22  ;;  %v2978_v40 = vand.u32 2147483647, %v5047_v22  ;;  %v2845_v56 = vadd.f32 0.0001, %v2839_v4 }
 0x22a   : > { %v2849_v32 = vmul.f32 2.0, %v2831_v41  ;;  %v2700_v25 = vadd.f32 %v2699_v52, %v2646_v14  ;;  %v2987_v38 = vsel %vm1137_vm0, %v2938_v11, 0.0  ;;  %v2973_v52 = vadd.f32 %v5108_v31, %v2972_v37 }
 0x22b   : > { %v2988_v16 = vadd.f32 %v2987_v38, %v2986_v17  ;;  %v2981_v58 = vor.u32 1.1754944e-38, %v2980_v9  ;;  %vm2979_vm9 = vcmp.eq.f32.partialorder %v2978_v40, 8.507059e+37 }
 0x22c   : > { %v2855_v61 = vadd.f32 0.0009, %v2849_v32  ;;  %v2749_v48 = vadd.f32 %v2748_v50, %v2700_v25  ;;  %v2977_v50 = vsel %vm2976_vm8, %v5108_v31, %v2973_v52 }
 0x22d   : > { %v2982_v41 = vsel %vm2979_vm9, %v2981_v58, %v2977_v50 }
 0x22e   : > { %v2861_v19 = vmul.f32 %v2855_v61, %v2843_v15  ;;  %v2792_v60 = vadd.f32 %v2791_v35, %v2749_v48  ;;  %v2752_v3 = vpop.f32.mrf.mxu0 }
 0x22f   : > { %v2650_v28 = vpop.f32.mrf.mxu2 }
 0x230   : > { %v2832_v51 = vsub.f32 %v2792_v60, %v4872_v59  ;;  %v2651_v8 = vadd.f32 %v2650_v28, %v2600_v44  ;;  %v2953_v47 = vmul.f32 %v2952_v30, %v2861_v19 }
 0x232   : > { %v2850_v42 = vmul.f32 2.0, %v2832_v51  ;;  %v2706_v39 = vadd.f32 %v2705_v33, %v2651_v8  ;;  %v2989_v24 = vsel %vm1137_vm0, %v2953_v47, 0.0 }
 0x233   : > { %v2990_v29 = vadd.f32 %v2989_v24, %v2988_v16 }
 0x234   : > { %v2856_v36 = vadd.f32 0.0009, %v2850_v42  ;;  %v2753_v59 = vadd.f32 %v2752_v3, %v2706_v39 }
 0x236   : > { %v2862_v17 = vmul.f32 %v2856_v36, %v2844_v21  ;;  %v2796_v18 = vadd.f32 %v2795_v54, %v2753_v59 }
 0x238   : > { %v2833_v6 = vsub.f32 %v2796_v18, %v5335_v1  ;;  %v2968_v46 = vmul.f32 %v2967_v12, %v2862_v17 }
 0x23a   : > { %v2851_v5 = vmul.f32 2.0, %v2833_v6  ;;  %v2991_v7 = vsel %vm1137_vm0, %v2968_v46, 0.0 }
 0x23b   : > { %v2992_v10 = vadd.f32 %v2991_v7, %v2990_v29 }
 0x23c   : > { %v2857_v53 = vadd.f32 0.0009, %v2851_v5 }
 0x23e   : > { %v2863_v11 = vmul.f32 %v2857_v53, %v2845_v56 }
 0x240   : > { %v2983_v14 = vmul.f32 %v2982_v41, %v2863_v11 }
 0x242   : > { %v2993_v2 = vsel %vm1137_vm0, %v2983_v14, 0.0 }
 0x243   : > { %v2994_v35 = vadd.f32 %v2993_v2, %v2992_v10 }
 0x245   : > { %2995 = vadd.xlane.f32.xlu0 %v2994_v35 }
 0x2b8   : > { %v2996_v34 = vpop.xlane.xlu0 %2995 }
 0x2b9   : > { %v2997_v22 = vrot.slane %v2996_v34, 4 }
 0x2bb   : > { %v2998_v32 = vadd.f32 %v2997_v22, %v2996_v34 }
 0x2bd   : > { %v2999_v25 = vrot.slane %v2998_v32, 2 }
 0x2bf   : > { %v3000_v62 = vadd.f32 %v2999_v25, %v2998_v32 }
 0x2c1   : > { %v3001_v38 = vrot.slane %v3000_v62, 1 }
 0x2c3   : > { %v3002_v15 = vadd.f32 %v3001_v38, %v3000_v62 }
 0x2c5   : > { %3116 = vpush %v3002_v15 }
 0x2f6   : > { %s3117_s30 = spop %3116 }
 0x2f7   : > { %v3004_v31 = vstv %s3117_s30 }
 0x2f8   : > { %3006 = vst.msk [vmem:[%s234_s29] sm:$0x1] %vm3005_vm10, %v3004_v31 }
 0x2f9 PF: > { %s13_s14 = sadd.s32 1, %s3310_s14   ;;  %s5336_s12 = smov %s3306_s13 }
 0x2fa   : > { %p10_p5 = scmp.ge.s32.totalorder %s13_s14, 4   ;;  %s5337_s13 = smov %s5339_s15 }
 0x2fc   :  { %12 = sbr.rel (!%p10_p5) target bundleno = 2 (0x2), region = 65 }

// kernel: tpu_custom_call.1
= control target key start
LH: loop header
LB: loop body
LE: loop exit
PB: predicated region body
PF: predicated region fallthrough
CT: control target
= control target key end

     0   :  { %s1865_s12 = smov 0   ;;  %s1867_s13 = smov 0   ;;  %s2915_s0 = inlined_call_operand.vmem [shape: f32[16,16], index: 0, kind: input, shape index: {}]   ;;  %s2916_s1 = inlined_call_operand.vmem [shape: f32[2,3,1,26,16], index: 1, kind: input, shape index: {}]   ;;  %s2917_s2 = inlined_call_operand.vmem [shape: f32[2,3,1,26,16], index: 2, kind: input, shape index: {}]   ;;  %s2918_s3 = inlined_call_operand.vmem [shape: f32[2,1,1,1], index: 3, kind: output, shape index: {}]  }
   0x1   :  { %s1869_s14 = smov 0  }
   0x2 LB: > { %s25_s15 = sadd.s32 1, %s1839_s13  ;;  %p1711_p0 = scmp.ge.s32.totalorder %s1843_s14, 1  ;;  %s1843_s14 = sphi %s1869_s14, %s13_s14   ;;  %s1839_s13 = sphi %s1867_s13, %s2980_s13   ;;  %s1835_s12 = sphi %s1865_s12, %s2979_s12  }
   0x3   : > { %p27_p1 = scmp.ge.s32.totalorder %s25_s15, 2  ;;  %p173_p2 = scmp.lt.s32.totalorder %s1843_s14, 3 }
   0x5   : > { %s2982_s15 = smov (%p27_p1, %s25_s15), 0  ;;  %p174_p3 = pnand %p1711_p0, %p173_p2 }
   0x7   : > { %177 = sbr.rel (%p174_p3) target bundleno = 568 (0x238), region = 32 }
   0xc   : > { %v236_v0 = vld [vmem:[%s2915_s0 + $0x8] sm:$0xff]  ;;  %v235_v1 = vld [vmem:[%s2915_s0] sm:$0xff]  ;;  %p211_p4 = scmp.lt.s32.totalorder %s1835_s12, 1  ;;  %vm1137_vm0 = vcmask 130048  }
   0xd   : > { %1746 = vmatpush.msra.mxu1 %v236_v0  ;;  %1747 = vmatpush.msra.mxu2 %v236_v0 }
   0xe   : > { %s2984_s12 = smov (!%p211_p4, %s1835_s12), 1  ;;  %1748 = vmatpush.msra.mxu3 %v236_v0  ;;  %1170 = vmatpush.msra.mxu0 %v236_v0 }
   0xf   : > { %1749 = vmatpush.msra.mxu1 %v235_v1  ;;  %1750 = vmatpush.msra.mxu2 %v235_v1  ;;  %s1752_s20 = smul.u32 96, %s2984_s12  ;;  %s234_s29 = scalar_lea.vmem %s2918_s3, %s2984_s12 }
  0x10   : > { %1751 = vmatpush.msra.mxu3 %v235_v1  ;;  %1171 = vmatpush.msra.mxu0 %v235_v1 }
  0x11   : > { %1276 = vmatpush.msrb.mxu2 %v236_v0  ;;  %1223 = vmatpush.msrb.mxu1 %v236_v0  ;;  %s1897_s23 = scalar_lea.vmem %s2916_s1, %s1752_s20  ;;  %s2098_s26 = scalar_lea.vmem %s2917_s2, %s1752_s20 }
  0x12   : > { %1329 = vmatpush.msrb.mxu3 %v236_v0  ;;  %v1900_v2 = vld [vmem:[%s1897_s23 + $0x8] sm:$0xff]  ;;  %1382 = vmatpush.msrb.mxu0 %v236_v0  ;;  %v1932_v16 = vld [vmem:[%s1897_s23 + $0x10] sm:$0xff]  ;;  %v1983_v54 = vld [vmem:[%s1897_s23 + $0x20] sm:$0xff] }
  0x13   : > { %1277 = vmatpush.msrb.mxu2 %v235_v1  ;;  %v1903_v3 = vld [vmem:[%s1897_s23 + $0x9] sm:$0xff]  ;;  %1224 = vmatpush.msrb.mxu1 %v235_v1  ;;  %v250_v5 = vmul.f32 0.0010283801, %v1900_v2  ;;  %2945 = vst [vmem:[#allocation2_spill] sm:$0xff] %v1932_v16  ;;  %v934_v21 = vmul.f32 0.036000773, %v1932_v16  ;;  %v1990_v56 = vmul.f32 %v1900_v2, %v1900_v2 }
  0x14   : > { %v1906_v4 = vld [vmem:[%s1897_s23 + $0xa] sm:$0xff]  ;;  %v1910_v6 = vmul.f32 0.007598758, %v1903_v3  ;;  %1330 = vmatpush.msrb.mxu3 %v235_v1  ;;  %1383 = vmatpush.msrb.mxu0 %v235_v1  ;;  %v1942_v23 = vld [vmem:[%s1897_s23 + $0x12] sm:$0xff]  ;;  %2952 = vst [vmem:[#allocation9_spill] sm:$0xff] %v1983_v54  ;;  %v1998_v62 = vld [vmem:[%s1897_s23 + $0x21] sm:$0xff] }
  0x15   : > { %v400_v7 = vmul.f32 0.036000773, %v1906_v4  ;;  %v1914_v8 = vld [vmem:[%s1897_s23 + $0xb] sm:$0xff]  ;;  %2947 = vst [vmem:[#allocation4_spill] sm:$0xff] %v1942_v23  ;;  %v1949_v27 = vmul.f32 0.0010283801, %v1942_v23 }
  0x16   : > { %v1917_v9 = vld [vmem:[%s1897_s23 + $0xc] sm:$0xff]  ;;  %v316_v11 = vadd.f32 %v1910_v6, %v250_v5  ;;  %v490_v12 = vmul.f32 0.10936069, %v1914_v8  ;;  %v1986_v55 = vmul.f32 0.036000773, %v1900_v2  ;;  %2953 = vst [vmem:[#allocation10_spill] sm:$0xff] %v1998_v62  ;;  %v334_v5 = vmul.f32 %v1903_v3, %v1903_v3 }
  0x17   : > { %v1920_v10 = vld [vmem:[%s1897_s23 + $0xd] sm:$0xff]  ;;  %v580_v13 = vmul.f32 0.21300554, %v1917_v9  ;;  %v251_v59 = vmul.f32 0.0010283801, %v1983_v54  ;;  %v2001_v63 = vld [vmem:[%s1897_s23 + $0x22] sm:$0xff] }
  0x18   : > { %v1926_v14 = vld [vmem:[%s1897_s23 + $0xe] sm:$0xff]  ;;  %v406_v17 = vadd.f32 %v400_v7, %v316_v11  ;;  %v670_v18 = vmul.f32 0.26601171, %v1920_v10  ;;  %2954 = vst [vmem:[#allocation11_spill] sm:$0xff] %v2001_v63  ;;  %v2004_v0 = vld [vmem:[%s1897_s23 + $0x23] sm:$0xff] }
  0x19   : > { %v1929_v15 = vld [vmem:[%s1897_s23 + $0xf] sm:$0xff]  ;;  %v760_v19 = vmul.f32 0.21300554, %v1926_v14  ;;  %2955 = vst [vmem:[#allocation12_spill] sm:$0xff] %v2004_v0  ;;  %v2007_v1 = vmul.f32 0.0010283801, %v1990_v56 }
  0x1a   : > { %v850_v20 = vmul.f32 0.10936069, %v1929_v15  ;;  %v1939_v22 = vld [vmem:[%s1897_s23 + $0x11] sm:$0xff]  ;;  %v1945_v24 = vld [vmem:[%s1897_s23 + $0x28] sm:$0xff]  ;;  %v496_v25 = vadd.f32 %v490_v12, %v406_v17  ;;  %v311_v7 = vmul.f32 0.007598758, %v1998_v62 }
  0x1b   : > { %2946 = vst [vmem:[#allocation3_spill] sm:$0xff] %v1939_v22  ;;  %v1008_v26 = vmul.f32 0.007598758, %v1939_v22  ;;  %v252_v28 = vmul.f32 0.0010283801, %v1945_v24  ;;  %v1953_v29 = vld [vmem:[%s1897_s23 + $0x29] sm:$0xff] }
  0x1c   : > { %2948 = vst [vmem:[#allocation5_spill] sm:$0xff] %v1945_v24  ;;  %v1956_v30 = vld [vmem:[%s1897_s23 + $0x2a] sm:$0xff]  ;;  %v1962_v32 = vmul.f32 0.036000773, %v1945_v24  ;;  %v586_v33 = vadd.f32 %v580_v13, %v496_v25  ;;  %v1965_v34 = vmul.f32 0.007598758, %v1953_v29 }
  0x1d   : > { %2949 = vst [vmem:[#allocation6_spill] sm:$0xff] %v1953_v29  ;;  %v1959_v31 = vld [vmem:[%s1897_s23 + $0x2b] sm:$0xff]  ;;  %v402_v35 = vmul.f32 0.036000773, %v1956_v30  ;;  %v1973_v40 = vmul.f32 0.0010283801, %v1956_v30 }
  0x1e   : > { %2950 = vst [vmem:[#allocation7_spill] sm:$0xff] %v1956_v30  ;;  %v492_v36 = vmul.f32 0.10936069, %v1959_v31  ;;  %v570_v37 = vld [vmem:[%s1897_s23 + $0x2c] sm:$0xff]  ;;  %v676_v41 = vadd.f32 %v670_v18, %v586_v33  ;;  %v318_v42 = vadd.f32 %v1965_v34, %v252_v28  ;;  %v401_v11 = vmul.f32 0.036000773, %v2001_v63 }
  0x1f   : > { %2951 = vst [vmem:[#allocation8_spill] sm:$0xff] %v1959_v31  ;;  %v660_v38 = vld [vmem:[%s1897_s23 + $0x2d] sm:$0xff]  ;;  %v582_v43 = vmul.f32 0.21300554, %v570_v37  ;;  %v491_v12 = vmul.f32 0.10936069, %v2004_v0  ;;  %v317_v28 = vadd.f32 %v311_v7, %v251_v59 }
  0x20   : > { %v750_v39 = vld [vmem:[%s1897_s23 + $0x2e] sm:$0xff]  ;;  %v672_v44 = vmul.f32 0.26601171, %v660_v38  ;;  %v766_v50 = vadd.f32 %v760_v19, %v676_v41  ;;  %v408_v51 = vadd.f32 %v402_v35, %v318_v42  ;;  %v2015_v18 = vld [vmem:[%s1897_s23 + $0x24] sm:$0xff]  ;;  %v2024_v25 = vmul.f32 0.0010283801, %v1906_v4 }
  0x21   : > { %v840_v45 = vld [vmem:[%s1897_s23 + $0x2f] sm:$0xff]  ;;  %v762_v47 = vmul.f32 0.21300554, %v750_v39  ;;  %2956 = vst [vmem:[#allocation13_spill] sm:$0xff] %v2015_v18  ;;  %v2018_v19 = vld [vmem:[%s1897_s23 + $0x25] sm:$0xff] }
  0x22   : > { %v928_v46 = vld [vmem:[%s1897_s23 + $0x30] sm:$0xff]  ;;  %v852_v48 = vmul.f32 0.10936069, %v840_v45  ;;  %v856_v60 = vadd.f32 %v850_v20, %v766_v50  ;;  %v498_v61 = vadd.f32 %v492_v36, %v408_v51  ;;  %2957 = vst [vmem:[#allocation14_spill] sm:$0xff] %v2018_v19  ;;  %v2021_v20 = vld [vmem:[%s1897_s23 + $0x26] sm:$0xff] }
  0x23   : > { %v1978_v49 = vmul.f32 0.036000773, %v928_v46  ;;  %v1003_v52 = vld [vmem:[%s1897_s23 + $0x31] sm:$0xff]  ;;  %2958 = vst [vmem:[#allocation15_spill] sm:$0xff] %v2021_v20  ;;  %v581_v33 = vmul.f32 0.21300554, %v2015_v18 }
  0x24   : > { %v1063_v53 = vld [vmem:[%s1897_s23 + $0x32] sm:$0xff]  ;;  %v1992_v57 = vmul.f32 0.007598758, %v1003_v52  ;;  %v940_v13 = vadd.f32 %v934_v21, %v856_v60  ;;  %v588_v17 = vadd.f32 %v582_v43, %v498_v61  ;;  %v671_v35 = vmul.f32 0.26601171, %v2018_v19  ;;  %v2030_v38 = vld [vmem:[%s1897_s23 + $0x27] sm:$0xff] }
  0x25   : > { %v1994_v58 = vmul.f32 0.0010283801, %v1063_v53  ;;  %v761_v36 = vmul.f32 0.21300554, %v2021_v20  ;;  %2959 = vst [vmem:[#allocation16_spill] sm:$0xff] %v2030_v38  ;;  %v241_v39 = vld [vmem:[%s1897_s23 + $0x40] sm:$0xff]  ;;  %v407_v43 = vadd.f32 %v401_v11, %v317_v28 }
  0x26   : > { %v1012_v21 = vadd.f32 %v1008_v26, %v940_v13  ;;  %v678_v37 = vadd.f32 %v672_v44, %v588_v17  ;;  %v242_v41 = vld [vmem:[%s1897_s23 + $0x48] sm:$0xff]  ;;  %v2034_v42 = vmul.f32 0.007598758, %v334_v5  ;;  %v851_v45 = vmul.f32 0.10936069, %v2030_v38 }
  0x27   : > { %v253_v46 = vmul.f32 0.0010283801, %v241_v39  ;;  %v254_v50 = vmul.f32 0.0010283801, %v242_v41  ;;  %v301_v52 = vld [vmem:[%s1897_s23 + $0x41] sm:$0xff]  ;;  %v302_v44 = vld [vmem:[%s1897_s23 + $0x49] sm:$0xff]  ;;  %v497_v60 = vadd.f32 %v491_v12, %v407_v43 }
  0x28   : > { %v1075_v51 = vadd.f32 %v1949_v27, %v1012_v21  ;;  %v768_v26 = vadd.f32 %v762_v47, %v678_v37  ;;  %v391_v53 = vld [vmem:[%s1897_s23 + $0x42] sm:$0xff]  ;;  %v2041_v59 = vmul.f32 0.036000773, %v242_v41  ;;  %v313_v61 = vmul.f32 0.007598758, %v301_v52  ;;  %v392_v7 = vld [vmem:[%s1897_s23 + $0x4a] sm:$0xff] }
  0x29   : > { %v2043_v5 = vmul.f32 0.007598758, %v302_v44  ;;  %v481_v11 = vld [vmem:[%s1897_s23 + $0x43] sm:$0xff]  ;;  %v403_v27 = vmul.f32 0.036000773, %v391_v53  ;;  %v482_v47 = vld [vmem:[%s1897_s23 + $0x4b] sm:$0xff]  ;;  %v2052_v21 = vmul.f32 %v1906_v4, %v1906_v4  ;;  %v587_v12 = vadd.f32 %v581_v33, %v497_v60 }
  0x2a   : > { %1715 = vmatmul.msk.f32.vlgmr.msra.gmra.mxu1 %vm1137_vm0, %v1075_v51  ;;  %v858_v13 = vadd.f32 %v852_v48, %v768_v26  ;;  %v404_v17 = vmul.f32 0.036000773, %v392_v7  ;;  %v571_v28 = vld [vmem:[%s1897_s23 + $0x44] sm:$0xff]  ;;  %v319_v37 = vadd.f32 %v313_v61, %v253_v46  ;;  %v493_v41 = vmul.f32 0.10936069, %v481_v11  ;;  %v572_v46 = vld [vmem:[%s1897_s23 + $0x4c] sm:$0xff] }
  0x2b   : > { %v320_v39 = vadd.f32 %v2043_v5, %v254_v50  ;;  %v661_v43 = vld [vmem:[%s1897_s23 + $0x45] sm:$0xff]  ;;  %v494_v26 = vmul.f32 0.10936069, %v482_v47  ;;  %v583_v44 = vmul.f32 0.21300554, %v571_v28  ;;  %v677_v38 = vadd.f32 %v671_v35, %v587_v12  ;;  %v662_v61 = vld [vmem:[%s1897_s23 + $0x4d] sm:$0xff] }
  0x2c   : > { %v751_v52 = vld [vmem:[%s1897_s23 + $0x46] sm:$0xff]  ;;  %v942_v48 = vadd.f32 %v1978_v49, %v858_v13  ;;  %v673_v53 = vmul.f32 0.26601171, %v661_v43  ;;  %v409_v20 = vadd.f32 %v403_v27, %v319_v37  ;;  %v752_v19 = vld [vmem:[%s1897_s23 + $0x4e] sm:$0xff]  ;;  %v2063_v18 = vmul.f32 0.0010283801, %v392_v7 }
  0x2d   : > { %v841_v51 = vld [vmem:[%s1897_s23 + $0x47] sm:$0xff]  ;;  %v410_v33 = vadd.f32 %v404_v17, %v320_v39  ;;  %v763_v60 = vmul.f32 0.21300554, %v751_v52  ;;  %v584_v31 = vmul.f32 0.21300554, %v572_v46  ;;  %v767_v49 = vadd.f32 %v761_v36, %v677_v38  ;;  %v842_v27 = vld [vmem:[%s1897_s23 + $0x4f] sm:$0xff] }
  0x2e   : > { %v1014_v50 = vadd.f32 %v1992_v57, %v942_v48  ;;  %v853_v11 = vmul.f32 0.10936069, %v841_v51  ;;  %v499_v13 = vadd.f32 %v493_v41, %v409_v20  ;;  %v674_v47 = vmul.f32 0.26601171, %v662_v61  ;;  %v929_v28 = vld [vmem:[%s1897_s23 + $0x50] sm:$0xff]  ;;  %v2071_v38 = vld [vmem:[%s1897_s23] sm:$0xff] }
  0x2f   : > { %v500_v35 = vadd.f32 %v494_v26, %v410_v33  ;;  %v1004_v17 = vld [vmem:[%s1897_s23 + $0x51] sm:$0xff]  ;;  %v764_v37 = vmul.f32 0.21300554, %v752_v19  ;;  %v854_v39 = vmul.f32 0.10936069, %v842_v27  ;;  %v857_v57 = vadd.f32 %v851_v45, %v767_v49  ;;  %v2074_v41 = vld [vmem:[%s1897_s23 + $0x1] sm:$0xff] }
  0x30   : > { %v1077_v12 = vadd.f32 %v1994_v58, %v1014_v50  ;;  %v938_v43 = vmul.f32 0.036000773, %v929_v28  ;;  %v589_v7 = vadd.f32 %v583_v44, %v499_v13  ;;  %v1010_v36 = vmul.f32 0.007598758, %v1004_v17  ;;  %v1064_v20 = vld [vmem:[%s1897_s23 + $0x52] sm:$0xff]  ;;  %v2083_v44 = vld [vmem:[%s1897_s23 + $0x2] sm:$0xff] }
  0x31   : > { %v590_v52 = vadd.f32 %v584_v31, %v500_v35  ;;  %v1073_v51 = vmul.f32 0.0010283801, %v1064_v20  ;;  %v249_v58 = vmul.f32 0.0010283801, %v2071_v38  ;;  %v309_v19 = vmul.f32 0.007598758, %v2074_v41 }
  0x32   : > { %1717 = vmatmul.msk.f32.vlgmr.msra.gmra.mxu2 %vm1137_vm0, %v1077_v12  ;;  %v261_v45 = vmul.f32 %v2071_v38, %v2071_v38  ;;  %v941_v31 = vadd.f32 %v1962_v32, %v857_v57  ;;  %v679_v48 = vadd.f32 %v673_v53, %v589_v7  ;;  %v2086_v33 = vld [vmem:[%s1897_s23 + $0x3] sm:$0xff]  ;;  %v333_v61 = vmul.f32 %v2074_v41, %v2074_v41  ;;  %v2155_v30 = vld [vmem:[%s2098_s26 + $0xb] sm:$0xff] }
  0x33   : > { %v680_v26 = vadd.f32 %v674_v47, %v590_v52  ;;  %v2089_v46 = vld [vmem:[%s1897_s23 + $0x4] sm:$0xff]  ;;  %v315_v32 = vadd.f32 %v309_v19, %v249_v58  ;;  %v399_v53 = vmul.f32 0.036000773, %v2083_v44  ;;  %v489_v50 = vmul.f32 0.10936069, %v2086_v33 }
  0x34   : > { %v579_v49 = vmul.f32 0.21300554, %v2089_v46  ;;  %v1013_v13 = vadd.f32 %v941_v31, %v1965_v34  ;;  %v769_v35 = vadd.f32 %v763_v60, %v679_v48  ;;  %v2105_v27 = vld [vmem:[%s1897_s23 + $0x5] sm:$0xff]  ;;  %v267_v12 = vmul.f32 0.0010283801, %v261_v45 }
  0x35   : > { %v770_v47 = vadd.f32 %v764_v37, %v680_v26  ;;  %v2108_v28 = vld [vmem:[%s1897_s23 + $0x6] sm:$0xff]  ;;  %v405_v57 = vadd.f32 %v399_v53, %v315_v32  ;;  %v669_v7 = vmul.f32 0.26601171, %v2105_v27  ;;  %v339_v31 = vmul.f32 0.007598758, %v333_v61 }
  0x36   : > { %v2111_v17 = vld [vmem:[%s1897_s23 + $0x7] sm:$0xff]  ;;  %v759_v52 = vmul.f32 0.21300554, %v2108_v28  ;;  %v1076_v34 = vadd.f32 %v1973_v40, %v1013_v13  ;;  %v859_v60 = vadd.f32 %v853_v11, %v769_v35  ;;  %v346_v40 = vadd.f32 %v2034_v42, %v2007_v1 }
  0x37   : > { %v849_v20 = vmul.f32 0.10936069, %v2111_v17  ;;  %v860_v37 = vadd.f32 %v854_v39, %v770_v47  ;;  %v2118_v58 = vld [vmem:[%s2098_s26] sm:$0xff]  ;;  %v2121_v19 = vld [vmem:[%s2098_s26 + $0x8] sm:$0xff]  ;;  %v495_v48 = vadd.f32 %v489_v50, %v405_v57  ;;  %v502_v29 = vmul.f32 0.10936069, %v2155_v30 }
  0x38   : > { %v255_v45 = vmul.f32 0.0010283801, %v2118_v58  ;;  %v256_v26 = vmul.f32 0.0010283801, %v2121_v19  ;;  %v2126_v32 = vld [vmem:[%s2098_s26 + $0x1] sm:$0xff]  ;;  %v2129_v53 = vld [vmem:[%s2098_s26 + $0x9] sm:$0xff]  ;;  %1716 = vmatmul.msk.f32.gmra.mxu1 %vm1137_vm0, %v1076_v34  ;;  %v943_v11 = vadd.f32 %v2041_v59, %v859_v60  ;;  %v423_v34 = vmul.f32 %v2083_v44, %v2083_v44 }
  0x39   : > { %v944_v39 = vadd.f32 %v938_v43, %v860_v37  ;;  %v321_v61 = vmul.f32 0.007598758, %v2126_v32  ;;  %v2137_v50 = vmul.f32 0.007598758, %v2129_v53  ;;  %v2140_v13 = vld [vmem:[%s2098_s26 + $0x2] sm:$0xff]  ;;  %v2143_v35 = vld [vmem:[%s2098_s26 + $0xa] sm:$0xff]  ;;  %v585_v47 = vadd.f32 %v579_v49, %v495_v48 }
  0x3a   : > { %v411_v1 = vmul.f32 0.036000773, %v2140_v13  ;;  %v412_v57 = vmul.f32 0.036000773, %v2143_v35  ;;  %v1015_v59 = vadd.f32 %v943_v11, %v2043_v5  ;;  %v2152_v0 = vld [vmem:[%s2098_s26 + $0x3] sm:$0xff]  ;;  %v873_v23 = vmul.f32 %v2111_v17, %v2111_v17 }
  0x3b   : > { %v1016_v43 = vadd.f32 %v1010_v36, %v944_v39  ;;  %v327_v60 = vadd.f32 %v321_v61, %v255_v45  ;;  %v328_v37 = vadd.f32 %v2137_v50, %v256_v26  ;;  %v2158_v49 = vld [vmem:[%s2098_s26 + $0x4] sm:$0xff]  ;;  %v675_v48 = vadd.f32 %v669_v7, %v585_v47 }
  0x3c   : > { %v501_v63 = vmul.f32 0.10936069, %v2152_v0  ;;  %v591_v62 = vmul.f32 0.21300554, %v2158_v49  ;;  %v1078_v5 = vadd.f32 %v2063_v18, %v1015_v59  ;;  %v2165_v26 = vld [vmem:[%s2098_s26 + $0x5] sm:$0xff]  ;;  %v345_v7 = vadd.f32 %v339_v31, %v267_v12 }
  0x3d   : > { %v1079_v36 = vadd.f32 %v1073_v51, %v1016_v43  ;;  %v417_v45 = vadd.f32 %v411_v1, %v327_v60  ;;  %v418_v11 = vadd.f32 %v412_v57, %v328_v37  ;;  %v765_v39 = vadd.f32 %v759_v52, %v675_v48  ;;  %v2169_v24 = vld [vmem:[%s2098_s26 + $0x6] sm:$0xff] }
  0x3e   : > { %v681_v61 = vmul.f32 0.26601171, %v2165_v26  ;;  %v2172_v54 = vld [vmem:[%s2098_s26 + $0x7] sm:$0xff]  ;;  %v514_v47 = vmul.f32 %v1914_v8, %v1914_v8  ;;  %1718 = vmatmul.msk.f32.gmra.mxu2 %vm1137_vm0, %v1078_v5  ;;  %v771_v1 = vmul.f32 0.21300554, %v2169_v24  ;;  %v513_v12 = vmul.f32 %v2086_v33, %v2086_v33 }
  0x3f   : > { %1719 = vmatmul.msk.f32.vlgmr.msra.gmra.mxu3 %vm1137_vm0, %v1079_v36  ;;  %v507_v18 = vadd.f32 %v501_v63, %v417_v45  ;;  %v2178_v51 = vadd.f32 %v502_v29, %v418_v11  ;;  %v861_v52 = vmul.f32 0.10936069, %v2172_v54  ;;  %v855_v57 = vadd.f32 %v849_v20, %v765_v39 }
  0x40   : > { %v945_v59 = vmul.f32 0.036000773, %v2121_v19  ;;  %v429_v43 = vmul.f32 0.036000773, %v423_v34  ;;  %v430_v60 = vmul.f32 0.036000773, %v2052_v21  ;;  %v603_v37 = vmul.f32 %v2089_v46, %v2089_v46 }
  0x41   : > { %v597_v31 = vadd.f32 %v591_v62, %v507_v18  ;;  %v693_v29 = vmul.f32 %v2105_v27, %v2105_v27  ;;  %v939_v63 = vadd.f32 %v1986_v55, %v855_v57  ;;  %v1080_v48 = vmul.f32 0.0010283801, %v2143_v35 }
  0x42   : > { %v435_v20 = vadd.f32 %v429_v43, %v345_v7  ;;  %v519_v5 = vmul.f32 0.10936069, %v513_v12  ;;  %v520_v34 = vmul.f32 0.10936069, %v514_v47  ;;  %v609_v45 = vmul.f32 0.21300554, %v603_v37 }
  0x43   : > { %v687_v36 = vadd.f32 %v681_v61, %v597_v31  ;;  %v783_v62 = vmul.f32 %v2108_v28, %v2108_v28  ;;  %v1011_v11 = vadd.f32 %v939_v63, %v1910_v6  ;;  %v699_v18 = vmul.f32 0.26601171, %v693_v29 }
  0x44   : > { %v525_v39 = vadd.f32 %v519_v5, %v435_v20  ;;  %v436_v16 = vadd.f32 %v430_v60, %v346_v40  ;;  %v960_v57 = vmul.f32 0.036000773, %v1990_v56  ;;  %v879_v47 = vmul.f32 0.10936069, %v873_v23 }
  0x45   : > { %v777_v22 = vadd.f32 %v771_v1, %v687_v36  ;;  %v789_v55 = vmul.f32 0.21300554, %v783_v62  ;;  %v1074_v7 = vadd.f32 %v2024_v25, %v1011_v11  ;;  %v273_v43 = vmul.f32 %v2118_v58, %v2118_v58 }
  0x46   : > { %v615_v61 = vadd.f32 %v609_v45, %v525_v39  ;;  %v274_v6 = vmul.f32 %v2121_v19, %v2121_v19  ;;  %v351_v31 = vmul.f32 %v2126_v32, %v2126_v32  ;;  %v352_v40 = vmul.f32 %v2129_v53, %v2129_v53 }
  0x47   : > { %v867_v12 = vadd.f32 %v861_v52, %v777_v22  ;;  %1714 = vmatmul.msk.f32.vlgmr.msra.gmra.mxu0 %vm1137_vm0, %v1074_v7  ;;  %v279_v1 = vmul.f32 0.0010283801, %v273_v43  ;;  %v441_v23 = vmul.f32 %v2140_v13, %v2140_v13  ;;  %v2212_v25 = vmul.f32 %v2143_v35, %v2143_v35 }
  0x48   : > { %v705_v56 = vadd.f32 %v699_v18, %v615_v61  ;;  %v280_v52 = vmul.f32 0.0010283801, %v274_v6  ;;  %v357_v60 = vmul.f32 0.007598758, %v351_v31  ;;  %v2214_v37 = vmul.f32 0.007598758, %v352_v40 }
  0x49   : > { %v951_v22 = vadd.f32 %v945_v59, %v867_v12  ;;  %v447_v63 = vmul.f32 0.036000773, %v441_v23  ;;  %v448_v20 = vmul.f32 0.036000773, %v2212_v25  ;;  %v531_v5 = vmul.f32 %v2152_v0, %v2152_v0 }
  0x4a   : > { %v795_v29 = vadd.f32 %v789_v55, %v705_v56  ;;  %v363_v45 = vadd.f32 %v357_v60, %v279_v1  ;;  %v364_v62 = vadd.f32 %v2214_v37, %v280_v52  ;;  %v532_v11 = vmul.f32 %v2155_v30, %v2155_v30 }
  0x4b   : > { %v1020_v36 = vadd.f32 %v951_v22, %v2137_v50  ;;  %v537_v39 = vmul.f32 0.10936069, %v531_v5  ;;  %v621_v18 = vmul.f32 %v2158_v49, %v2158_v49  ;;  %v711_v55 = vmul.f32 %v2165_v26, %v2165_v26 }
  0x4c   : > { %v885_v59 = vadd.f32 %v879_v47, %v795_v29  ;;  %v2227_v61 = vadd.f32 %v520_v34, %v436_v16  ;;  %v1095_v43 = vmul.f32 0.0010283801, %v2052_v21  ;;  %v453_v50 = vadd.f32 %v447_v63, %v363_v45 }
  0x4d   : > { %v1086_v7 = vadd.f32 %v1080_v48, %v1020_v36  ;;  %v454_v31 = vadd.f32 %v448_v20, %v364_v62  ;;  %v627_v40 = vmul.f32 0.21300554, %v621_v18  ;;  %v801_v56 = vmul.f32 %v2169_v24, %v2169_v24 }
  0x4e   : > { %v966_v12 = vadd.f32 %v960_v57, %v885_v59  ;;  %v538_v47 = vmul.f32 0.10936069, %v532_v11  ;;  %v543_v1 = vadd.f32 %v537_v39, %v453_v50  ;;  %v717_v23 = vmul.f32 0.26601171, %v711_v55  ;;  %v2268_v39 = vld [vmem:[%s2098_s26 + $0xc] sm:$0xff] }
  0x4f   : > { %1720 = vmatmul.msk.f32.vlgmr.msrb.gmra.mxu1 %vm1137_vm0, %v1086_v7  ;;  %v891_v22 = vmul.f32 %v2172_v54, %v2172_v54  ;;  %v807_v48 = vmul.f32 0.21300554, %v801_v56  ;;  %v975_v34 = vmul.f32 0.036000773, %v274_v6  ;;  %v285_v21 = vmul.f32 %v2118_v58, %v2071_v38  ;;  %v2271_v7 = vld [vmem:[%s2098_s26 + $0xd] sm:$0xff] }
  0x50   : > { %v1032_v16 = vadd.f32 %v966_v12, %v2034_v42  ;;  %v633_v57 = vadd.f32 %v627_v40, %v543_v1  ;;  %v286_v60 = vmul.f32 %v2121_v19, %v1900_v2  ;;  %v369_v29 = vmul.f32 %v2126_v32, %v2074_v41  ;;  %v2282_v40 = vld [vmem:[%s2098_s26 + $0xf] sm:$0xff] }
  0x51   : > { %v897_v52 = vmul.f32 0.10936069, %v891_v22  ;;  %v291_v20 = vmul.f32 0.0010283801, %v285_v21  ;;  %v370_v5 = vmul.f32 %v2129_v53, %v1903_v3  ;;  %v459_v42 = vmul.f32 %v2140_v13, %v2083_v44  ;;  %v2285_v56 = vld [vmem:[%s2098_s26 + $0x10] sm:$0xff] }
  0x52   : > { %v1101_v63 = vadd.f32 %v1095_v43, %v1032_v16  ;;  %v723_v6 = vadd.f32 %v717_v23, %v633_v57  ;;  %v292_v36 = vmul.f32 0.0010283801, %v286_v60  ;;  %v375_v45 = vmul.f32 0.007598758, %v369_v29  ;;  %v2274_v43 = vld [vmem:[%s2098_s26 + $0xe] sm:$0xff] }
  0x53   : > { %v460_v38 = vmul.f32 %v2143_v35, %v1906_v4  ;;  %v2249_v2 = vmul.f32 0.007598758, %v370_v5  ;;  %v465_v58 = vmul.f32 0.036000773, %v459_v42  ;;  %v549_v41 = vmul.f32 %v2152_v0, %v2086_v33  ;;  %v2960_v42 = vld [vmem:[#allocation2_spill] sm:$0xff] }
  0x54   : > { %1726 = vmatmul.msk.f32.vlgmr.msrb.gmra.mxu2 %vm1137_vm0, %v1101_v63  ;;  %v550_v3 = vmul.f32 %v2155_v30, %v1914_v8  ;;  %v813_v19 = vadd.f32 %v807_v48, %v723_v6  ;;  %v381_v44 = vadd.f32 %v375_v45, %v291_v20  ;;  %v639_v53 = vmul.f32 %v2158_v49, %v2089_v46  ;;  %v2305_v63 = vld [vmem:[%s2098_s26 + $0x12] sm:$0xff] }
  0x55   : > { %v466_v32 = vmul.f32 0.036000773, %v460_v38  ;;  %v382_v4 = vadd.f32 %v2249_v2, %v292_v36  ;;  %v555_v13 = vmul.f32 0.10936069, %v549_v41  ;;  %v729_v62 = vmul.f32 %v2165_v26, %v2105_v27 }
  0x56   : > { %v556_v35 = vmul.f32 0.10936069, %v550_v3  ;;  %v903_v0 = vadd.f32 %v897_v52, %v813_v19  ;;  %v471_v33 = vadd.f32 %v465_v58, %v381_v44  ;;  %v645_v11 = vmul.f32 0.21300554, %v639_v53  ;;  %v2961_v58 = vld [vmem:[#allocation3_spill] sm:$0xff] }
  0x57   : > { %v819_v8 = vmul.f32 %v2169_v24, %v2108_v28  ;;  %v2262_v30 = vadd.f32 %v538_v47, %v454_v31  ;;  %v1110_v59 = vmul.f32 0.0010283801, %v2212_v25  ;;  %v472_v46 = vadd.f32 %v466_v32, %v382_v4  ;;  %v2962_v32 = vld [vmem:[#allocation4_spill] sm:$0xff] }
  0x58   : > { %v909_v49 = vmul.f32 %v2172_v54, %v2111_v17  ;;  %v981_v18 = vadd.f32 %v975_v34, %v903_v0  ;;  %v561_v27 = vadd.f32 %v555_v13, %v471_v33  ;;  %v735_v26 = vmul.f32 0.26601171, %v729_v62  ;;  %v2292_v34 = vld [vmem:[%s2098_s26 + $0x11] sm:$0xff] }
  0x59   : > { %v990_v55 = vmul.f32 0.036000773, %v286_v60  ;;  %v2276_v24 = vadd.f32 %v556_v35, %v472_v46  ;;  %v825_v28 = vmul.f32 0.21300554, %v819_v8  ;;  %v592_v25 = vmul.f32 0.21300554, %v2268_v39 }
  0x5a   : > { %v682_v54 = vmul.f32 0.26601171, %v2271_v7  ;;  %v1044_v17 = vadd.f32 %v981_v18, %v2214_v37  ;;  %v651_v50 = vadd.f32 %v645_v11, %v561_v27  ;;  %v915_v12 = vmul.f32 0.10936069, %v909_v49 }
  0x5b   : > { %v1125_v31 = vmul.f32 0.0010283801, %v460_v38  ;;  %v598_v47 = vadd.f32 %v592_v25, %v2178_v51  ;;  %v772_v1 = vmul.f32 0.21300554, %v2274_v43  ;;  %v862_v23 = vmul.f32 0.10936069, %v2282_v40 }
  0x5c   : > { %v946_v22 = vmul.f32 0.036000773, %v2285_v56  ;;  %v1116_v16 = vadd.f32 %v1110_v59, %v1044_v17  ;;  %v741_v48 = vadd.f32 %v735_v26, %v651_v50  ;;  %v604_v37 = vmul.f32 %v1917_v9, %v1917_v9 }
  0x5d   : > { %v694_v21 = vmul.f32 %v1920_v10, %v1920_v10  ;;  %v688_v57 = vadd.f32 %v682_v54, %v598_v47  ;;  %v1017_v52 = vmul.f32 0.007598758, %v2292_v34  ;;  %v784_v51 = vmul.f32 %v1926_v14, %v1926_v14 }
  0x5e   : > { %v874_v60 = vmul.f32 %v1929_v15, %v1929_v15  ;;  %1732 = vmatmul.msk.f32.vlgmr.msrb.gmra.mxu3 %vm1137_vm0, %v1116_v16  ;;  %v831_v29 = vadd.f32 %v825_v28, %v741_v48  ;;  %v610_v20 = vmul.f32 0.21300554, %v604_v37  ;;  %v957_v6 = vmul.f32 %v2960_v42, %v2960_v42 }
  0x5f   : > { %v700_v5 = vmul.f32 0.26601171, %v694_v21  ;;  %v778_v36 = vadd.f32 %v772_v1, %v688_v57  ;;  %v1081_v45 = vmul.f32 0.0010283801, %v2305_v63  ;;  %v790_v38 = vmul.f32 0.21300554, %v784_v51 }
  0x60   : > { %v1026_v41 = vmul.f32 %v2961_v58, %v2961_v58  ;;  %v921_v3 = vadd.f32 %v915_v12, %v831_v29  ;;  %v616_v19 = vadd.f32 %v610_v20, %v2227_v61  ;;  %v880_v44 = vmul.f32 0.10936069, %v874_v60 }
  0x61   : > { %v1092_v53 = vmul.f32 %v2962_v32, %v2962_v32  ;;  %v868_v4 = vadd.f32 %v862_v23, %v778_v36  ;;  %v622_v13 = vmul.f32 %v2268_v39, %v2268_v39  ;;  %v712_v35 = vmul.f32 %v2271_v7, %v2271_v7  ;;  %v2362_v36 = vld [vmem:[%s2098_s26 + $0x29] sm:$0xff] }
  0x62   : > { %v802_v62 = vmul.f32 %v2274_v43, %v2274_v43  ;;  %v996_v0 = vadd.f32 %v990_v55, %v921_v3  ;;  %v706_v33 = vadd.f32 %v700_v5, %v616_v19  ;;  %v961_v11 = vmul.f32 0.036000773, %v957_v6 }
  0x63   : > { %v892_v61 = vmul.f32 %v2282_v40, %v2282_v40  ;;  %v952_v8 = vadd.f32 %v946_v22, %v868_v4  ;;  %v1029_v59 = vmul.f32 0.007598758, %v1026_v41  ;;  %v628_v46 = vmul.f32 0.21300554, %v622_v13 }
  0x64   : > { %v718_v49 = vmul.f32 0.26601171, %v712_v35  ;;  %v1056_v18 = vadd.f32 %v996_v0, %v2249_v2  ;;  %v796_v27 = vadd.f32 %v790_v38, %v706_v33  ;;  %v1096_v26 = vmul.f32 0.0010283801, %v1092_v53  ;;  %v2368_v38 = vld [vmem:[%s2098_s26 + $0x23] sm:$0xff]  ;;  %v2380_v35 = vld [vmem:[%s2098_s26 + $0x2b] sm:$0xff] }
  0x65   : > { %v972_v28 = vmul.f32 %v2285_v56, %v2285_v56  ;;  %v1021_v25 = vadd.f32 %v1017_v52, %v952_v8  ;;  %v634_v54 = vadd.f32 %v628_v46, %v2262_v30  ;;  %v808_v55 = vmul.f32 0.21300554, %v802_v62  ;;  %v2384_v0 = vld [vmem:[%s2098_s26 + $0x24] sm:$0xff] }
  0x66   : > { %v1038_v17 = vmul.f32 %v2292_v34, %v2292_v34  ;;  %v1131_v50 = vadd.f32 %v1125_v31, %v1056_v18  ;;  %v886_v12 = vadd.f32 %v880_v44, %v796_v27  ;;  %v898_v47 = vmul.f32 0.10936069, %v892_v61  ;;  %v2387_v33 = vld [vmem:[%s2098_s26 + $0x25] sm:$0xff] }
  0x67   : > { %v640_v1 = vmul.f32 %v2268_v39, %v1917_v9  ;;  %v1087_v23 = vadd.f32 %v1081_v45, %v1021_v25  ;;  %v724_v2 = vadd.f32 %v718_v49, %v634_v54  ;;  %v976_v22 = vmul.f32 0.036000773, %v972_v28  ;;  %v2365_v45 = vld [vmem:[%s2098_s26 + $0x2a] sm:$0xff] }
  0x68   : > { %v1107_v16 = vmul.f32 %v2305_v63, %v2305_v63  ;;  %1738 = vmatmul.msk.f32.vlgmr.msrb.gmra.mxu0 %vm1137_vm0, %v1131_v50  ;;  %v967_v30 = vadd.f32 %v961_v11, %v886_v12  ;;  %v730_v31 = vmul.f32 %v2271_v7, %v1920_v10  ;;  %v820_v37 = vmul.f32 %v2274_v43, %v1926_v14  ;;  %v2345_v7 = vld [vmem:[%s2098_s26 + $0x20] sm:$0xff] }
  0x69   : > { %v646_v48 = vmul.f32 0.21300554, %v640_v1  ;;  %1721 = vmatmul.msk.f32.gmra.mxu1 %vm1137_vm0, %v1087_v23  ;;  %v814_v9 = vadd.f32 %v808_v55, %v724_v2  ;;  %v1041_v39 = vmul.f32 0.007598758, %v1038_v17  ;;  %v910_v21 = vmul.f32 %v2282_v40, %v1929_v15  ;;  %v2348_v43 = vld [vmem:[%s2098_s26 + $0x21] sm:$0xff]  ;;  %v2964_v23 = vld [vmem:[#allocation5_spill] sm:$0xff] }
  0x6a   : > { %v987_v57 = vmul.f32 %v2285_v56, %v2960_v42  ;;  %v1033_v52 = vadd.f32 %v1029_v59, %v967_v30  ;;  %v736_v10 = vmul.f32 0.26601171, %v730_v31  ;;  %v826_v14 = vmul.f32 0.21300554, %v820_v37  ;;  %v2353_v40 = vld [vmem:[%s2098_s26 + $0x28] sm:$0xff] }
  0x6b   : > { %v652_v51 = vadd.f32 %v646_v48, %v2276_v24  ;;  %v904_v60 = vadd.f32 %v898_v47, %v814_v9  ;;  %v1111_v29 = vmul.f32 0.0010283801, %v1107_v16  ;;  %v916_v20 = vmul.f32 0.10936069, %v910_v21  ;;  %v2356_v56 = vld [vmem:[%s2098_s26 + $0x22] sm:$0xff]  ;;  %v2963_v47 = vld [vmem:[#allocation9_spill] sm:$0xff] }
  0x6c   : > { %v1050_v15 = vmul.f32 %v2292_v34, %v2961_v58  ;;  %v1102_v5 = vadd.f32 %v1096_v26, %v1033_v52  ;;  %v1122_v42 = vmul.f32 %v2305_v63, %v2962_v32  ;;  %v257_v6 = vmul.f32 0.0010283801, %v2345_v7  ;;  %v2393_v26 = vld [vmem:[%s2098_s26 + $0x26] sm:$0xff] }
  0x6d   : > { %v742_v24 = vadd.f32 %v736_v10, %v652_v51  ;;  %v982_v34 = vadd.f32 %v976_v22, %v904_v60  ;;  %v258_v58 = vmul.f32 0.0010283801, %v2353_v40  ;;  %v323_v41 = vmul.f32 0.007598758, %v2348_v43  ;;  %v2396_v28 = vld [vmem:[%s2098_s26 + $0x27] sm:$0xff] }
  0x6e   : > { %v2373_v3 = vmul.f32 0.007598758, %v2362_v36  ;;  %1727 = vmatmul.msk.f32.gmra.mxu2 %vm1137_vm0, %v1102_v5  ;;  %v991_v19 = vmul.f32 0.036000773, %v987_v57  ;;  %v413_v44 = vmul.f32 0.036000773, %v2356_v56  ;;  %v263_v1 = vmul.f32 %v2963_v47, %v2963_v47 }
  0x6f   : > { %v832_v63 = vadd.f32 %v826_v14, %v742_v24  ;;  %v414_v32 = vmul.f32 0.036000773, %v2365_v45  ;;  %v1045_v53 = vadd.f32 %v1041_v39, %v982_v34  ;;  %v329_v4 = vadd.f32 %v323_v41, %v257_v6  ;;  %v2965_v16 = vld [vmem:[#allocation10_spill] sm:$0xff]  ;;  %v2967_v37 = vld [vmem:[#allocation11_spill] sm:$0xff]  ;;  %v2969_v5 = vld [vmem:[#allocation12_spill] sm:$0xff] }
  0x70   : > { %v330_v13 = vadd.f32 %v2373_v3, %v258_v58  ;;  %v503_v62 = vmul.f32 0.10936069, %v2368_v38  ;;  %v1053_v61 = vmul.f32 0.007598758, %v1050_v15  ;;  %v1126_v8 = vmul.f32 0.0010283801, %v1122_v42 }
  0x71   : > { %v922_v11 = vadd.f32 %v916_v20, %v832_v63  ;;  %v504_v59 = vmul.f32 0.10936069, %v2380_v35  ;;  %v1117_v46 = vadd.f32 %v1111_v29, %v1045_v53  ;;  %v419_v49 = vadd.f32 %v413_v44, %v329_v4  ;;  %v2966_v48 = vld [vmem:[#allocation6_spill] sm:$0xff]  ;;  %v2968_v52 = vld [vmem:[#allocation7_spill] sm:$0xff]  ;;  %v2970_v42 = vld [vmem:[#allocation8_spill] sm:$0xff] }
  0x72   : > { %v593_v18 = vmul.f32 0.21300554, %v2384_v0  ;;  %v683_v27 = vmul.f32 0.26601171, %v2387_v33  ;;  %v420_v54 = vadd.f32 %v414_v32, %v330_v13  ;;  %v773_v55 = vmul.f32 0.21300554, %v2393_v26 }
  0x73   : > { %v997_v25 = vadd.f32 %v991_v19, %v922_v11  ;;  %v863_v17 = vmul.f32 0.10936069, %v2396_v28  ;;  %1733 = vmatmul.msk.f32.gmra.mxu3 %vm1137_vm0, %v1117_v46  ;;  %v509_v50 = vadd.f32 %v503_v62, %v419_v49  ;;  %v947_v12 = vmul.f32 0.036000773, %v2353_v40  ;;  %v2971_v41 = vld [vmem:[#allocation13_spill] sm:$0xff]  ;;  %v2972_v19 = vld [vmem:[#allocation14_spill] sm:$0xff] }
  0x74   : > { %v264_v2 = vmul.f32 %v2964_v23, %v2964_v23  ;;  %v335_v30 = vmul.f32 %v2965_v16, %v2965_v16  ;;  %v336_v31 = vmul.f32 %v2966_v48, %v2966_v48  ;;  %v425_v9 = vmul.f32 %v2967_v37, %v2967_v37  ;;  %v2973_v13 = vld [vmem:[#allocation15_spill] sm:$0xff] }
  0x75   : > { %v1057_v22 = vadd.f32 %v1053_v61, %v997_v25  ;;  %v599_v39 = vadd.f32 %v593_v18, %v509_v50  ;;  %v269_v21 = vmul.f32 0.0010283801, %v263_v1  ;;  %v426_v51 = vmul.f32 %v2968_v52, %v2968_v52  ;;  %v2974_v25 = vld [vmem:[#allocation16_spill] sm:$0xff] }
  0x76   : > { %v270_v57 = vmul.f32 0.0010283801, %v264_v2  ;;  %v341_v14 = vmul.f32 0.007598758, %v335_v30  ;;  %v2414_v60 = vmul.f32 0.007598758, %v336_v31  ;;  %v515_v24 = vmul.f32 %v2969_v5, %v2969_v5 }
  0x77   : > { %v1132_v10 = vadd.f32 %v1126_v8, %v1057_v22  ;;  %v431_v29 = vmul.f32 0.036000773, %v425_v9  ;;  %v689_v20 = vadd.f32 %v683_v27, %v599_v39  ;;  %v432_v15 = vmul.f32 0.036000773, %v426_v51 }
  0x78   : > { %v516_v6 = vmul.f32 %v2970_v42, %v2970_v42  ;;  %v347_v34 = vadd.f32 %v341_v14, %v269_v21  ;;  %v348_v58 = vadd.f32 %v2414_v60, %v270_v57  ;;  %v605_v63 = vmul.f32 %v2971_v41, %v2971_v41 }
  0x79   : > { %1739 = vmatmul.msk.f32.gmra.mxu0 %vm1137_vm0, %v1132_v10  ;;  %v695_v44 = vmul.f32 %v2972_v19, %v2972_v19  ;;  %v779_v32 = vadd.f32 %v773_v55, %v689_v20  ;;  %v1082_v53 = vmul.f32 0.0010283801, %v2365_v45  ;;  %v521_v4 = vmul.f32 0.10936069, %v515_v24 }
  0x7a   : > { %v785_v62 = vmul.f32 %v2973_v13, %v2973_v13  ;;  %v2429_v11 = vadd.f32 %v504_v59, %v420_v54  ;;  %v437_v61 = vadd.f32 %v431_v29, %v347_v34  ;;  %v522_v8 = vmul.f32 0.10936069, %v516_v6 }
  0x7b   : > { %v611_v46 = vmul.f32 0.21300554, %v605_v63  ;;  %v869_v49 = vadd.f32 %v863_v17, %v779_v32  ;;  %v438_v18 = vadd.f32 %v432_v15, %v348_v58  ;;  %v701_v27 = vmul.f32 0.26601171, %v695_v44 }
  0x7c   : > { %v875_v50 = vmul.f32 %v2974_v25, %v2974_v25  ;;  %v527_v1 = vadd.f32 %v521_v4, %v437_v61  ;;  %v791_v23 = vmul.f32 0.21300554, %v785_v62  ;;  %v962_v55 = vmul.f32 0.036000773, %v264_v2 }
  0x7d   : > { %v275_v22 = vmul.f32 %v2345_v7, %v2345_v7  ;;  %v953_v30 = vadd.f32 %v947_v12, %v869_v49  ;;  %v276_v59 = vmul.f32 %v2353_v40, %v2353_v40  ;;  %v353_v54 = vmul.f32 %v2348_v43, %v2348_v43 }
  0x7e   : > { %v881_v48 = vmul.f32 0.10936069, %v875_v50  ;;  %v617_v17 = vadd.f32 %v611_v46, %v527_v1  ;;  %v354_v9 = vmul.f32 %v2362_v36, %v2362_v36  ;;  %v443_v39 = vmul.f32 %v2356_v56, %v2356_v56 }
  0x7f   : > { %v281_v31 = vmul.f32 0.0010283801, %v275_v22  ;;  %v1022_v2 = vadd.f32 %v953_v30, %v2373_v3  ;;  %v282_v21 = vmul.f32 0.0010283801, %v276_v59  ;;  %v359_v57 = vmul.f32 0.007598758, %v353_v54 }
  0x80   : > { %v444_v12 = vmul.f32 %v2365_v45, %v2365_v45  ;;  %v707_v52 = vadd.f32 %v701_v27, %v617_v17  ;;  %v2446_v10 = vmul.f32 0.007598758, %v354_v9  ;;  %v449_v14 = vmul.f32 0.036000773, %v443_v39  ;;  %v1792_v9 = vld [vmem:[%s1897_s23 + $0x29] sm:$0xff] }
  0x81   : > { %v533_v29 = vmul.f32 %v2368_v38, %v2368_v38  ;;  %v1088_v20 = vadd.f32 %v1082_v53, %v1022_v2  ;;  %v365_v15 = vadd.f32 %v359_v57, %v281_v31  ;;  %v534_v42 = vmul.f32 %v2380_v35, %v2380_v35 }
  0x82   : > { %v450_v24 = vmul.f32 0.036000773, %v444_v12  ;;  %v797_v6 = vadd.f32 %v791_v23, %v707_v52  ;;  %v366_v3 = vadd.f32 %v2446_v10, %v282_v21  ;;  %v623_v58 = vmul.f32 %v2384_v0, %v2384_v0 }
  0x83   : > { %v539_v34 = vmul.f32 0.10936069, %v533_v29  ;;  %1722 = vmatmul.msk.f32.gmra.mxu1 %vm1137_vm0, %v1088_v20  ;;  %v2456_v63 = vadd.f32 %v522_v8, %v438_v18  ;;  %v455_v44 = vadd.f32 %v449_v14, %v365_v15  ;;  %v713_v32 = vmul.f32 %v2387_v33, %v2387_v33  ;;  %v1794_v29 = vld [vmem:[%s1897_s23 + $0x2b] sm:$0xff] }
  0x84   : > { %v803_v53 = vmul.f32 %v2393_v26, %v2393_v26  ;;  %v887_v4 = vadd.f32 %v881_v48, %v797_v6  ;;  %v1097_v62 = vmul.f32 0.0010283801, %v426_v51  ;;  %v629_v61 = vmul.f32 0.21300554, %v623_v58  ;;  %v1791_v48 = vld [vmem:[%s1897_s23 + $0x28] sm:$0xff] }
  0x85   : > { %v893_v46 = vmul.f32 %v2396_v28, %v2396_v28  ;;  %v456_v49 = vadd.f32 %v450_v24, %v366_v3  ;;  %v540_v27 = vmul.f32 0.10936069, %v534_v42  ;;  %v545_v8 = vadd.f32 %v539_v34, %v455_v44 }
  0x86   : > { %v719_v18 = vmul.f32 0.26601171, %v713_v32  ;;  %v968_v50 = vadd.f32 %v962_v55, %v887_v4  ;;  %v809_v1 = vmul.f32 0.21300554, %v803_v53  ;;  %v977_v22 = vmul.f32 0.036000773, %v276_v59 }
  0x87   : > { %v899_v23 = vmul.f32 0.10936069, %v893_v46  ;;  %v635_v30 = vadd.f32 %v629_v61, %v545_v8  ;;  %v287_v54 = vmul.f32 %v2345_v7, %v2963_v47  ;;  %v288_v51 = vmul.f32 %v1791_v48, %v2353_v40  ;;  %v1793_v59 = vld [vmem:[%s1897_s23 + $0x2a] sm:$0xff] }
  0x88   : > { %v371_v17 = vmul.f32 %v2348_v43, %v2965_v16  ;;  %v1034_v31 = vadd.f32 %v968_v50, %v2414_v60  ;;  %v372_v39 = vmul.f32 %v1792_v9, %v2362_v36  ;;  %v461_v55 = vmul.f32 %v2356_v56, %v2967_v37  ;;  %v2511_v46 = vld [vmem:[%s2098_s26 + $0x30] sm:$0xff] }
  0x89   : > { %v462_v2 = vmul.f32 %v1793_v59, %v2365_v45  ;;  %v725_v21 = vadd.f32 %v719_v18, %v635_v30  ;;  %v293_v7 = vmul.f32 0.0010283801, %v287_v54  ;;  %v294_v47 = vmul.f32 0.0010283801, %v288_v51  ;;  %v2519_v54 = vld [vmem:[%s2098_s26 + $0x31] sm:$0xff] }
  0x8a   : > { %v377_v57 = vmul.f32 0.007598758, %v371_v17  ;;  %v1103_v40 = vadd.f32 %v1097_v62, %v1034_v31  ;;  %v2477_v52 = vmul.f32 0.007598758, %v372_v39  ;;  %v467_v43 = vmul.f32 0.036000773, %v461_v55 }
  0x8b   : > { %v468_v16 = vmul.f32 0.036000773, %v462_v2  ;;  %v815_v60 = vadd.f32 %v809_v1, %v725_v21  ;;  %v551_v36 = vmul.f32 %v2368_v38, %v2969_v5  ;;  %v552_v56 = vmul.f32 %v1794_v29, %v2380_v35  ;;  %v1796_v48 = vld [vmem:[%s1897_s23 + $0x2d] sm:$0xff] }
  0x8c   : > { %v383_v14 = vadd.f32 %v377_v57, %v293_v7  ;;  %1728 = vmatmul.msk.f32.gmra.mxu2 %vm1137_vm0, %v1103_v40  ;;  %v384_v45 = vadd.f32 %v2477_v52, %v294_v47  ;;  %v641_v37 = vmul.f32 %v2384_v0, %v2971_v41  ;;  %v731_v20 = vmul.f32 %v2387_v33, %v2972_v19  ;;  %v2494_v19 = vld [vmem:[%s2098_s26 + $0x2c] sm:$0xff] }
  0x8d   : > { %v821_v15 = vmul.f32 %v2393_v26, %v2973_v13  ;;  %v905_v24 = vadd.f32 %v899_v23, %v815_v60  ;;  %v557_v5 = vmul.f32 0.10936069, %v551_v36  ;;  %v558_v42 = vmul.f32 0.10936069, %v552_v56  ;;  %v2497_v26 = vld [vmem:[%s2098_s26 + $0x2d] sm:$0xff] }
  0x8e   : > { %v473_v38 = vadd.f32 %v467_v43, %v383_v14  ;;  %v1112_v35 = vmul.f32 0.0010283801, %v444_v12  ;;  %v474_v6 = vadd.f32 %v468_v16, %v384_v45  ;;  %v647_v3 = vmul.f32 0.21300554, %v641_v37  ;;  %v1795_v23 = vld [vmem:[%s1897_s23 + $0x2c] sm:$0xff] }
  0x8f   : > { %v737_v34 = vmul.f32 0.26601171, %v731_v20  ;;  %v983_v58 = vadd.f32 %v977_v22, %v905_v24  ;;  %v827_v41 = vmul.f32 0.21300554, %v821_v15  ;;  %v911_v33 = vmul.f32 %v2396_v28, %v2974_v25  ;;  %v2505_v28 = vld [vmem:[%s2098_s26 + $0x2e] sm:$0xff] }
  0x90   : > { %v563_v0 = vadd.f32 %v557_v5, %v473_v38  ;;  %v546_v13 = vadd.f32 %v540_v27, %v456_v49  ;;  %v992_v44 = vmul.f32 0.036000773, %v288_v51  ;;  %v594_v12 = vmul.f32 0.21300554, %v2494_v19  ;;  %v2508_v25 = vld [vmem:[%s2098_s26 + $0x2f] sm:$0xff] }
  0x91   : > { %v684_v32 = vmul.f32 0.26601171, %v2497_v26  ;;  %v1046_v53 = vadd.f32 %v983_v58, %v2446_v10  ;;  %v2502_v4 = vadd.f32 %v558_v42, %v474_v6  ;;  %v1127_v61 = vmul.f32 0.0010283801, %v462_v2  ;;  %v1797_v17 = vld [vmem:[%s1897_s23 + $0x2e] sm:$0xff] }
  0x92   : > { %v653_v62 = vadd.f32 %v647_v3, %v563_v0  ;;  %v917_v49 = vmul.f32 0.10936069, %v911_v33  ;;  %v600_v27 = vadd.f32 %v594_v12, %v2429_v11  ;;  %v774_v8 = vmul.f32 0.21300554, %v2505_v28  ;;  %v1798_v31 = vld [vmem:[%s1897_s23 + $0x2f] sm:$0xff] }
  0x93   : > { %v864_v10 = vmul.f32 0.10936069, %v2508_v25  ;;  %v1118_v18 = vadd.f32 %v1112_v35, %v1046_v53  ;;  %v948_v1 = vmul.f32 0.036000773, %v2511_v46  ;;  %v606_v22 = vmul.f32 %v1795_v23, %v1795_v23  ;;  %v2527_v59 = vld [vmem:[%s2098_s26 + $0x32] sm:$0xff] }
  0x94   : > { %v743_v50 = vadd.f32 %v737_v34, %v653_v62  ;;  %v690_v30 = vadd.f32 %v684_v32, %v600_v27  ;;  %v696_v51 = vmul.f32 %v1796_v48, %v1796_v48  ;;  %v786_v11 = vmul.f32 %v1797_v17, %v1797_v17  ;;  %v1799_v21 = vld [vmem:[%s1897_s23 + $0x30] sm:$0xff] }
  0x95   : > { %v876_v9 = vmul.f32 %v1798_v31, %v1798_v31  ;;  %1734 = vmatmul.msk.f32.gmra.mxu3 %vm1137_vm0, %v1118_v18  ;;  %v1018_v55 = vmul.f32 0.007598758, %v2519_v54  ;;  %v612_v2 = vmul.f32 0.21300554, %v606_v22  ;;  %v958_v7 = vmul.f32 %v1799_v21, %v1799_v21  ;;  %v1800_v43 = vld [vmem:[%s1897_s23 + $0x31] sm:$0xff] }
  0x96   : > { %v833_v39 = vadd.f32 %v827_v41, %v743_v50  ;;  %v780_v47 = vadd.f32 %v774_v8, %v690_v30  ;;  %v1083_v57 = vmul.f32 0.0010283801, %v2527_v59  ;;  %v702_v40 = vmul.f32 0.26601171, %v696_v51  ;;  %v1801_v38 = vld [vmem:[%s1897_s23 + $0x32] sm:$0xff] }
  0x97   : > { %v1027_v16 = vmul.f32 %v1800_v43, %v1800_v43  ;;  %v618_v14 = vadd.f32 %v612_v2, %v2456_v63  ;;  %v792_v36 = vmul.f32 0.21300554, %v786_v11  ;;  %v882_v29 = vmul.f32 0.10936069, %v876_v9 }
  0x98   : > { %v923_v60 = vadd.f32 %v917_v49, %v833_v39  ;;  %v870_v56 = vadd.f32 %v864_v10, %v780_v47  ;;  %v963_v45 = vmul.f32 0.036000773, %v958_v7  ;;  %v624_v37 = vmul.f32 %v2494_v19, %v2494_v19 }
  0x99   : > { %v714_v20 = vmul.f32 %v2497_v26, %v2497_v26  ;;  %v708_v24 = vadd.f32 %v702_v40, %v618_v14  ;;  %v1093_v5 = vmul.f32 %v1801_v38, %v1801_v38  ;;  %v804_v42 = vmul.f32 %v2505_v28, %v2505_v28  ;;  %v2572_v40 = vld [vmem:[%s2098_s26 + $0x49] sm:$0xff] }
  0x9a   : > { %v998_v15 = vadd.f32 %v992_v44, %v923_v60  ;;  %v954_v35 = vadd.f32 %v948_v1, %v870_v56  ;;  %v630_v6 = vmul.f32 0.21300554, %v624_v37  ;;  %v894_v3 = vmul.f32 %v2508_v25, %v2508_v25 }
  0x9b   : > { %v720_v63 = vmul.f32 0.26601171, %v714_v20  ;;  %v798_v58 = vadd.f32 %v792_v36, %v708_v24  ;;  %v1030_v0 = vmul.f32 0.007598758, %v1027_v16  ;;  %v810_v41 = vmul.f32 0.21300554, %v804_v42 }
  0x9c   : > { %v1058_v34 = vadd.f32 %v998_v15, %v2477_v52  ;;  %v1023_v33 = vadd.f32 %v1018_v55, %v954_v35  ;;  %v636_v12 = vadd.f32 %v630_v6, %v546_v13  ;;  %v973_v44 = vmul.f32 %v2511_v46, %v2511_v46  ;;  %v2592_v42 = vld [vmem:[%s2098_s26 + $0x4b] sm:$0xff] }
  0x9d   : > { %v1039_v32 = vmul.f32 %v2519_v54, %v2519_v54  ;;  %v888_v62 = vadd.f32 %v882_v29, %v798_v58  ;;  %v1098_v49 = vmul.f32 0.0010283801, %v1093_v5  ;;  %v642_v27 = vmul.f32 %v1795_v23, %v2494_v19  ;;  %v2595_v35 = vld [vmem:[%s2098_s26 + $0x44] sm:$0xff] }
  0x9e   : > { %v1133_v53 = vadd.f32 %v1127_v61, %v1058_v34  ;;  %v1089_v8 = vadd.f32 %v1083_v57, %v1023_v33  ;;  %v726_v10 = vadd.f32 %v720_v63, %v636_v12  ;;  %v900_v18 = vmul.f32 0.10936069, %v894_v3  ;;  %v2600_v58 = vld [vmem:[%s2098_s26 + $0x45] sm:$0xff] }
  0x9f   : > { %v1108_v52 = vmul.f32 %v2527_v59, %v2527_v59  ;;  %v969_v13 = vadd.f32 %v963_v45, %v888_v62  ;;  %v978_v50 = vmul.f32 0.036000773, %v973_v44  ;;  %v648_v1 = vmul.f32 0.21300554, %v642_v27 }
  0xa0   : > { %1740 = vmatmul.msk.f32.gmra.mxu0 %vm1137_vm0, %v1133_v53  ;;  %v732_v22 = vmul.f32 %v1796_v48, %v2497_v26  ;;  %1723 = vmatmul.msk.f32.gmra.mxu1 %vm1137_vm0, %v1089_v8  ;;  %v816_v19 = vadd.f32 %v810_v41, %v726_v10  ;;  %v1042_v61 = vmul.f32 0.007598758, %v1039_v32  ;;  %v822_v23 = vmul.f32 %v1797_v17, %v2505_v28  ;;  %v2558_v26 = vld [vmem:[%s2098_s26 + $0x40] sm:$0xff]  ;;  %v2565_v17 = vld [vmem:[%s2098_s26 + $0x48] sm:$0xff] }
  0xa1   : > { %v912_v30 = vmul.f32 %v1798_v31, %v2508_v25  ;;  %v1035_v51 = vadd.f32 %v1030_v0, %v969_v13  ;;  %v654_v11 = vadd.f32 %v648_v1, %v2502_v4  ;;  %v988_v39 = vmul.f32 %v1799_v21, %v2511_v46  ;;  %v2561_v48 = vld [vmem:[%s2098_s26 + $0x41] sm:$0xff]  ;;  %v2575_v46 = vld [vmem:[%s2098_s26 + $0x4a] sm:$0xff] }
  0xa2   : > { %v738_v9 = vmul.f32 0.26601171, %v732_v22  ;;  %v906_v55 = vadd.f32 %v900_v18, %v816_v19  ;;  %v1113_v2 = vmul.f32 0.0010283801, %v1108_v52  ;;  %v828_v7 = vmul.f32 0.21300554, %v822_v23 }
  0xa3   : > { %v1051_v28 = vmul.f32 %v1800_v43, %v2519_v54  ;;  %v2568_v25 = vld [vmem:[%s2098_s26 + $0x42] sm:$0xff]  ;;  %v1104_v31 = vadd.f32 %v1098_v49, %v1035_v51  ;;  %v918_v47 = vmul.f32 0.10936069, %v912_v30  ;;  %v1123_v57 = vmul.f32 %v1801_v38, %v2527_v59 }
  0xa4   : > { %v744_v4 = vadd.f32 %v738_v9, %v654_v11  ;;  %v2578_v21 = vld [vmem:[%s2098_s26 + $0x43] sm:$0xff]  ;;  %v984_v16 = vadd.f32 %v978_v50, %v906_v55  ;;  %v259_v60 = vmul.f32 0.0010283801, %v2558_v26  ;;  %v260_v54 = vmul.f32 0.0010283801, %v2565_v17 }
  0xa5   : > { %v325_v43 = vmul.f32 0.007598758, %v2561_v48  ;;  %1729 = vmatmul.msk.f32.gmra.mxu2 %vm1137_vm0, %v1104_v31  ;;  %v993_v36 = vmul.f32 0.036000773, %v988_v39  ;;  %v2585_v59 = vmul.f32 0.007598758, %v2572_v40 }
  0xa6   : > { %v834_v14 = vadd.f32 %v828_v7, %v744_v4  ;;  %v415_v29 = vmul.f32 0.036000773, %v2568_v25  ;;  %v1047_v56 = vadd.f32 %v1042_v61, %v984_v16  ;;  %v416_v37 = vmul.f32 0.036000773, %v2575_v46  ;;  %v2603_v0 = vld [vmem:[%s2098_s26 + $0x46] sm:$0xff] }
  0xa7   : > { %v331_v45 = vadd.f32 %v325_v43, %v259_v60  ;;  %v505_v20 = vmul.f32 0.10936069, %v2578_v21  ;;  %v1054_v24 = vmul.f32 0.007598758, %v1051_v28  ;;  %v1128_v38 = vmul.f32 0.0010283801, %v1123_v57 }
  0xa8   : > { %v924_v15 = vadd.f32 %v918_v47, %v834_v14  ;;  %v332_v5 = vadd.f32 %v2585_v59, %v260_v54  ;;  %v1119_v6 = vadd.f32 %v1113_v2, %v1047_v56  ;;  %v506_v3 = vmul.f32 0.10936069, %v2592_v42  ;;  %v2608_v32 = vld [vmem:[%s2098_s26 + $0x47] sm:$0xff] }
  0xa9   : > { %v421_v63 = vadd.f32 %v415_v29, %v331_v45  ;;  %v595_v34 = vmul.f32 0.21300554, %v2595_v35  ;;  %v685_v12 = vmul.f32 0.26601171, %v2600_v58  ;;  %v775_v44 = vmul.f32 0.21300554, %v2603_v0 }
  0xaa   : > { %v999_v41 = vadd.f32 %v993_v36, %v924_v15  ;;  %v422_v33 = vadd.f32 %v416_v37, %v332_v5  ;;  %1735 = vmatmul.msk.f32.gmra.mxu3 %vm1137_vm0, %v1119_v6  ;;  %v865_v62 = vmul.f32 0.10936069, %v2608_v32  ;;  %v2613_v49 = vld [vmem:[%s1897_s23 + $0x40] sm:$0xff]  ;;  %v2618_v8 = vld [vmem:[%s1897_s23 + $0x48] sm:$0xff]  ;;  %v949_v52 = vmul.f32 0.036000773, %v2565_v17 }
  0xab   : > { %v511_v53 = vadd.f32 %v505_v20, %v421_v63  ;;  %v265_v27 = vmul.f32 %v2613_v49, %v2613_v49  ;;  %v266_v10 = vmul.f32 %v2618_v8, %v2618_v8  ;;  %v2624_v13 = vld [vmem:[%s1897_s23 + $0x41] sm:$0xff]  ;;  %v2629_v1 = vld [vmem:[%s1897_s23 + $0x49] sm:$0xff]  ;;  %v1084_v29 = vmul.f32 0.0010283801, %v2575_v46 }
  0xac   : > { %v1059_v18 = vadd.f32 %v1054_v24, %v999_v41  ;;  %v337_v50 = vmul.f32 %v2624_v13, %v2624_v13  ;;  %v338_v22 = vmul.f32 %v2629_v1, %v2629_v1  ;;  %v2634_v30 = vld [vmem:[%s1897_s23 + $0x42] sm:$0xff]  ;;  %v2641_v55 = vld [vmem:[%s1897_s23 + $0x4a] sm:$0xff]  ;;  %v2668_v20 = vadd.f32 %v506_v3, %v422_v33 }
  0xad   : > { %v601_v19 = vadd.f32 %v595_v34, %v511_v53  ;;  %v271_v61 = vmul.f32 0.0010283801, %v265_v27  ;;  %v272_v23 = vmul.f32 0.0010283801, %v266_v10  ;;  %v427_v51 = vmul.f32 %v2634_v30, %v2634_v30  ;;  %v2646_v31 = vld [vmem:[%s1897_s23 + $0x43] sm:$0xff]  ;;  %v2651_v47 = vld [vmem:[%s1897_s23 + $0x4b] sm:$0xff] }
  0xae   : > { %v1134_v11 = vadd.f32 %v1128_v38, %v1059_v18  ;;  %v343_v9 = vmul.f32 0.007598758, %v337_v50  ;;  %v2638_v39 = vmul.f32 0.007598758, %v338_v22  ;;  %v428_v2 = vmul.f32 %v2641_v55, %v2641_v55  ;;  %v2658_v43 = vld [vmem:[%s1897_s23 + $0x44] sm:$0xff] }
  0xaf   : > { %v691_v7 = vadd.f32 %v685_v12, %v601_v19  ;;  %v433_v28 = vmul.f32 0.036000773, %v427_v51  ;;  %v517_v4 = vmul.f32 %v2646_v31, %v2646_v31  ;;  %v518_v57 = vmul.f32 %v2651_v47, %v2651_v47  ;;  %v2664_v45 = vld [vmem:[%s1897_s23 + $0x45] sm:$0xff] }
  0xb0   : > { %1741 = vmatmul.msk.f32.gmra.mxu0 %vm1137_vm0, %v1134_v11  ;;  %v349_v16 = vadd.f32 %v343_v9, %v271_v61  ;;  %v350_v60 = vadd.f32 %v2638_v39, %v272_v23  ;;  %v434_v54 = vmul.f32 0.036000773, %v428_v2  ;;  %v607_v14 = vmul.f32 %v2658_v43, %v2658_v43  ;;  %v2671_v38 = vld [vmem:[%s1897_s23 + $0x46] sm:$0xff] }
  0xb1   : > { %v781_v36 = vadd.f32 %v775_v44, %v691_v7  ;;  %v523_v56 = vmul.f32 0.10936069, %v517_v4  ;;  %v697_v37 = vmul.f32 %v2664_v45, %v2664_v45  ;;  %v787_v5 = vmul.f32 %v2671_v38, %v2671_v38  ;;  %v2676_v41 = vld [vmem:[%s1897_s23 + $0x47] sm:$0xff] }
  0xb2   : > { %v439_v15 = vadd.f32 %v433_v28, %v349_v16  ;;  %v613_v24 = vmul.f32 0.21300554, %v607_v14  ;;  %v440_v63 = vadd.f32 %v434_v54, %v350_v60  ;;  %v524_v34 = vmul.f32 0.10936069, %v518_v57 }
  0xb3   : > { %v871_v6 = vadd.f32 %v865_v62, %v781_v36  ;;  %v877_v12 = vmul.f32 %v2676_v41, %v2676_v41  ;;  %v703_v53 = vmul.f32 0.26601171, %v697_v37  ;;  %v793_v27 = vmul.f32 0.21300554, %v787_v5 }
  0xb4   : > { %v529_v44 = vadd.f32 %v523_v56, %v439_v15  ;;  %v964_v3 = vmul.f32 0.036000773, %v266_v10  ;;  %v277_v50 = vmul.f32 %v2558_v26, %v2558_v26  ;;  %v278_v22 = vmul.f32 %v2565_v17, %v2565_v17 }
  0xb5   : > { %v955_v33 = vadd.f32 %v949_v52, %v871_v6  ;;  %v883_v18 = vmul.f32 0.10936069, %v877_v12  ;;  %v355_v19 = vmul.f32 %v2561_v48, %v2561_v48  ;;  %v356_v61 = vmul.f32 %v2572_v40, %v2572_v40 }
  0xb6   : > { %v619_v62 = vadd.f32 %v613_v24, %v529_v44  ;;  %v445_v23 = vmul.f32 %v2568_v25, %v2568_v25  ;;  %v283_v52 = vmul.f32 0.0010283801, %v277_v50  ;;  %v284_v51 = vmul.f32 0.0010283801, %v278_v22 }
  0xb7   : > { %v1024_v10 = vadd.f32 %v955_v33, %v2585_v59  ;;  %v446_v11 = vmul.f32 %v2575_v46, %v2575_v46  ;;  %v361_v7 = vmul.f32 0.007598758, %v355_v19  ;;  %v2693_v28 = vmul.f32 0.007598758, %v356_v61 }
  0xb8   : > { %v709_v9 = vadd.f32 %v703_v53, %v619_v62  ;;  %v451_v4 = vmul.f32 0.036000773, %v445_v23  ;;  %v535_v60 = vmul.f32 %v2578_v21, %v2578_v21  ;;  %v536_v54 = vmul.f32 %v2592_v42, %v2592_v42 }
  0xb9   : > { %v1090_v57 = vadd.f32 %v1084_v29, %v1024_v10  ;;  %v452_v16 = vmul.f32 0.036000773, %v446_v11  ;;  %v367_v59 = vadd.f32 %v361_v7, %v283_v52  ;;  %v368_v36 = vadd.f32 %v2693_v28, %v284_v51 }
  0xba   : > { %v799_v14 = vadd.f32 %v793_v27, %v709_v9  ;;  %v625_v56 = vmul.f32 %v2595_v35, %v2595_v35  ;;  %v2703_v37 = vadd.f32 %v524_v34, %v440_v63  ;;  %v541_v15 = vmul.f32 0.10936069, %v535_v60 }
  0xbb   : > { %1724 = vmatmul.msk.f32.gmra.mxu1 %vm1137_vm0, %v1090_v57  ;;  %v715_v29 = vmul.f32 %v2600_v58, %v2600_v58  ;;  %v805_v24 = vmul.f32 %v2603_v0, %v2603_v0  ;;  %v1099_v6 = vmul.f32 0.0010283801, %v428_v2  ;;  %v457_v12 = vadd.f32 %v451_v4, %v367_v59 }
  0xbc   : > { %v889_v5 = vadd.f32 %v883_v18, %v799_v14  ;;  %v631_v44 = vmul.f32 0.21300554, %v625_v56  ;;  %v458_v53 = vadd.f32 %v452_v16, %v368_v36  ;;  %v542_v27 = vmul.f32 0.10936069, %v536_v54 }
  0xbd   : > { %v721_v33 = vmul.f32 0.26601171, %v715_v29  ;;  %v895_v50 = vmul.f32 %v2608_v32, %v2608_v32  ;;  %v547_v63 = vadd.f32 %v541_v15, %v457_v12  ;;  %v811_v34 = vmul.f32 0.21300554, %v805_v24  ;;  %v2759_v12 = vld [vmem:[%s2098_s26 + $0x4f] sm:$0xff] }
  0xbe   : > { %v970_v62 = vadd.f32 %v964_v3, %v889_v5  ;;  %v979_v19 = vmul.f32 0.036000773, %v278_v22  ;;  %v289_v23 = vmul.f32 %v2613_v49, %v2558_v26  ;;  %v290_v18 = vmul.f32 %v2618_v8, %v2565_v17 }
  0xbf   : > { %v901_v61 = vmul.f32 0.10936069, %v895_v50  ;;  %v373_v2 = vmul.f32 %v2624_v13, %v2561_v48  ;;  %v637_v52 = vadd.f32 %v631_v44, %v547_v63  ;;  %v374_v51 = vmul.f32 %v2629_v1, %v2572_v40  ;;  %v2762_v44 = vld [vmem:[%s2098_s26 + $0x50] sm:$0xff] }
  0xc0   : > { %v1036_v10 = vadd.f32 %v970_v62, %v2638_v39  ;;  %v463_v3 = vmul.f32 %v2634_v30, %v2568_v25  ;;  %v295_v22 = vmul.f32 0.0010283801, %v289_v23  ;;  %v296_v9 = vmul.f32 0.0010283801, %v290_v18  ;;  %v1814_v50 = vld [vmem:[%s1897_s23 + $0x4c] sm:$0xff] }
  0xc1   : > { %v379_v7 = vmul.f32 0.007598758, %v373_v2  ;;  %v464_v26 = vmul.f32 %v2641_v55, %v2575_v46  ;;  %v727_v17 = vadd.f32 %v721_v33, %v637_v52  ;;  %v2724_v8 = vmul.f32 0.007598758, %v374_v51  ;;  %v1817_v51 = vld [vmem:[%s1897_s23 + $0x4f] sm:$0xff] }
  0xc2   : > { %v1105_v49 = vadd.f32 %v1099_v6, %v1036_v10  ;;  %v469_v48 = vmul.f32 0.036000773, %v463_v3  ;;  %v553_v4 = vmul.f32 %v2646_v31, %v2578_v21  ;;  %v554_v40 = vmul.f32 %v2651_v47, %v2592_v42  ;;  %v2774_v10 = vld [vmem:[%s2098_s26 + $0x52] sm:$0xff] }
  0xc3   : > { %v385_v13 = vadd.f32 %v379_v7, %v295_v22  ;;  %v470_v39 = vmul.f32 0.036000773, %v464_v26  ;;  %v817_v25 = vadd.f32 %v811_v34, %v727_v17  ;;  %v386_v1 = vadd.f32 %v2724_v8, %v296_v9  ;;  %v2768_v34 = vld [vmem:[%s2098_s26 + $0x51] sm:$0xff] }
  0xc4   : > { %1730 = vmatmul.msk.f32.gmra.mxu2 %vm1137_vm0, %v1105_v49  ;;  %v643_v46 = vmul.f32 %v2658_v43, %v2595_v35  ;;  %v733_v30 = vmul.f32 %v2664_v45, %v2600_v58  ;;  %v559_v57 = vmul.f32 0.10936069, %v553_v4  ;;  %v560_v16 = vmul.f32 0.10936069, %v554_v40  ;;  %v2743_v58 = vld [vmem:[%s2098_s26 + $0x4c] sm:$0xff] }
  0xc5   : > { %v475_v55 = vadd.f32 %v469_v48, %v385_v13  ;;  %v823_v21 = vmul.f32 %v2671_v38, %v2603_v0  ;;  %v2738_v42 = vadd.f32 %v542_v27, %v458_v53  ;;  %v907_v31 = vadd.f32 %v901_v61, %v817_v25  ;;  %v2746_v43 = vld [vmem:[%s2098_s26 + $0x4d] sm:$0xff] }
  0xc6   : > { %v476_v47 = vadd.f32 %v470_v39, %v386_v1  ;;  %v649_v60 = vmul.f32 0.21300554, %v643_v46  ;;  %v1114_v54 = vmul.f32 0.0010283801, %v446_v11  ;;  %v739_v59 = vmul.f32 0.26601171, %v733_v30 }
  0xc7   : > { %v565_v14 = vadd.f32 %v559_v57, %v475_v55  ;;  %v913_v35 = vmul.f32 %v2676_v41, %v2608_v32  ;;  %v985_v45 = vadd.f32 %v979_v19, %v907_v31  ;;  %v829_v0 = vmul.f32 0.21300554, %v823_v21  ;;  %v2753_v32 = vld [vmem:[%s2098_s26 + $0x4e] sm:$0xff] }
  0xc8   : > { %v994_v38 = vmul.f32 0.036000773, %v290_v18  ;;  %v596_v36 = vmul.f32 0.21300554, %v2743_v58  ;;  %v2749_v56 = vadd.f32 %v560_v16, %v476_v47  ;;  %v1129_v15 = vmul.f32 0.0010283801, %v464_v26 }
  0xc9   : > { %v655_v11 = vadd.f32 %v649_v60, %v565_v14  ;;  %v686_v29 = vmul.f32 0.26601171, %v2746_v43  ;;  %v1048_v41 = vadd.f32 %v985_v45, %v2693_v28  ;;  %v919_v24 = vmul.f32 0.10936069, %v913_v35  ;;  %v1816_v61 = vld [vmem:[%s1897_s23 + $0x4e] sm:$0xff] }
  0xca   : > { %v602_v5 = vadd.f32 %v596_v36, %v2668_v20  ;;  %v776_v6 = vmul.f32 0.21300554, %v2753_v32  ;;  %v866_v27 = vmul.f32 0.10936069, %v2759_v12  ;;  %v950_v33 = vmul.f32 0.036000773, %v2762_v44 }
  0xcb   : > { %v745_v53 = vadd.f32 %v739_v59, %v655_v11  ;;  %v608_v62 = vmul.f32 %v1814_v50, %v1814_v50  ;;  %v1120_v28 = vadd.f32 %v1114_v54, %v1048_v41  ;;  %v1815_v20 = vld [vmem:[%s1897_s23 + $0x4d] sm:$0xff]  ;;  %v788_v23 = vmul.f32 %v1816_v61, %v1816_v61 }
  0xcc   : > { %v692_v63 = vadd.f32 %v686_v29, %v602_v5  ;;  %v698_v19 = vmul.f32 %v1815_v20, %v1815_v20  ;;  %v1019_v2 = vmul.f32 0.007598758, %v2768_v34  ;;  %v878_v3 = vmul.f32 %v1817_v51, %v1817_v51  ;;  %v1818_v26 = vld [vmem:[%s1897_s23 + $0x50] sm:$0xff] }
  0xcd   : > { %v835_v18 = vadd.f32 %v829_v0, %v745_v53  ;;  %v614_v52 = vmul.f32 0.21300554, %v608_v62  ;;  %1736 = vmatmul.msk.f32.gmra.mxu3 %vm1137_vm0, %v1120_v28  ;;  %v1085_v9 = vmul.f32 0.0010283801, %v2774_v10  ;;  %v959_v49 = vmul.f32 %v1818_v26, %v1818_v26  ;;  %v1819_v39 = vld [vmem:[%s1897_s23 + $0x51] sm:$0xff] }
  0xce   : > { %v782_v22 = vadd.f32 %v776_v6, %v692_v63  ;;  %v704_v7 = vmul.f32 0.26601171, %v698_v19  ;;  %v794_v13 = vmul.f32 0.21300554, %v788_v23  ;;  %v1028_v4 = vmul.f32 %v1819_v39, %v1819_v39  ;;  %v1820_v1 = vld [vmem:[%s1897_s23 + $0x52] sm:$0xff] }
  0xcf   : > { %v925_v17 = vadd.f32 %v919_v24, %v835_v18  ;;  %v620_v48 = vadd.f32 %v614_v52, %v2703_v37  ;;  %v884_v25 = vmul.f32 0.10936069, %v878_v3  ;;  %v1094_v46 = vmul.f32 %v1820_v1, %v1820_v1 }
  0xd0   : > { %v872_v40 = vadd.f32 %v866_v27, %v782_v22  ;;  %v626_v30 = vmul.f32 %v2743_v58, %v2743_v58  ;;  %v716_v16 = vmul.f32 %v2746_v43, %v2746_v43  ;;  %v806_v21 = vmul.f32 %v2753_v32, %v2753_v32 }
  0xd1   : > { %v1000_v55 = vadd.f32 %v994_v38, %v925_v17  ;;  %v710_v57 = vadd.f32 %v704_v7, %v620_v48  ;;  %v965_v37 = vmul.f32 0.036000773, %v959_v49  ;;  %v896_v60 = vmul.f32 %v2759_v12, %v2759_v12 }
  0xd2   : > { %v956_v31 = vadd.f32 %v950_v33, %v872_v40  ;;  %v632_v47 = vmul.f32 0.21300554, %v626_v30  ;;  %v1031_v59 = vmul.f32 0.007598758, %v1028_v4  ;;  %v722_v35 = vmul.f32 0.26601171, %v716_v16  ;;  %v1176_v40 = vpop.f32.mrf.mxu1 }
  0xd3   : > { %v1060_v54 = vadd.f32 %v1000_v55, %v2724_v8  ;;  %v800_v14 = vadd.f32 %v794_v13, %v710_v57  ;;  %v812_v38 = vmul.f32 0.21300554, %v806_v21  ;;  %v974_v36 = vmul.f32 %v2762_v44, %v2762_v44  ;;  %v1173_v21 = vpop.f32.mrf.mxu0 }
  0xd4   : > { %v1025_v45 = vadd.f32 %v1019_v2, %v956_v31  ;;  %v638_v0 = vadd.f32 %v632_v47, %v2738_v42  ;;  %v1100_v41 = vmul.f32 0.0010283801, %v1094_v46  ;;  %v1040_v24 = vmul.f32 %v2768_v34, %v2768_v34  ;;  %v2818_v46 = vpop.f32.mrf.mxu3 }
  0xd5   : > { %v1135_v11 = vadd.f32 %v1129_v15, %v1060_v54  ;;  %v890_v29 = vadd.f32 %v884_v25, %v800_v14  ;;  %v902_v53 = vmul.f32 0.10936069, %v896_v60  ;;  %v644_v8 = vmul.f32 %v1814_v50, %v2743_v58 }
  0xd6   : > { %v1091_v5 = vadd.f32 %v1085_v9, %v1025_v45  ;;  %v728_v6 = vadd.f32 %v722_v35, %v638_v0  ;;  %v980_v33 = vmul.f32 0.036000773, %v974_v36  ;;  %v1109_v42 = vmul.f32 %v2774_v10, %v2774_v10 }
  0xd7   : > { %1742 = vmatmul.msk.f32.gmra.mxu0 %vm1137_vm0, %v1135_v11  ;;  %v971_v27 = vadd.f32 %v965_v37, %v890_v29  ;;  %v734_v62 = vmul.f32 %v1815_v20, %v2746_v43  ;;  %v650_v28 = vmul.f32 0.21300554, %v644_v8  ;;  %v824_v63 = vmul.f32 %v1816_v61, %v2753_v32 }
  0xd8   : > { %1725 = vmatmul.msk.f32.gmra.mxu1 %vm1137_vm0, %v1091_v5  ;;  %v818_v15 = vadd.f32 %v812_v38, %v728_v6  ;;  %v914_v19 = vmul.f32 %v1817_v51, %v2759_v12  ;;  %v1043_v18 = vmul.f32 0.007598758, %v1040_v24  ;;  %v989_v3 = vmul.f32 %v1818_v26, %v2762_v44 }
  0xd9   : > { %v1037_v23 = vadd.f32 %v1031_v59, %v971_v27  ;;  %v740_v58 = vmul.f32 0.26601171, %v734_v62  ;;  %v656_v2 = vadd.f32 %v650_v28, %v2749_v56  ;;  %v830_v52 = vmul.f32 0.21300554, %v824_v63 }
  0xda   : > { %v908_v50 = vadd.f32 %v902_v53, %v818_v15  ;;  %v1115_v9 = vmul.f32 0.0010283801, %v1109_v42  ;;  %v920_v7 = vmul.f32 0.10936069, %v914_v19  ;;  %v1052_v49 = vmul.f32 %v1819_v39, %v2768_v34  ;;  %v2812_v34 = vpop.f32.mrf.mxu2  ;;  %v2814_v39 = vpop.f32.mrf.mxu1 }
  0xdb   : > { %v1106_v22 = vadd.f32 %v1100_v41, %v1037_v23  ;;  %v746_v20 = vadd.f32 %v740_v58, %v656_v2  ;;  %v995_v61 = vmul.f32 0.036000773, %v989_v3  ;;  %v1124_v51 = vmul.f32 %v1820_v1, %v2774_v10 }
  0xdc   : > { %v986_v43 = vadd.f32 %v980_v33, %v908_v50  ;;  %v1055_v56 = vmul.f32 0.007598758, %v1052_v49  ;;  %v1403_v31 = vmul.f32 %v1173_v21, %v1173_v21  ;;  %v1404_v47 = vmul.f32 %v1176_v40, %v1176_v40 }
  0xdd   : > { %1731 = vmatmul.msk.f32.gmra.mxu2 %vm1137_vm0, %v1106_v22  ;;  %v836_v12 = vadd.f32 %v830_v52, %v746_v20  ;;  %v1130_v26 = vmul.f32 0.0010283801, %v1124_v51  ;;  %v1405_v29 = vmul.f32 %v2814_v39, %v2814_v39  ;;  %v1406_v58 = vmul.f32 %v2812_v34, %v2812_v34 }
  0xde   : > { %v1049_v32 = vadd.f32 %v1043_v18, %v986_v43 }
  0xdf   : > { %v926_v48 = vadd.f32 %v920_v7, %v836_v12 }
  0xe0   : > { %v1121_v17 = vadd.f32 %v1115_v9, %v1049_v32 }
  0xe1   : > { %v1001_v44 = vadd.f32 %v995_v61, %v926_v48  ;;  %v1332_v30 = vpop.f32.mrf.mxu3 }
  0xe2   : > { %1737 = vmatmul.msk.f32.gmra.mxu3 %vm1137_vm0, %v1121_v17  ;;  %v2816_v25 = vpop.f32.mrf.mxu2  ;;  %v1226_v10 = vpop.f32.mrf.mxu1 }
  0xe3   : > { %v1061_v13 = vadd.f32 %v1055_v56, %v1001_v44  ;;  %v1409_v37 = vmul.f32 %v1226_v10, %v1226_v10  ;;  %v1415_v51 = vmul.f32 %v1226_v10, %v1173_v21 }
  0xe5   : > { %v1136_v4 = vadd.f32 %v1130_v26, %v1061_v13  ;;  %v1427_v35 = vsub.f32 %v1332_v30, %v1409_v37  ;;  %v1469_v5 = vadd.f32 %v1409_v37, %v1403_v31  ;;  %v1385_v6 = vpop.f32.mrf.mxu0  ;;  %v1439_v21 = vmul.f32 2.0, %v1415_v51 }
  0xe7   : > { %1743 = vmatmul.msk.f32.gmra.mxu0 %vm1137_vm0, %v1136_v4  ;;  %v1475_v62 = vadd.f32 0.0001, %v1469_v5  ;;  %v1433_v4 = vsub.f32 %v1385_v6, %v1415_v51 }
  0xea   : > { %v1279_v1 = vpop.f32.mrf.mxu2  ;;  %v1229_v55 = vpop.f32.mrf.mxu1 }
  0xeb   : > { %v1410_v60 = vmul.f32 %v1229_v55, %v1229_v55  ;;  %v1421_v59 = vsub.f32 %v1279_v1, %v1403_v31  ;;  %v1416_v20 = vmul.f32 %v1229_v55, %v1176_v40  ;;  %v1451_v31 = vmul.f32 2.0, %v1433_v4 }
  0xed   : > { %v1481_v36 = vadd.f32 %v1427_v35, %v1421_v59  ;;  %v1470_v41 = vadd.f32 %v1410_v60, %v1404_v47  ;;  %v1440_v10 = vmul.f32 2.0, %v1416_v20  ;;  %v1445_v35 = vadd.f32 0.0001, %v1439_v21 }
  0xef   : > { %v1487_v33 = vadd.f32 0.0009, %v1481_v36  ;;  %v1476_v42 = vadd.f32 0.0001, %v1470_v41 }
  0xf1   : > { %v2824_v63 = vmul.f32 %v1487_v33, %v1475_v62 }
  0xf2   : > { %v1282_v57 = vpop.f32.mrf.mxu2 }
  0xf3   : > { %v1422_v54 = vsub.f32 %v1282_v57, %v1404_v47  ;;  %vm1504_vm3 = vweird.f32 %v2824_v63 }
  0xf6   : > { %v1335_v16 = vpop.f32.mrf.mxu3  ;;  %v1388_v2 = vpop.f32.mrf.mxu0 }
  0xf7   : > { %v1428_v14 = vsub.f32 %v1335_v16, %v1410_v60  ;;  %v1434_v17 = vsub.f32 %v1388_v2, %v1416_v20 }
  0xf9   : > { %v1482_v0 = vadd.f32 %v1428_v14, %v1422_v54  ;;  %v1452_v40 = vmul.f32 2.0, %v1434_v17  ;;  %v1446_v14 = vadd.f32 0.0001, %v1440_v10 }
  0xfb   : > { %v1488_v53 = vadd.f32 0.0009, %v1482_v0  ;;  %v1458_v37 = vadd.f32 0.0009, %v1452_v40  ;;  %v1457_v0 = vadd.f32 0.0009, %v1451_v31 }
  0xfd   : > { %v2822_v15 = vmul.f32 %v1488_v53, %v1476_v42 }
  0xff   : > { %1779 = vrcp.f32 %v2822_v15  ;;  %v1525_v6 = vand.u32 2147483648, %v2822_v15  ;;  %vm1519_vm4 = vweird.f32 %v2822_v15  ;;  %v1523_v53 = vand.u32 2147483647, %v2822_v15 }
 0x100   : > { %v1232_v45 = vpop.f32.mrf.mxu1  ;;  %1781 = vrcp.f32 %v2824_v63 }
 0x101   : > { %v1411_v24 = vmul.f32 %v1232_v45, %v1232_v45  ;;  %v1417_v16 = vmul.f32 %v1232_v45, %v2814_v39  ;;  %vm1524_vm8 = vcmp.eq.f32.partialorder %v1523_v53, 8.507059e+37  ;;  %v1408_v53 = vmul.f32 %v2818_v46, %v2818_v46 }
 0x103   : > { %v1471_v19 = vadd.f32 %v1411_v24, %v1405_v29 }
 0x105   : > { %v1477_v22 = vadd.f32 0.0001, %v1471_v19  ;;  %v2832_v32 = vpop.eup %1779 }
 0x106   : > { %v2834_v61 = vpop.eup %1781  ;;  %v1515_v56 = vmul.f32 %v2832_v32, %v2822_v15  ;;  %vm1520_vm1 = vweird.f32 %v2832_v32 }
 0x107   : > { %v1500_v44 = vmul.f32 %v2834_v61, %v2824_v63  ;;  %vm1505_vm2 = vweird.f32 %v2834_v61  ;;  %vm2861_vm5 = vmor %vm1519_vm4, %vm1520_vm1 }
 0x108   : > { %v1516_v30 = vsub.f32 1.0, %v1515_v56  ;;  %vm2869_vm6 = vmor %vm1504_vm3, %vm1505_vm2 }
 0x109   : > { %v1501_v57 = vsub.f32 1.0, %v1500_v44 }
 0x10a   : > { %v1517_v47 = vmul.f32 %v2832_v32, %v1516_v30  ;;  %v1407_v30 = vmul.f32 %v2816_v25, %v2816_v25 }
 0x10b   : > { %v1502_v54 = vmul.f32 %v2834_v61, %v1501_v57 }
 0x10d   : > { %v1503_v5 = vadd.f32 %v2834_v61, %v1502_v54 }
 0x10f   : > { %v1285_v38 = vpop.f32.mrf.mxu2 }
 0x110   : > { %v1423_v8 = vsub.f32 %v1285_v38, %v1405_v29  ;;  %v1464_v38 = vmul.f32 %v1458_v37, %v1446_v14  ;;  %v1518_v29 = vadd.f32 %v2832_v32, %v1517_v47 }
 0x112   : > { %v1522_v15 = vsel %vm2861_vm5, %v2832_v32, %v1518_v29  ;;  %v1463_v32 = vmul.f32 %v1457_v0, %v1445_v35 }
 0x118   : > { %v1338_v11 = vpop.f32.mrf.mxu3 }
 0x119   : > { %v1429_v27 = vsub.f32 %v1338_v11, %v1411_v24  ;;  %v1441_v11 = vmul.f32 2.0, %v1417_v16 }
 0x11b   : > { %v1483_v28 = vadd.f32 %v1429_v27, %v1423_v8  ;;  %v1508_v27 = vand.u32 2147483647, %v2824_v63 }
 0x11d   : > { %v1235_v23 = vpop.f32.mrf.mxu1  ;;  %v1489_v50 = vadd.f32 0.0009, %v1483_v28  ;;  %v1391_v13 = vpop.f32.mrf.mxu0  ;;  %vm1509_vm10 = vcmp.eq.f32.partialorder %v1508_v27, 8.507059e+37 }
 0x11e   : > { %v1412_v52 = vmul.f32 %v1235_v23, %v1235_v23  ;;  %v1435_v59 = vsub.f32 %v1391_v13, %v1417_v16  ;;  %v1418_v36 = vmul.f32 %v1235_v23, %v2812_v34  ;;  %v1510_v34 = vand.u32 2147483648, %v2824_v63 }
 0x11f   : > { %v2830_v7 = vmul.f32 %v1489_v50, %v1477_v22  ;;  %v1447_v23 = vadd.f32 0.0001, %v1441_v11  ;;  %v1526_v50 = vor.u32 1.1754944e-38, %v1525_v6 }
 0x120   : > { %v1472_v12 = vadd.f32 %v1412_v52, %v1406_v58  ;;  %v1453_v24 = vmul.f32 2.0, %v1435_v59  ;;  %v1511_v2 = vor.u32 1.1754944e-38, %v1510_v34 }
 0x121   : > { %1783 = vrcp.f32 %v2830_v7  ;;  %v1538_v42 = vand.u32 2147483647, %v2830_v7  ;;  %v1540_v62 = vand.u32 2147483648, %v2830_v7  ;;  %vm1534_vm9 = vweird.f32 %v2830_v7 }
 0x122   : > { %v1478_v26 = vadd.f32 0.0001, %v1472_v12  ;;  %v1527_v22 = vsel %vm1524_vm8, %v1526_v50, %v1522_v15  ;;  %v1442_v12 = vmul.f32 2.0, %v1418_v36 }
 0x123   : > { %vm1539_vm12 = vcmp.eq.f32.partialorder %v1538_v42, 8.507059e+37 }
 0x127   : > { %v1784_v55 = vpop.eup %1783 }
 0x128   : > { %v1288_v18 = vpop.f32.mrf.mxu2  ;;  %v1530_v60 = vmul.f32 %v1784_v55, %v2830_v7  ;;  %vm1535_vm7 = vweird.f32 %v1784_v55 }
 0x129   : > { %v1424_v3 = vsub.f32 %v1288_v18, %v1406_v58  ;;  %v1459_v18 = vadd.f32 0.0009, %v1453_v24  ;;  %v1507_v58 = vsel %vm2869_vm6, %v2834_v61, %v1503_v5  ;;  %vm1536_vm11 = vmor %vm1534_vm9, %vm1535_vm7 }
 0x12a   : > { %v1531_v39 = vsub.f32 1.0, %v1530_v60  ;;  %v1512_v20 = vsel %vm1509_vm10, %v1511_v2, %v1507_v58  ;;  %vm1610_vm10 = vcmask 0  }
 0x12b   : > { %v1465_v17 = vmul.f32 %v1459_v18, %v1447_v23  ;;  %v1513_v44 = vmul.f32 %v1512_v20, %v1463_v32 }
 0x12c   : > { %v1532_v63 = vmul.f32 %v1784_v55, %v1531_v39 }
 0x12d   : > { %v1341_v9 = vpop.f32.mrf.mxu3  ;;  %v1394_v45 = vpop.f32.mrf.mxu0  ;;  %v1589_v54 = vsel %vm1137_vm0, %v1513_v44, 0.0 }
 0x12e   : > { %v1430_v43 = vsub.f32 %v1341_v9, %v1412_v52  ;;  %v1436_v8 = vsub.f32 %v1394_v45, %v1418_v36  ;;  %v1533_v52 = vadd.f32 %v1784_v55, %v1532_v63  ;;  %v1541_v9 = vor.u32 1.1754944e-38, %v1540_v62 }
 0x130   : > { %v1484_v49 = vadd.f32 %v1430_v43, %v1424_v3  ;;  %v1454_v3 = vmul.f32 2.0, %v1436_v8 }
 0x132   : > { %v1490_v48 = vadd.f32 0.0009, %v1484_v49  ;;  %v1537_v49 = vsel %vm1536_vm11, %v1784_v55, %v1533_v52  ;;  %v1460_v56 = vadd.f32 0.0009, %v1454_v3  ;;  %v1448_v55 = vadd.f32 0.0001, %v1442_v12 }
 0x133   : > { %v1542_v51 = vsel %vm1539_vm12, %v1541_v9, %v1537_v49 }
 0x134   : > { %v2841_v1 = vmul.f32 %v1490_v48, %v1478_v26  ;;  %v1528_v48 = vmul.f32 %v1527_v22, %v1464_v38  ;;  %v1543_v13 = vmul.f32 %v1542_v51, %v1465_v17  ;;  %v1466_v21 = vmul.f32 %v1460_v56, %v1448_v55 }
 0x136   : > { %1785 = vrcp.f32 %v2841_v1  ;;  %v1555_v26 = vand.u32 2147483648, %v2841_v1  ;;  %v1553_v40 = vand.u32 2147483647, %v2841_v1  ;;  %vm1549_vm14 = vweird.f32 %v2841_v1 }
 0x137   : > { %v1590_v16 = vsel %vm1137_vm0, %v1528_v48, 0.0  ;;  %v1592_v14 = vsel %vm1137_vm0, %v1543_v13, 0.0 }
 0x138   : > { %v1238_v61 = vpop.f32.mrf.mxu1  ;;  %v1556_v37 = vor.u32 1.1754944e-38, %v1555_v26  ;;  %vm1554_vm1 = vcmp.eq.f32.partialorder %v1553_v40, 8.507059e+37  ;;  %v1591_v38 = vadd.f32 %v1590_v16, %v1589_v54 }
 0x139   : > { %v1413_v57 = vmul.f32 %v1238_v61, %v1238_v61  ;;  %v1419_v15 = vmul.f32 %v1238_v61, %v2816_v25 }
 0x13a   : > { %v1593_v11 = vadd.f32 %v1592_v14, %v1591_v38 }
 0x13b   : > { %v1473_v59 = vadd.f32 %v1413_v57, %v1407_v30  ;;  %v1443_v32 = vmul.f32 2.0, %v1419_v15 }
 0x13c   : > { %v2851_v41 = vpop.eup %1785 }
 0x13d   : > { %v1545_v28 = vmul.f32 %v2851_v41, %v2841_v1  ;;  %vm1550_vm13 = vweird.f32 %v2851_v41  ;;  %v1479_v45 = vadd.f32 0.0001, %v1473_v59  ;;  %v1449_v56 = vadd.f32 0.0001, %v1443_v32 }
 0x13e   : > { %vm1551_vm15 = vmor %vm1549_vm14, %vm1550_vm13 }
 0x13f   : > { %v1546_v43 = vsub.f32 1.0, %v1545_v28 }
 0x141   : > { %v1547_v4 = vmul.f32 %v2851_v41, %v1546_v43 }
 0x143   : > { %v1548_v10 = vadd.f32 %v2851_v41, %v1547_v4 }
 0x145   : > { %v1552_v60 = vsel %vm1551_vm15, %v2851_v41, %v1548_v10 }
 0x146   : > { %v1557_v0 = vsel %vm1554_vm1, %v1556_v37, %v1552_v60 }
 0x147   : > { %v1291_v7 = vpop.f32.mrf.mxu2  ;;  %v1558_v36 = vmul.f32 %v1557_v0, %v1466_v21 }
 0x148   : > { %v1425_v31 = vsub.f32 %v1291_v7, %v1407_v30 }
 0x149   : > { %v1594_v39 = vsel %vm1137_vm0, %v1558_v36, 0.0 }
 0x14a   : > { %v2893_v24 = vadd.f32 %v1594_v39, %v1593_v11 }
 0x150   : > { %v1344_v47 = vpop.f32.mrf.mxu3 }
 0x151   : > { %v1431_v35 = vsub.f32 %v1344_v47, %v1413_v57 }
 0x153   : > { %v1485_v1 = vadd.f32 %v1431_v35, %v1425_v31 }
 0x154   : > { %v1397_v27 = vpop.f32.mrf.mxu0 }
 0x155   : > { %v1491_v29 = vadd.f32 0.0009, %v1485_v1  ;;  %v1241_v41 = vpop.f32.mrf.mxu1  ;;  %v1437_v50 = vsub.f32 %v1397_v27, %v1419_v15 }
 0x156   : > { %v1414_v8 = vmul.f32 %v1241_v41, %v1241_v41  ;;  %v1420_v52 = vmul.f32 %v1241_v41, %v2818_v46 }
 0x157   : > { %v1497_v5 = vmul.f32 %v1491_v29, %v1479_v45  ;;  %v1455_v9 = vmul.f32 2.0, %v1437_v50 }
 0x158   : > { %v1474_v28 = vadd.f32 %v1414_v8, %v1408_v53  ;;  %v1444_v7 = vmul.f32 2.0, %v1420_v52 }
 0x159   : > { %1787 = vrcp.f32 %v1497_v5  ;;  %v1570_v49 = vand.u32 2147483648, %v1497_v5  ;;  %vm1564_vm3 = vweird.f32 %v1497_v5  ;;  %v1568_v12 = vand.u32 2147483647, %v1497_v5 }
 0x15a   : > { %v1480_v18 = vadd.f32 0.0001, %v1474_v28  ;;  %v1461_v25 = vadd.f32 0.0009, %v1455_v9  ;;  %v1450_v10 = vadd.f32 0.0001, %v1444_v7 }
 0x15b   : > { %v1571_v48 = vor.u32 1.1754944e-38, %v1570_v49  ;;  %vm1569_vm5 = vcmp.eq.f32.partialorder %v1568_v12, 8.507059e+37 }
 0x15c   : > { %v1467_v26 = vmul.f32 %v1461_v25, %v1449_v56 }
 0x15f   : > { %v1788_v6 = vpop.eup %1787 }
 0x160   : > { %v1294_v34 = vpop.f32.mrf.mxu2  ;;  %v1560_v33 = vmul.f32 %v1788_v6, %v1497_v5  ;;  %vm1565_vm2 = vweird.f32 %v1788_v6 }
 0x161   : > { %v1426_v42 = vsub.f32 %v1294_v34, %v1408_v53  ;;  %vm1566_vm4 = vmor %vm1564_vm3, %vm1565_vm2 }
 0x162   : > { %v1561_v63 = vsub.f32 1.0, %v1560_v33 }
 0x164   : > { %v1562_v2 = vmul.f32 %v1788_v6, %v1561_v63  ;;  %v1400_v22 = vpop.f32.mrf.mxu0 }
 0x165   : > { %v1347_v62 = vpop.f32.mrf.mxu3  ;;  %v1438_v20 = vsub.f32 %v1400_v22, %v1420_v52 }
 0x166   : > { %v1432_v19 = vsub.f32 %v1347_v62, %v1414_v8  ;;  %v1563_v43 = vadd.f32 %v1788_v6, %v1562_v2 }
 0x167   : > { %v1456_v61 = vmul.f32 2.0, %v1438_v20 }
 0x168   : > { %v1486_v23 = vadd.f32 %v1432_v19, %v1426_v42  ;;  %v1567_v51 = vsel %vm1566_vm4, %v1788_v6, %v1563_v43 }
 0x169   : > { %v1572_v44 = vsel %vm1569_vm5, %v1571_v48, %v1567_v51  ;;  %v1462_v4 = vadd.f32 0.0009, %v1456_v61 }
 0x16a   : > { %v1492_v58 = vadd.f32 0.0009, %v1486_v23  ;;  %v1573_v30 = vmul.f32 %v1572_v44, %v1467_v26 }
 0x16b   : > { %v1468_v31 = vmul.f32 %v1462_v4, %v1450_v10 }
 0x16c   : > { %v1498_v3 = vmul.f32 %v1492_v58, %v1480_v18  ;;  %v1596_v47 = vsel %vm1137_vm0, %v1573_v30, 0.0 }
 0x16d   : > { %v1597_v14 = vadd.f32 %v1596_v47, %v2893_v24 }
 0x16e   : > { %1789 = vrcp.f32 %v1498_v3  ;;  %v1585_v40 = vand.u32 2147483648, %v1498_v3  ;;  %v1583_v57 = vand.u32 2147483647, %v1498_v3  ;;  %vm1579_vm7 = vweird.f32 %v1498_v3 }
 0x170   : > { %v1586_v21 = vor.u32 1.1754944e-38, %v1585_v40  ;;  %vm1584_vm9 = vcmp.eq.f32.partialorder %v1583_v57, 8.507059e+37 }
 0x174   : > { %v1790_v17 = vpop.eup %1789 }
 0x175   : > { %v1575_v46 = vmul.f32 %v1790_v17, %v1498_v3  ;;  %vm1580_vm6 = vweird.f32 %v1790_v17 }
 0x176   : > { %vm1581_vm8 = vmor %vm1579_vm7, %vm1580_vm6 }
 0x177   : > { %v1576_v13 = vsub.f32 1.0, %v1575_v46 }
 0x179   : > { %v1577_v55 = vmul.f32 %v1790_v17, %v1576_v13 }
 0x17b   : > { %v1578_v16 = vadd.f32 %v1790_v17, %v1577_v55 }
 0x17d   : > { %v1582_v37 = vsel %vm1581_vm8, %v1790_v17, %v1578_v16 }
 0x17e   : > { %v1587_v60 = vsel %vm1584_vm9, %v1586_v21, %v1582_v37 }
 0x17f   : > { %v1588_v54 = vmul.f32 %v1587_v60, %v1468_v31 }
 0x181   : > { %v1598_v59 = vsel %vm1137_vm0, %v1588_v54, 0.0 }
 0x182   : > { %v1599_v35 = vadd.f32 %v1598_v59, %v1597_v14 }
 0x184   : > { %1600 = vadd.xlane.f32.xlu0 %v1599_v35 }
 0x1f7   : > { %v1601_v0 = vpop.xlane.xlu0 %1600 }
 0x1f8   : > { %v1602_v38 = vrot.slane %v1601_v0, 4 }
 0x1fa   : > { %v1603_v36 = vadd.f32 %v1602_v38, %v1601_v0 }
 0x1fc   : > { %v1604_v1 = vrot.slane %v1603_v36, 2 }
 0x1fe   : > { %v1605_v11 = vadd.f32 %v1604_v1, %v1603_v36 }
 0x200   : > { %v1606_v39 = vrot.slane %v1605_v11, 1 }
 0x202   : > { %v1607_v45 = vadd.f32 %v1606_v39, %v1605_v11 }
 0x204   : > { %1753 = vpush %v1607_v45 }
 0x235   : > { %s1754_s30 = spop %1753 }
 0x236   : > { %v1609_v29 = vstv %s1754_s30 }
 0x237   : > { %1611 = vst.msk [vmem:[%s234_s29] sm:$0x1] %vm1610_vm10, %v1609_v29 }
 0x238 PF: > { %s13_s14 = sadd.s32 1, %s1843_s14   ;;  %s2979_s12 = smov %s1839_s13 }
 0x239   : > { %p10_p5 = scmp.ge.s32.totalorder %s13_s14, 4   ;;  %s2980_s13 = smov %s2982_s15 }
 0x23b   :  { %12 = sbr.rel (!%p10_p5) target bundleno = 2 (0x2), region = 65 }

// kernel: tpu_custom_call.1
= control target key start
LH: loop header
LB: loop body
LE: loop exit
PB: predicated region body
PF: predicated region fallthrough
CT: control target
= control target key end

     0   :  { %s3446_s9 = smov 0   ;;  %s3448_s10 = smov 0   ;;  %s5874_s0 = inlined_call_operand.vmem [shape: f32[2,3,1,26,16], index: 0, kind: input, shape index: {}]   ;;  %s5875_s1 = inlined_call_operand.vmem [shape: f32[2,3,1,26,16], index: 1, kind: input, shape index: {}]   ;;  %s5876_s2 = inlined_call_operand.vmem [shape: f32[2,1,1,1], index: 2, kind: output, shape index: {}]  }
   0x1   :  { %s3450_s11 = smov 0  }
   0x2 LB: > { %s24_s12 = sadd.s32 1, %s3414_s10  ;;  %p3159_p0 = scmp.ge.s32.totalorder %s3418_s11, 1  ;;  %s3418_s11 = sphi %s3450_s11, %s12_s11   ;;  %s3414_s10 = sphi %s3448_s10, %s6173_s10   ;;  %s3410_s9 = sphi %s3446_s9, %s6172_s9  }
   0x3   : > { %p26_p1 = scmp.ge.s32.totalorder %s24_s12, 2  ;;  %p148_p2 = scmp.lt.s32.totalorder %s3418_s11, 3 }
   0x5   : > { %s6175_s12 = smov (%p26_p1, %s24_s12), 0  ;;  %p149_p3 = pnand %p3159_p0, %p148_p2 }
   0x7   : > { %152 = sbr.rel (%p149_p3) target bundleno = 1742 (0x6ce), region = 28 }
   0xc   : > { %p184_p4 = scmp.lt.s32.totalorder %s3410_s9, 1  ;;  %s3420_s17 = smov 5   ;;  %vm1132_vm0 = vcmask 39936   ;;  %vm1139_vm1 = vcmask 171008   ;;  %vm3036_vm15 = vcmask 130048  }
   0xd   : > { %s3421_s21 = smov 127   ;;  %s3422_s22 = smov 126  }
   0xe   : > { %s6177_s9 = smov (!%p184_p4, %s3410_s9), 1  ;;  %s3423_s23 = smov 125  }
   0xf   : > { %s3164_s13 = smul.u32 96, %s6177_s9  ;;  %s3424_s24 = smov 124  }
  0x10   : > { %s3425_s25 = smov 123   ;;  %s3426_s26 = smov 122  }
  0x11   : > { %s3472_s16 = scalar_lea.vmem %s5874_s0, %s3164_s13  ;;  %s3520_s20 = scalar_lea.vmem %s5875_s1, %s3164_s13 }
  0x12   : > { %v210_v0 = vld [vmem:[%s3472_s16 + $0x20] sm:$0xff]  ;;  %v211_v8 = vld [vmem:[%s3472_s16 + $0x28] sm:$0xff]  ;;  %s3427_s27 = smov 121   ;;  %s3428_s28 = smov 120  }
  0x13   : > { %v222_v1 = vmul.f32 0.0010283801, %v210_v0  ;;  %v270_v2 = vld [vmem:[%s3472_s16 + $0x21] sm:$0xff]  ;;  %v271_v9 = vld [vmem:[%s3472_s16 + $0x29] sm:$0xff]  ;;  %v223_v16 = vmul.f32 0.0010283801, %v211_v8  ;;  %s207_s5 = scalar_lea.vmem %s5876_s2, %s6177_s9 }
  0x14   : > { %v282_v3 = vmul.f32 0.007598758, %v270_v2  ;;  %v360_v4 = vld [vmem:[%s3472_s16 + $0x22] sm:$0xff]  ;;  %v283_v17 = vmul.f32 0.007598758, %v271_v9  ;;  %v361_v19 = vld [vmem:[%s3472_s16 + $0x2a] sm:$0xff] }
  0x15   : > { %v372_v6 = vmul.f32 0.036000773, %v360_v4  ;;  %v450_v7 = vld [vmem:[%s3472_s16 + $0x23] sm:$0xff]  ;;  %v373_v29 = vmul.f32 0.036000773, %v361_v19  ;;  %v451_v30 = vld [vmem:[%s3472_s16 + $0x2b] sm:$0xff] }
  0x16   : > { %v288_v5 = vadd.f32 %v282_v3, %v222_v1  ;;  %v462_v11 = vmul.f32 0.10936069, %v450_v7  ;;  %v540_v12 = vld [vmem:[%s3472_s16 + $0x24] sm:$0xff]  ;;  %v289_v28 = vadd.f32 %v283_v17, %v223_v16  ;;  %v906_v32 = vmul.f32 0.036000773, %v211_v8  ;;  %v541_v50 = vld [vmem:[%s3472_s16 + $0x2c] sm:$0xff] }
  0x17   : > { %v552_v14 = vmul.f32 0.21300554, %v540_v12  ;;  %v630_v15 = vld [vmem:[%s3472_s16 + $0x25] sm:$0xff]  ;;  %v463_v41 = vmul.f32 0.10936069, %v451_v30  ;;  %v631_v9 = vld [vmem:[%s3472_s16 + $0x2d] sm:$0xff] }
  0x18   : > { %v378_v10 = vadd.f32 %v372_v6, %v288_v5  ;;  %v720_v18 = vld [vmem:[%s3472_s16 + $0x26] sm:$0xff]  ;;  %v642_v21 = vmul.f32 0.26601171, %v630_v15  ;;  %v379_v40 = vadd.f32 %v373_v29, %v289_v28  ;;  %v1041_v45 = vmul.f32 0.0010283801, %v361_v19  ;;  %v1034_v28 = vld [vmem:[%s3472_s16 + $0x32] sm:$0xff] }
  0x19   : > { %v810_v22 = vld [vmem:[%s3472_s16 + $0x27] sm:$0xff]  ;;  %v732_v23 = vmul.f32 0.21300554, %v720_v18  ;;  %v553_v61 = vmul.f32 0.21300554, %v541_v50  ;;  %s3429_s29 = smov 119  }
  0x1a   : > { %v468_v13 = vadd.f32 %v462_v11, %v378_v10  ;;  %v208_v24 = vld [vmem:[%s3472_s16] sm:$0xff]  ;;  %v822_v26 = vmul.f32 0.10936069, %v810_v22  ;;  %v209_v27 = vld [vmem:[%s3472_s16 + $0x8] sm:$0xff]  ;;  %v469_v57 = vadd.f32 %v463_v41, %v379_v40  ;;  %s3430_s30 = smov 118  }
  0x1b   : > { %v220_v33 = vmul.f32 0.0010283801, %v208_v24  ;;  %v268_v34 = vld [vmem:[%s3472_s16 + $0x1] sm:$0xff]  ;;  %v221_v35 = vmul.f32 0.0010283801, %v209_v27  ;;  %v269_v36 = vld [vmem:[%s3472_s16 + $0x9] sm:$0xff] }
  0x1c   : > { %v558_v20 = vadd.f32 %v552_v14, %v468_v13  ;;  %v280_v38 = vmul.f32 0.007598758, %v268_v34  ;;  %v358_v39 = vld [vmem:[%s3472_s16 + $0x2] sm:$0xff]  ;;  %v3491_v42 = vmul.f32 0.007598758, %v269_v36  ;;  %v359_v43 = vld [vmem:[%s3472_s16 + $0xa] sm:$0xff]  ;;  %v559_v11 = vadd.f32 %v553_v61, %v469_v57 }
  0x1d   : > { %v370_v47 = vmul.f32 0.036000773, %v358_v39  ;;  %v448_v48 = vld [vmem:[%s3472_s16 + $0x3] sm:$0xff]  ;;  %v449_v49 = vld [vmem:[%s3472_s16 + $0xb] sm:$0xff]  ;;  %v371_v52 = vmul.f32 0.036000773, %v359_v43 }
  0x1e   : > { %v648_v25 = vadd.f32 %v642_v21, %v558_v20  ;;  %v286_v46 = vadd.f32 %v280_v38, %v220_v33  ;;  %v287_v51 = vadd.f32 %v3491_v42, %v221_v35  ;;  %v460_v55 = vmul.f32 0.10936069, %v448_v48  ;;  %v538_v56 = vld [vmem:[%s3472_s16 + $0x4] sm:$0xff]  ;;  %v539_v0 = vld [vmem:[%s3472_s16 + $0xc] sm:$0xff] }
  0x1f   : > { %v461_v59 = vmul.f32 0.10936069, %v449_v49  ;;  %v628_v60 = vld [vmem:[%s3472_s16 + $0x5] sm:$0xff]  ;;  %v550_v1 = vmul.f32 0.21300554, %v538_v56  ;;  %v721_v10 = vld [vmem:[%s3472_s16 + $0x2e] sm:$0xff] }
  0x20   : > { %v738_v31 = vadd.f32 %v732_v23, %v648_v25  ;;  %v376_v54 = vadd.f32 %v370_v47, %v286_v46  ;;  %v377_v58 = vadd.f32 %v371_v52, %v287_v51  ;;  %v718_v2 = vld [vmem:[%s3472_s16 + $0x6] sm:$0xff]  ;;  %v640_v5 = vmul.f32 0.26601171, %v628_v60  ;;  %v811_v14 = vld [vmem:[%s3472_s16 + $0x2f] sm:$0xff] }
  0x21   : > { %v808_v3 = vld [vmem:[%s3472_s16 + $0x7] sm:$0xff]  ;;  %v551_v7 = vmul.f32 0.21300554, %v539_v0  ;;  %v730_v8 = vmul.f32 0.21300554, %v718_v2  ;;  %v899_v20 = vld [vmem:[%s3472_s16 + $0x30] sm:$0xff] }
  0x22   : > { %v828_v37 = vadd.f32 %v822_v26, %v738_v31  ;;  %v466_v63 = vadd.f32 %v460_v55, %v376_v54  ;;  %v467_v6 = vadd.f32 %v461_v59, %v377_v58  ;;  %v820_v13 = vmul.f32 0.10936069, %v808_v3  ;;  %v974_v24 = vld [vmem:[%s3472_s16 + $0x31] sm:$0xff]  ;;  %v212_v38 = vld [vmem:[%s3472_s16 + $0x40] sm:$0xff]  ;;  %v3528_v48 = vld [vmem:[%s3520_s20 + $0x48] sm:$0xff] }
  0x23   : > { %v904_v16 = vmul.f32 0.036000773, %v209_v27  ;;  %v733_v18 = vmul.f32 0.21300554, %v721_v10  ;;  %v823_v23 = vmul.f32 0.10936069, %v811_v14 }
  0x24   : > { %v912_v44 = vadd.f32 %v906_v32, %v828_v37  ;;  %v556_v4 = vadd.f32 %v550_v1, %v466_v63  ;;  %v557_v19 = vadd.f32 %v551_v7, %v467_v6  ;;  %v629_v25 = vld [vmem:[%s3472_s16 + $0xd] sm:$0xff]  ;;  %v1039_v32 = vmul.f32 0.0010283801, %v359_v43  ;;  %v272_v50 = vld [vmem:[%s3472_s16 + $0x41] sm:$0xff] }
  0x25   : > { %v719_v26 = vld [vmem:[%s3472_s16 + $0xe] sm:$0xff]  ;;  %v641_v29 = vmul.f32 0.26601171, %v629_v25  ;;  %v907_v34 = vmul.f32 0.036000773, %v899_v20  ;;  %v362_v2 = vld [vmem:[%s3472_s16 + $0x42] sm:$0xff] }
  0x26   : > { %v984_v53 = vadd.f32 %v912_v44, %v283_v17  ;;  %v646_v12 = vadd.f32 %v640_v5, %v556_v4  ;;  %v643_v17 = vmul.f32 0.26601171, %v631_v9  ;;  %v731_v30 = vmul.f32 0.21300554, %v719_v26  ;;  %v809_v31 = vld [vmem:[%s3472_s16 + $0xf] sm:$0xff]  ;;  %v542_v26 = vld [vmem:[%s3472_s16 + $0x44] sm:$0xff] }
  0x27   : > { %v898_v35 = vld [vmem:[%s3472_s16 + $0x10] sm:$0xff]  ;;  %v647_v36 = vadd.f32 %v641_v29, %v557_v19  ;;  %v821_v37 = vmul.f32 0.10936069, %v809_v31  ;;  %v980_v41 = vmul.f32 0.007598758, %v974_v24 }
  0x28   : > { %v1047_v62 = vadd.f32 %v1041_v45, %v984_v53  ;;  %v736_v15 = vadd.f32 %v730_v8, %v646_v12  ;;  %v649_v22 = vadd.f32 %v643_v17, %v559_v11  ;;  %v1042_v43 = vmul.f32 0.0010283801, %v1034_v28  ;;  %v973_v44 = vld [vmem:[%s3472_s16 + $0x11] sm:$0xff]  ;;  %v3525_v45 = vld [vmem:[%s3472_s16 + $0x48] sm:$0xff] }
  0x29   : > { %v737_v46 = vadd.f32 %v731_v30, %v647_v36  ;;  %v905_v47 = vmul.f32 0.036000773, %v898_v35  ;;  %v3532_v49 = vmul.f32 %v3525_v45, %v3525_v45  ;;  %v273_v51 = vld [vmem:[%s3472_s16 + $0x49] sm:$0xff]  ;;  %v224_v54 = vmul.f32 0.0010283801, %v212_v38 }
  0x2a   : > { %1118 = vrot.lane.b32.xlu1 %v1047_v62, %s3420_s17  ;;  %v826_v21 = vadd.f32 %v820_v13, %v736_v15  ;;  %v739_v33 = vadd.f32 %v733_v18, %v649_v22  ;;  %v3539_v55 = vmul.f32 %v3528_v48, %v3525_v45  ;;  %v979_v57 = vmul.f32 0.007598758, %v973_v44  ;;  %v3549_v5 = vld [vmem:[%s3520_s20 + $0x49] sm:$0xff] }
  0x2b   : > { %v827_v56 = vadd.f32 %v821_v37, %v737_v46  ;;  %v225_v58 = vmul.f32 0.0010283801, %v3525_v45  ;;  %v284_v59 = vmul.f32 0.007598758, %v272_v50  ;;  %v3543_v61 = vmul.f32 0.007598758, %v273_v51 }
  0x2c   : > { %v910_v27 = vadd.f32 %v904_v16, %v826_v21  ;;  %v829_v40 = vadd.f32 %v823_v23, %v739_v33  ;;  %5926 = vst [vmem:[#allocation2_spill] sm:$0xff] %v3539_v55  ;;  %v243_v0 = vmul.f32 0.0010283801, %v3532_v49  ;;  %v309_v1 = vmul.f32 %v273_v51, %v273_v51  ;;  %v363_v7 = vld [vmem:[%s3472_s16 + $0x4a] sm:$0xff] }
  0x2d   : > { %v911_v62 = vadd.f32 %v905_v47, %v827_v56  ;;  %v267_v4 = vmul.f32 0.0010283801, %v3539_v55  ;;  %v290_v6 = vadd.f32 %v284_v59, %v224_v54  ;;  %v291_v9 = vadd.f32 %v3543_v61, %v225_v58  ;;  %v452_v18 = vld [vmem:[%s3472_s16 + $0x43] sm:$0xff]  ;;  %v453_v19 = vld [vmem:[%s3472_s16 + $0x4b] sm:$0xff] }
  0x2e   : > { %v982_v39 = vadd.f32 %v910_v27, %v3491_v42  ;;  %v913_v53 = vadd.f32 %v907_v34, %v829_v40  ;;  %v1033_v42 = vld [vmem:[%s3472_s16 + $0x12] sm:$0xff]  ;;  %v3553_v10 = vmul.f32 0.007598758, %v309_v1  ;;  %v345_v11 = vmul.f32 %v3549_v5, %v273_v51  ;;  %v632_v34 = vld [vmem:[%s3472_s16 + $0x45] sm:$0xff] }
  0x2f   : > { %v1040_v63 = vmul.f32 0.0010283801, %v1033_v42  ;;  %v983_v8 = vadd.f32 %v979_v57, %v911_v62  ;;  %v374_v12 = vmul.f32 0.036000773, %v362_v2  ;;  %v3557_v13 = vmul.f32 %v363_v7, %v363_v7  ;;  %v543_v30 = vld [vmem:[%s3472_s16 + $0x4c] sm:$0xff] }
  0x30   : > { %v1045_v52 = vadd.f32 %v1039_v32, %v982_v39  ;;  %v985_v60 = vadd.f32 %v980_v41, %v913_v53  ;;  %v321_v15 = vadd.f32 %v3553_v10, %v243_v0  ;;  %v3560_v16 = vmul.f32 0.007598758, %v345_v11  ;;  %v722_v36 = vld [vmem:[%s3472_s16 + $0x46] sm:$0xff]  ;;  %v723_v46 = vld [vmem:[%s3472_s16 + $0x4e] sm:$0xff] }
  0x31   : > { %v1046_v14 = vadd.f32 %v1040_v63, %v983_v8  ;;  %v375_v17 = vmul.f32 0.036000773, %v363_v7  ;;  %v380_v20 = vadd.f32 %v374_v12, %v290_v6  ;;  %v405_v21 = vmul.f32 0.036000773, %v3557_v13  ;;  %v812_v39 = vld [vmem:[%s3472_s16 + $0x47] sm:$0xff]  ;;  %v813_v51 = vld [vmem:[%s3472_s16 + $0x4f] sm:$0xff] }
  0x32   : > { %1114 = vrot.lane.b32.xlu0 %v1045_v52, %s3420_s17  ;;  %v1048_v3 = vadd.f32 %v1042_v43, %v985_v60  ;;  %5927 = vst [vmem:[#allocation3_spill] sm:$0xff] %v3560_v16  ;;  %v3566_v22 = vadd.f32 %v3560_v16, %v267_v4  ;;  %v464_v24 = vmul.f32 0.10936069, %v452_v18  ;;  %v465_v25 = vmul.f32 0.10936069, %v453_v19  ;;  %v633_v41 = vld [vmem:[%s3472_s16 + $0x4d] sm:$0xff] }
  0x33   : > { %v381_v23 = vadd.f32 %v375_v17, %v291_v9  ;;  %v411_v28 = vadd.f32 %v405_v21, %v321_v15  ;;  %v489_v29 = vmul.f32 %v453_v19, %v453_v19  ;;  %v554_v33 = vmul.f32 0.21300554, %v542_v26  ;;  %v900_v56 = vld [vmem:[%s3472_s16 + $0x50] sm:$0xff] }
  0x34   : > { %1120 = vrot.lane.b32.xlu1 %v1048_v3, %s3420_s17  ;;  %5928 = vst [vmem:[#allocation4_spill] sm:$0xff] %v3566_v22  ;;  %v470_v31 = vadd.f32 %v464_v24, %v380_v20  ;;  %v555_v35 = vmul.f32 0.21300554, %v543_v30  ;;  %v644_v40 = vmul.f32 0.26601171, %v632_v34  ;;  %v975_v63 = vld [vmem:[%s3472_s16 + $0x51] sm:$0xff] }
  0x35   : > { %v471_v27 = vadd.f32 %v465_v25, %v381_v23  ;;  %v495_v32 = vmul.f32 0.10936069, %v489_v29  ;;  %v734_v44 = vmul.f32 0.21300554, %v722_v36  ;;  %v824_v50 = vmul.f32 0.10936069, %v812_v39 }
  0x36   : > { %v560_v38 = vadd.f32 %v554_v33, %v470_v31  ;;  %v645_v52 = vmul.f32 0.26601171, %v633_v41  ;;  %v908_v42 = vmul.f32 0.036000773, %v3525_v45  ;;  %v735_v54 = vmul.f32 0.21300554, %v723_v46 }
  0x37   : > { %v3573_v37 = vadd.f32 %v495_v32, %v411_v28  ;;  %v561_v43 = vadd.f32 %v555_v35, %v471_v27  ;;  %v825_v58 = vmul.f32 0.10936069, %v813_v51  ;;  %v909_v62 = vmul.f32 0.036000773, %v900_v56  ;;  %v1035_v8 = vld [vmem:[%s3472_s16 + $0x52] sm:$0xff] }
  0x38   : > { %v650_v47 = vadd.f32 %v644_v40, %v560_v38  ;;  %v1043_v1 = vmul.f32 0.0010283801, %v363_v7  ;;  %v981_v4 = vmul.f32 0.007598758, %v975_v63  ;;  %v1044_v11 = vmul.f32 0.0010283801, %v1035_v8 }
  0x39   : > { %v651_v57 = vadd.f32 %v645_v52, %v561_v43 }
  0x3a   : > { %1116 = vrot.lane.b32.xlu0 %v1046_v14, %s3420_s17  ;;  %v740_v53 = vadd.f32 %v734_v44, %v650_v47 }
  0x3b   : > { %v741_v60 = vadd.f32 %v735_v54, %v651_v57 }
  0x3c   : > { %v830_v59 = vadd.f32 %v824_v50, %v740_v53 }
  0x3d   : > { %v831_v2 = vadd.f32 %v825_v58, %v741_v60 }
  0x3e   : > { %v914_v0 = vadd.f32 %v908_v42, %v830_v59 }
  0x3f   : > { %v915_v6 = vadd.f32 %v909_v62, %v831_v2 }
  0x40   : > { %v986_v3 = vadd.f32 %v914_v0, %v3543_v61 }
  0x41   : > { %v987_v45 = vadd.f32 %v981_v4, %v915_v6 }
  0x42   : > { %v1049_v9 = vadd.f32 %v1043_v1, %v986_v3 }
  0x43   : > { %v1050_v12 = vadd.f32 %v1044_v11, %v987_v45  ;;  %v274_v45 = vld [vmem:[%s3520_s20 + $0x1] sm:$0xff] }
  0x44   : > { %1122 = vrot.lane.b32.xlu2 %v1049_v9, %s3420_s17  ;;  %v214_v9 = vld [vmem:[%s3520_s20] sm:$0xff] }
  0x45   : > { %v216_v11 = vld [vmem:[%s3520_s20 + $0x20] sm:$0xff] }
  0x4c   : > { %1124 = vrot.lane.b32.xlu2 %v1050_v12, %s3420_s17  ;;  %v276_v12 = vld [vmem:[%s3520_s20 + $0x21] sm:$0xff] }
  0x9c   : > { %v1119_v14 = vpop.permute.xlu1 %1118 }
  0x9d   : > { %v1135_v15 = vsel %vm1132_vm0, 0.0, %v1119_v14 }
  0x9e   : > { %v3588_v7 = vsel %vm1139_vm1, %v1135_v15, 0.0  ;;  %v1123_v21 = vpop.permute.xlu2 %1122  ;;  %v226_v15 = vmul.f32 0.0010283801, %v214_v9 }
  0x9f   : > { %v3591_v61 = vmul.f32 0.007598758, %v3588_v7  ;;  %v1137_v31 = vsel %vm1132_vm0, 0.0, %v1123_v21  ;;  %v3646_v40 = vmul.f32 0.036000773, %v3588_v7 }
  0xa0   : > { %v3625_v34 = vsel %vm1139_vm1, %v1137_v31, 0.0  ;;  %v1226_v50 = vmul.f32 0.10936069, %v3588_v7  ;;  %v1262_v56 = vmul.f32 0.21300554, %v3588_v7 }
  0xa1   : > { %1168 = vrot.lane.b32.xlu2 %v3591_v61, %s3421_s21  ;;  %v3636_v38 = vmul.f32 0.007598758, %v3625_v34  ;;  %v3667_v47 = vmul.f32 0.036000773, %v3625_v34  ;;  %v1228_v54 = vmul.f32 0.10936069, %v3625_v34 }
  0xa2   : > { %v1264_v62 = vmul.f32 0.21300554, %v3625_v34  ;;  %v1298_v63 = vmul.f32 0.26601171, %v3588_v7  ;;  %v1300_v3 = vmul.f32 0.26601171, %v3625_v34 }
  0xa3   : > { %v228_v21 = vmul.f32 0.0010283801, %v216_v11  ;;  %v3777_v11 = vmul.f32 0.007598758, %v3549_v5 }
  0xa4   : > { %v1115_v17 = vpop.permute.xlu0 %1114 }
  0xa5   : > { %v1133_v18 = vsel %vm1132_vm0, 0.0, %v1115_v17  ;;  %v292_v17 = vmul.f32 0.007598758, %v274_v45  ;;  %v231_v45 = vmul.f32 0.0010283801, %v3528_v48 }
  0xa6   : > { %v3597_v19 = vsel %vm1139_vm1, %v1133_v18, 0.0  ;;  %v1121_v23 = vpop.permute.xlu1 %1120  ;;  %v1125_v32 = vpop.permute.xlu2 %1124  ;;  %v364_v18 = vld [vmem:[%s3520_s20 + $0x2] sm:$0xff] }
  0xa7   : > { %v3600_v20 = vmul.f32 0.007598758, %v3597_v19  ;;  %v1136_v24 = vsel %vm1132_vm0, 0.0, %v1121_v23  ;;  %v1138_v33 = vsel %vm1132_vm0, 0.0, %v1125_v32  ;;  %v3639_v39 = vmul.f32 0.036000773, %v3597_v19 }
  0xa8   : > { %v3606_v25 = vsel %vm1139_vm1, %v1136_v24, 0.0  ;;  %v3628_v35 = vsel %vm1139_vm1, %v1138_v33, 0.0  ;;  %v1224_v46 = vmul.f32 0.10936069, %v3597_v19  ;;  %v1260_v42 = vmul.f32 0.21300554, %v3597_v19 }
  0xa9   : > { %1164 = vrot.lane.b32.xlu0 %v3600_v20, %s3421_s21  ;;  %v3610_v29 = vmul.f32 0.007598758, %v3606_v25  ;;  %v3631_v36 = vmul.f32 0.007598758, %v3628_v35  ;;  %v3651_v41 = vmul.f32 0.036000773, %v3606_v25 }
  0xaa   : > { %v3657_v44 = vmul.f32 0.036000773, %v3628_v35  ;;  %v1227_v51 = vmul.f32 0.10936069, %v3606_v25  ;;  %v1229_v53 = vmul.f32 0.10936069, %v3628_v35 }
  0xab   : > { %1174 = vrot.lane.b32.xlu2 %v3631_v36, %s3421_s21  ;;  %v1263_v57 = vmul.f32 0.21300554, %v3606_v25  ;;  %v1265_v59 = vmul.f32 0.21300554, %v3628_v35  ;;  %v1296_v60 = vmul.f32 0.26601171, %v3597_v19 }
  0xac   : > { %v1117_v26 = vpop.permute.xlu0 %1116  ;;  %v1299_v0 = vmul.f32 0.26601171, %v3606_v25  ;;  %v1301_v2 = vmul.f32 0.26601171, %v3628_v35  ;;  %v294_v23 = vmul.f32 0.007598758, %v276_v12 }
  0xad   : > { %v1134_v28 = vsel %vm1132_vm0, 0.0, %v1117_v26  ;;  %v366_v24 = vld [vmem:[%s3520_s20 + $0x22] sm:$0xff]  ;;  %v382_v31 = vmul.f32 0.036000773, %v364_v18  ;;  %v3783_v18 = vld [vmem:[%s3520_s20 + $0x4a] sm:$0xff] }
  0xae   : > { %v3613_v30 = vsel %vm1139_vm1, %v1134_v28, 0.0  ;;  %v298_v28 = vadd.f32 %v292_v17, %v226_v15  ;;  %v454_v32 = vld [vmem:[%s3520_s20 + $0x3] sm:$0xff]  ;;  %v457_v17 = vld [vmem:[%s3520_s20 + $0x2b] sm:$0xff] }
  0xaf   : > { %v3617_v27 = vmul.f32 0.007598758, %v3613_v30  ;;  %v3654_v43 = vmul.f32 0.036000773, %v3613_v30  ;;  %v1225_v52 = vmul.f32 0.10936069, %v3613_v30 }
  0xb0   : > { %v1261_v58 = vmul.f32 0.21300554, %v3613_v30  ;;  %v1297_v1 = vmul.f32 0.26601171, %v3613_v30  ;;  %v3740_v33 = vld [vmem:[%s3520_s20 + $0x28] sm:$0xff] }
  0xb1   : > { %1170 = vrot.lane.b32.xlu0 %v3610_v29, %s3421_s21  ;;  %1166 = vrot.lane.b32.xlu1 %v3617_v27, %s3421_s21 }
  0xb3   : > { %1204 = vrot.lane.b32.xlu2 %v3646_v40, %s3422_s22 }
  0xb9   : > { %1200 = vrot.lane.b32.xlu0 %v3639_v39, %s3422_s22  ;;  %1172 = vrot.lane.b32.xlu1 %v3636_v38, %s3421_s21 }
  0xbb   : > { %1210 = vrot.lane.b32.xlu2 %v3657_v44, %s3422_s22 }
  0xc1   : > { %1206 = vrot.lane.b32.xlu0 %v3651_v41, %s3422_s22  ;;  %1202 = vrot.lane.b32.xlu1 %v3654_v43, %s3422_s22 }
  0xc3   : > { %1240 = vrot.lane.b32.xlu2 %v1226_v50, %s3423_s23 }
  0xc9   : > { %1236 = vrot.lane.b32.xlu0 %v1224_v46, %s3423_s23  ;;  %1208 = vrot.lane.b32.xlu1 %v3667_v47, %s3422_s22 }
  0xcb   : > { %1246 = vrot.lane.b32.xlu2 %v1229_v53, %s3423_s23 }
  0xd1   : > { %1242 = vrot.lane.b32.xlu0 %v1227_v51, %s3423_s23  ;;  %1238 = vrot.lane.b32.xlu1 %v1225_v52, %s3423_s23 }
  0xd3   : > { %1276 = vrot.lane.b32.xlu2 %v1262_v56, %s3424_s24 }
  0xd9   : > { %1272 = vrot.lane.b32.xlu0 %v1260_v42, %s3424_s24  ;;  %1244 = vrot.lane.b32.xlu1 %v1228_v54, %s3423_s23 }
  0xdb   : > { %1282 = vrot.lane.b32.xlu2 %v1265_v59, %s3424_s24 }
  0xe1   : > { %1278 = vrot.lane.b32.xlu0 %v1263_v57, %s3424_s24  ;;  %1274 = vrot.lane.b32.xlu1 %v1261_v58, %s3424_s24 }
  0xe3   : > { %1312 = vrot.lane.b32.xlu2 %v1298_v63, %s3425_s25 }
  0xe9   : > { %1308 = vrot.lane.b32.xlu0 %v1296_v60, %s3425_s25  ;;  %1280 = vrot.lane.b32.xlu1 %v1264_v62, %s3424_s24 }
  0xeb   : > { %1318 = vrot.lane.b32.xlu2 %v1301_v2, %s3425_s25  ;;  %v634_v2 = vld [vmem:[%s3520_s20 + $0x5] sm:$0xff] }
  0xf1   : > { %1314 = vrot.lane.b32.xlu0 %v1299_v0, %s3425_s25  ;;  %1310 = vrot.lane.b32.xlu1 %v1297_v1, %s3425_s25  ;;  %v3769_v0 = vld [vmem:[%s3520_s20 + $0xa] sm:$0xff] }
  0xf2   : > { %v546_v1 = vld [vmem:[%s3520_s20 + $0x24] sm:$0xff]  ;;  %v383_v5 = vmul.f32 0.036000773, %v3769_v0 }
  0xf3   : > { %1336 = vrot.lane.b32.xlu2 %v1262_v56, %s3426_s26  ;;  %v472_v56 = vmul.f32 0.10936069, %v454_v32 }
  0xf9   : > { %1332 = vrot.lane.b32.xlu0 %v1260_v42, %s3426_s26  ;;  %1316 = vrot.lane.b32.xlu1 %v1300_v3, %s3425_s25 }
  0xfb   : > { %1342 = vrot.lane.b32.xlu2 %v1265_v59, %s3426_s26  ;;  %v3711_v4 = vpop.permute.xlu2 %1168 }
  0xfc   : > { %5929 = vst [vmem:[#allocation5_spill] sm:$0xff] %v3711_v4 }
 0x101   : > { %1338 = vrot.lane.b32.xlu0 %v1263_v57, %s3426_s26  ;;  %1334 = vrot.lane.b32.xlu1 %v1261_v58, %s3426_s26  ;;  %v544_v57 = vld [vmem:[%s3520_s20 + $0x4] sm:$0xff] }
 0x103   : > { %1360 = vrot.lane.b32.xlu2 %v1226_v50, %s3427_s27  ;;  %v300_v50 = vadd.f32 %v294_v23, %v228_v21  ;;  %v455_v23 = vld [vmem:[%s3520_s20 + $0xb] sm:$0xff] }
 0x105   : > { %v3716_v6 = vpop.permute.xlu2 %1174 }
 0x109   : > { %1356 = vrot.lane.b32.xlu0 %v1224_v46, %s3427_s27  ;;  %1340 = vrot.lane.b32.xlu1 %v1264_v62, %s3426_s26  ;;  %v275_v46 = vld [vmem:[%s3520_s20 + $0x9] sm:$0xff] }
 0x10a   : > { %v3766_v60 = vmul.f32 0.007598758, %v275_v46  ;;  %v652_v46 = vmul.f32 0.26601171, %v634_v2  ;;  %v726_v2 = vld [vmem:[%s3520_s20 + $0x26] sm:$0xff] }
 0x10b   : > { %1366 = vrot.lane.b32.xlu2 %v1229_v53, %s3427_s27 }
 0x10d   : > { %v3721_v8 = vpop.permute.xlu2 %1204 }
 0x10e   : > { %5930 = vst [vmem:[#allocation6_spill] sm:$0xff] %v3721_v8  ;;  %v639_v8 = vld [vmem:[%s3520_s20 + $0x4d] sm:$0xff] }
 0x111   : > { %1362 = vrot.lane.b32.xlu0 %v1227_v51, %s3427_s27  ;;  %1358 = vrot.lane.b32.xlu1 %v1225_v52, %s3427_s27  ;;  %v384_v51 = vmul.f32 0.036000773, %v366_v24  ;;  %v456_v52 = vld [vmem:[%s3520_s20 + $0x23] sm:$0xff] }
 0x112   : > { %v474_v63 = vmul.f32 0.10936069, %v456_v52 }
 0x113   : > { %1384 = vrot.lane.b32.xlu2 %v3646_v40, %s3428_s28  ;;  %v3748_v40 = vld [vmem:[%s3520_s20 + $0x8] sm:$0xff]  ;;  %v390_v62 = vadd.f32 %v384_v51, %v300_v50  ;;  %v387_v51 = vmul.f32 0.036000773, %v3783_v18 }
 0x114   : > { %v227_v59 = vmul.f32 0.0010283801, %v3748_v40  ;;  %v724_v50 = vld [vmem:[%s3520_s20 + $0x6] sm:$0xff] }
 0x115   : > { %v3736_v26 = vpop.permute.xlu2 %1210  ;;  %v480_v24 = vadd.f32 %v474_v63, %v390_v62  ;;  %v545_v62 = vld [vmem:[%s3520_s20 + $0xc] sm:$0xff] }
 0x116   : > { %v299_v21 = vadd.f32 %v3766_v60, %v227_v59  ;;  %v473_v59 = vmul.f32 0.10936069, %v455_v23  ;;  %v549_v23 = vld [vmem:[%s3520_s20 + $0x4c] sm:$0xff] }
 0x119   : > { %1380 = vrot.lane.b32.xlu0 %v3639_v39, %s3428_s28  ;;  %1364 = vrot.lane.b32.xlu1 %v1228_v54, %s3427_s27  ;;  %v277_v39 = vld [vmem:[%s3520_s20 + $0x29] sm:$0xff]  ;;  %v388_v54 = vadd.f32 %v382_v31, %v298_v28  ;;  %v564_v28 = vmul.f32 0.21300554, %v546_v1 }
 0x11a   : > { %v3758_v58 = vmul.f32 0.007598758, %v277_v39  ;;  %v636_v31 = vld [vmem:[%s3520_s20 + $0x25] sm:$0xff] }
 0x11b   : > { %v3730_v14 = vpop.permute.xlu0 %1164  ;;  %1390 = vrot.lane.b32.xlu2 %v3657_v44, %s3428_s28  ;;  %v478_v9 = vadd.f32 %v472_v56, %v388_v54  ;;  %v562_v44 = vmul.f32 0.21300554, %v544_v57  ;;  %v475_v54 = vmul.f32 0.10936069, %v457_v17  ;;  %v547_v56 = vld [vmem:[%s3520_s20 + $0x2c] sm:$0xff]  ;;  %v570_v63 = vadd.f32 %v564_v28, %v480_v24 }
 0x11c   : > { %v459_v57 = vld [vmem:[%s3520_s20 + $0x4b] sm:$0xff]  ;;  %v654_v1 = vmul.f32 0.26601171, %v636_v31  ;;  %v563_v31 = vmul.f32 0.21300554, %v545_v62 }
 0x11d   : > { %v3773_v3 = vpop.permute.xlu2 %1240  ;;  %v637_v28 = vld [vmem:[%s3520_s20 + $0x2d] sm:$0xff]  ;;  %v567_v62 = vmul.f32 0.21300554, %v549_v23 }
 0x11e   : > { %5933 = vst [vmem:[#allocation9_spill] sm:$0xff] %v3773_v3  ;;  %v655_v16 = vmul.f32 0.26601171, %v637_v28  ;;  %v729_v28 = vld [vmem:[%s3520_s20 + $0x4e] sm:$0xff] }
 0x121   : > { %1386 = vrot.lane.b32.xlu0 %v3651_v41, %s3428_s28  ;;  %1382 = vrot.lane.b32.xlu1 %v3654_v43, %s3428_s28  ;;  %v229_v41 = vmul.f32 0.0010283801, %v3740_v33  ;;  %v3763_v43 = vld [vmem:[%s3520_s20 + $0x2a] sm:$0xff] }
 0x122   : > { %v385_v15 = vmul.f32 0.036000773, %v3763_v43 }
 0x123   : > { %v3752_v53 = vpop.permute.xlu1 %1166  ;;  %v3754_v42 = vpop.permute.xlu0 %1170  ;;  %v301_v12 = vadd.f32 %v3758_v58, %v229_v41  ;;  %1408 = vrot.lane.b32.xlu2 %v3591_v61, %s3429_s29  ;;  %v389_v41 = vadd.f32 %v383_v5, %v299_v21  ;;  %v477_v21 = vmul.f32 0.10936069, %v459_v57  ;;  %v565_v5 = vmul.f32 0.21300554, %v547_v56 }
 0x124   : > { %5931 = vst [vmem:[#allocation7_spill] sm:$0xff] %v3752_v53 }
 0x125   : > { %5932 = vst [vmem:[#allocation8_spill] sm:$0xff] %v3754_v42  ;;  %v391_v52 = vadd.f32 %v385_v15, %v301_v12  ;;  %v814_v12 = vld [vmem:[%s3520_s20 + $0x7] sm:$0xff]  ;;  %v479_v24 = vadd.f32 %v473_v59, %v389_v41  ;;  %v3232_v42 = vld [vmem:[%s3472_s16 + $0x4f] sm:$0xff] }
 0x126   : > { %v218_v15 = vld [vmem:[%s3520_s20 + $0x40] sm:$0xff]  ;;  %v832_v3 = vmul.f32 0.10936069, %v814_v12 }
 0x127   : > { %v481_v61 = vadd.f32 %v475_v54, %v391_v52  ;;  %v816_v52 = vld [vmem:[%s3520_s20 + $0x27] sm:$0xff] }
 0x128   : > { %v458_v54 = vld [vmem:[%s3520_s20 + $0x43] sm:$0xff]  ;;  %v834_v12 = vmul.f32 0.10936069, %v816_v52  ;;  %v747_v52 = vmul.f32 0.21300554, %v729_v28  ;;  %v903_v28 = vld [vmem:[%s3520_s20 + $0x50] sm:$0xff] }
 0x129   : > { %1404 = vrot.lane.b32.xlu0 %v3600_v20, %s3429_s29  ;;  %1388 = vrot.lane.b32.xlu1 %v3667_v47, %s3428_s28  ;;  %v568_v20 = vadd.f32 %v562_v44, %v478_v9  ;;  %v303_v47 = vadd.f32 %v3777_v11, %v231_v45  ;;  %v3806_v9 = vpop.permute.xlu2 %1246  ;;  %v742_v45 = vmul.f32 0.21300554, %v724_v50  ;;  %v660_v50 = vadd.f32 %v654_v1, %v570_v63  ;;  %v548_v41 = vld [vmem:[%s3520_s20 + $0x44] sm:$0xff]  ;;  %v727_v63 = vld [vmem:[%s3520_s20 + $0x2e] sm:$0xff] }
 0x12a   : > { %v571_v4 = vadd.f32 %v565_v5, %v481_v61  ;;  %v569_v1 = vadd.f32 %v563_v31, %v479_v24  ;;  %v657_v24 = vmul.f32 0.26601171, %v639_v8  ;;  %v3845_v8 = vmul.f32 0.0010283801, %v3588_v7  ;;  %v902_v7 = vld [vmem:[%s3520_s20 + $0x30] sm:$0xff] }
 0x12b   : > { %v3793_v32 = vpop.permute.xlu1 %1172  ;;  %v3795_v39 = vpop.permute.xlu0 %1200  ;;  %v658_v44 = vadd.f32 %v652_v46, %v568_v20  ;;  %v393_v17 = vadd.f32 %v387_v51, %v303_v47  ;;  %v278_v20 = vld [vmem:[%s3520_s20 + $0x41] sm:$0xff]  ;;  %v744_v47 = vmul.f32 0.21300554, %v726_v2  ;;  %v635_v51 = vld [vmem:[%s3520_s20 + $0xd] sm:$0xff]  ;;  %1414 = vrot.lane.b32.xlu2 %v3631_v36, %s3429_s29  ;;  %v476_v36 = vmul.f32 0.10936069, %v458_v54 }
 0x12c   : > { %5934 = vst [vmem:[#allocation10_spill] sm:$0xff] %v3793_v32  ;;  %v368_v46 = vld [vmem:[%s3520_s20 + $0x42] sm:$0xff]  ;;  %v653_v2 = vmul.f32 0.26601171, %v635_v51  ;;  %v296_v55 = vmul.f32 0.007598758, %v278_v20  ;;  %v661_v31 = vadd.f32 %v655_v16, %v571_v4 }
 0x12d   : > { %v483_v59 = vadd.f32 %v477_v21, %v393_v17  ;;  %v386_v22 = vmul.f32 0.036000773, %v368_v46  ;;  %v916_v21 = vmul.f32 0.036000773, %v3748_v40  ;;  %v745_v20 = vmul.f32 0.21300554, %v727_v63 }
 0x12e   : > { %5938 = vst [vmem:[#allocation14_spill] sm:$0xff] %v3845_v8  ;;  %v815_v16 = vld [vmem:[%s3520_s20 + $0xf] sm:$0xff] }
 0x12f   : > { %v573_v23 = vadd.f32 %v567_v62, %v483_v59  ;;  %v833_v63 = vmul.f32 0.10936069, %v815_v16 }
 0x131   : > { %1410 = vrot.lane.b32.xlu0 %v3610_v29, %s3429_s29  ;;  %1406 = vrot.lane.b32.xlu1 %v3617_v27, %s3429_s29  ;;  %v748_v29 = vadd.f32 %v742_v45, %v658_v44  ;;  %v230_v27 = vmul.f32 0.0010283801, %v218_v15  ;;  %v3831_v44 = vmul.f32 0.0010283801, %v3597_v19  ;;  %v750_v45 = vadd.f32 %v744_v47, %v660_v50  ;;  %v725_v15 = vld [vmem:[%s3520_s20 + $0xe] sm:$0xff]  ;;  %v3834_v17 = vpop.permute.xlu2 %1276  ;;  %v638_v50 = vld [vmem:[%s3520_s20 + $0x45] sm:$0xff] }
 0x132   : > { %5937 = vst [vmem:[#allocation13_spill] sm:$0xff] %v3834_v17  ;;  %v817_v19 = vld [vmem:[%s3520_s20 + $0x2f] sm:$0xff]  ;;  %v743_v40 = vmul.f32 0.21300554, %v725_v15  ;;  %v3863_v15 = vmul.f32 0.0010283801, %v3606_v25 }
 0x133   : > { %v3821_v56 = vpop.permute.xlu1 %1202  ;;  %v3823_v57 = vpop.permute.xlu0 %1206  ;;  %v838_v61 = vadd.f32 %v832_v3, %v748_v29  ;;  %v302_v5 = vadd.f32 %v296_v55, %v230_v27  ;;  %v659_v3 = vadd.f32 %v653_v2, %v569_v1  ;;  %v566_v55 = vmul.f32 0.21300554, %v548_v41  ;;  %v819_v27 = vld [vmem:[%s3520_s20 + $0x4f] sm:$0xff]  ;;  %1438 = vrot.lane.b32.xlu2 %v3845_v8, %s3430_s30 }
 0x134   : > { %5935 = vst [vmem:[#allocation11_spill] sm:$0xff] %v3821_v56  ;;  %v840_v51 = vadd.f32 %v834_v12, %v750_v45  ;;  %v751_v41 = vadd.f32 %v745_v20, %v661_v31  ;;  %v835_v59 = vmul.f32 0.10936069, %v817_v19  ;;  %v656_v2 = vmul.f32 0.26601171, %v638_v50  ;;  %v728_v45 = vld [vmem:[%s3520_s20 + $0x46] sm:$0xff] }
 0x135   : > { %5936 = vst [vmem:[#allocation12_spill] sm:$0xff] %v3823_v57  ;;  %v392_v46 = vadd.f32 %v386_v22, %v302_v5  ;;  %v922_v29 = vadd.f32 %v916_v21, %v838_v61  ;;  %v663_v22 = vadd.f32 %v657_v24, %v573_v23  ;;  %v749_v62 = vadd.f32 %v743_v40, %v659_v3  ;;  %v901_v12 = vld [vmem:[%s3520_s20 + $0x10] sm:$0xff]  ;;  %v818_v40 = vld [vmem:[%s3520_s20 + $0x47] sm:$0xff] }
 0x136   : > { %5942 = vst [vmem:[#allocation18_spill] sm:$0xff] %v3863_v15  ;;  %v1051_v5 = vmul.f32 0.0010283801, %v3769_v0  ;;  %v841_v31 = vadd.f32 %v835_v59, %v751_v41  ;;  %v919_v20 = vmul.f32 0.036000773, %v902_v7  ;;  %v977_v25 = vld [vmem:[%s3520_s20 + $0x31] sm:$0xff] }
 0x137   : > { %v482_v54 = vadd.f32 %v476_v36, %v392_v46  ;;  %v837_v36 = vmul.f32 0.10936069, %v819_v27  ;;  %v991_v23 = vadd.f32 %v922_v29, %v3766_v60  ;;  %v753_v24 = vadd.f32 %v747_v52, %v663_v22  ;;  %v976_v46 = vld [vmem:[%s3520_s20 + $0x11] sm:$0xff] }
 0x138   : > { %v917_v19 = vmul.f32 0.036000773, %v901_v12  ;;  %v746_v0 = vmul.f32 0.21300554, %v728_v45  ;;  %v3878_v60 = vmul.f32 0.0010283801, %v3628_v35  ;;  %v925_v22 = vadd.f32 %v919_v20, %v841_v31 }
 0x139   : > { %1434 = vrot.lane.b32.xlu0 %v3831_v44, %s3430_s30  ;;  %1412 = vrot.lane.b32.xlu1 %v3636_v38, %s3429_s29  ;;  %v918_v38 = vmul.f32 0.036000773, %v3740_v33  ;;  %v572_v1 = vadd.f32 %v566_v55, %v482_v54  ;;  %v3859_v33 = vmul.f32 0.0010283801, %v3613_v30  ;;  %v3865_v61 = vpop.permute.xlu2 %1282  ;;  %v839_v30 = vadd.f32 %v833_v63, %v749_v62  ;;  %v978_v29 = vld [vmem:[%s3520_s20 + $0x51] sm:$0xff] }
 0x13a   : > { %v1057_v52 = vadd.f32 %v1051_v5, %v991_v23  ;;  %v843_v54 = vadd.f32 %v837_v36, %v753_v24  ;;  %v989_v27 = vmul.f32 0.007598758, %v977_v25  ;;  %v1037_v35 = vld [vmem:[%s3520_s20 + $0x32] sm:$0xff]  ;;  %v988_v59 = vmul.f32 0.007598758, %v976_v46 }
 0x13b   : > { %v3848_v4 = vpop.permute.xlu1 %1208  ;;  %v3850_v47 = vpop.permute.xlu0 %1236  ;;  %5941 = vst [vmem:[#allocation17_spill] sm:$0xff] %v3859_v33  ;;  %v924_v21 = vadd.f32 %v918_v38, %v840_v51  ;;  %v662_v3 = vadd.f32 %v656_v2, %v572_v1  ;;  %v1053_v51 = vmul.f32 0.0010283801, %v3763_v43  ;;  %v921_v38 = vmul.f32 0.036000773, %v903_v28  ;;  %1444 = vrot.lane.b32.xlu2 %v3878_v60, %s3430_s30  ;;  %v1036_v7 = vld [vmem:[%s3520_s20 + $0x12] sm:$0xff] }
 0x13c   : > { %5939 = vst [vmem:[#allocation15_spill] sm:$0xff] %v3848_v4  ;;  %v923_v41 = vadd.f32 %v917_v19, %v839_v30  ;;  %v836_v63 = vmul.f32 0.10936069, %v818_v40  ;;  %v990_v45 = vmul.f32 0.007598758, %v978_v29  ;;  %v1038_v5 = vld [vmem:[%s3520_s20 + $0x52] sm:$0xff]  ;;  %v994_v36 = vadd.f32 %v989_v27, %v925_v22 }
 0x13d   : > { %5940 = vst [vmem:[#allocation16_spill] sm:$0xff] %v3850_v47  ;;  %v993_v16 = vadd.f32 %v924_v21, %v3758_v58  ;;  %v752_v62 = vadd.f32 %v746_v0, %v662_v3  ;;  %v3892_v58 = vmul.f32 0.0010283801, %v3625_v34  ;;  %v927_v2 = vadd.f32 %v921_v38, %v843_v54 }
 0x13e   : > { %v1054_v12 = vmul.f32 0.0010283801, %v1037_v35  ;;  %v1052_v21 = vmul.f32 0.0010283801, %v1036_v7  ;;  %v992_v23 = vadd.f32 %v988_v59, %v923_v41  ;;  %v920_v28 = vmul.f32 0.036000773, %v3528_v48 }
 0x13f   : > { %5945 = vst [vmem:[#allocation21_spill] sm:$0xff] %v3892_v58  ;;  %v1059_v1 = vadd.f32 %v1053_v51, %v993_v16  ;;  %v842_v24 = vadd.f32 %v836_v63, %v752_v62  ;;  %v1056_v20 = vmul.f32 0.0010283801, %v1038_v5  ;;  %v996_v25 = vadd.f32 %v990_v45, %v927_v2 }
 0x140   : > { %v1060_v30 = vadd.f32 %v1054_v12, %v994_v36  ;;  %v1058_v19 = vadd.f32 %v1052_v21, %v992_v23  ;;  %v1055_v46 = vmul.f32 0.0010283801, %v3783_v18 }
 0x141   : > { %1440 = vrot.lane.b32.xlu0 %v3863_v15, %s3430_s30  ;;  %1436 = vrot.lane.b32.xlu1 %v3859_v33, %s3430_s30  ;;  %v3894_v43 = vpop.permute.xlu2 %1312  ;;  %v926_v3 = vadd.f32 %v920_v28, %v842_v24  ;;  %v1062_v40 = vadd.f32 %v1056_v20, %v996_v25 }
 0x142   : > { %5946 = vst [vmem:[#allocation22_spill] sm:$0xff] %v3894_v43 }
 0x143   : > { %v3880_v55 = vpop.permute.xlu1 %1238  ;;  %v3882_v50 = vpop.permute.xlu0 %1242  ;;  %1468 = vrot.lane.b32.xlu2 %v1059_v1, %s3420_s17  ;;  %v995_v48 = vadd.f32 %v926_v3, %v3777_v11 }
 0x144   : > { %5943 = vst [vmem:[#allocation19_spill] sm:$0xff] %v3880_v55 }
 0x145   : > { %5944 = vst [vmem:[#allocation20_spill] sm:$0xff] %v3882_v50  ;;  %v1061_v38 = vadd.f32 %v1055_v46, %v995_v48 }
 0x149   : > { %1464 = vrot.lane.b32.xlu0 %v1057_v52, %s3420_s17  ;;  %1442 = vrot.lane.b32.xlu1 %v3892_v58, %s3430_s30  ;;  %v3906_v0 = vpop.permute.xlu2 %1318 }
 0x14b   : > { %v3901_v34 = vpop.permute.xlu1 %1244  ;;  %v3903_v31 = vpop.permute.xlu0 %1272  ;;  %1474 = vrot.lane.b32.xlu2 %v1062_v40, %s3420_s17 }
 0x14c   : > { %5947 = vst [vmem:[#allocation23_spill] sm:$0xff] %v3901_v34 }
 0x14d   : > { %5948 = vst [vmem:[#allocation24_spill] sm:$0xff] %v3903_v31 }
 0x151   : > { %1470 = vrot.lane.b32.xlu0 %v1060_v30, %s3420_s17  ;;  %1466 = vrot.lane.b32.xlu1 %v1058_v19, %s3420_s17  ;;  %v3917_v52 = vpop.permute.xlu2 %1336 }
 0x152   : > { %5951 = vst [vmem:[#allocation27_spill] sm:$0xff] %v3917_v52 }
 0x153   : > { %v3912_v16 = vpop.permute.xlu1 %1274  ;;  %v3914_v51 = vpop.permute.xlu0 %1278 }
 0x154   : > { %5949 = vst [vmem:[#allocation25_spill] sm:$0xff] %v3912_v16 }
 0x155   : > { %5950 = vst [vmem:[#allocation26_spill] sm:$0xff] %v3914_v51 }
 0x159   : > { %1472 = vrot.lane.b32.xlu1 %v1061_v38, %s3420_s17  ;;  %v3924_v22 = vpop.permute.xlu2 %1342 }
 0x15b   : > { %v3920_v54 = vpop.permute.xlu1 %1280  ;;  %v3922_v29 = vpop.permute.xlu0 %1308 }
 0x15c   : > { %5952 = vst [vmem:[#allocation28_spill] sm:$0xff] %v3920_v54 }
 0x15d   : > { %5953 = vst [vmem:[#allocation29_spill] sm:$0xff] %v3922_v29 }
 0x161   : > { %v3930_v27 = vpop.permute.xlu2 %1360 }
 0x162   : > { %5956 = vst [vmem:[#allocation32_spill] sm:$0xff] %v3930_v27 }
 0x163   : > { %v3926_v11 = vpop.permute.xlu1 %1310  ;;  %v3928_v18 = vpop.permute.xlu0 %1314 }
 0x164   : > { %5954 = vst [vmem:[#allocation30_spill] sm:$0xff] %v3926_v11 }
 0x165   : > { %5955 = vst [vmem:[#allocation31_spill] sm:$0xff] %v3928_v18 }
 0x169   : > { %v3936_v59 = vpop.permute.xlu2 %1366 }
 0x16b   : > { %v3932_v35 = vpop.permute.xlu1 %1316  ;;  %v3934_v41 = vpop.permute.xlu0 %1332 }
 0x16c   : > { %5957 = vst [vmem:[#allocation33_spill] sm:$0xff] %v3932_v35 }
 0x16d   : > { %5958 = vst [vmem:[#allocation34_spill] sm:$0xff] %v3934_v41 }
 0x171   : > { %v3942_v63 = vpop.permute.xlu2 %1384 }
 0x172   : > { %5961 = vst [vmem:[#allocation37_spill] sm:$0xff] %v3942_v63 }
 0x173   : > { %v3938_v7 = vpop.permute.xlu1 %1334  ;;  %v3940_v62 = vpop.permute.xlu0 %1338 }
 0x174   : > { %5959 = vst [vmem:[#allocation35_spill] sm:$0xff] %v3938_v7 }
 0x175   : > { %5960 = vst [vmem:[#allocation36_spill] sm:$0xff] %v3940_v62 }
 0x179   : > { %v3948_v45 = vpop.permute.xlu2 %1390 }
 0x17b   : > { %v3944_v1 = vpop.permute.xlu1 %1340  ;;  %v3946_v2 = vpop.permute.xlu0 %1356 }
 0x17c   : > { %5962 = vst [vmem:[#allocation38_spill] sm:$0xff] %v3944_v1 }
 0x17d   : > { %5963 = vst [vmem:[#allocation39_spill] sm:$0xff] %v3946_v2 }
 0x181   : > { %v3954_v5 = vpop.permute.xlu2 %1408 }
 0x182   : > { %5966 = vst [vmem:[#allocation42_spill] sm:$0xff] %v3954_v5 }
 0x183   : > { %v3950_v12 = vpop.permute.xlu1 %1358  ;;  %v3952_v21 = vpop.permute.xlu0 %1362 }
 0x184   : > { %5964 = vst [vmem:[#allocation40_spill] sm:$0xff] %v3950_v12 }
 0x185   : > { %5965 = vst [vmem:[#allocation41_spill] sm:$0xff] %v3952_v21 }
 0x189   : > { %v3960_v24 = vpop.permute.xlu2 %1414 }
 0x18b   : > { %v3956_v36 = vpop.permute.xlu1 %1364  ;;  %v3958_v23 = vpop.permute.xlu0 %1380 }
 0x18c   : > { %5967 = vst [vmem:[#allocation43_spill] sm:$0xff] %v3956_v36 }
 0x18d   : > { %5968 = vst [vmem:[#allocation44_spill] sm:$0xff] %v3958_v23 }
 0x191   : > { %v3966_v25 = vpop.permute.xlu2 %1438 }
 0x192   : > { %5971 = vst [vmem:[#allocation47_spill] sm:$0xff] %v3966_v25 }
 0x193   : > { %v3962_v28 = vpop.permute.xlu1 %1382  ;;  %v3964_v20 = vpop.permute.xlu0 %1386 }
 0x194   : > { %5969 = vst [vmem:[#allocation45_spill] sm:$0xff] %v3962_v28 }
 0x195   : > { %5970 = vst [vmem:[#allocation46_spill] sm:$0xff] %v3964_v20 }
 0x199   : > { %v3972_v3 = vpop.permute.xlu2 %1444 }
 0x19b   : > { %v3968_v30 = vpop.permute.xlu1 %1388  ;;  %v3970_v19 = vpop.permute.xlu0 %1404 }
 0x19c   : > { %5972 = vst [vmem:[#allocation48_spill] sm:$0xff] %v3968_v30 }
 0x19d   : > { %5973 = vst [vmem:[#allocation49_spill] sm:$0xff] %v3970_v19 }
 0x1a1   : > { %v1469_v46 = vpop.permute.xlu2 %1468 }
 0x1a2   : > { %v1484_v38 = vsel %vm1132_vm0, 0.0, %v1469_v46 }
 0x1a3   : > { %v3974_v40 = vpop.permute.xlu1 %1406  ;;  %v3976_v48 = vpop.permute.xlu0 %1410  ;;  %v3980_v5 = vsel %vm1139_vm1, %v1484_v38, 0.0 }
 0x1a4   : > { %5974 = vst [vmem:[#allocation50_spill] sm:$0xff] %v3974_v40  ;;  %v3983_v63 = vmul.f32 0.007598758, %v3980_v5  ;;  %v1574_v28 = vmul.f32 0.10936069, %v3980_v5 }
 0x1a5   : > { %5975 = vst [vmem:[#allocation51_spill] sm:$0xff] %v3976_v48  ;;  %v1610_v12 = vmul.f32 0.21300554, %v3980_v5  ;;  %v1646_v18 = vmul.f32 0.26601171, %v3980_v5 }
 0x1a6   : > { %1516 = vrot.lane.b32.xlu2 %v3983_v63, %s3421_s21 }
 0x1a9   : > { %v1475_v52 = vpop.permute.xlu2 %1474 }
 0x1aa   : > { %v1487_v43 = vsel %vm1132_vm0, 0.0, %v1475_v52 }
 0x1ab   : > { %v3985_v25 = vpop.permute.xlu1 %1412  ;;  %v3987_v27 = vpop.permute.xlu0 %1434  ;;  %v3993_v17 = vsel %vm1139_vm1, %v1487_v43, 0.0 }
 0x1ac   : > { %5976 = vst [vmem:[#allocation52_spill] sm:$0xff] %v3985_v25  ;;  %v3996_v46 = vmul.f32 0.007598758, %v3993_v17  ;;  %v4005_v25 = vmul.f32 0.036000773, %v3980_v5 }
 0x1ad   : > { %5977 = vst [vmem:[#allocation53_spill] sm:$0xff] %v3987_v27  ;;  %v1577_v21 = vmul.f32 0.10936069, %v3993_v17  ;;  %v1613_v62 = vmul.f32 0.21300554, %v3993_v17 }
 0x1ae   : > { %1522 = vrot.lane.b32.xlu2 %v3996_v46, %s3421_s21  ;;  %v1649_v23 = vmul.f32 0.26601171, %v3993_v17 }
 0x1b3   : > { %v3998_v38 = vpop.permute.xlu1 %1436  ;;  %v4000_v8 = vpop.permute.xlu0 %1440 }
 0x1b4   : > { %5978 = vst [vmem:[#allocation54_spill] sm:$0xff] %v3998_v38 }
 0x1b5   : > { %5979 = vst [vmem:[#allocation55_spill] sm:$0xff] %v4000_v8  ;;  %v4019_v8 = vmul.f32 0.036000773, %v3993_v17 }
 0x1b6   : > { %1552 = vrot.lane.b32.xlu2 %v4005_v25, %s3422_s22 }
 0x1bb   : > { %v4007_v30 = vpop.permute.xlu1 %1442  ;;  %v1465_v36 = vpop.permute.xlu0 %1464 }
 0x1bc   : > { %5980 = vst [vmem:[#allocation56_spill] sm:$0xff] %v4007_v30  ;;  %v1482_v43 = vsel %vm1132_vm0, 0.0, %v1465_v36 }
 0x1bd   : > { %v4013_v52 = vsel %vm1139_vm1, %v1482_v43, 0.0 }
 0x1be   : > { %v4016_v38 = vmul.f32 0.007598758, %v4013_v52  ;;  %1558 = vrot.lane.b32.xlu2 %v4019_v8, %s3422_s22  ;;  %v4053_v54 = vmul.f32 0.036000773, %v4013_v52  ;;  %v1572_v27 = vmul.f32 0.10936069, %v4013_v52 }
 0x1bf   : > { %v1608_v4 = vmul.f32 0.21300554, %v4013_v52  ;;  %v1644_v32 = vmul.f32 0.26601171, %v4013_v52 }
 0x1c0   : > { %1512 = vrot.lane.b32.xlu0 %v4016_v38, %s3421_s21 }
 0x1c3   : > { %v1467_v1 = vpop.permute.xlu1 %1466  ;;  %v1471_v30 = vpop.permute.xlu0 %1470 }
 0x1c4   : > { %v1483_v48 = vsel %vm1132_vm0, 0.0, %v1467_v1  ;;  %v1485_v36 = vsel %vm1132_vm0, 0.0, %v1471_v30 }
 0x1c5   : > { %v4028_v43 = vsel %vm1139_vm1, %v1483_v48, 0.0  ;;  %v4031_v40 = vsel %vm1139_vm1, %v1485_v36, 0.0 }
 0x1c6   : > { %v4034_v35 = vmul.f32 0.007598758, %v4028_v43  ;;  %v4037_v20 = vmul.f32 0.007598758, %v4031_v40  ;;  %1588 = vrot.lane.b32.xlu2 %v1574_v28, %s3423_s23  ;;  %v1573_v7 = vmul.f32 0.10936069, %v4028_v43 }
 0x1c7   : > { %v1575_v19 = vmul.f32 0.10936069, %v4031_v40  ;;  %v1609_v51 = vmul.f32 0.21300554, %v4028_v43  ;;  %v1611_v16 = vmul.f32 0.21300554, %v4031_v40 }
 0x1c8   : > { %1514 = vrot.lane.b32.xlu1 %v4034_v35, %s3421_s21  ;;  %1518 = vrot.lane.b32.xlu0 %v4037_v20, %s3421_s21  ;;  %v1645_v58 = vmul.f32 0.26601171, %v4028_v43  ;;  %v1647_v2 = vmul.f32 0.26601171, %v4031_v40 }
 0x1cb   : > { %v1473_v1 = vpop.permute.xlu1 %1472 }
 0x1cc   : > { %v1486_v30 = vsel %vm1132_vm0, 0.0, %v1473_v1  ;;  %v4062_v1 = vmul.f32 0.036000773, %v4028_v43 }
 0x1cd   : > { %v4047_v48 = vsel %vm1139_vm1, %v1486_v30, 0.0  ;;  %v4065_v30 = vmul.f32 0.036000773, %v4031_v40 }
 0x1ce   : > { %v4050_v36 = vmul.f32 0.007598758, %v4047_v48  ;;  %1594 = vrot.lane.b32.xlu2 %v1577_v21, %s3423_s23  ;;  %v4074_v34 = vmul.f32 0.036000773, %v4047_v48  ;;  %v4089_v11 = vmul.f32 0.10936069, %v4047_v48 }
 0x1d0   : > { %1520 = vrot.lane.b32.xlu1 %v4050_v36, %s3421_s21  ;;  %1548 = vrot.lane.b32.xlu0 %v4053_v54, %s3422_s22 }
 0x1d6   : > { %1624 = vrot.lane.b32.xlu2 %v1610_v12, %s3424_s24 }
 0x1d8   : > { %1550 = vrot.lane.b32.xlu1 %v4062_v1, %s3422_s22  ;;  %1554 = vrot.lane.b32.xlu0 %v4065_v30, %s3422_s22 }
 0x1de   : > { %1630 = vrot.lane.b32.xlu2 %v1613_v62, %s3424_s24 }
 0x1e0   : > { %1556 = vrot.lane.b32.xlu1 %v4074_v34, %s3422_s22  ;;  %1584 = vrot.lane.b32.xlu0 %v1572_v27, %s3423_s23 }
 0x1e6   : > { %1660 = vrot.lane.b32.xlu2 %v1646_v18, %s3425_s25  ;;  %v1612_v18 = vmul.f32 0.21300554, %v4047_v48 }
 0x1e8   : > { %1586 = vrot.lane.b32.xlu1 %v1573_v7, %s3423_s23  ;;  %1590 = vrot.lane.b32.xlu0 %v1575_v19, %s3423_s23 }
 0x1ee   : > { %1666 = vrot.lane.b32.xlu2 %v1649_v23, %s3425_s25 }
 0x1f0   : > { %1592 = vrot.lane.b32.xlu1 %v4089_v11, %s3423_s23  ;;  %1620 = vrot.lane.b32.xlu0 %v1608_v4, %s3424_s24 }
 0x1f6   : > { %1684 = vrot.lane.b32.xlu2 %v1610_v12, %s3426_s26 }
 0x1f8   : > { %1622 = vrot.lane.b32.xlu1 %v1609_v51, %s3424_s24  ;;  %1626 = vrot.lane.b32.xlu0 %v1611_v16, %s3424_s24 }
 0x1fe   : > { %1690 = vrot.lane.b32.xlu2 %v1613_v62, %s3426_s26 }
 0x200   : > { %1628 = vrot.lane.b32.xlu1 %v1612_v18, %s3424_s24  ;;  %1656 = vrot.lane.b32.xlu0 %v1644_v32, %s3425_s25  ;;  %v4107_v23 = vpop.permute.xlu2 %1516  ;;  %v1648_v32 = vmul.f32 0.26601171, %v4047_v48 }
 0x201   : > { %5981 = vst [vmem:[#allocation57_spill] sm:$0xff] %v4107_v23 }
 0x206   : > { %1708 = vrot.lane.b32.xlu2 %v1574_v28, %s3427_s27  ;;  %v3215_v28 = vld [vmem:[%s3472_s16 + $0x21] sm:$0xff] }
 0x207   : > { %v306_v23 = vmul.f32 %v3215_v28, %v3215_v28 }
 0x208   : > { %1658 = vrot.lane.b32.xlu1 %v1645_v58, %s3425_s25  ;;  %1662 = vrot.lane.b32.xlu0 %v1647_v2, %s3425_s25  ;;  %v4114_v12 = vpop.permute.xlu2 %1522  ;;  %v3214_v58 = vld [vmem:[%s3472_s16 + $0x20] sm:$0xff] }
 0x209   : > { %v234_v2 = vmul.f32 %v3214_v58, %v3214_v58  ;;  %v312_v50 = vmul.f32 0.007598758, %v306_v23  ;;  %v3217_v58 = vld [vmem:[%s3472_s16 + $0x23] sm:$0xff] }
 0x20a   : > { %v486_v28 = vmul.f32 %v3217_v58, %v3217_v58 }
 0x20c   : > { %v492_v23 = vmul.f32 0.10936069, %v486_v28 }
 0x20e   : > { %1714 = vrot.lane.b32.xlu2 %v1577_v21, %s3427_s27 }
 0x210   : > { %1664 = vrot.lane.b32.xlu1 %v1648_v32, %s3425_s25  ;;  %1680 = vrot.lane.b32.xlu0 %v1608_v4, %s3426_s26  ;;  %v4120_v62 = vpop.permute.xlu2 %1552  ;;  %v240_v32 = vmul.f32 0.0010283801, %v234_v2  ;;  %v3216_v4 = vld [vmem:[%s3472_s16 + $0x22] sm:$0xff] }
 0x211   : > { %5982 = vst [vmem:[#allocation58_spill] sm:$0xff] %v4120_v62  ;;  %v396_v55 = vmul.f32 %v3216_v4, %v3216_v4  ;;  %v3218_v2 = vld [vmem:[%s3472_s16 + $0x24] sm:$0xff] }
 0x212   : > { %v576_v4 = vmul.f32 %v3218_v2, %v3218_v2  ;;  %v3222_v2 = vld [vmem:[%s3472_s16 + $0x26] sm:$0xff] }
 0x216   : > { %1732 = vrot.lane.b32.xlu2 %v4005_v25, %s3428_s28 }
 0x218   : > { %1682 = vrot.lane.b32.xlu1 %v1609_v51, %s3426_s26  ;;  %1686 = vrot.lane.b32.xlu0 %v1611_v16, %s3426_s26  ;;  %v4129_v21 = vpop.permute.xlu2 %1558  ;;  %v318_v16 = vadd.f32 %v312_v50, %v240_v32  ;;  %v402_v51 = vmul.f32 0.036000773, %v396_v55  ;;  %v582_v55 = vmul.f32 0.21300554, %v576_v4  ;;  %v3220_v32 = vld [vmem:[%s3472_s16 + $0x4c] sm:$0xff] }
 0x219   : > { %v579_v58 = vmul.f32 %v3220_v32, %v3220_v32  ;;  %v3224_v4 = vld [vmem:[%s3472_s16 + $0x4d] sm:$0xff] }
 0x21a   : > { %v408_v25 = vadd.f32 %v402_v51, %v318_v16 }
 0x21c   : > { %v498_v50 = vadd.f32 %v492_v23, %v408_v25  ;;  %v585_v23 = vmul.f32 0.21300554, %v579_v58 }
 0x21e   : > { %1738 = vrot.lane.b32.xlu2 %v4019_v8, %s3428_s28  ;;  %v3221_v8 = vld [vmem:[%s3472_s16] sm:$0xff]  ;;  %v588_v51 = vadd.f32 %v582_v55, %v498_v50 }
 0x21f   : > { %v232_v16 = vmul.f32 %v3221_v8, %v3221_v8  ;;  %v3225_v55 = vld [vmem:[%s3472_s16 + $0x2] sm:$0xff] }
 0x220   : > { %1688 = vrot.lane.b32.xlu1 %v1612_v18, %s3426_s26  ;;  %1704 = vrot.lane.b32.xlu0 %v1572_v27, %s3427_s27  ;;  %v4137_v62 = vpop.permute.xlu2 %1588  ;;  %v3219_v27 = vld [vmem:[%s3472_s16 + $0x25] sm:$0xff] }
 0x221   : > { %5983 = vst [vmem:[#allocation59_spill] sm:$0xff] %v4137_v62  ;;  %v666_v18 = vmul.f32 %v3219_v27, %v3219_v27  ;;  %v3223_v62 = vld [vmem:[%s3472_s16 + $0x1] sm:$0xff]  ;;  %v669_v27 = vmul.f32 %v3224_v4, %v3224_v4  ;;  %v591_v4 = vadd.f32 %v585_v23, %v3573_v37 }
 0x222   : > { %v3226_v8 = vld [vmem:[%s3472_s16 + $0x27] sm:$0xff] }
 0x223   : > { %v672_v28 = vmul.f32 0.26601171, %v666_v18  ;;  %v394_v18 = vmul.f32 %v3225_v55, %v3225_v55  ;;  %v3228_v55 = vld [vmem:[%s3472_s16 + $0x3] sm:$0xff] }
 0x224   : > { %v3230_v37 = vld [vmem:[%s3472_s16 + $0x8] sm:$0xff] }
 0x225   : > { %v678_v32 = vadd.f32 %v672_v28, %v588_v51  ;;  %v400_v41 = vmul.f32 0.036000773, %v394_v18  ;;  %v484_v51 = vmul.f32 %v3228_v55, %v3228_v55  ;;  %v3229_v28 = vld [vmem:[%s3472_s16 + $0x28] sm:$0xff]  ;;  %v4168_v23 = vmul.f32 %v3230_v37, %v3230_v37 }
 0x226   : > { %1756 = vrot.lane.b32.xlu2 %v3983_v63, %s3429_s29  ;;  %v238_v63 = vmul.f32 0.0010283801, %v232_v16 }
 0x227   : > { %v490_v18 = vmul.f32 0.10936069, %v484_v51  ;;  %v3236_v51 = vld [vmem:[%s3472_s16 + $0x50] sm:$0xff] }
 0x228   : > { %1706 = vrot.lane.b32.xlu1 %v1573_v7, %s3427_s27  ;;  %1710 = vrot.lane.b32.xlu0 %v1575_v19, %s3427_s27  ;;  %v756_v7 = vmul.f32 %v3222_v2, %v3222_v2  ;;  %v304_v19 = vmul.f32 %v3223_v62, %v3223_v62  ;;  %v4148_v25 = vpop.permute.xlu2 %1594  ;;  %v846_v2 = vmul.f32 %v3226_v8, %v3226_v8 }
 0x22a   : > { %v310_v50 = vmul.f32 0.007598758, %v304_v19  ;;  %v762_v62 = vmul.f32 0.21300554, %v756_v7  ;;  %v235_v7 = vmul.f32 %v3229_v28, %v3229_v28  ;;  %v852_v57 = vmul.f32 0.10936069, %v846_v2 }
 0x22b   : > { %v3234_v2 = vld [vmem:[%s3472_s16 + $0x29] sm:$0xff] }
 0x22c   : > { %v316_v19 = vadd.f32 %v310_v50, %v238_v63  ;;  %v768_v8 = vadd.f32 %v762_v62, %v678_v32  ;;  %v3233_v32 = vld [vmem:[%s3472_s16 + $0x4] sm:$0xff]  ;;  %v307_v55 = vmul.f32 %v3234_v2, %v3234_v2  ;;  %v933_v37 = vmul.f32 0.036000773, %v235_v7 }
 0x22d   : > { %v574_v62 = vmul.f32 %v3233_v32, %v3233_v32  ;;  %v3237_v2 = vld [vmem:[%s3472_s16 + $0x5] sm:$0xff] }
 0x22e   : > { %1762 = vrot.lane.b32.xlu2 %v3996_v46, %s3429_s29  ;;  %v406_v50 = vadd.f32 %v400_v41, %v316_v19  ;;  %v858_v28 = vadd.f32 %v852_v57, %v768_v8  ;;  %v241_v19 = vmul.f32 0.0010283801, %v235_v7  ;;  %v930_v8 = vmul.f32 %v3236_v51, %v3236_v51  ;;  %v3239_v7 = vld [vmem:[%s3472_s16 + $0x2b] sm:$0xff] }
 0x22f   : > { %v580_v32 = vmul.f32 0.21300554, %v574_v62  ;;  %v3241_v62 = vld [vmem:[%s3472_s16 + $0x51] sm:$0xff] }
 0x230   : > { %1712 = vrot.lane.b32.xlu1 %v4089_v11, %s3427_s27  ;;  %1728 = vrot.lane.b32.xlu0 %v4053_v54, %s3428_s28  ;;  %v675_v11 = vmul.f32 0.26601171, %v669_v27  ;;  %v3227_v54 = vld [vmem:[%s3472_s16 + $0x4e] sm:$0xff]  ;;  %v4165_v56 = vpop.permute.xlu2 %1624 }
 0x231   : > { %v759_v16 = vmul.f32 %v3227_v54, %v3227_v54  ;;  %5984 = vst [vmem:[#allocation60_spill] sm:$0xff] %v4165_v56  ;;  %v3231_v27 = vld [vmem:[%s3472_s16 + $0x9] sm:$0xff]  ;;  %v849_v54 = vmul.f32 %v3232_v42, %v3232_v42  ;;  %v4179_v42 = vmul.f32 0.0010283801, %v3980_v5  ;;  %v664_v56 = vmul.f32 %v3237_v2, %v3237_v2 }
 0x232   : > { %v4157_v58 = vpop.permute.xlu0 %1512  ;;  %v305_v46 = vmul.f32 %v3231_v27, %v3231_v27  ;;  %v681_v29 = vadd.f32 %v675_v11, %v591_v4  ;;  %v3235_v11 = vld [vmem:[%s3472_s16 + $0xa] sm:$0xff]  ;;  %v496_v27 = vadd.f32 %v490_v18, %v406_v50  ;;  %v936_v18 = vmul.f32 0.036000773, %v930_v8  ;;  %v3243_v8 = vld [vmem:[%s3472_s16 + $0x40] sm:$0xff] }
 0x233   : > { %v765_v63 = vmul.f32 0.21300554, %v759_v16  ;;  %5985 = vst [vmem:[#allocation61_spill] sm:$0xff] %v4179_v42  ;;  %v4189_v16 = vmul.f32 %v3235_v11, %v3235_v11  ;;  %v855_v57 = vmul.f32 0.10936069, %v849_v54  ;;  %v939_v11 = vadd.f32 %v933_v37, %v858_v28 }
 0x234   : > { %v4186_v41 = vmul.f32 0.007598758, %v305_v46  ;;  %v313_v46 = vmul.f32 0.007598758, %v307_v55  ;;  %v487_v54 = vmul.f32 %v3239_v7, %v3239_v7  ;;  %v999_v55 = vmul.f32 %v3241_v62, %v3241_v62 }
 0x235   : > { %v771_v5 = vadd.f32 %v765_v63, %v681_v29  ;;  %v401_v53 = vmul.f32 0.036000773, %v4189_v16  ;;  %v586_v37 = vadd.f32 %v580_v32, %v496_v27  ;;  %v236_v7 = vmul.f32 %v3243_v8, %v3243_v8 }
 0x236   : > { %1786 = vrot.lane.b32.xlu2 %v4179_v42, %s3430_s30  ;;  %v3240_v42 = vld [vmem:[%s3472_s16 + $0xb] sm:$0xff]  ;;  %v319_v63 = vadd.f32 %v313_v46, %v241_v19  ;;  %v1005_v19 = vadd.f32 %v939_v11, %v313_v46  ;;  %v493_v32 = vmul.f32 0.10936069, %v487_v54 }
 0x237   : > { %v485_v29 = vmul.f32 %v3240_v42, %v3240_v42  ;;  %v861_v28 = vadd.f32 %v855_v57, %v771_v5  ;;  %v4209_v42 = vmul.f32 0.0010283801, %v3993_v17  ;;  %v3244_v5 = vld [vmem:[%s3472_s16 + $0xc] sm:$0xff] }
 0x238   : > { %1730 = vrot.lane.b32.xlu1 %v4062_v1, %s3428_s28  ;;  %1734 = vrot.lane.b32.xlu0 %v4065_v30, %s3428_s28  ;;  %v239_v30 = vmul.f32 0.0010283801, %v4168_v23  ;;  %v4196_v15 = vpop.permute.xlu2 %1630  ;;  %v3245_v17 = vld [vmem:[%s3472_s16 + $0x2c] sm:$0xff] }
 0x239   : > { %v491_v57 = vmul.f32 0.10936069, %v485_v29  ;;  %v577_v31 = vmul.f32 %v3245_v17, %v3245_v17  ;;  %v942_v46 = vadd.f32 %v936_v18, %v861_v28  ;;  %v3246_v11 = vld [vmem:[%s3472_s16 + $0x52] sm:$0xff]  ;;  %v242_v29 = vmul.f32 0.0010283801, %v236_v7  ;;  %v3251_v7 = vld [vmem:[%s3472_s16 + $0x42] sm:$0xff] }
 0x23a   : > { %v4181_v4 = vpop.permute.xlu1 %1514  ;;  %v4183_v1 = vpop.permute.xlu0 %1518  ;;  %v317_v51 = vadd.f32 %v4186_v41, %v239_v30  ;;  %v3242_v30 = vld [vmem:[%s3472_s16 + $0x6] sm:$0xff]  ;;  %v1065_v8 = vmul.f32 %v3246_v11, %v3246_v11 }
 0x23b   : > { %5986 = vst [vmem:[#allocation62_spill] sm:$0xff] %v4181_v4  ;;  %v754_v2 = vmul.f32 %v3242_v30, %v3242_v30  ;;  %v1002_v30 = vmul.f32 0.007598758, %v999_v55  ;;  %v3249_v17 = vld [vmem:[%s3472_s16 + $0xd] sm:$0xff]  ;;  %v583_v28 = vmul.f32 0.21300554, %v577_v31 }
 0x23c   : > { %5987 = vst [vmem:[#allocation63_spill] sm:$0xff] %v4183_v1  ;;  %v3238_v1 = vld [vmem:[%s3472_s16 + $0x2a] sm:$0xff]  ;;  %v665_v47 = vmul.f32 %v3249_v17, %v3249_v17 }
 0x23d   : > { %v397_v4 = vmul.f32 %v3238_v1, %v3238_v1  ;;  %v670_v1 = vmul.f32 0.26601171, %v664_v56  ;;  %v575_v56 = vmul.f32 %v3244_v5, %v3244_v5  ;;  %v3250_v11 = vld [vmem:[%s3472_s16 + $0x2d] sm:$0xff] }
 0x23e   : > { %1792 = vrot.lane.b32.xlu2 %v4209_v42, %s3430_s30 }
 0x23f   : > { %v403_v50 = vmul.f32 0.036000773, %v397_v4  ;;  %v1068_v33 = vmul.f32 0.0010283801, %v397_v4  ;;  %v676_v4 = vadd.f32 %v670_v1, %v586_v37  ;;  %v581_v55 = vmul.f32 0.21300554, %v575_v56 }
 0x240   : > { %1736 = vrot.lane.b32.xlu1 %v4074_v34, %s3428_s28  ;;  %1752 = vrot.lane.b32.xlu0 %v4016_v38, %s3429_s29  ;;  %v407_v38 = vadd.f32 %v401_v53, %v317_v51  ;;  %v3247_v53 = vld [vmem:[%s3472_s16 + $0x7] sm:$0xff]  ;;  %v667_v37 = vmul.f32 %v3250_v11, %v3250_v11 }
 0x241   : > { %v409_v27 = vadd.f32 %v403_v50, %v319_v63  ;;  %v844_v51 = vmul.f32 %v3247_v53, %v3247_v53  ;;  %v4223_v63 = vpop.permute.xlu2 %1660  ;;  %v1074_v54 = vadd.f32 %v1068_v33, %v1005_v19  ;;  %v1071_v33 = vmul.f32 0.0010283801, %v1065_v8  ;;  %v3252_v56 = vld [vmem:[%s3472_s16 + $0x43] sm:$0xff]  ;;  %v3256_v11 = vld [vmem:[%s3472_s16 + $0x2e] sm:$0xff] }
 0x242   : > { %v4212_v62 = vpop.permute.xlu1 %1520  ;;  %v4214_v34 = vpop.permute.xlu0 %1548  ;;  %5990 = vst [vmem:[#allocation66_spill] sm:$0xff] %v4223_v63  ;;  %v497_v50 = vadd.f32 %v491_v57, %v407_v38  ;;  %v488_v31 = vmul.f32 %v3252_v56, %v3252_v56  ;;  %v3254_v8 = vld [vmem:[%s3472_s16 + $0x45] sm:$0xff] }
 0x243   : > { %5988 = vst [vmem:[#allocation64_spill] sm:$0xff] %v4212_v62  ;;  %v760_v62 = vmul.f32 0.21300554, %v754_v2  ;;  %v499_v18 = vadd.f32 %v493_v32, %v409_v27  ;;  %v1008_v2 = vadd.f32 %v1002_v30, %v942_v46  ;;  %v850_v38 = vmul.f32 0.10936069, %v844_v51  ;;  %v3253_v27 = vld [vmem:[%s3472_s16 + $0x44] sm:$0xff] }
 0x244   : > { %5989 = vst [vmem:[#allocation65_spill] sm:$0xff] %v4214_v34  ;;  %v3248_v34 = vld [vmem:[%s3472_s16 + $0x41] sm:$0xff]  ;;  %v578_v32 = vmul.f32 %v3253_v27, %v3253_v27  ;;  %v671_v30 = vmul.f32 0.26601171, %v665_v47  ;;  %v673_v51 = vmul.f32 0.26601171, %v667_v37 }
 0x245   : > { %v308_v5 = vmul.f32 %v3248_v34, %v3248_v34  ;;  %v766_v19 = vadd.f32 %v760_v62, %v676_v4  ;;  %v398_v34 = vmul.f32 %v3251_v7, %v3251_v7  ;;  %v668_v62 = vmul.f32 %v3254_v8, %v3254_v8  ;;  %v3255_v4 = vld [vmem:[%s3472_s16 + $0xe] sm:$0xff]  ;;  %v3257_v27 = vld [vmem:[%s3472_s16 + $0x46] sm:$0xff] }
 0x246   : > { %v589_v17 = vadd.f32 %v583_v28, %v499_v18  ;;  %1816 = vrot.lane.b32.xlu2 %v1074_v54, %s3420_s17  ;;  %v584_v56 = vmul.f32 0.21300554, %v578_v32  ;;  %v758_v63 = vmul.f32 %v3257_v27, %v3257_v27  ;;  %v4244_v47 = vmul.f32 0.0010283801, %v4013_v52  ;;  %v3258_v54 = vld [vmem:[%s3472_s16 + $0x47] sm:$0xff] }
 0x247   : > { %v314_v1 = vmul.f32 0.007598758, %v308_v5  ;;  %v404_v46 = vmul.f32 0.036000773, %v398_v34  ;;  %v755_v5 = vmul.f32 %v3255_v4, %v3255_v4  ;;  %v856_v28 = vadd.f32 %v850_v38, %v766_v19 }
 0x248   : > { %1754 = vrot.lane.b32.xlu1 %v4034_v35, %s3429_s29  ;;  %1758 = vrot.lane.b32.xlu0 %v4037_v20, %s3429_s29  ;;  %v587_v20 = vadd.f32 %v581_v55, %v497_v50  ;;  %v1077_v50 = vadd.f32 %v1071_v33, %v1008_v2  ;;  %v931_v55 = vmul.f32 0.036000773, %v4168_v23  ;;  %v674_v34 = vmul.f32 0.26601171, %v668_v62  ;;  %v3260_v23 = vld [vmem:[%s3472_s16 + $0x2f] sm:$0xff] }
 0x249   : > { %v320_v57 = vadd.f32 %v314_v1, %v242_v29  ;;  %v494_v29 = vmul.f32 0.10936069, %v488_v31  ;;  %v757_v1 = vmul.f32 %v3256_v11, %v3256_v11  ;;  %v4247_v18 = vpop.permute.xlu2 %1666  ;;  %v848_v31 = vmul.f32 %v3258_v54, %v3258_v54  ;;  %v3262_v11 = vld [vmem:[%s3472_s16 + $0x30] sm:$0xff] }
 0x24a   : > { %v4234_v53 = vpop.permute.xlu1 %1550  ;;  %v4236_v35 = vpop.permute.xlu0 %1554  ;;  %v677_v8 = vadd.f32 %v671_v30, %v587_v20  ;;  %v761_v4 = vmul.f32 0.21300554, %v755_v5  ;;  %v847_v2 = vmul.f32 %v3260_v23, %v3260_v23  ;;  %v764_v19 = vmul.f32 0.21300554, %v758_v63 }
 0x24b   : > { %v410_v7 = vadd.f32 %v404_v46, %v320_v57  ;;  %v3259_v57 = vld [vmem:[%s3472_s16 + $0xf] sm:$0xff]  ;;  %v679_v46 = vadd.f32 %v673_v51, %v589_v17  ;;  %v763_v52 = vmul.f32 0.21300554, %v757_v1  ;;  %v937_v30 = vadd.f32 %v931_v55, %v856_v28 }
 0x24c   : > { %v845_v32 = vmul.f32 %v3259_v57, %v3259_v57  ;;  %v854_v5 = vmul.f32 0.10936069, %v848_v31  ;;  %v767_v17 = vadd.f32 %v761_v4, %v677_v8  ;;  %v853_v27 = vmul.f32 0.10936069, %v847_v2  ;;  %v3263_v4 = vld [vmem:[%s3472_s16 + $0x11] sm:$0xff] }
 0x24d   : > { %v500_v37 = vadd.f32 %v494_v29, %v410_v7  ;;  %v3261_v29 = vld [vmem:[%s3472_s16 + $0x10] sm:$0xff]  ;;  %v929_v7 = vmul.f32 %v3262_v11, %v3262_v11  ;;  %v769_v1 = vadd.f32 %v763_v52, %v679_v46  ;;  %v935_v63 = vmul.f32 0.036000773, %v3532_v49 }
 0x24e   : > { %v851_v51 = vmul.f32 0.10936069, %v845_v32  ;;  %1822 = vrot.lane.b32.xlu2 %v1077_v50, %s3420_s17  ;;  %v4268_v55 = vmul.f32 0.0010283801, %v4031_v40  ;;  %v1003_v31 = vadd.f32 %v937_v30, %v4186_v41  ;;  %v997_v57 = vmul.f32 %v3263_v4, %v3263_v4 }
 0x24f   : > { %v590_v33 = vadd.f32 %v584_v56, %v500_v37  ;;  %v4265_v37 = vmul.f32 0.0010283801, %v4028_v43  ;;  %v859_v49 = vadd.f32 %v853_v27, %v769_v1  ;;  %v934_v40 = vmul.f32 0.036000773, %v929_v7  ;;  %v3264_v43 = vld [vmem:[%s3472_s16 + $0x31] sm:$0xff] }
 0x250   : > { %1760 = vrot.lane.b32.xlu1 %v4050_v36, %s3429_s29  ;;  %1782 = vrot.lane.b32.xlu0 %v4244_v47, %s3430_s30  ;;  %v928_v36 = vmul.f32 %v3261_v29, %v3261_v29  ;;  %v857_v50 = vadd.f32 %v851_v51, %v767_v17  ;;  %v998_v32 = vmul.f32 %v3264_v43, %v3264_v43  ;;  %v3266_v17 = vld [vmem:[%s3472_s16 + $0x32] sm:$0xff]  ;;  %v4288_v29 = vmul.f32 0.0010283801, %v4047_v48 }
 0x251   : > { %v680_v62 = vadd.f32 %v674_v34, %v590_v33  ;;  %v4270_v28 = vpop.permute.xlu2 %1684  ;;  %v1066_v34 = vmul.f32 0.0010283801, %v4189_v16  ;;  %v1000_v33 = vmul.f32 0.007598758, %v997_v57  ;;  %v1064_v51 = vmul.f32 %v3266_v17, %v3266_v17 }
 0x252   : > { %v4256_v38 = vpop.permute.xlu1 %1556  ;;  %v4258_v20 = vpop.permute.xlu0 %1584  ;;  %5991 = vst [vmem:[#allocation67_spill] sm:$0xff] %v4270_v28  ;;  %v932_v8 = vmul.f32 0.036000773, %v928_v36  ;;  %v1070_v48 = vmul.f32 0.0010283801, %v3557_v13 }
 0x253   : > { %v770_v56 = vadd.f32 %v764_v19, %v680_v62  ;;  %v1072_v23 = vadd.f32 %v1066_v34, %v1003_v31  ;;  %v3265_v19 = vld [vmem:[%s3472_s16 + $0x12] sm:$0xff]  ;;  %v940_v62 = vadd.f32 %v934_v40, %v859_v49  ;;  %v1069_v1 = vmul.f32 0.0010283801, %v1064_v51 }
 0x254   : > { %v938_v2 = vadd.f32 %v932_v8, %v857_v50  ;;  %v1063_v30 = vmul.f32 %v3265_v19, %v3265_v19 }
 0x255   : > { %v860_v54 = vadd.f32 %v854_v5, %v770_v56  ;;  %v1001_v5 = vmul.f32 0.007598758, %v998_v32 }
 0x256   : > { %v1004_v11 = vadd.f32 %v1000_v33, %v938_v2 }
 0x257   : > { %v941_v16 = vadd.f32 %v935_v63, %v860_v54  ;;  %v1006_v7 = vadd.f32 %v1001_v5, %v940_v62 }
 0x258   : > { %1784 = vrot.lane.b32.xlu1 %v4265_v37, %s3430_s30  ;;  %1788 = vrot.lane.b32.xlu0 %v4268_v55, %s3430_s30 }
 0x259   : > { %v1007_v52 = vadd.f32 %v941_v16, %v3553_v10  ;;  %v1691_v36 = vpop.permute.xlu2 %1690  ;;  %v1067_v10 = vmul.f32 0.0010283801, %v1063_v30  ;;  %v1075_v34 = vadd.f32 %v1069_v1, %v1006_v7  ;;  %v1535_v30 = vadd.f32 %v4114_v12, %v4209_v42 }
 0x25a   : > { %v4280_v46 = vpop.permute.xlu1 %1586  ;;  %v4282_v41 = vpop.permute.xlu0 %1590 }
 0x25b   : > { %v1073_v63 = vadd.f32 %v1067_v10, %v1004_v11  ;;  %v1076_v8 = vadd.f32 %v1070_v48, %v1007_v52  ;;  %v1187_v52 = vadd.f32 %v3716_v6, %v3878_v60  ;;  %v1571_v51 = vadd.f32 %v4129_v21, %v1535_v30 }
 0x25d   : > { %v1223_v62 = vadd.f32 %v3736_v26, %v1187_v52  ;;  %v1607_v10 = vadd.f32 %v4148_v25, %v1571_v51  ;;  %v1182_v51 = vadd.f32 %v3730_v14, %v3831_v44  ;;  %v6000_v14 = vld [vmem:[#allocation65_spill] sm:$0xff] }
 0x25f   : > { %v1259_v17 = vadd.f32 %v3806_v9, %v1223_v62  ;;  %v1643_v1 = vadd.f32 %v4196_v15, %v1607_v10 }
 0x260   : > { %1790 = vrot.lane.b32.xlu1 %v4288_v29, %s3430_s30  ;;  %1812 = vrot.lane.b32.xlu0 %v1072_v23, %s3420_s17 }
 0x261   : > { %v4297_v54 = vpop.permute.xlu2 %1708  ;;  %v1295_v11 = vadd.f32 %v3865_v61, %v1259_v17  ;;  %v1679_v26 = vadd.f32 %v4247_v18, %v1643_v1 }
 0x262   : > { %v4293_v27 = vpop.permute.xlu1 %1592  ;;  %v4295_v56 = vpop.permute.xlu0 %1620  ;;  %5992 = vst [vmem:[#allocation68_spill] sm:$0xff] %v4297_v54  ;;  %v4813_v54 = vld [vmem:[%s3520_s20 + $0xb] sm:$0xff] }
 0x263   : > { %v1331_v60 = vadd.f32 %v3906_v0, %v1295_v11  ;;  %v1703_v21 = vadd.f32 %v1691_v36, %v1679_v26 }
 0x265   : > { %v1355_v12 = vadd.f32 %v3924_v22, %v1331_v60  ;;  %v1218_v60 = vadd.f32 %v3795_v39, %v1182_v51  ;;  %v6001_v39 = vld [vmem:[#allocation24_spill] sm:$0xff] }
 0x267   : > { %v1379_v9 = vadd.f32 %v3936_v59, %v1355_v12  ;;  %v1530_v12 = vadd.f32 %v4157_v58, %v4244_v47  ;;  %v6004_v47 = vld [vmem:[#allocation18_spill] sm:$0xff] }
 0x268   : > { %1814 = vrot.lane.b32.xlu1 %v1073_v63, %s3420_s17  ;;  %1818 = vrot.lane.b32.xlu0 %v1075_v34, %s3420_s17 }
 0x269   : > { %v1715_v4 = vpop.permute.xlu2 %1714  ;;  %v1403_v61 = vadd.f32 %v3948_v45, %v1379_v9  ;;  %v5999_v9 = vld [vmem:[#allocation16_spill] sm:$0xff]  ;;  %v1566_v44 = vadd.f32 %v6000_v14, %v1530_v12 }
 0x26a   : > { %v4302_v31 = vpop.permute.xlu1 %1622  ;;  %v4304_v50 = vpop.permute.xlu0 %1626  ;;  %v1727_v25 = vadd.f32 %v1715_v4, %v1703_v21  ;;  %v1254_v21 = vadd.f32 %v5999_v9, %v1218_v60  ;;  %v6008_v12 = vld [vmem:[#allocation12_spill] sm:$0xff] }
 0x26b   : > { %v1427_v0 = vadd.f32 %v3960_v24, %v1403_v61 }
 0x26d   : > { %v1457_v15 = vadd.f32 %v3972_v3, %v1427_v0  ;;  %v1290_v0 = vadd.f32 %v6001_v39, %v1254_v21  ;;  %v6009_v21 = vld [vmem:[#allocation34_spill] sm:$0xff]  ;;  %v6011_v39 = vld [vmem:[#allocation63_spill] sm:$0xff] }
 0x26f   : > { %v4354_v52 = vmul.f32 %v1457_v15, %v1457_v15 }
 0x270   : > { %1820 = vrot.lane.b32.xlu1 %v1076_v8, %s3420_s17 }
 0x271   : > { %v4311_v40 = vpop.permute.xlu2 %1732 }
 0x272   : > { %v4307_v57 = vpop.permute.xlu1 %1628  ;;  %v4309_v49 = vpop.permute.xlu0 %1656  ;;  %5993 = vst [vmem:[#allocation69_spill] sm:$0xff] %v4311_v40 }
 0x279   : > { %v1739_v16 = vpop.permute.xlu2 %1738 }
 0x27a   : > { %v4313_v43 = vpop.permute.xlu1 %1658  ;;  %v4315_v32 = vpop.permute.xlu0 %1662  ;;  %v1751_v48 = vadd.f32 %v1739_v16, %v1727_v25 }
 0x281   : > { %v4321_v2 = vpop.permute.xlu2 %1756 }
 0x282   : > { %v4317_v13 = vpop.permute.xlu1 %1664  ;;  %v4319_v23 = vpop.permute.xlu0 %1680  ;;  %5994 = vst [vmem:[#allocation70_spill] sm:$0xff] %v4321_v2 }
 0x289   : > { %v1763_v5 = vpop.permute.xlu2 %1762 }
 0x28a   : > { %v4325_v33 = vpop.permute.xlu1 %1682  ;;  %v4327_v19 = vpop.permute.xlu0 %1686  ;;  %v1775_v22 = vadd.f32 %v1763_v5, %v1751_v48  ;;  %v1602_v48 = vadd.f32 %v4258_v20, %v1566_v44  ;;  %v6010_v20 = vld [vmem:[#allocation62_spill] sm:$0xff] }
 0x28b   : > { %v1531_v44 = vadd.f32 %v6010_v20, %v4265_v37  ;;  %v6015_v37 = vld [vmem:[#allocation21_spill] sm:$0xff] }
 0x28c   : > { %v1638_v51 = vadd.f32 %v4295_v56, %v1602_v48  ;;  %v6013_v56 = vld [vmem:[#allocation20_spill] sm:$0xff] }
 0x291   : > { %v4344_v42 = vpop.permute.xlu2 %1786 }
 0x292   : > { %v4336_v7 = vpop.permute.xlu1 %1688  ;;  %v4338_v6 = vpop.permute.xlu0 %1704  ;;  %5995 = vst [vmem:[#allocation71_spill] sm:$0xff] %v4344_v42 }
 0x299   : > { %v1793_v8 = vpop.permute.xlu2 %1792 }
 0x29a   : > { %v4348_v63 = vpop.permute.xlu1 %1706  ;;  %v4350_v34 = vpop.permute.xlu0 %1710  ;;  %v1805_v18 = vadd.f32 %v1793_v8, %v1775_v22  ;;  %v6003_v22 = vld [vmem:[#allocation7_spill] sm:$0xff]  ;;  %v6005_v8 = vld [vmem:[#allocation8_spill] sm:$0xff] }
 0x29c   : > { %v4356_v30 = vmul.f32 %v1805_v18, %v1805_v18  ;;  %v4358_v59 = vmul.f32 %v1805_v18, %v1457_v15  ;;  %v6002_v15 = vld [vmem:[#allocation17_spill] sm:$0xff]  ;;  %v1185_v18 = vadd.f32 %v6005_v8, %v6004_v47  ;;  %v6014_v8 = vld [vmem:[#allocation39_spill] sm:$0xff] }
 0x29d   : > { %v1183_v58 = vadd.f32 %v6003_v22, %v6002_v15  ;;  %v1533_v15 = vadd.f32 %v6011_v39, %v4268_v55  ;;  %v1674_v22 = vadd.f32 %v4309_v49, %v1638_v51  ;;  %v6016_v55 = vld [vmem:[#allocation10_spill] sm:$0xff]  ;;  %v6017_v51 = vld [vmem:[#allocation25_spill] sm:$0xff] }
 0x29e   : > { %5996 = vst [vmem:[#allocation72_spill] sm:$0xff] %v4356_v30  ;;  %v4364_v4 = vadd.f32 %v4356_v30, %v4354_v52  ;;  %v1221_v9 = vadd.f32 %v6008_v12, %v1185_v18  ;;  %v1567_v18 = vadd.f32 %v4234_v53, %v1531_v44  ;;  %v1186_v49 = vadd.f32 %v6016_v55, %v6015_v37  ;;  %v6018_v12 = vld [vmem:[#allocation26_spill] sm:$0xff]  ;;  %v6020_v44 = vld [vmem:[#allocation15_spill] sm:$0xff]  ;;  %v6027_v55 = vld [vmem:[#allocation64_spill] sm:$0xff] }
 0x29f   : > { %5997 = vst [vmem:[#allocation73_spill] sm:$0xff] %v4358_v59  ;;  %v6021_v39 = vld [vmem:[#allocation30_spill] sm:$0xff] }
 0x2a0   : > { %5998 = vst [vmem:[#allocation74_spill] sm:$0xff] %v4364_v4  ;;  %v1257_v48 = vadd.f32 %v6013_v56, %v1221_v9  ;;  %v1603_v20 = vadd.f32 %v4280_v46, %v1567_v18  ;;  %v6023_v56 = vld [vmem:[#allocation49_spill] sm:$0xff]  ;;  %v6024_v46 = vld [vmem:[#allocation35_spill] sm:$0xff]  ;;  %v6025_v18 = vld [vmem:[#allocation36_spill] sm:$0xff] }
 0x2a1   : > { %v1817_v24 = vpop.permute.xlu2 %1816  ;;  %v4804_v30 = vld [vmem:[%s3520_s20 + $0x5] sm:$0xff]  ;;  %6065 = vst [vmem:[#allocation15_spill] sm:$0xff] %v4813_v54 }
 0x2a2   : > { %v4360_v45 = vpop.permute.xlu1 %1712  ;;  %v1729_v36 = vpop.permute.xlu0 %1728  ;;  %v1832_v16 = vsel %vm1132_vm0, 0.0, %v1817_v24  ;;  %v6006_v24 = vld [vmem:[#allocation29_spill] sm:$0xff]  ;;  %v1293_v9 = vadd.f32 %v6018_v12, %v1257_v48 }
 0x2a3   : > { %v4368_v3 = vsel %vm1139_vm1, %v1832_v16, 0.0  ;;  %v1326_v16 = vadd.f32 %v6006_v24, %v1290_v0  ;;  %v6012_v0 = vld [vmem:[#allocation19_spill] sm:$0xff] }
 0x2a4   : > { %v4371_v62 = vmul.f32 0.007598758, %v4368_v3 }
 0x2a5   : > { %v1350_v14 = vadd.f32 %v6009_v21, %v1326_v16  ;;  %v1569_v16 = vadd.f32 %v4236_v35, %v1533_v15  ;;  %v6019_v21 = vld [vmem:[#allocation44_spill] sm:$0xff] }
 0x2a6   : > { %1864 = vrot.lane.b32.xlu2 %v4371_v62, %s3421_s21  ;;  %6064 = vst [vmem:[#allocation44_spill] sm:$0xff] %v4804_v30 }
 0x2a7   : > { %v1374_v24 = vadd.f32 %v6014_v8, %v1350_v14  ;;  %v1605_v53 = vadd.f32 %v4282_v41, %v1569_v16  ;;  %v6026_v16 = vld [vmem:[#allocation53_spill] sm:$0xff] }
 0x2a9   : > { %v1823_v11 = vpop.permute.xlu2 %1822  ;;  %v1398_v14 = vadd.f32 %v6019_v21, %v1374_v24  ;;  %v1641_v48 = vadd.f32 %v4304_v50, %v1605_v53  ;;  %v6030_v21 = vld [vmem:[#allocation41_spill] sm:$0xff] }
 0x2aa   : > { %v4373_v5 = vpop.permute.xlu1 %1730  ;;  %v4375_v17 = vpop.permute.xlu0 %1734  ;;  %v1835_v10 = vsel %vm1132_vm0, 0.0, %v1823_v11  ;;  %v4406_v11 = vmul.f32 0.036000773, %v4368_v3 }
 0x2ab   : > { %v4384_v1 = vsel %vm1139_vm1, %v1835_v10, 0.0  ;;  %v6007_v10 = vld [vmem:[#allocation11_spill] sm:$0xff]  ;;  %v1422_v8 = vadd.f32 %v6023_v56, %v1398_v14 }
 0x2ac   : > { %v4389_v26 = vmul.f32 0.007598758, %v4384_v1  ;;  %v1219_v60 = vadd.f32 %v6007_v10, %v1183_v58  ;;  %v1698_v10 = vadd.f32 %v4319_v23, %v1674_v22  ;;  %v1222_v23 = vadd.f32 %v6020_v44, %v1186_v49  ;;  %v6022_v22 = vld [vmem:[#allocation31_spill] sm:$0xff]  ;;  %v6031_v44 = vld [vmem:[#allocation28_spill] sm:$0xff] }
 0x2ad   : > { %v4439_v24 = vmul.f32 0.036000773, %v4384_v1  ;;  %v1534_v49 = vadd.f32 %v6027_v55, %v4288_v29 }
 0x2ae   : > { %1870 = vrot.lane.b32.xlu2 %v4389_v26, %s3421_s21  ;;  %v1255_v47 = vadd.f32 %v6012_v0, %v1219_v60  ;;  %v1722_v35 = vadd.f32 %v4338_v6, %v1698_v10  ;;  %v1329_v0 = vadd.f32 %v6022_v22, %v1293_v9  ;;  %v1452_v10 = vadd.f32 %v6026_v16, %v1422_v8 }
 0x2b0   : > { %v1291_v60 = vadd.f32 %v6017_v51, %v1255_v47  ;;  %v1639_v47 = vadd.f32 %v4302_v31, %v1603_v20  ;;  %v1746_v37 = vadd.f32 %v1729_v36, %v1722_v35  ;;  %v1353_v6 = vadd.f32 %v6025_v18, %v1329_v0  ;;  %v6028_v51 = vld [vmem:[#allocation23_spill] sm:$0xff]  ;;  %v6029_v36 = vld [vmem:[#allocation40_spill] sm:$0xff] }
 0x2b1   : > { %v1677_v31 = vadd.f32 %v4315_v32, %v1641_v48  ;;  %v1570_v20 = vadd.f32 %v4256_v38, %v1534_v49  ;;  %v6032_v32 = vld [vmem:[#allocation45_spill] sm:$0xff]  ;;  %v4459_v0 = vmul.f32 %v1452_v10, %v1452_v10  ;;  %v6041_v49 = vld [vmem:[#allocation54_spill] sm:$0xff] }
 0x2b2   : > { %v4392_v61 = vpop.permute.xlu1 %1736  ;;  %v1753_v25 = vpop.permute.xlu0 %1752  ;;  %v1327_v15 = vadd.f32 %v6021_v39, %v1291_v60  ;;  %v1258_v60 = vadd.f32 %v6028_v51, %v1222_v23  ;;  %v1675_v12 = vadd.f32 %v4313_v43, %v1639_v47  ;;  %v1377_v14 = vadd.f32 %v6030_v21, %v1353_v6  ;;  %v6033_v23 = vld [vmem:[#allocation46_spill] sm:$0xff] }
 0x2b3   : > { %v1770_v50 = vadd.f32 %v1753_v25, %v1746_v37  ;;  %v1701_v29 = vadd.f32 %v4327_v19, %v1677_v31  ;;  %v1606_v38 = vadd.f32 %v4293_v27, %v1570_v20  ;;  %v6036_v19 = vld [vmem:[#allocation33_spill] sm:$0xff]  ;;  %v6037_v37 = vld [vmem:[#allocation50_spill] sm:$0xff] }
 0x2b4   : > { %v1351_v41 = vadd.f32 %v6024_v46, %v1327_v15  ;;  %v1294_v39 = vadd.f32 %v6031_v44, %v1258_v60  ;;  %v1699_v15 = vadd.f32 %v4325_v33, %v1675_v12  ;;  %v1401_v22 = vadd.f32 %v6033_v23, %v1377_v14  ;;  %v6042_v60 = vld [vmem:[#allocation55_spill] sm:$0xff] }
 0x2b5   : > { %v1725_v8 = vadd.f32 %v4350_v34, %v1701_v29  ;;  %v1642_v6 = vadd.f32 %v4307_v57, %v1606_v38  ;;  %v4479_v34 = vmul.f32 0.10936069, %v4368_v3  ;;  %v6052_v38 = vld [vmem:[#allocation56_spill] sm:$0xff] }
 0x2b6   : > { %1900 = vrot.lane.b32.xlu2 %v4406_v11, %s3422_s22  ;;  %v1375_v9 = vadd.f32 %v6029_v36, %v1351_v41  ;;  %v1723_v56 = vadd.f32 %v4348_v63, %v1699_v15  ;;  %v1330_v48 = vadd.f32 %v6036_v19, %v1294_v39  ;;  %v6038_v41 = vld [vmem:[#allocation51_spill] sm:$0xff] }
 0x2b7   : > { %v1425_v18 = vadd.f32 %v6038_v41, %v1401_v22  ;;  %v1749_v27 = vadd.f32 %v4375_v17, %v1725_v8  ;;  %v1678_v31 = vadd.f32 %v4317_v13, %v1642_v6 }
 0x2b8   : > { %v1399_v25 = vadd.f32 %v6032_v32, %v1375_v9  ;;  %v1747_v16 = vadd.f32 %v4373_v5, %v1723_v56  ;;  %v6043_v5 = vld [vmem:[#allocation43_spill] sm:$0xff] }
 0x2b9   : > { %v1455_v12 = vadd.f32 %v6042_v60, %v1425_v18  ;;  %v1702_v17 = vadd.f32 %v4336_v7, %v1678_v31 }
 0x2ba   : > { %v1755_v59 = vpop.permute.xlu1 %1754  ;;  %v1759_v58 = vpop.permute.xlu0 %1758  ;;  %v1423_v46 = vadd.f32 %v6037_v37, %v1399_v25 }
 0x2bb   : > { %v1771_v57 = vadd.f32 %v1755_v59, %v1747_v16  ;;  %v4492_v15 = vmul.f32 %v1455_v12, %v1455_v12  ;;  %v1726_v13 = vadd.f32 %v4360_v45, %v1702_v17  ;;  %v4514_v45 = vmul.f32 0.10936069, %v4384_v1 }
 0x2bc   : > { %v1453_v51 = vadd.f32 %v6041_v49, %v1423_v46 }
 0x2bd   : > { %v1750_v25 = vadd.f32 %v4392_v61, %v1726_v13 }
 0x2be   : > { %1906 = vrot.lane.b32.xlu2 %v4439_v24, %s3422_s22  ;;  %v4490_v39 = vmul.f32 %v1453_v51, %v1453_v51 }
 0x2c2   : > { %v1761_v53 = vpop.permute.xlu1 %1760  ;;  %v1783_v35 = vpop.permute.xlu0 %1782 }
 0x2c3   : > { %v1800_v43 = vadd.f32 %v1783_v35, %v1770_v50  ;;  %v1773_v50 = vadd.f32 %v1759_v58, %v1749_v27  ;;  %v6044_v35 = vld [vmem:[#allocation48_spill] sm:$0xff]  ;;  %v1774_v8 = vadd.f32 %v1761_v53, %v1750_v25  ;;  %v1958_v27 = vmul.f32 0.21300554, %v4368_v3 }
 0x2c5   : > { %v4464_v47 = vmul.f32 %v1800_v43, %v1800_v43  ;;  %v4466_v33 = vmul.f32 %v1800_v43, %v1452_v10  ;;  %v6040_v10 = vld [vmem:[#allocation38_spill] sm:$0xff]  ;;  %v6049_v43 = vld [vmem:[#allocation52_spill] sm:$0xff] }
 0x2c6   : > { %v1354_v55 = vadd.f32 %v6040_v10, %v1330_v48  ;;  %1936 = vrot.lane.b32.xlu2 %v4479_v34, %s3423_s23 }
 0x2c7   : > { %6034 = vst [vmem:[#allocation16_spill] sm:$0xff] %v4464_v47  ;;  %v4476_v63 = vadd.f32 %v4464_v47, %v4459_v0 }
 0x2c8   : > { %6035 = vst [vmem:[#allocation65_spill] sm:$0xff] %v4466_v33  ;;  %v1378_v36 = vadd.f32 %v6043_v5, %v1354_v55  ;;  %v3272_v33 = vld [vmem:[%s3520_s20 + $0x49] sm:$0xff] }
 0x2c9   : > { %6039 = vst [vmem:[#allocation24_spill] sm:$0xff] %v4476_v63 }
 0x2ca   : > { %v1785_v9 = vpop.permute.xlu1 %1784  ;;  %v1789_v21 = vpop.permute.xlu0 %1788  ;;  %v1402_v44 = vadd.f32 %v6044_v35, %v1378_v36 }
 0x2cb   : > { %v1801_v14 = vadd.f32 %v1785_v9, %v1771_v57  ;;  %v1803_v20 = vadd.f32 %v1789_v21, %v1773_v50  ;;  %v1961_v50 = vmul.f32 0.21300554, %v4384_v1 }
 0x2cc   : > { %v1426_v32 = vadd.f32 %v6049_v43, %v1402_v44  ;;  %v1997_v44 = vmul.f32 0.26601171, %v4384_v1 }
 0x2cd   : > { %v4495_v59 = vmul.f32 %v1801_v14, %v1801_v14  ;;  %v4497_v58 = vmul.f32 %v1801_v14, %v1453_v51  ;;  %v4499_v7 = vmul.f32 %v1803_v20, %v1803_v20  ;;  %v4501_v29 = vmul.f32 %v1803_v20, %v1455_v12 }
 0x2ce   : > { %v1456_v56 = vadd.f32 %v6052_v38, %v1426_v32  ;;  %1942 = vrot.lane.b32.xlu2 %v4514_v45, %s3423_s23  ;;  %v1994_v14 = vmul.f32 0.26601171, %v4368_v3 }
 0x2cf   : > { %6045 = vst [vmem:[#allocation17_spill] sm:$0xff] %v4495_v59  ;;  %v4507_v23 = vadd.f32 %v4495_v59, %v4490_v39  ;;  %v4511_v22 = vadd.f32 %v4499_v7, %v4492_v15 }
 0x2d0   : > { %6046 = vst [vmem:[#allocation7_spill] sm:$0xff] %v4497_v58  ;;  %v4523_v41 = vmul.f32 %v1456_v56, %v1456_v56 }
 0x2d1   : > { %6047 = vst [vmem:[#allocation18_spill] sm:$0xff] %v4499_v7 }
 0x2d2   : > { %6048 = vst [vmem:[#allocation8_spill] sm:$0xff] %v4501_v29  ;;  %v1791_v19 = vpop.permute.xlu1 %1790  ;;  %v1813_v48 = vpop.permute.xlu0 %1812  ;;  %v3271_v29 = vld [vmem:[%s3520_s20 + $0x48] sm:$0xff] }
 0x2d3   : > { %6050 = vst [vmem:[#allocation29_spill] sm:$0xff] %v4507_v23  ;;  %v1804_v61 = vadd.f32 %v1791_v19, %v1774_v8  ;;  %v1830_v37 = vsel %vm1132_vm0, 0.0, %v1813_v48  ;;  %v4651_v58 = vmul.f32 %v3271_v29, %v3271_v29  ;;  %v3274_v29 = vld [vmem:[%s3520_s20 + $0x4a] sm:$0xff] }
 0x2d4   : > { %6051 = vst [vmem:[#allocation11_spill] sm:$0xff] %v4511_v22  ;;  %v4521_v46 = vsel %vm1139_vm1, %v1830_v37, 0.0  ;;  %v3279_v23 = vld [vmem:[%s3520_s20 + $0x27] sm:$0xff] }
 0x2d5   : > { %v4525_v18 = vmul.f32 %v1804_v61, %v1804_v61  ;;  %v4527_v6 = vmul.f32 %v1804_v61, %v1456_v56  ;;  %v4530_v16 = vmul.f32 0.007598758, %v4521_v46  ;;  %v4568_v21 = vmul.f32 0.036000773, %v4521_v46 }
 0x2d6   : > { %1972 = vrot.lane.b32.xlu2 %v1958_v27, %s3424_s24  ;;  %v4592_v43 = vmul.f32 0.10936069, %v4521_v46  ;;  %v1956_v8 = vmul.f32 0.21300554, %v4521_v46 }
 0x2d7   : > { %6053 = vst [vmem:[#allocation12_spill] sm:$0xff] %v4525_v18  ;;  %v4534_v53 = vadd.f32 %v4525_v18, %v4523_v41  ;;  %1860 = vrot.lane.b32.xlu0 %v4530_v16, %s3421_s21  ;;  %v3275_v18 = vld [vmem:[%s3520_s20 + $0x25] sm:$0xff] }
 0x2d8   : > { %6054 = vst [vmem:[#allocation34_spill] sm:$0xff] %v4527_v6 }
 0x2d9   : > { %6055 = vst [vmem:[#allocation62_spill] sm:$0xff] %v4534_v53  ;;  %v327_v53 = vmul.f32 %v3272_v33, %v3272_v33  ;;  %v4664_v33 = vmul.f32 %v3274_v29, %v3274_v29 }
 0x2da   : > { %v1815_v10 = vpop.permute.xlu1 %1814  ;;  %v1819_v55 = vpop.permute.xlu0 %1818 }
 0x2db   : > { %v1831_v49 = vsel %vm1132_vm0, 0.0, %v1815_v10  ;;  %v1833_v51 = vsel %vm1132_vm0, 0.0, %v1819_v55  ;;  %v3267_v10 = vld [vmem:[%s3520_s20 + $0x20] sm:$0xff] }
 0x2dc   : > { %v4543_v60 = vsel %vm1139_vm1, %v1831_v49, 0.0  ;;  %v4546_v12 = vsel %vm1139_vm1, %v1833_v51, 0.0  ;;  %v246_v55 = vmul.f32 %v3267_v10, %v3267_v10  ;;  %v3268_v49 = vld [vmem:[%s3520_s20 + $0x21] sm:$0xff] }
 0x2dd   : > { %v4549_v31 = vmul.f32 0.007598758, %v4543_v60  ;;  %v4552_v57 = vmul.f32 0.007598758, %v4546_v12  ;;  %v4577_v20 = vmul.f32 0.036000773, %v4543_v60  ;;  %v324_v51 = vmul.f32 %v3268_v49, %v3268_v49 }
 0x2de   : > { %1978 = vrot.lane.b32.xlu2 %v1961_v50, %s3424_s24  ;;  %v4580_v35 = vmul.f32 0.036000773, %v4546_v12  ;;  %v4600_v32 = vmul.f32 0.10936069, %v4543_v60  ;;  %v4603_v25 = vmul.f32 0.10936069, %v4546_v12 }
 0x2df   : > { %1862 = vrot.lane.b32.xlu1 %v4549_v31, %s3421_s21  ;;  %1866 = vrot.lane.b32.xlu0 %v4552_v57, %s3421_s21  ;;  %v1957_v48 = vmul.f32 0.21300554, %v4543_v60  ;;  %v1959_v61 = vmul.f32 0.21300554, %v4546_v12 }
 0x2e2   : > { %v1821_v5 = vpop.permute.xlu1 %1820 }
 0x2e3   : > { %v1834_v36 = vsel %vm1132_vm0, 0.0, %v1821_v5  ;;  %v1995_v5 = vmul.f32 0.26601171, %v4546_v12 }
 0x2e4   : > { %v4562_v17 = vsel %vm1139_vm1, %v1834_v36, 0.0  ;;  %v252_v36 = vmul.f32 0.0010283801, %v246_v55 }
 0x2e5   : > { %v4565_v9 = vmul.f32 0.007598758, %v4562_v17  ;;  %v4589_v13 = vmul.f32 0.036000773, %v4562_v17  ;;  %v4613_v56 = vmul.f32 0.10936069, %v4562_v17 }
 0x2e6   : > { %2008 = vrot.lane.b32.xlu2 %v1994_v14, %s3425_s25  ;;  %v330_v14 = vmul.f32 0.007598758, %v324_v51  ;;  %v1996_v51 = vmul.f32 0.26601171, %v4562_v17 }
 0x2e7   : > { %1868 = vrot.lane.b32.xlu1 %v4565_v9, %s3421_s21  ;;  %1896 = vrot.lane.b32.xlu0 %v4568_v21, %s3422_s22 }
 0x2e8   : > { %v336_v10 = vadd.f32 %v330_v14, %v252_v36  ;;  %v3273_v36 = vld [vmem:[%s3520_s20 + $0x24] sm:$0xff] }
 0x2e9   : > { %v594_v14 = vmul.f32 %v3273_v36, %v3273_v36  ;;  %v3276_v36 = vld [vmem:[%s3520_s20 + $0x4b] sm:$0xff] }
 0x2ee   : > { %2014 = vrot.lane.b32.xlu2 %v1997_v44, %s3425_s25  ;;  %v3269_v44 = vld [vmem:[%s3520_s20 + $0x22] sm:$0xff] }
 0x2ef   : > { %1898 = vrot.lane.b32.xlu1 %v4577_v20, %s3422_s22  ;;  %1902 = vrot.lane.b32.xlu0 %v4580_v35, %s3422_s22 }
 0x2f6   : > { %2032 = vrot.lane.b32.xlu2 %v1958_v27, %s3426_s26  ;;  %v4632_v27 = vmul.f32 0.21300554, %v4562_v17 }
 0x2f7   : > { %1904 = vrot.lane.b32.xlu1 %v4589_v13, %s3422_s22  ;;  %1932 = vrot.lane.b32.xlu0 %v4592_v43, %s3423_s23 }
 0x2fe   : > { %2038 = vrot.lane.b32.xlu2 %v1961_v50, %s3426_s26  ;;  %v1993_v50 = vmul.f32 0.26601171, %v4543_v60 }
 0x2ff   : > { %1934 = vrot.lane.b32.xlu1 %v4600_v32, %s3423_s23  ;;  %1938 = vrot.lane.b32.xlu0 %v4603_v25, %s3423_s23 }
 0x300   : > { %v4610_v38 = vpop.permute.xlu2 %1864 }
 0x306   : > { %2056 = vrot.lane.b32.xlu2 %v4479_v34, %s3427_s27  ;;  %v1992_v34 = vmul.f32 0.26601171, %v4521_v46 }
 0x307   : > { %1940 = vrot.lane.b32.xlu1 %v4613_v56, %s3423_s23  ;;  %1968 = vrot.lane.b32.xlu0 %v1956_v8, %s3424_s24 }
 0x308   : > { %v4621_v19 = vpop.permute.xlu2 %1870 }
 0x30e   : > { %2062 = vrot.lane.b32.xlu2 %v4514_v45, %s3427_s27 }
 0x30f   : > { %1970 = vrot.lane.b32.xlu1 %v1957_v48, %s3424_s24  ;;  %1974 = vrot.lane.b32.xlu0 %v1959_v61, %s3424_s24 }
 0x310   : > { %v4629_v37 = vpop.permute.xlu2 %1900 }
 0x316   : > { %2080 = vrot.lane.b32.xlu2 %v4406_v11, %s3428_s28  ;;  %v3270_v11 = vld [vmem:[%s3520_s20 + $0x23] sm:$0xff] }
 0x317   : > { %1976 = vrot.lane.b32.xlu1 %v4632_v27, %s3424_s24  ;;  %2004 = vrot.lane.b32.xlu0 %v1992_v34, %s3425_s25  ;;  %v414_v34 = vmul.f32 %v3269_v44, %v3269_v44  ;;  %v504_v6 = vmul.f32 %v3270_v11, %v3270_v11  ;;  %v255_v44 = vmul.f32 0.0010283801, %v4651_v58  ;;  %v600_v11 = vmul.f32 0.21300554, %v594_v14  ;;  %v3278_v14 = vld [vmem:[%s3520_s20 + $0x4c] sm:$0xff] }
 0x318   : > { %v4642_v45 = vpop.permute.xlu2 %1906 }
 0x319   : > { %v420_v49 = vmul.f32 0.036000773, %v414_v34  ;;  %v4661_v34 = vmul.f32 0.007598758, %v327_v53  ;;  %v507_v53 = vmul.f32 %v3276_v36, %v3276_v36 }
 0x31e   : > { %2086 = vrot.lane.b32.xlu2 %v4439_v24, %s3428_s28 }
 0x31f   : > { %2006 = vrot.lane.b32.xlu1 %v1993_v50, %s3425_s25  ;;  %2010 = vrot.lane.b32.xlu0 %v1995_v5, %s3425_s25  ;;  %v426_v50 = vadd.f32 %v420_v49, %v336_v10  ;;  %v510_v5 = vmul.f32 0.10936069, %v504_v6  ;;  %v684_v10 = vmul.f32 %v3275_v18, %v3275_v18  ;;  %v339_v6 = vadd.f32 %v4661_v34, %v255_v44 }
 0x320   : > { %v4656_v55 = vpop.permute.xlu2 %1936  ;;  %v423_v49 = vmul.f32 0.036000773, %v4664_v33  ;;  %v513_v18 = vmul.f32 0.10936069, %v507_v53  ;;  %v597_v44 = vmul.f32 %v3278_v14, %v3278_v14  ;;  %v3282_v53 = vld [vmem:[%s3520_s20 + $0x4e] sm:$0xff] }
 0x321   : > { %v516_v24 = vadd.f32 %v510_v5, %v426_v50  ;;  %v690_v22 = vmul.f32 0.26601171, %v684_v10 }
 0x322   : > { %v429_v5 = vadd.f32 %v423_v49, %v339_v6 }
 0x324   : > { %v519_v59 = vadd.f32 %v513_v18, %v429_v5  ;;  %v3284_v18 = vld [vmem:[%s3520_s20 + $0x4f] sm:$0xff] }
 0x325   : > { %v867_v14 = vmul.f32 %v3284_v18, %v3284_v18 }
 0x326   : > { %2104 = vrot.lane.b32.xlu2 %v4371_v62, %s3429_s29  ;;  %v864_v62 = vmul.f32 %v3279_v23, %v3279_v23 }
 0x327   : > { %2012 = vrot.lane.b32.xlu1 %v1996_v51, %s3425_s25  ;;  %2028 = vrot.lane.b32.xlu0 %v1956_v8, %s3426_s26  ;;  %v606_v51 = vadd.f32 %v600_v11, %v516_v24  ;;  %v3277_v8 = vld [vmem:[%s3520_s20 + $0x26] sm:$0xff]  ;;  %v603_v24 = vmul.f32 0.21300554, %v597_v44 }
 0x328   : > { %v4674_v29 = vpop.permute.xlu2 %1942  ;;  %v774_v50 = vmul.f32 %v3277_v8, %v3277_v8  ;;  %v3280_v11 = vld [vmem:[%s3520_s20 + $0x4d] sm:$0xff]  ;;  %v870_v49 = vmul.f32 0.10936069, %v864_v62  ;;  %v4699_v8 = vmul.f32 0.0010283801, %v4368_v3 }
 0x329   : > { %v696_v36 = vadd.f32 %v690_v22, %v606_v51  ;;  %v687_v10 = vmul.f32 %v3280_v11, %v3280_v11  ;;  %v777_v51 = vmul.f32 %v3282_v53, %v3282_v53  ;;  %v4719_v62 = vld [vmem:[%s3520_s20 + $0x2a] sm:$0xff] }
 0x32a   : > { %v780_v7 = vmul.f32 0.21300554, %v774_v50  ;;  %v4702_v50 = vld [vmem:[%s3520_s20 + $0x29] sm:$0xff]  ;;  %6058 = vst [vmem:[#allocation20_spill] sm:$0xff] %v4719_v62 }
 0x32b   : > { %v693_v23 = vmul.f32 0.26601171, %v687_v10  ;;  %6057 = vst [vmem:[#allocation19_spill] sm:$0xff] %v4702_v50  ;;  %v873_v10 = vmul.f32 0.10936069, %v867_v14 }
 0x32c   : > { %v786_v22 = vadd.f32 %v780_v7, %v696_v36  ;;  %v325_v7 = vmul.f32 %v4702_v50, %v4702_v50 }
 0x32e   : > { %2110 = vrot.lane.b32.xlu2 %v4389_v26, %s3429_s29  ;;  %v609_v26 = vadd.f32 %v603_v24, %v519_v59  ;;  %v876_v5 = vadd.f32 %v870_v49, %v786_v22  ;;  %v4712_v3 = vmul.f32 0.007598758, %v325_v7  ;;  %v4723_v24 = vmul.f32 %v4719_v62, %v4719_v62  ;;  %v3286_v22 = vld [vmem:[%s3520_s20 + $0x50] sm:$0xff]  ;;  %v4858_v62 = vld [vmem:[%s3520_s20 + $0x41] sm:$0xff] }
 0x32f   : > { %2030 = vrot.lane.b32.xlu1 %v1957_v48, %s3426_s26  ;;  %2034 = vrot.lane.b32.xlu0 %v1959_v61, %s3426_s26  ;;  %v4687_v48 = vld [vmem:[%s3520_s20 + $0x28] sm:$0xff]  ;;  %v945_v49 = vmul.f32 %v3286_v22, %v3286_v22  ;;  %6072 = vst [vmem:[#allocation64_spill] sm:$0xff] %v4858_v62 }
 0x330   : > { %v4684_v6 = vpop.permute.xlu2 %1972  ;;  %6056 = vst [vmem:[#allocation63_spill] sm:$0xff] %v4687_v48  ;;  %v4691_v61 = vmul.f32 %v4687_v48, %v4687_v48  ;;  %v699_v59 = vadd.f32 %v693_v23, %v609_v26  ;;  %v4727_v26 = vmul.f32 0.0010283801, %v4384_v1  ;;  %v4740_v1 = vld [vmem:[%s3520_s20 + $0x1] sm:$0xff] }
 0x331   : > { %v951_v53 = vmul.f32 0.036000773, %v945_v49  ;;  %v4903_v48 = vld [vmem:[%s3520_s20 + $0x44] sm:$0xff] }
 0x332   : > { %6079 = vst [vmem:[#allocation33_spill] sm:$0xff] %v4903_v48 }
 0x336   : > { %2134 = vrot.lane.b32.xlu2 %v4699_v8, %s3430_s30 }
 0x337   : > { %2036 = vrot.lane.b32.xlu1 %v4632_v27, %s3426_s26  ;;  %2052 = vrot.lane.b32.xlu0 %v4592_v43, %s3427_s27  ;;  %v948_v27 = vmul.f32 0.036000773, %v4691_v61  ;;  %v783_v43 = vmul.f32 0.21300554, %v777_v51  ;;  %v3287_v51 = vld [vmem:[%s3520_s20 + $0x51] sm:$0xff] }
 0x338   : > { %v4710_v44 = vpop.permute.xlu2 %1978  ;;  %v1011_v7 = vmul.f32 %v3287_v51, %v3287_v51  ;;  %v4752_v51 = vld [vmem:[%s3520_s20 + $0x2] sm:$0xff] }
 0x339   : > { %v954_v36 = vadd.f32 %v948_v27, %v876_v5  ;;  %v789_v11 = vadd.f32 %v783_v43, %v699_v59  ;;  %v4735_v5 = vld [vmem:[%s3520_s20] sm:$0xff]  ;;  %v322_v59 = vmul.f32 %v4740_v1, %v4740_v1 }
 0x33a   : > { %v244_v27 = vmul.f32 %v4735_v5, %v4735_v5 }
 0x33b   : > { %v879_v23 = vadd.f32 %v873_v10, %v789_v11  ;;  %v3290_v11 = vld [vmem:[%s3520_s20 + $0x52] sm:$0xff]  ;;  %v328_v49 = vmul.f32 0.007598758, %v322_v59 }
 0x33c   : > { %v1080_v10 = vmul.f32 %v3290_v11, %v3290_v11  ;;  %v250_v22 = vmul.f32 0.0010283801, %v244_v27  ;;  %v4767_v11 = vld [vmem:[%s3520_s20 + $0x8] sm:$0xff] }
 0x33d   : > { %v957_v14 = vadd.f32 %v951_v53, %v879_v23  ;;  %6060 = vst [vmem:[#allocation21_spill] sm:$0xff] %v4767_v11  ;;  %v4771_v63 = vmul.f32 %v4767_v11, %v4767_v11 }
 0x33e   : > { %2140 = vrot.lane.b32.xlu2 %v4727_v26, %s3430_s30  ;;  %v334_v23 = vadd.f32 %v328_v49, %v250_v22  ;;  %v4783_v49 = vld [vmem:[%s3520_s20 + $0x4] sm:$0xff] }
 0x33f   : > { %2054 = vrot.lane.b32.xlu1 %v4600_v32, %s3427_s27  ;;  %2058 = vrot.lane.b32.xlu0 %v4603_v25, %s3427_s27  ;;  %v1017_v32 = vadd.f32 %v954_v36, %v4712_v3  ;;  %v1083_v25 = vmul.f32 0.0010283801, %v4723_v24  ;;  %v1014_v36 = vmul.f32 0.007598758, %v1011_v7  ;;  %v4760_v7 = vld [vmem:[%s3520_s20 + $0x3] sm:$0xff]  ;;  %6062 = vst [vmem:[#allocation25_spill] sm:$0xff] %v4783_v49 }
 0x340   : > { %v4744_v43 = vpop.permute.xlu2 %2008  ;;  %6059 = vst [vmem:[#allocation39_spill] sm:$0xff] %v4760_v7  ;;  %v502_v27 = vmul.f32 %v4760_v7, %v4760_v7  ;;  %v4947_v7 = vld [vmem:[%s3520_s20 + $0x46] sm:$0xff] }
 0x341   : > { %v1089_v18 = vadd.f32 %v1083_v25, %v1017_v32  ;;  %v412_v32 = vmul.f32 %v4752_v51, %v4752_v51  ;;  %6084 = vst [vmem:[#allocation55_spill] sm:$0xff] %v4947_v7 }
 0x342   : > { %v508_v22 = vmul.f32 0.10936069, %v502_v27 }
 0x343   : > { %v418_v53 = vmul.f32 0.036000773, %v412_v32  ;;  %v592_v32 = vmul.f32 %v4783_v49, %v4783_v49 }
 0x345   : > { %v598_v27 = vmul.f32 0.21300554, %v592_v32 }
 0x346   : > { %2164 = vrot.lane.b32.xlu2 %v1089_v18, %s3420_s17  ;;  %v4774_v18 = vld [vmem:[%s3520_s20 + $0x9] sm:$0xff] }
 0x347   : > { %2060 = vrot.lane.b32.xlu1 %v4613_v56, %s3427_s27  ;;  %2076 = vrot.lane.b32.xlu0 %v4568_v21, %s3428_s28  ;;  %v1020_v56 = vadd.f32 %v1014_v36, %v957_v14  ;;  %v1086_v21 = vmul.f32 0.0010283801, %v1080_v10  ;;  %6061 = vst [vmem:[#allocation10_spill] sm:$0xff] %v4774_v18  ;;  %v323_v14 = vmul.f32 %v4774_v18, %v4774_v18 }
 0x348   : > { %v4764_v59 = vpop.permute.xlu2 %2014  ;;  %v424_v10 = vadd.f32 %v418_v53, %v334_v23  ;;  %v253_v23 = vmul.f32 0.0010283801, %v4691_v61  ;;  %v503_v61 = vmul.f32 %v4813_v54, %v4813_v54  ;;  %v4829_v54 = vld [vmem:[%s3520_s20 + $0x6] sm:$0xff] }
 0x349   : > { %v4756_v25 = vpop.permute.xlu0 %1860  ;;  %v1092_v36 = vadd.f32 %v1086_v21, %v1020_v56  ;;  %v251_v56 = vmul.f32 0.0010283801, %v4771_v63  ;;  %v4792_v21 = vmul.f32 0.007598758, %v323_v14  ;;  %v682_v14 = vmul.f32 %v4804_v30, %v4804_v30  ;;  %6067 = vst [vmem:[#allocation31_spill] sm:$0xff] %v4829_v54 }
 0x34a   : > { %v514_v53 = vadd.f32 %v508_v22, %v424_v10  ;;  %v421_v10 = vmul.f32 0.036000773, %v4723_v24  ;;  %v4820_v22 = vld [vmem:[%s3520_s20 + $0x2b] sm:$0xff]  ;;  %v4834_v24 = vld [vmem:[%s3520_s20 + $0x40] sm:$0xff] }
 0x34b   : > { %v335_v2 = vadd.f32 %v4792_v21, %v251_v56  ;;  %6066 = vst [vmem:[#allocation30_spill] sm:$0xff] %v4820_v22  ;;  %v505_v32 = vmul.f32 %v4820_v22, %v4820_v22  ;;  %v688_v28 = vmul.f32 0.26601171, %v682_v14  ;;  %v4853_v22 = vld [vmem:[%s3520_s20 + $0x7] sm:$0xff] }
 0x34c   : > { %v604_v56 = vadd.f32 %v598_v27, %v514_v53  ;;  %6068 = vst [vmem:[#allocation49_spill] sm:$0xff] %v4834_v24  ;;  %v4843_v53 = vld [vmem:[%s3520_s20 + $0xc] sm:$0xff] }
 0x34d   : > { %6069 = vst [vmem:[#allocation35_spill] sm:$0xff] %v4843_v53  ;;  %v593_v27 = vmul.f32 %v4843_v53, %v4843_v53  ;;  %v511_v11 = vmul.f32 0.10936069, %v505_v32 }
 0x34e   : > { %2170 = vrot.lane.b32.xlu2 %v1092_v36, %s3420_s17  ;;  %v337_v36 = vadd.f32 %v4712_v3, %v253_v23  ;;  %v772_v3 = vmul.f32 %v4829_v54, %v4829_v54  ;;  %v248_v23 = vmul.f32 %v4834_v24, %v4834_v24  ;;  %v4848_v54 = vld [vmem:[%s3520_s20 + $0x2c] sm:$0xff]  ;;  %6071 = vst [vmem:[#allocation53_spill] sm:$0xff] %v4853_v22 }
 0x34f   : > { %2078 = vrot.lane.b32.xlu1 %v4577_v20, %s3428_s28  ;;  %2082 = vrot.lane.b32.xlu0 %v4580_v35, %s3428_s28  ;;  %v4795_v20 = vld [vmem:[%s3520_s20 + $0xa] sm:$0xff]  ;;  %6070 = vst [vmem:[#allocation36_spill] sm:$0xff] %v4848_v54  ;;  %v595_v24 = vmul.f32 %v4848_v54, %v4848_v54  ;;  %v599_v53 = vmul.f32 0.21300554, %v593_v27 }
 0x350   : > { %6063 = vst [vmem:[#allocation26_spill] sm:$0xff] %v4795_v20  ;;  %v4799_v35 = vmul.f32 %v4795_v20, %v4795_v20  ;;  %v4808_v42 = vpop.permute.xlu2 %2032  ;;  %v427_v14 = vadd.f32 %v421_v10, %v337_v36  ;;  %v254_v30 = vmul.f32 0.0010283801, %v248_v23  ;;  %v326_v36 = vmul.f32 %v4858_v62, %v4858_v62  ;;  %v4865_v54 = vld [vmem:[%s3520_s20 + $0xd] sm:$0xff] }
 0x351   : > { %v4787_v47 = vpop.permute.xlu1 %1862  ;;  %v4789_v4 = vpop.permute.xlu0 %1866  ;;  %6073 = vst [vmem:[#allocation23_spill] sm:$0xff] %v4865_v54  ;;  %v683_v49 = vmul.f32 %v4865_v54, %v4865_v54 }
 0x352   : > { %v419_v40 = vmul.f32 0.036000773, %v4799_v35  ;;  %v332_v23 = vmul.f32 0.007598758, %v326_v36 }
 0x353   : > { %v689_v62 = vmul.f32 0.26601171, %v683_v49  ;;  %v596_v49 = vmul.f32 %v4903_v48, %v4903_v48 }
 0x354   : > { %v425_v18 = vadd.f32 %v419_v40, %v335_v2  ;;  %v862_v40 = vmul.f32 %v4853_v22, %v4853_v22  ;;  %v694_v2 = vadd.f32 %v688_v28, %v604_v56  ;;  %v517_v22 = vadd.f32 %v511_v11, %v427_v14  ;;  %v4870_v56 = vld [vmem:[%s3520_s20 + $0x2d] sm:$0xff]  ;;  %v4884_v14 = vld [vmem:[%s3520_s20 + $0x43] sm:$0xff] }
 0x355   : > { %v601_v28 = vmul.f32 0.21300554, %v595_v24  ;;  %6074 = vst [vmem:[#allocation40_spill] sm:$0xff] %v4870_v56  ;;  %v338_v27 = vadd.f32 %v332_v23, %v254_v30  ;;  %v506_v36 = vmul.f32 %v4884_v14, %v4884_v14 }
 0x356   : > { %6076 = vst [vmem:[#allocation28_spill] sm:$0xff] %v4884_v14 }
 0x357   : > { %2084 = vrot.lane.b32.xlu1 %v4589_v13, %s3428_s28  ;;  %2100 = vrot.lane.b32.xlu0 %v4530_v16, %s3429_s29  ;;  %v509_v16 = vmul.f32 0.10936069, %v503_v61  ;;  %v778_v61 = vmul.f32 0.21300554, %v772_v3  ;;  %v685_v3 = vmul.f32 %v4870_v56, %v4870_v56  ;;  %v4893_v56 = vld [vmem:[%s3520_s20 + $0xe] sm:$0xff]  ;;  %v607_v30 = vadd.f32 %v601_v28, %v517_v22 }
 0x358   : > { %v4862_v10 = vpop.permute.xlu2 %2038  ;;  %6077 = vst [vmem:[#allocation45_spill] sm:$0xff] %v4893_v56  ;;  %v512_v50 = vmul.f32 0.10936069, %v506_v36  ;;  %v946_v22 = vmul.f32 0.036000773, %v4771_v63  ;;  %v4923_v63 = vld [vmem:[%s3520_s20 + $0x2f] sm:$0xff] }
 0x359   : > { %v4838_v20 = vpop.permute.xlu1 %1868  ;;  %v4840_v13 = vpop.permute.xlu0 %1896  ;;  %v515_v32 = vadd.f32 %v509_v16, %v425_v18  ;;  %v4879_v18 = vld [vmem:[%s3520_s20 + $0x42] sm:$0xff]  ;;  %v784_v24 = vadd.f32 %v778_v61, %v694_v2  ;;  %v868_v16 = vmul.f32 0.10936069, %v862_v40  ;;  %v691_v2 = vmul.f32 0.26601171, %v685_v3  ;;  %v4898_v61 = vld [vmem:[%s3520_s20 + $0x2e] sm:$0xff] }
 0x35a   : > { %6075 = vst [vmem:[#allocation41_spill] sm:$0xff] %v4879_v18  ;;  %v416_v11 = vmul.f32 %v4879_v18, %v4879_v18  ;;  %v773_v18 = vmul.f32 %v4893_v56, %v4893_v56  ;;  %v775_v23 = vmul.f32 %v4898_v61, %v4898_v61  ;;  %v4914_v56 = vld [vmem:[%s3520_s20 + $0xf] sm:$0xff] }
 0x35b   : > { %6078 = vst [vmem:[#allocation46_spill] sm:$0xff] %v4898_v61  ;;  %v874_v28 = vadd.f32 %v868_v16, %v784_v24  ;;  %v697_v36 = vadd.f32 %v691_v2, %v607_v30  ;;  %v4928_v24 = vld [vmem:[%s3520_s20 + $0x45] sm:$0xff] }
 0x35c   : > { %v422_v40 = vmul.f32 0.036000773, %v416_v11  ;;  %v779_v11 = vmul.f32 0.21300554, %v773_v18  ;;  %6080 = vst [vmem:[#allocation50_spill] sm:$0xff] %v4914_v56  ;;  %v686_v16 = vmul.f32 %v4928_v24, %v4928_v24 }
 0x35d   : > { %6081 = vst [vmem:[#allocation51_spill] sm:$0xff] %v4923_v63  ;;  %v602_v18 = vmul.f32 0.21300554, %v596_v49  ;;  %v952_v30 = vadd.f32 %v946_v22, %v874_v28  ;;  %v776_v22 = vmul.f32 %v4947_v7, %v4947_v7  ;;  %v4952_v28 = vmul.f32 0.0010283801, %v4543_v60 }
 0x35e   : > { %v428_v14 = vadd.f32 %v422_v40, %v338_v27  ;;  %v863_v27 = vmul.f32 %v4914_v56, %v4914_v56  ;;  %v781_v40 = vmul.f32 0.21300554, %v775_v23  ;;  %6082 = vst [vmem:[#allocation38_spill] sm:$0xff] %v4928_v24  ;;  %v4937_v56 = vld [vmem:[%s3520_s20 + $0x10] sm:$0xff]  ;;  %v692_v61 = vmul.f32 0.26601171, %v686_v16 }
 0x35f   : > { %2102 = vrot.lane.b32.xlu1 %v4549_v31, %s3429_s29  ;;  %2106 = vrot.lane.b32.xlu0 %v4552_v57, %s3429_s29  ;;  %v605_v57 = vadd.f32 %v599_v53, %v515_v32  ;;  %v4908_v53 = vmul.f32 0.0010283801, %v4521_v46  ;;  %v865_v46 = vmul.f32 %v4923_v63, %v4923_v63  ;;  %6083 = vst [vmem:[#allocation54_spill] sm:$0xff] %v4937_v56 }
 0x360   : > { %v4911_v32 = vpop.permute.xlu2 %2056  ;;  %v869_v23 = vmul.f32 0.10936069, %v863_v27  ;;  %v943_v48 = vmul.f32 %v4937_v56, %v4937_v56 }
 0x361   : > { %v4888_v54 = vpop.permute.xlu1 %1898  ;;  %v4890_v31 = vpop.permute.xlu0 %1902  ;;  %v695_v3 = vadd.f32 %v689_v62, %v605_v57  ;;  %v518_v62 = vadd.f32 %v512_v50, %v428_v14  ;;  %v787_v50 = vadd.f32 %v781_v40, %v697_v36  ;;  %v4942_v14 = vld [vmem:[%s3520_s20 + $0x30] sm:$0xff]  ;;  %v871_v24 = vmul.f32 0.10936069, %v865_v46 }
 0x362   : > { %v944_v49 = vmul.f32 %v4942_v14, %v4942_v14  ;;  %v1015_v36 = vadd.f32 %v952_v30, %v4792_v21  ;;  %v1081_v40 = vmul.f32 0.0010283801, %v4799_v35  ;;  %v782_v21 = vmul.f32 0.21300554, %v776_v22  ;;  %v4976_v35 = vld [vmem:[%s3520_s20 + $0x47] sm:$0xff] }
 0x363   : > { %v785_v2 = vadd.f32 %v779_v11, %v695_v3  ;;  %v608_v63 = vadd.f32 %v602_v18, %v518_v62  ;;  %v4955_v3 = vmul.f32 0.0010283801, %v4546_v12  ;;  %v1883_v11 = vadd.f32 %v4621_v19, %v4727_v26  ;;  %v4962_v18 = vld [vmem:[%s3520_s20 + $0x11] sm:$0xff]  ;;  %6087 = vst [vmem:[#allocation52_spill] sm:$0xff] %v4976_v35 }
 0x364   : > { %v947_v62 = vmul.f32 0.036000773, %v943_v48  ;;  %6085 = vst [vmem:[#allocation43_spill] sm:$0xff] %v4962_v18  ;;  %v1009_v60 = vmul.f32 %v4962_v18, %v4962_v18  ;;  %v949_v16 = vmul.f32 0.036000773, %v944_v49  ;;  %v4967_v12 = vld [vmem:[%s3520_s20 + $0x31] sm:$0xff]  ;;  %v877_v48 = vadd.f32 %v871_v24, %v787_v50 }
 0x365   : > { %v875_v46 = vadd.f32 %v869_v23, %v785_v2  ;;  %6086 = vst [vmem:[#allocation48_spill] sm:$0xff] %v4967_v12  ;;  %v1010_v19 = vmul.f32 %v4967_v12, %v4967_v12  ;;  %v698_v26 = vadd.f32 %v692_v61, %v608_v63  ;;  %v866_v30 = vmul.f32 %v4976_v35, %v4976_v35  ;;  %v4986_v12 = vld [vmem:[%s3520_s20 + $0x12] sm:$0xff] }
 0x366   : > { %v1919_v2 = vadd.f32 %v4642_v45, %v1883_v11  ;;  %v1087_v18 = vadd.f32 %v1081_v40, %v1015_v36  ;;  %v1012_v7 = vmul.f32 0.007598758, %v1009_v60  ;;  %v1078_v61 = vmul.f32 %v4986_v12, %v4986_v12  ;;  %v4991_v50 = vld [vmem:[%s3520_s20 + $0x32] sm:$0xff] }
 0x367   : > { %2108 = vrot.lane.b32.xlu1 %v4565_v9, %s3429_s29  ;;  %2130 = vrot.lane.b32.xlu0 %v4908_v53, %s3430_s30  ;;  %v953_v56 = vadd.f32 %v947_v62, %v875_v46  ;;  %v1013_v63 = vmul.f32 0.007598758, %v1010_v19  ;;  %v955_v24 = vadd.f32 %v949_v16, %v877_v48  ;;  %v1079_v22 = vmul.f32 %v4991_v50, %v4991_v50 }
 0x368   : > { %v2063_v27 = vpop.permute.xlu2 %2062  ;;  %v788_v45 = vadd.f32 %v782_v21, %v698_v26  ;;  %v872_v11 = vmul.f32 0.10936069, %v866_v30  ;;  %v1880_v35 = vadd.f32 %v4610_v38, %v4699_v8  ;;  %v1955_v36 = vadd.f32 %v4674_v29, %v1919_v2 }
 0x369   : > { %v4932_v57 = vpop.permute.xlu1 %1904  ;;  %v4934_v9 = vpop.permute.xlu0 %1932  ;;  %v4999_v40 = vmul.f32 0.0010283801, %v4562_v17  ;;  %v1016_v60 = vadd.f32 %v1012_v7, %v953_v56  ;;  %v1082_v16 = vmul.f32 0.0010283801, %v1078_v61  ;;  %v1018_v19 = vadd.f32 %v1013_v63, %v955_v24 }
 0x36a   : > { %v1991_v62 = vadd.f32 %v4710_v44, %v1955_v36  ;;  %v1084_v48 = vmul.f32 0.0010283801, %v1079_v22  ;;  %v878_v26 = vadd.f32 %v872_v11, %v788_v45  ;;  %v950_v38 = vmul.f32 0.036000773, %v4651_v58 }
 0x36b   : > { %v1916_v29 = vadd.f32 %v4629_v37, %v1880_v35  ;;  %v1088_v56 = vadd.f32 %v1082_v16, %v1016_v60 }
 0x36c   : > { %v2027_v17 = vadd.f32 %v4764_v59, %v1991_v62  ;;  %v1090_v30 = vadd.f32 %v1084_v48, %v1018_v19 }
 0x36d   : > { %v1952_v44 = vadd.f32 %v4656_v55, %v1916_v29  ;;  %v1085_v55 = vmul.f32 0.0010283801, %v4664_v33 }
 0x36e   : > { %v2051_v7 = vadd.f32 %v4862_v10, %v2027_v17 }
 0x36f   : > { %2132 = vrot.lane.b32.xlu1 %v4952_v28, %s3430_s30  ;;  %2136 = vrot.lane.b32.xlu0 %v4955_v3, %s3430_s30  ;;  %v1988_v2 = vadd.f32 %v4684_v6, %v1952_v44 }
 0x370   : > { %v2081_v46 = vpop.permute.xlu2 %2080  ;;  %v2075_v61 = vadd.f32 %v2063_v27, %v2051_v7 }
 0x371   : > { %v4981_v23 = vpop.permute.xlu1 %1934  ;;  %v4983_v49 = vpop.permute.xlu0 %1938  ;;  %v2024_v58 = vadd.f32 %v4744_v43, %v1988_v2 }
 0x373   : > { %v2048_v10 = vadd.f32 %v4808_v42, %v2024_v58 }
 0x375   : > { %v2072_v6 = vadd.f32 %v4911_v32, %v2048_v10 }
 0x377   : > { %2138 = vrot.lane.b32.xlu1 %v4999_v40, %s3430_s30  ;;  %2160 = vrot.lane.b32.xlu0 %v1087_v18, %s3420_s17  ;;  %v956_v18 = vadd.f32 %v950_v38, %v878_v26  ;;  %v2096_v22 = vadd.f32 %v2081_v46, %v2072_v6 }
 0x378   : > { %v2087_v63 = vpop.permute.xlu2 %2086 }
 0x379   : > { %v5008_v8 = vpop.permute.xlu1 %1940  ;;  %v5010_v21 = vpop.permute.xlu0 %1968  ;;  %v2099_v37 = vadd.f32 %v2087_v63, %v2075_v61  ;;  %v1019_v59 = vadd.f32 %v956_v18, %v4661_v34 }
 0x37b   : > { %v1091_v27 = vadd.f32 %v1085_v55, %v1019_v59 }
 0x37f   : > { %2162 = vrot.lane.b32.xlu1 %v1088_v56, %s3420_s17  ;;  %2166 = vrot.lane.b32.xlu0 %v1090_v30, %s3420_s17 }
 0x380   : > { %v2105_v43 = vpop.permute.xlu2 %2104 }
 0x381   : > { %v5021_v35 = vpop.permute.xlu1 %1970  ;;  %v5023_v24 = vpop.permute.xlu0 %1974  ;;  %v2120_v45 = vadd.f32 %v2105_v43, %v2096_v22  ;;  %v1882_v22 = vadd.f32 %v4838_v20, %v4999_v40  ;;  %v1881_v20 = vadd.f32 %v4789_v4, %v4955_v3 }
 0x387   : > { %2168 = vrot.lane.b32.xlu1 %v1091_v27, %s3420_s17  ;;  %v1878_v27 = vadd.f32 %v4756_v25, %v4908_v53  ;;  %v1879_v25 = vadd.f32 %v4787_v47, %v4952_v28 }
 0x388   : > { %v2111_v62 = vpop.permute.xlu2 %2110 }
 0x389   : > { %v1977_v11 = vpop.permute.xlu1 %1976  ;;  %v2005_v36 = vpop.permute.xlu0 %2004  ;;  %v2123_v34 = vadd.f32 %v2111_v62, %v2099_v37  ;;  %v1914_v43 = vadd.f32 %v4840_v13, %v1878_v27 }
 0x38b   : > { %v1950_v62 = vadd.f32 %v4934_v9, %v1914_v43  ;;  %v1917_v9 = vadd.f32 %v4890_v31, %v1881_v20 }
 0x38d   : > { %v1953_v47 = vadd.f32 %v4983_v49, %v1917_v9 }
 0x38f   : > { %v1989_v3 = vadd.f32 %v5023_v24, %v1953_v47 }
 0x390   : > { %v2135_v16 = vpop.permute.xlu2 %2134 }
 0x391   : > { %v2007_v60 = vpop.permute.xlu1 %2006  ;;  %v2011_v33 = vpop.permute.xlu0 %2010  ;;  %v5027_v42 = vadd.f32 %v2135_v16, %v2120_v45  ;;  %v1918_v45 = vadd.f32 %v4932_v57, %v1882_v22  ;;  %v1915_v57 = vadd.f32 %v4888_v54, %v1879_v25 }
 0x393   : > { %v1954_v16 = vadd.f32 %v5008_v8, %v1918_v45 }
 0x395   : > { %v1990_v13 = vadd.f32 %v1977_v11, %v1954_v16 }
 0x398   : > { %v2141_v26 = vpop.permute.xlu2 %2140 }
 0x399   : > { %v2013_v19 = vpop.permute.xlu1 %2012  ;;  %v2029_v48 = vpop.permute.xlu0 %2028  ;;  %v5029_v38 = vadd.f32 %v2141_v26, %v2123_v34  ;;  %v1986_v26 = vadd.f32 %v5010_v21, %v1950_v62  ;;  %v1951_v21 = vadd.f32 %v4981_v23, %v1915_v57 }
 0x39a   : > { %v2026_v8 = vadd.f32 %v2013_v19, %v1990_v13  ;;  %v2025_v19 = vadd.f32 %v2011_v33, %v1989_v3  ;;  %v6097_v13 = vld [vmem:[#allocation53_spill] sm:$0xff] }
 0x39b   : > { %v2873_v32 = vsub.f32 %v5029_v38, %v4354_v52  ;;  %v2022_v40 = vadd.f32 %v2005_v36, %v1986_v26  ;;  %v1987_v4 = vadd.f32 %v5021_v35, %v1951_v21 }
 0x39d   : > { %v2023_v31 = vadd.f32 %v2007_v60, %v1987_v4 }
 0x3a0   : > { %v2165_v17 = vpop.permute.xlu2 %2164 }
 0x3a1   : > { %v2031_v46 = vpop.permute.xlu1 %2030  ;;  %v2035_v29 = vpop.permute.xlu0 %2034  ;;  %v2180_v44 = vsel %vm1132_vm0, 0.0, %v2165_v17 }
 0x3a2   : > { %v5035_v7 = vsel %vm1139_vm1, %v2180_v44, 0.0  ;;  %v2046_v44 = vadd.f32 %v2029_v48, %v2022_v40  ;;  %v2047_v48 = vadd.f32 %v2031_v46, %v2023_v31 }
 0x3a3   : > { %v5038_v56 = vmul.f32 0.007598758, %v5035_v7  ;;  %v5052_v55 = vmul.f32 0.036000773, %v5035_v7  ;;  %v2306_v45 = vmul.f32 0.21300554, %v5035_v7 }
 0x3a4   : > { %v2342_v40 = vmul.f32 0.26601171, %v5035_v7 }
 0x3a5   : > { %2212 = vrot.lane.b32.xlu2 %v5038_v56, %s3421_s21 }
 0x3a8   : > { %v2171_v2 = vpop.permute.xlu2 %2170 }
 0x3a9   : > { %v2037_v30 = vpop.permute.xlu1 %2036  ;;  %v2053_v18 = vpop.permute.xlu0 %2052  ;;  %v2183_v61 = vsel %vm1132_vm0, 0.0, %v2171_v2 }
 0x3aa   : > { %v5044_v63 = vsel %vm1139_vm1, %v2183_v61, 0.0  ;;  %v2050_v28 = vadd.f32 %v2037_v30, %v2026_v8  ;;  %v2070_v2 = vadd.f32 %v2053_v18, %v2046_v44  ;;  %v5079_v61 = vmul.f32 0.10936069, %v5035_v7 }
 0x3ab   : > { %v5047_v58 = vmul.f32 0.007598758, %v5044_v63  ;;  %v5064_v34 = vmul.f32 0.036000773, %v5044_v63  ;;  %v2049_v30 = vadd.f32 %v2035_v29, %v2025_v19  ;;  %v5086_v43 = vmul.f32 0.10936069, %v5044_v63 }
 0x3ad   : > { %2218 = vrot.lane.b32.xlu2 %v5047_v58, %s3421_s21 }
 0x3b1   : > { %v2055_v37 = vpop.permute.xlu1 %2054  ;;  %v2059_v59 = vpop.permute.xlu0 %2058 }
 0x3b2   : > { %v2071_v18 = vadd.f32 %v2055_v37, %v2047_v48  ;;  %v2073_v22 = vadd.f32 %v2059_v59, %v2049_v30  ;;  %v2309_v59 = vmul.f32 0.21300554, %v5044_v63 }
 0x3b5   : > { %2248 = vrot.lane.b32.xlu2 %v5052_v55, %s3422_s22 }
 0x3b9   : > { %v2061_v10 = vpop.permute.xlu1 %2060  ;;  %v2077_v6 = vpop.permute.xlu0 %2076 }
 0x3ba   : > { %v2074_v11 = vadd.f32 %v2061_v10, %v2050_v28  ;;  %v2094_v36 = vadd.f32 %v2077_v6, %v2070_v2  ;;  %v2345_v2 = vmul.f32 0.26601171, %v5044_v63 }
 0x3bd   : > { %2254 = vrot.lane.b32.xlu2 %v5064_v34, %s3422_s22 }
 0x3c1   : > { %v2079_v53 = vpop.permute.xlu1 %2078  ;;  %v2083_v17 = vpop.permute.xlu0 %2082 }
 0x3c2   : > { %v2095_v35 = vadd.f32 %v2079_v53, %v2071_v18  ;;  %v2097_v24 = vadd.f32 %v2083_v17, %v2073_v22 }
 0x3c5   : > { %2284 = vrot.lane.b32.xlu2 %v5079_v61, %s3423_s23 }
 0x3c9   : > { %v2085_v54 = vpop.permute.xlu1 %2084  ;;  %v2101_v27 = vpop.permute.xlu0 %2100 }
 0x3ca   : > { %v2098_v23 = vadd.f32 %v2085_v54, %v2074_v11  ;;  %v2118_v49 = vadd.f32 %v2101_v27, %v2094_v36 }
 0x3cd   : > { %2290 = vrot.lane.b32.xlu2 %v5086_v43, %s3423_s23 }
 0x3d1   : > { %v2103_v10 = vpop.permute.xlu1 %2102  ;;  %v2107_v6 = vpop.permute.xlu0 %2106 }
 0x3d2   : > { %v2119_v60 = vadd.f32 %v2103_v10, %v2095_v35  ;;  %v2121_v33 = vadd.f32 %v2107_v6, %v2097_v24  ;;  %v3324_v10 = vld [vmem:[%s3472_s16] sm:$0xff] }
 0x3d3   : > { %v256_v6 = vmul.f32 %v3324_v10, %v4735_v5  ;;  %v3330_v10 = vld [vmem:[%s3472_s16 + $0x4] sm:$0xff] }
 0x3d5   : > { %2320 = vrot.lane.b32.xlu2 %v2306_v45, %s3424_s24 }
 0x3d9   : > { %v2109_v62 = vpop.permute.xlu1 %2108  ;;  %v2131_v16 = vpop.permute.xlu0 %2130 }
 0x3da   : > { %v2122_v46 = vadd.f32 %v2109_v62, %v2098_v23  ;;  %v5092_v29 = vadd.f32 %v2131_v16, %v2118_v49 }
 0x3dd   : > { %2326 = vrot.lane.b32.xlu2 %v2309_v59, %s3424_s24 }
 0x3e1   : > { %v2133_v26 = vpop.permute.xlu1 %2132  ;;  %v2137_v25 = vpop.permute.xlu0 %2136 }
 0x3e2   : > { %v5098_v53 = vadd.f32 %v2133_v26, %v2119_v60  ;;  %v5100_v17 = vadd.f32 %v2137_v25, %v2121_v33  ;;  %v3325_v60 = vld [vmem:[%s3472_s16 + $0x1] sm:$0xff]  ;;  %v5182_v25 = vmul.f32 0.0010283801, %v5035_v7  ;;  %v3329_v7 = vld [vmem:[%s3472_s16 + $0x29] sm:$0xff] }
 0x3e3   : > { %v340_v33 = vmul.f32 %v3325_v60, %v4740_v1  ;;  %v3326_v26 = vld [vmem:[%s3472_s16 + $0x2] sm:$0xff] }
 0x3e4   : > { %v430_v5 = vmul.f32 %v3326_v26, %v4752_v51  ;;  %v3327_v1 = vld [vmem:[%s3472_s16 + $0x3] sm:$0xff] }
 0x3e5   : > { %2356 = vrot.lane.b32.xlu2 %v2342_v40, %s3425_s25 }
 0x3e9   : > { %v2139_v57 = vpop.permute.xlu1 %2138  ;;  %v2161_v9 = vpop.permute.xlu0 %2160 }
 0x3ea   : > { %v5108_v8 = vadd.f32 %v2139_v57, %v2122_v46  ;;  %v2178_v44 = vsel %vm1132_vm0, 0.0, %v2161_v9  ;;  %v262_v46 = vmul.f32 0.0010283801, %v256_v6  ;;  %v436_v57 = vmul.f32 0.036000773, %v430_v5  ;;  %v6091_v6 = vld [vmem:[#allocation25_spill] sm:$0xff] }
 0x3eb   : > { %v5112_v21 = vsel %vm1139_vm1, %v2178_v44, 0.0  ;;  %v610_v60 = vmul.f32 %v3330_v10, %v6091_v6  ;;  %v3331_v5 = vld [vmem:[%s3472_s16 + $0x2a] sm:$0xff] }
 0x3ec   : > { %v5117_v28 = vmul.f32 0.007598758, %v5112_v21  ;;  %v5150_v18 = vmul.f32 0.036000773, %v5112_v21  ;;  %v5177_v16 = vmul.f32 0.10936069, %v5112_v21 }
 0x3ed   : > { %2362 = vrot.lane.b32.xlu2 %v2345_v2, %s3425_s25  ;;  %v3328_v2 = vld [vmem:[%s3472_s16 + $0x28] sm:$0xff] }
 0x3ee   : > { %2208 = vrot.lane.b32.xlu0 %v5117_v28, %s3421_s21 }
 0x3f1   : > { %v2163_v4 = vpop.permute.xlu1 %2162  ;;  %v2167_v3 = vpop.permute.xlu0 %2166 }
 0x3f2   : > { %v2179_v11 = vsel %vm1132_vm0, 0.0, %v2163_v4  ;;  %v2181_v36 = vsel %vm1132_vm0, 0.0, %v2167_v3  ;;  %v6089_v4 = vld [vmem:[#allocation63_spill] sm:$0xff] }
 0x3f3   : > { %v5126_v54 = vsel %vm1139_vm1, %v2179_v11, 0.0  ;;  %v5129_v27 = vsel %vm1139_vm1, %v2181_v36, 0.0  ;;  %v5193_v51 = vmul.f32 %v3328_v2, %v6089_v4  ;;  %v6090_v3 = vld [vmem:[#allocation19_spill] sm:$0xff]  ;;  %v6093_v2 = vld [vmem:[#allocation44_spill] sm:$0xff] }
 0x3f4   : > { %v5132_v31 = vmul.f32 0.007598758, %v5126_v54  ;;  %v5135_v19 = vmul.f32 0.007598758, %v5129_v27  ;;  %v5158_v35 = vmul.f32 0.036000773, %v5126_v54  ;;  %v343_v11 = vmul.f32 %v3329_v7, %v6090_v3 }
 0x3f5   : > { %2380 = vrot.lane.b32.xlu2 %v2306_v45, %s3426_s26  ;;  %v5161_v24 = vmul.f32 0.036000773, %v5129_v27  ;;  %v3333_v7 = vld [vmem:[%s3472_s16 + $0x2b] sm:$0xff]  ;;  %v6094_v3 = vld [vmem:[#allocation30_spill] sm:$0xff] }
 0x3f6   : > { %2210 = vrot.lane.b32.xlu1 %v5132_v31, %s3421_s21  ;;  %2214 = vrot.lane.b32.xlu0 %v5135_v19, %s3421_s21  ;;  %v5211_v26 = vmul.f32 0.007598758, %v343_v11  ;;  %v523_v11 = vmul.f32 %v3333_v7, %v6094_v3  ;;  %v6096_v7 = vld [vmem:[#allocation36_spill] sm:$0xff] }
 0x3f9   : > { %v2169_v23 = vpop.permute.xlu1 %2168 }
 0x3fa   : > { %v2182_v49 = vsel %vm1132_vm0, 0.0, %v2169_v23 }
 0x3fb   : > { %v5144_v48 = vsel %vm1139_vm1, %v2182_v49, 0.0  ;;  %v5200_v49 = vmul.f32 0.10936069, %v5126_v54 }
 0x3fc   : > { %v5147_v30 = vmul.f32 0.007598758, %v5144_v48  ;;  %v5174_v62 = vmul.f32 0.036000773, %v5144_v48  ;;  %v5231_v6 = vmul.f32 0.10936069, %v5144_v48 }
 0x3fd   : > { %2386 = vrot.lane.b32.xlu2 %v2309_v59, %s3426_s26  ;;  %v346_v59 = vmul.f32 0.007598758, %v340_v33  ;;  %v5208_v33 = vmul.f32 0.0010283801, %v5044_v63  ;;  %v3332_v63 = vld [vmem:[%s3472_s16 + $0x5] sm:$0xff] }
 0x3fe   : > { %2216 = vrot.lane.b32.xlu1 %v5147_v30, %s3421_s21  ;;  %2244 = vrot.lane.b32.xlu0 %v5150_v18, %s3422_s22 }
 0x3ff   : > { %v2213_v22 = vpop.permute.xlu2 %2212  ;;  %v352_v44 = vadd.f32 %v346_v59, %v262_v46 }
 0x400   : > { %v2228_v9 = vadd.f32 %v2213_v22, %v5182_v25  ;;  %v5203_v22 = vmul.f32 0.10936069, %v5129_v27 }
 0x401   : > { %v442_v59 = vadd.f32 %v436_v57, %v352_v44 }
 0x405   : > { %2404 = vrot.lane.b32.xlu2 %v5079_v61, %s3427_s27  ;;  %v6088_v61 = vld [vmem:[#allocation39_spill] sm:$0xff] }
 0x406   : > { %2246 = vrot.lane.b32.xlu1 %v5158_v35, %s3422_s22  ;;  %2250 = vrot.lane.b32.xlu0 %v5161_v24, %s3422_s22  ;;  %v520_v40 = vmul.f32 %v3327_v1, %v6088_v61  ;;  %v6092_v1 = vld [vmem:[#allocation20_spill] sm:$0xff] }
 0x407   : > { %v2219_v45 = vpop.permute.xlu2 %2218  ;;  %v5215_v61 = vmul.f32 %v3331_v5, %v6092_v1 }
 0x408   : > { %v526_v36 = vmul.f32 0.10936069, %v520_v40  ;;  %v616_v40 = vmul.f32 0.21300554, %v610_v60  ;;  %v2231_v57 = vadd.f32 %v2219_v45, %v5208_v33  ;;  %v5234_v60 = vmul.f32 0.21300554, %v5112_v21 }
 0x40a   : > { %v532_v44 = vadd.f32 %v526_v36, %v442_v59  ;;  %v3334_v36 = vld [vmem:[%s3472_s16 + $0x6] sm:$0xff] }
 0x40b   : > { %v6095_v59 = vld [vmem:[#allocation31_spill] sm:$0xff] }
 0x40c   : > { %v622_v1 = vadd.f32 %v616_v40, %v532_v44  ;;  %v3337_v40 = vld [vmem:[%s3472_s16 + $0x2d] sm:$0xff] }
 0x40d   : > { %2410 = vrot.lane.b32.xlu2 %v5086_v43, %s3427_s27  ;;  %v265_v43 = vmul.f32 0.0010283801, %v5193_v51  ;;  %v6098_v44 = vld [vmem:[#allocation40_spill] sm:$0xff] }
 0x40e   : > { %2252 = vrot.lane.b32.xlu1 %v5174_v62, %s3422_s22  ;;  %2280 = vrot.lane.b32.xlu0 %v5177_v16, %s3423_s23 }
 0x40f   : > { %v2249_v23 = vpop.permute.xlu2 %2248  ;;  %v355_v4 = vadd.f32 %v5211_v26, %v265_v43  ;;  %v790_v43 = vmul.f32 %v3334_v36, %v6095_v59 }
 0x410   : > { %v2264_v46 = vadd.f32 %v2249_v23, %v2228_v9  ;;  %v700_v9 = vmul.f32 %v3332_v63, %v6093_v2  ;;  %v439_v23 = vmul.f32 0.036000773, %v5215_v61  ;;  %v529_v63 = vmul.f32 0.10936069, %v523_v11  ;;  %v3335_v2 = vld [vmem:[%s3472_s16 + $0x2c] sm:$0xff] }
 0x411   : > { %v613_v3 = vmul.f32 %v3335_v2, %v6096_v7  ;;  %v796_v47 = vmul.f32 0.21300554, %v790_v43  ;;  %v3338_v43 = vld [vmem:[%s3472_s16 + $0x8] sm:$0xff] }
 0x412   : > { %v706_v45 = vmul.f32 0.26601171, %v700_v9  ;;  %v3336_v9 = vld [vmem:[%s3472_s16 + $0x7] sm:$0xff] }
 0x413   : > { %v880_v20 = vmul.f32 %v3336_v9, %v6097_v13  ;;  %v619_v59 = vmul.f32 0.21300554, %v613_v3  ;;  %v6099_v13 = vld [vmem:[#allocation21_spill] sm:$0xff]  ;;  %v3339_v3 = vld [vmem:[%s3472_s16 + $0x2e] sm:$0xff] }
 0x414   : > { %v712_v36 = vadd.f32 %v706_v45, %v622_v1  ;;  %v5258_v45 = vmul.f32 %v3338_v43, %v6099_v13  ;;  %v2340_v13 = vmul.f32 0.26601171, %v5112_v21 }
 0x415   : > { %2428 = vrot.lane.b32.xlu2 %v5052_v55, %s3428_s28  ;;  %v445_v55 = vadd.f32 %v439_v23, %v355_v4  ;;  %v703_v4 = vmul.f32 %v3337_v40, %v6098_v44  ;;  %v5251_v23 = vmul.f32 0.21300554, %v5126_v54  ;;  %v886_v1 = vmul.f32 0.10936069, %v880_v20  ;;  %v3340_v40 = vld [vmem:[%s3472_s16 + $0x9] sm:$0xff]  ;;  %v6101_v44 = vld [vmem:[#allocation10_spill] sm:$0xff] }
 0x416   : > { %2282 = vrot.lane.b32.xlu1 %v5200_v49, %s3423_s23  ;;  %2286 = vrot.lane.b32.xlu0 %v5203_v22, %s3423_s23  ;;  %v802_v2 = vadd.f32 %v796_v47, %v712_v36  ;;  %v341_v37 = vmul.f32 %v3340_v40, %v6101_v44  ;;  %v961_v20 = vmul.f32 0.036000773, %v5258_v45  ;;  %v3341_v36 = vld [vmem:[%s3472_s16 + $0x2f] sm:$0xff] }
 0x417   : > { %v2255_v10 = vpop.permute.xlu2 %2254  ;;  %v709_v7 = vmul.f32 0.26601171, %v703_v4  ;;  %v2308_v4 = vmul.f32 0.21300554, %v5144_v48  ;;  %v3343_v40 = vld [vmem:[%s3472_s16 + $0x30] sm:$0xff] }
 0x418   : > { %v2267_v5 = vadd.f32 %v2255_v10, %v2231_v57  ;;  %v535_v57 = vadd.f32 %v529_v63, %v445_v55  ;;  %v5254_v10 = vmul.f32 0.21300554, %v5129_v27  ;;  %v6100_v55 = vld [vmem:[#allocation46_spill] sm:$0xff]  ;;  %v892_v43 = vadd.f32 %v886_v1, %v802_v2 }
 0x419   : > { %v793_v9 = vmul.f32 %v3339_v3, %v6100_v55  ;;  %v5275_v3 = vmul.f32 0.007598758, %v341_v37  ;;  %v959_v44 = vmul.f32 %v3343_v40, %v4942_v14 }
 0x41a   : > { %v967_v2 = vadd.f32 %v961_v20, %v892_v43  ;;  %v3344_v20 = vld [vmem:[%s3472_s16 + $0x31] sm:$0xff] }
 0x41b   : > { %v964_v43 = vmul.f32 0.036000773, %v959_v44  ;;  %v2344_v44 = vmul.f32 0.26601171, %v5144_v48 }
 0x41d   : > { %2434 = vrot.lane.b32.xlu2 %v5064_v34, %s3428_s28  ;;  %v625_v34 = vadd.f32 %v619_v59, %v535_v57 }
 0x41e   : > { %2288 = vrot.lane.b32.xlu1 %v5231_v6, %s3423_s23  ;;  %2316 = vrot.lane.b32.xlu0 %v5234_v60, %s3424_s24 }
 0x41f   : > { %v2285_v11 = vpop.permute.xlu2 %2284  ;;  %v715_v47 = vadd.f32 %v709_v7, %v625_v34  ;;  %v6103_v34 = vld [vmem:[#allocation26_spill] sm:$0xff] }
 0x420   : > { %v2300_v63 = vadd.f32 %v2285_v11, %v2264_v46  ;;  %v799_v46 = vmul.f32 0.21300554, %v793_v9  ;;  %v6102_v11 = vld [vmem:[#allocation51_spill] sm:$0xff] }
 0x421   : > { %v883_v59 = vmul.f32 %v3341_v36, %v6102_v11  ;;  %v1027_v36 = vadd.f32 %v967_v2, %v5275_v3  ;;  %v6104_v11 = vld [vmem:[#allocation48_spill] sm:$0xff] }
 0x422   : > { %v805_v55 = vadd.f32 %v799_v46, %v715_v47  ;;  %v2341_v47 = vmul.f32 0.26601171, %v5126_v54  ;;  %v2343_v46 = vmul.f32 0.26601171, %v5129_v27 }
 0x423   : > { %v889_v9 = vmul.f32 0.10936069, %v883_v59 }
 0x425   : > { %2452 = vrot.lane.b32.xlu2 %v5038_v56, %s3429_s29  ;;  %v3342_v56 = vld [vmem:[%s3472_s16 + $0xa] sm:$0xff] }
 0x426   : > { %2318 = vrot.lane.b32.xlu1 %v5251_v23, %s3424_s24  ;;  %2322 = vrot.lane.b32.xlu0 %v5254_v10, %s3424_s24  ;;  %v5281_v7 = vmul.f32 %v3342_v56, %v6103_v34  ;;  %v3345_v56 = vld [vmem:[%s3472_s16 + $0x32] sm:$0xff] }
 0x427   : > { %v2291_v57 = vpop.permute.xlu2 %2290  ;;  %v1094_v34 = vmul.f32 %v3345_v56, %v4991_v50  ;;  %v3352_v56 = vld [vmem:[%s3472_s16 + $0x21] sm:$0xff] }
 0x428   : > { %v2303_v1 = vadd.f32 %v2291_v57, %v2267_v5  ;;  %v1096_v37 = vmul.f32 0.0010283801, %v5281_v7  ;;  %v895_v5 = vadd.f32 %v889_v9, %v805_v55  ;;  %v1022_v57 = vmul.f32 %v3344_v20, %v6104_v11 }
 0x429   : > { %v1099_v9 = vmul.f32 0.0010283801, %v1094_v34  ;;  %v3353_v34 = vld [vmem:[%s3520_s20 + $0x21] sm:$0xff] }
 0x42a   : > { %v1102_v14 = vadd.f32 %v1096_v37, %v1027_v36  ;;  %v970_v2 = vadd.f32 %v964_v43, %v895_v5  ;;  %v3347_v37 = vld [vmem:[%s3472_s16 + $0x41] sm:$0xff] }
 0x42b   : > { %v3348_v43 = vld [vmem:[%s3472_s16 + $0x42] sm:$0xff] }
 0x42d   : > { %2458 = vrot.lane.b32.xlu2 %v5047_v58, %s3429_s29  ;;  %v1025_v58 = vmul.f32 0.007598758, %v1022_v57  ;;  %v6107_v57 = vld [vmem:[#allocation41_spill] sm:$0xff] }
 0x42e   : > { %2324 = vrot.lane.b32.xlu1 %v2308_v4, %s3424_s24  ;;  %2352 = vrot.lane.b32.xlu0 %v2340_v13, %s3425_s25 }
 0x42f   : > { %v2321_v13 = vpop.permute.xlu2 %2320  ;;  %v1030_v55 = vadd.f32 %v1025_v58, %v970_v2  ;;  %v6108_v2 = vld [vmem:[#allocation28_spill] sm:$0xff] }
 0x430   : > { %v2336_v59 = vadd.f32 %v2321_v13, %v2300_v63  ;;  %v434_v13 = vmul.f32 %v3348_v43, %v6107_v57 }
 0x431   : > { %v1105_v11 = vadd.f32 %v1099_v9, %v1030_v55  ;;  %v342_v55 = vmul.f32 %v3353_v34, %v3352_v56 }
 0x433   : > { %v348_v57 = vmul.f32 0.007598758, %v342_v55  ;;  %v3363_v55 = vld [vmem:[%s3472_s16 + $0x4b] sm:$0xff] }
 0x435   : > { %2508 = vrot.lane.b32.xlu2 %v1102_v14, %s3420_s17 }
 0x436   : > { %2354 = vrot.lane.b32.xlu1 %v2341_v47, %s3425_s25  ;;  %2358 = vrot.lane.b32.xlu0 %v2343_v46, %s3425_s25  ;;  %v3349_v47 = vld [vmem:[%s3472_s16 + $0x20] sm:$0xff] }
 0x437   : > { %v2327_v40 = vpop.permute.xlu2 %2326 }
 0x438   : > { %v2339_v20 = vadd.f32 %v2327_v40, %v2303_v1  ;;  %v6109_v40 = vld [vmem:[#allocation15_spill] sm:$0xff] }
 0x43d   : > { %2514 = vrot.lane.b32.xlu2 %v1105_v11, %s3420_s17 }
 0x43e   : > { %2360 = vrot.lane.b32.xlu1 %v2344_v44, %s3425_s25  ;;  %2376 = vrot.lane.b32.xlu0 %v5234_v60, %s3426_s26 }
 0x43f   : > { %v2357_v63 = vpop.permute.xlu2 %2356 }
 0x440   : > { %v2372_v50 = vadd.f32 %v2357_v63, %v2336_v59  ;;  %v440_v63 = vmul.f32 0.036000773, %v434_v13 }
 0x445   : > { %2482 = vrot.lane.b32.xlu2 %v5182_v25, %s3430_s30  ;;  %v3346_v25 = vld [vmem:[%s3472_s16 + $0x40] sm:$0xff] }
 0x446   : > { %2378 = vrot.lane.b32.xlu1 %v5251_v23, %s3426_s26  ;;  %2382 = vrot.lane.b32.xlu0 %v5254_v10, %s3426_s26  ;;  %v6105_v10 = vld [vmem:[#allocation49_spill] sm:$0xff] }
 0x447   : > { %v2363_v1 = vpop.permute.xlu2 %2362 }
 0x448   : > { %v2375_v36 = vadd.f32 %v2363_v1, %v2339_v20  ;;  %v437_v20 = vmul.f32 0.036000773, %v5281_v7  ;;  %v6110_v1 = vld [vmem:[#allocation33_spill] sm:$0xff]  ;;  %v3358_v7 = vld [vmem:[%s3472_s16 + $0x45] sm:$0xff] }
 0x44d   : > { %2488 = vrot.lane.b32.xlu2 %v5208_v33, %s3430_s30  ;;  %v263_v33 = vmul.f32 0.0010283801, %v5258_v45  ;;  %v3354_v45 = vld [vmem:[%s3472_s16 + $0xb] sm:$0xff] }
 0x44e   : > { %2384 = vrot.lane.b32.xlu1 %v2308_v4, %s3426_s26  ;;  %2400 = vrot.lane.b32.xlu0 %v5177_v16, %s3427_s27  ;;  %v260_v4 = vmul.f32 %v3346_v25, %v6105_v10  ;;  %v6106_v16 = vld [vmem:[#allocation64_spill] sm:$0xff]  ;;  %v521_v44 = vmul.f32 %v3354_v45, %v6109_v40  ;;  %v3361_v45 = vld [vmem:[%s3472_s16 + $0x23] sm:$0xff] }
 0x44f   : > { %v2381_v60 = vpop.permute.xlu2 %2380  ;;  %v344_v5 = vmul.f32 %v3347_v37, %v6106_v16  ;;  %v353_v9 = vadd.f32 %v5275_v3, %v263_v33  ;;  %v3357_v37 = vld [vmem:[%s3520_s20 + $0x22] sm:$0xff]  ;;  %v3364_v40 = vld [vmem:[%s3520_s20 + $0x4b] sm:$0xff] }
 0x450   : > { %v5314_v23 = vadd.f32 %v2381_v60, %v2372_v50  ;;  %v266_v59 = vmul.f32 0.0010283801, %v260_v4  ;;  %v3355_v50 = vld [vmem:[%s3472_s16 + $0x44] sm:$0xff]  ;;  %v527_v13 = vmul.f32 0.10936069, %v521_v44  ;;  %v525_v44 = vmul.f32 %v3364_v40, %v3363_v55  ;;  %v3371_v40 = vld [vmem:[%s3472_s16 + $0xe] sm:$0xff] }
 0x451   : > { %v350_v14 = vmul.f32 0.007598758, %v344_v5  ;;  %v614_v60 = vmul.f32 %v3355_v50, %v6110_v1  ;;  %v3356_v4 = vld [vmem:[%s3472_s16 + $0x22] sm:$0xff] }
 0x452   : > { %v432_v16 = vmul.f32 %v3357_v37, %v3356_v4  ;;  %v6111_v5 = vld [vmem:[#allocation38_spill] sm:$0xff] }
 0x453   : > { %v704_v33 = vmul.f32 %v3358_v7, %v6111_v5  ;;  %v356_v43 = vadd.f32 %v350_v14, %v266_v59  ;;  %v3362_v59 = vld [vmem:[%s3520_s20 + $0x23] sm:$0xff] }
 0x454   : > { %v522_v14 = vmul.f32 %v3362_v59, %v3361_v45  ;;  %v438_v50 = vmul.f32 0.036000773, %v432_v16  ;;  %v6115_v5 = vld [vmem:[#allocation23_spill] sm:$0xff] }
 0x455   : > { %v710_v1 = vmul.f32 0.26601171, %v704_v33  ;;  %v3369_v33 = vld [vmem:[%s3472_s16 + $0x24] sm:$0xff] }
 0x456   : > { %2402 = vrot.lane.b32.xlu1 %v5200_v49, %s3427_s27  ;;  %2406 = vrot.lane.b32.xlu0 %v5203_v22, %s3427_s27  ;;  %v3350_v49 = vld [vmem:[%s3520_s20 + $0x20] sm:$0xff]  ;;  %v528_v59 = vmul.f32 0.10936069, %v522_v14 }
 0x457   : > { %v258_v46 = vmul.f32 %v3350_v49, %v3349_v47  ;;  %v3351_v22 = vld [vmem:[%s3472_s16 + $0x43] sm:$0xff]  ;;  %v2387_v11 = vpop.permute.xlu2 %2386  ;;  %v3359_v47 = vld [vmem:[%s3472_s16 + $0xc] sm:$0xff] }
 0x458   : > { %v524_v58 = vmul.f32 %v3351_v22, %v6108_v2  ;;  %v5339_v25 = vadd.f32 %v2387_v11, %v2375_v36  ;;  %v5350_v36 = vmul.f32 0.0010283801, %v5112_v21  ;;  %v620_v22 = vmul.f32 0.21300554, %v614_v60  ;;  %v3360_v2 = vld [vmem:[%s3472_s16 + $0x46] sm:$0xff] }
 0x459   : > { %v264_v10 = vmul.f32 0.0010283801, %v258_v46  ;;  %v443_v46 = vadd.f32 %v437_v20, %v353_v9  ;;  %v446_v21 = vadd.f32 %v440_v63, %v356_v43  ;;  %v3365_v11 = vld [vmem:[%s3472_s16 + $0x47] sm:$0xff]  ;;  %v6114_v9 = vld [vmem:[#allocation52_spill] sm:$0xff] }
 0x45a   : > { %v530_v3 = vmul.f32 0.10936069, %v524_v58  ;;  %v6113_v58 = vld [vmem:[#allocation55_spill] sm:$0xff]  ;;  %v884_v20 = vmul.f32 %v3365_v11, %v6114_v9 }
 0x45b   : > { %v794_v56 = vmul.f32 %v3360_v2, %v6113_v58  ;;  %v533_v37 = vadd.f32 %v527_v13, %v443_v46  ;;  %v3366_v63 = vld [vmem:[%s3472_s16 + $0xd] sm:$0xff]  ;;  %v531_v13 = vmul.f32 0.10936069, %v525_v44  ;;  %v6116_v44 = vld [vmem:[#allocation45_spill] sm:$0xff] }
 0x45c   : > { %v536_v60 = vadd.f32 %v530_v3, %v446_v21  ;;  %v701_v43 = vmul.f32 %v3366_v63, %v6115_v5  ;;  %v3367_v2 = vld [vmem:[%s3472_s16 + $0x4a] sm:$0xff]  ;;  %v890_v46 = vmul.f32 0.10936069, %v884_v20 }
 0x45d   : > { %v3368_v58 = vld [vmem:[%s3520_s20 + $0x4a] sm:$0xff] }
 0x45e   : > { %2408 = vrot.lane.b32.xlu1 %v5231_v6, %s3427_s27  ;;  %2424 = vrot.lane.b32.xlu0 %v5150_v18, %s3428_s28  ;;  %v6112_v6 = vld [vmem:[#allocation35_spill] sm:$0xff]  ;;  %v5372_v45 = vmul.f32 %v3368_v58, %v3367_v2  ;;  %v626_v16 = vadd.f32 %v620_v22, %v536_v60  ;;  %v707_v55 = vmul.f32 0.26601171, %v701_v43  ;;  %v6118_v60 = vld [vmem:[#allocation2_spill] sm:$0xff] }
 0x45f   : > { %v611_v49 = vmul.f32 %v3359_v47, %v6112_v6  ;;  %v2405_v7 = vpop.permute.xlu2 %2404  ;;  %v354_v47 = vadd.f32 %v348_v57, %v264_v10  ;;  %v800_v6 = vmul.f32 0.21300554, %v794_v56  ;;  %v3370_v3 = vld [vmem:[%s3520_s20 + $0x24] sm:$0xff]  ;;  %v5384_v10 = vmul.f32 0.0010283801, %v5129_v27  ;;  %v6117_v27 = vld [vmem:[#allocation4_spill] sm:$0xff] }
 0x460   : > { %v2209_v18 = vpop.permute.xlu0 %2208  ;;  %v441_v57 = vmul.f32 0.036000773, %v5372_v45  ;;  %v716_v22 = vadd.f32 %v710_v1, %v626_v16  ;;  %v965_v1 = vmul.f32 0.036000773, %v6118_v60  ;;  %v3372_v2 = vld [vmem:[%s3472_s16 + $0xf] sm:$0xff]  ;;  %v6119_v58 = vld [vmem:[#allocation50_spill] sm:$0xff] }
 0x461   : > { %v5357_v34 = vadd.f32 %v2209_v18, %v5350_v36  ;;  %v617_v4 = vmul.f32 0.21300554, %v611_v49  ;;  %v5368_v18 = vadd.f32 %v2405_v7, %v5314_v23  ;;  %v612_v49 = vmul.f32 %v3370_v3, %v3369_v33  ;;  %v3374_v16 = vld [vmem:[%s3520_s20 + $0x25] sm:$0xff] }
 0x462   : > { %v5381_v23 = vmul.f32 0.0010283801, %v5126_v54  ;;  %v447_v9 = vadd.f32 %v441_v57, %v6117_v27  ;;  %v806_v20 = vadd.f32 %v800_v6, %v716_v22  ;;  %v3375_v22 = vld [vmem:[%s3472_s16 + $0x26] sm:$0xff] }
 0x463   : > { %v623_v14 = vadd.f32 %v617_v4, %v533_v37  ;;  %v618_v4 = vmul.f32 0.21300554, %v612_v49  ;;  %v5403_v49 = vmul.f32 0.0010283801, %v5144_v48  ;;  %v3378_v27 = vld [vmem:[%s3472_s16 + $0x4c] sm:$0xff] }
 0x464   : > { %v537_v7 = vadd.f32 %v531_v13, %v447_v9  ;;  %v896_v63 = vadd.f32 %v890_v46, %v806_v20  ;;  %v6120_v13 = vld [vmem:[#allocation3_spill] sm:$0xff] }
 0x465   : > { %v713_v5 = vadd.f32 %v707_v55, %v623_v14  ;;  %v3377_v55 = vld [vmem:[%s3472_s16 + $0x10] sm:$0xff]  ;;  %v3380_v60 = vld [vmem:[%s3472_s16 + $0x27] sm:$0xff] }
 0x466   : > { %2426 = vrot.lane.b32.xlu1 %v5158_v35, %s3428_s28  ;;  %2430 = vrot.lane.b32.xlu0 %v5161_v24, %s3428_s28  ;;  %v791_v35 = vmul.f32 %v3371_v40, %v6116_v44  ;;  %v444_v24 = vadd.f32 %v438_v50, %v354_v47  ;;  %v881_v50 = vmul.f32 %v3372_v2, %v6119_v58  ;;  %v3373_v47 = vld [vmem:[%s3472_s16 + $0x25] sm:$0xff] }
 0x467   : > { %v2411_v37 = vpop.permute.xlu2 %2410  ;;  %v702_v33 = vmul.f32 %v3374_v16, %v3373_v47  ;;  %v971_v57 = vadd.f32 %v965_v1, %v896_v63  ;;  %v6121_v40 = vld [vmem:[#allocation54_spill] sm:$0xff]  ;;  %v3379_v9 = vld [vmem:[%s3520_s20 + $0x4c] sm:$0xff] }
 0x468   : > { %v2211_v56 = vpop.permute.xlu1 %2210  ;;  %v2215_v21 = vpop.permute.xlu0 %2214  ;;  %v797_v43 = vmul.f32 0.21300554, %v791_v35  ;;  %v2423_v3 = vadd.f32 %v2411_v37, %v5339_v25  ;;  %v534_v6 = vadd.f32 %v528_v59, %v444_v24  ;;  %v615_v20 = vmul.f32 %v3379_v9, %v3378_v27  ;;  %v3381_v1 = vld [vmem:[%s3520_s20 + $0x27] sm:$0xff] }
 0x469   : > { %v2227_v54 = vadd.f32 %v2211_v56, %v5381_v23  ;;  %v2229_v11 = vadd.f32 %v2215_v21, %v5384_v10  ;;  %v5406_v46 = vadd.f32 %v971_v57, %v6120_v13  ;;  %v3376_v56 = vld [vmem:[%s3520_s20 + $0x26] sm:$0xff]  ;;  %v708_v44 = vmul.f32 0.26601171, %v702_v33 }
 0x46a   : > { %v792_v25 = vmul.f32 %v3376_v56, %v3375_v22  ;;  %v803_v14 = vadd.f32 %v797_v43, %v713_v5  ;;  %v624_v24 = vadd.f32 %v618_v4, %v534_v6  ;;  %v882_v63 = vmul.f32 %v3381_v1, %v3380_v60  ;;  %v6122_v47 = vld [vmem:[#allocation43_spill] sm:$0xff] }
 0x46b   : > { %v621_v4 = vmul.f32 0.21300554, %v615_v20  ;;  %v3383_v33 = vld [vmem:[%s3472_s16 + $0x4d] sm:$0xff]  ;;  %v963_v60 = vmul.f32 0.036000773, %v5193_v51 }
 0x46c   : > { %v798_v2 = vmul.f32 0.21300554, %v792_v25  ;;  %v3384_v6 = vld [vmem:[%s3520_s20 + $0x4d] sm:$0xff]  ;;  %v888_v13 = vmul.f32 0.10936069, %v882_v63 }
 0x46d   : > { %v705_v57 = vmul.f32 %v3384_v6, %v3383_v33  ;;  %v3389_v1 = vld [vmem:[%s3520_s20 + $0x4f] sm:$0xff]  ;;  %v1098_v6 = vmul.f32 0.0010283801, %v5215_v61 }
 0x46e   : > { %2432 = vrot.lane.b32.xlu1 %v5174_v62, %s3428_s28  ;;  %2448 = vrot.lane.b32.xlu0 %v5117_v28, %s3429_s29  ;;  %v887_v62 = vmul.f32 0.10936069, %v881_v50  ;;  %v958_v28 = vmul.f32 %v3377_v55, %v6121_v40  ;;  %v3382_v50 = vld [vmem:[%s3472_s16 + $0x11] sm:$0xff] }
 0x46f   : > { %v2429_v37 = vpop.permute.xlu2 %2428  ;;  %v1021_v16 = vmul.f32 %v3382_v50, %v6122_v47  ;;  %v3386_v40 = vld [vmem:[%s3472_s16 + $0x4e] sm:$0xff] }
 0x470   : > { %v2217_v59 = vpop.permute.xlu1 %2216  ;;  %v2245_v21 = vpop.permute.xlu0 %2244  ;;  %v893_v5 = vadd.f32 %v887_v62, %v803_v14  ;;  %v962_v43 = vmul.f32 0.036000773, %v958_v28  ;;  %v2444_v58 = vadd.f32 %v2429_v37, %v5368_v18  ;;  %v3385_v62 = vld [vmem:[%s3472_s16 + $0x12] sm:$0xff] }
 0x471   : > { %v2230_v48 = vadd.f32 %v2217_v59, %v5403_v49  ;;  %v2262_v35 = vadd.f32 %v2245_v21, %v5357_v34  ;;  %v714_v34 = vadd.f32 %v708_v44, %v624_v24  ;;  %v1024_v21 = vmul.f32 0.007598758, %v1021_v16  ;;  %v3387_v28 = vld [vmem:[%s3520_s20 + $0x4e] sm:$0xff] }
 0x472   : > { %v968_v56 = vadd.f32 %v962_v43, %v893_v5  ;;  %v1093_v55 = vmul.f32 %v3385_v62, %v4986_v12  ;;  %v795_v44 = vmul.f32 %v3387_v28, %v3386_v40  ;;  %v3390_v47 = vld [vmem:[%s3472_s16 + $0x50] sm:$0xff]  ;;  %v6123_v40 = vld [vmem:[#allocation61_spill] sm:$0xff] }
 0x473   : > { %v804_v14 = vadd.f32 %v798_v2, %v714_v34  ;;  %v3391_v16 = vld [vmem:[%s3520_s20 + $0x50] sm:$0xff]  ;;  %v6124_v28 = vld [vmem:[#allocation57_spill] sm:$0xff] }
 0x474   : > { %v1028_v9 = vadd.f32 %v1024_v21, %v968_v56  ;;  %v1097_v12 = vmul.f32 0.0010283801, %v1093_v55  ;;  %v3394_v55 = vld [vmem:[%s3472_s16 + $0x52] sm:$0xff] }
 0x475   : > { %v894_v20 = vadd.f32 %v888_v13, %v804_v14  ;;  %v3392_v13 = vld [vmem:[%s3472_s16 + $0x51] sm:$0xff] }
 0x476   : > { %2450 = vrot.lane.b32.xlu1 %v5132_v31, %s3429_s29  ;;  %2454 = vrot.lane.b32.xlu0 %v5135_v19, %s3429_s29  ;;  %v627_v31 = vadd.f32 %v621_v4, %v537_v7  ;;  %v711_v19 = vmul.f32 0.26601171, %v705_v57  ;;  %v3388_v7 = vld [vmem:[%s3472_s16 + $0x4f] sm:$0xff]  ;;  %v1103_v51 = vadd.f32 %v1097_v12, %v1028_v9  ;;  %v6125_v9 = vld [vmem:[#allocation14_spill] sm:$0xff] }
 0x477   : > { %v2435_v24 = vpop.permute.xlu2 %2434  ;;  %v885_v63 = vmul.f32 %v3389_v1, %v3388_v7  ;;  %v969_v2 = vadd.f32 %v963_v60, %v894_v20  ;;  %v6126_v20 = vld [vmem:[#allocation5_spill] sm:$0xff]  ;;  %v6127_v60 = vld [vmem:[#allocation58_spill] sm:$0xff] }
 0x478   : > { %v2247_v22 = vpop.permute.xlu1 %2246  ;;  %v2251_v18 = vpop.permute.xlu0 %2250  ;;  %v2447_v27 = vadd.f32 %v2435_v24, %v2423_v3  ;;  %v6128_v7 = vld [vmem:[#allocation6_spill] sm:$0xff] }
 0x479   : > { %v2263_v25 = vadd.f32 %v2247_v22, %v2227_v54  ;;  %v2265_v59 = vadd.f32 %v2251_v18, %v2229_v11  ;;  %v717_v54 = vadd.f32 %v711_v19, %v627_v31  ;;  %v801_v11 = vmul.f32 0.21300554, %v795_v44  ;;  %v3393_v22 = vld [vmem:[%s3520_s20 + $0x51] sm:$0xff] }
 0x47a   : > { %v891_v50 = vmul.f32 0.10936069, %v885_v63  ;;  %v1029_v33 = vadd.f32 %v969_v2, %v5211_v26  ;;  %v1023_v18 = vmul.f32 %v3393_v22, %v3392_v13  ;;  %v3395_v31 = vld [vmem:[%s3520_s20 + $0x52] sm:$0xff]  ;;  %v6129_v63 = vld [vmem:[#allocation59_spill] sm:$0xff] }
 0x47b   : > { %v1095_v19 = vmul.f32 %v3395_v31, %v3394_v55  ;;  %v6138_v31 = vld [vmem:[#allocation32_spill] sm:$0xff] }
 0x47c   : > { %v1104_v14 = vadd.f32 %v1098_v6, %v1029_v33  ;;  %v6133_v33 = vld [vmem:[#allocation66_spill] sm:$0xff] }
 0x47e   : > { %2456 = vrot.lane.b32.xlu1 %v5147_v30, %s3429_s29  ;;  %2478 = vrot.lane.b32.xlu0 %v5350_v36, %s3430_s30  ;;  %v807_v30 = vadd.f32 %v801_v11, %v717_v54  ;;  %v960_v36 = vmul.f32 %v3391_v16, %v3390_v47 }
 0x47f   : > { %v2453_v34 = vpop.permute.xlu2 %2452 }
 0x480   : > { %v2253_v37 = vpop.permute.xlu1 %2252  ;;  %v2281_v3 = vpop.permute.xlu0 %2280  ;;  %v5440_v4 = vadd.f32 %v2453_v34, %v2444_v58  ;;  %v966_v57 = vmul.f32 0.036000773, %v960_v36  ;;  %v6132_v36 = vld [vmem:[#allocation13_spill] sm:$0xff] }
 0x481   : > { %v2266_v5 = vadd.f32 %v2253_v37, %v2230_v48  ;;  %v2298_v43 = vadd.f32 %v2281_v3, %v2262_v35  ;;  %v1100_v48 = vmul.f32 0.0010283801, %v5372_v45  ;;  %v897_v35 = vadd.f32 %v891_v50, %v807_v30  ;;  %v6131_v50 = vld [vmem:[#allocation60_spill] sm:$0xff] }
 0x482   : > { %v1532_v45 = vadd.f32 %v6124_v28, %v6123_v40 }
 0x483   : > { %v1106_v61 = vadd.f32 %v1100_v48, %v5406_v46  ;;  %v972_v62 = vadd.f32 %v966_v57, %v897_v35  ;;  %v1184_v46 = vadd.f32 %v6126_v20, %v6125_v9  ;;  %v6134_v35 = vld [vmem:[#allocation22_spill] sm:$0xff]  ;;  %v6143_v20 = vld [vmem:[#allocation71_spill] sm:$0xff] }
 0x484   : > { %v1568_v12 = vadd.f32 %v6127_v60, %v1532_v45  ;;  %v6140_v45 = vld [vmem:[#allocation37_spill] sm:$0xff] }
 0x485   : > { %v1220_v1 = vadd.f32 %v6128_v7, %v1184_v46 }
 0x486   : > { %2480 = vrot.lane.b32.xlu1 %v5381_v23, %s3430_s30  ;;  %2510 = vrot.lane.b32.xlu0 %v1103_v51, %s3420_s17  ;;  %v1026_v23 = vmul.f32 0.007598758, %v1023_v18  ;;  %v1604_v37 = vadd.f32 %v6129_v63, %v1568_v12  ;;  %v6130_v51 = vld [vmem:[#allocation9_spill] sm:$0xff] }
 0x487   : > { %v2459_v44 = vpop.permute.xlu2 %2458  ;;  %v1256_v30 = vadd.f32 %v6130_v51, %v1220_v1 }
 0x488   : > { %v2283_v58 = vpop.permute.xlu1 %2282  ;;  %v2287_v56 = vpop.permute.xlu0 %2286  ;;  %v5455_v24 = vadd.f32 %v2459_v44, %v2447_v27  ;;  %v1640_v47 = vadd.f32 %v6131_v50, %v1604_v37 }
 0x489   : > { %v2299_v21 = vadd.f32 %v2283_v58, %v2263_v25  ;;  %v2301_v26 = vadd.f32 %v2287_v56, %v2265_v59  ;;  %v1032_v25 = vadd.f32 %v1026_v23, %v972_v62  ;;  %v1101_v59 = vmul.f32 0.0010283801, %v1095_v19  ;;  %v6136_v58 = vld [vmem:[#allocation27_spill] sm:$0xff]  ;;  %v6139_v19 = vld [vmem:[#allocation69_spill] sm:$0xff] }
 0x48a   : > { %v1292_v34 = vadd.f32 %v6132_v36, %v1256_v30  ;;  %v1676_v6 = vadd.f32 %v6133_v33, %v1640_v47 }
 0x48b   : > { %v1107_v2 = vadd.f32 %v1101_v59, %v1032_v25  ;;  %v6141_v25 = vld [vmem:[#allocation70_spill] sm:$0xff] }
 0x48e   : > { %2512 = vrot.lane.b32.xlu1 %v1104_v14, %s3420_s17  ;;  %2516 = vrot.lane.b32.xlu0 %v1106_v61, %s3420_s17  ;;  %v6137_v14 = vld [vmem:[#allocation68_spill] sm:$0xff] }
 0x48f   : > { %v2509_v16 = vpop.permute.xlu2 %2508 }
 0x490   : > { %v2289_v54 = vpop.permute.xlu1 %2288  ;;  %v2317_v11 = vpop.permute.xlu0 %2316  ;;  %v2526_v48 = vsel %vm1132_vm0, 0.0, %v2509_v16 }
 0x491   : > { %v2302_v3 = vadd.f32 %v2289_v54, %v2266_v5  ;;  %v2334_v27 = vadd.f32 %v2317_v11, %v2298_v43  ;;  %v1328_v5 = vadd.f32 %v6134_v35, %v1292_v34  ;;  %v6135_v43 = vld [vmem:[#allocation67_spill] sm:$0xff]  ;;  %v5475_v13 = vsel %vm1139_vm1, %v2526_v48, 0.0 }
 0x492   : > { %v1700_v57 = vadd.f32 %v6135_v43, %v1676_v6  ;;  %v5480_v55 = vmul.f32 0.007598758, %v5475_v13  ;;  %v6144_v11 = vld [vmem:[#allocation47_spill] sm:$0xff] }
 0x493   : > { %v1352_v56 = vadd.f32 %v6136_v58, %v1328_v5 }
 0x494   : > { %v1724_v61 = vadd.f32 %v6137_v14, %v1700_v57  ;;  %v6146_v14 = vld [vmem:[#allocation74_spill] sm:$0xff] }
 0x496   : > { %2518 = vrot.lane.b32.xlu1 %v1107_v2, %s3420_s17  ;;  %2484 = vrot.lane.b32.xlu0 %v5384_v10, %s3430_s30  ;;  %v1376_v10 = vadd.f32 %v6138_v31, %v1352_v56  ;;  %v1748_v40 = vadd.f32 %v6139_v19, %v1724_v61  ;;  %v2927_v61 = vadd.f32 0.0001, %v6146_v14  ;;  %v6150_v14 = vld [vmem:[#allocation17_spill] sm:$0xff] }
 0x497   : > { %v2515_v28 = vpop.permute.xlu2 %2514 }
 0x498   : > { %v2319_v22 = vpop.permute.xlu1 %2318  ;;  %v2323_v18 = vpop.permute.xlu0 %2322  ;;  %v1400_v44 = vadd.f32 %v6140_v45, %v1376_v10  ;;  %v1772_v59 = vadd.f32 %v6141_v25, %v1748_v40  ;;  %v2529_v9 = vsel %vm1132_vm0, 0.0, %v2515_v28 }
 0x499   : > { %v2335_v62 = vadd.f32 %v2319_v22, %v2299_v21  ;;  %v2337_v23 = vadd.f32 %v2323_v18, %v2301_v26  ;;  %v6142_v21 = vld [vmem:[#allocation42_spill] sm:$0xff]  ;;  %v5496_v60 = vsel %vm1139_vm1, %v2529_v9, 0.0 }
 0x49a   : > { %v1424_v26 = vadd.f32 %v6142_v21, %v1400_v44  ;;  %v5493_v46 = vadd.f32 %v6143_v20, %v1772_v59 }
 0x49c   : > { %v5499_v7 = vadd.f32 %v6144_v11, %v1424_v26  ;;  %v2858_v37 = vmul.f32 %v5493_v46, %v5493_v46 }
 0x49e   : > { %2486 = vrot.lane.b32.xlu1 %v5403_v49, %s3430_s30  ;;  %2556 = vrot.lane.b32.xlu0 %v5480_v55, %s3421_s21  ;;  %v5502_v49 = vmul.f32 0.007598758, %v5496_v60  ;;  %v2852_v51 = vmul.f32 %v5499_v7, %v5499_v7 }
 0x49f   : > { %v2483_v2 = vpop.permute.xlu2 %2482 }
 0x4a0   : > { %v2325_v12 = vpop.permute.xlu1 %2324  ;;  %v2353_v54 = vpop.permute.xlu0 %2352  ;;  %v2498_v30 = vadd.f32 %v2483_v2, %v5440_v4  ;;  %v2918_v50 = vadd.f32 %v2858_v37, %v2852_v51  ;;  %v2870_v47 = vsub.f32 %v5027_v42, %v2852_v51  ;;  %v6145_v4 = vld [vmem:[#allocation72_spill] sm:$0xff] }
 0x4a1   : > { %v2338_v1 = vadd.f32 %v2325_v12, %v2302_v3  ;;  %v2370_v63 = vadd.f32 %v2353_v54, %v2334_v27 }
 0x4a2   : > { %v2876_v3 = vsub.f32 %v2498_v30, %v2858_v37  ;;  %v2924_v6 = vadd.f32 0.0001, %v2918_v50 }
 0x4a4   : > { %v2930_v36 = vadd.f32 %v2876_v3, %v2870_v47 }
 0x4a6   : > { %2562 = vrot.lane.b32.xlu0 %v5502_v49, %s3421_s21  ;;  %v2936_v48 = vadd.f32 0.0009, %v2930_v36 }
 0x4a7   : > { %v2489_v35 = vpop.permute.xlu2 %2488 }
 0x4a8   : > { %v2355_v27 = vpop.permute.xlu1 %2354  ;;  %v2359_v16 = vpop.permute.xlu0 %2358  ;;  %v5512_v5 = vmul.f32 %v2936_v48, %v2924_v6  ;;  %v2501_v43 = vadd.f32 %v2489_v35, %v5455_v24  ;;  %v6148_v6 = vsub.f32 %v5092_v29, %v4459_v0  ;;  %v6149_v35 = vld [vmem:[#allocation24_spill] sm:$0xff]  ;;  %v6151_v29 = vsub.f32 %v5098_v53, %v4490_v39 }
 0x4a9   : > { %v2371_v34 = vadd.f32 %v2355_v27, %v2335_v62  ;;  %v2373_v33 = vadd.f32 %v2359_v16, %v2337_v23 }
 0x4aa   : > { %v2879_v57 = vsub.f32 %v2501_v43, %v6145_v4  ;;  %v2922_v43 = vadd.f32 0.0001, %v6149_v35  ;;  %vm2981_vm7 = vweird.f32 %v5512_v5 }
 0x4ac   : > { %v2933_v42 = vadd.f32 %v2879_v57, %v2873_v32 }
 0x4ae   : > { %v2939_v62 = vadd.f32 0.0009, %v2933_v42 }
 0x4b0   : > { %v2361_v22 = vpop.permute.xlu1 %2360  ;;  %v2377_v18 = vpop.permute.xlu0 %2376  ;;  %v5520_v23 = vmul.f32 %v2939_v62, %v2927_v61 }
 0x4b1   : > { %v2374_v58 = vadd.f32 %v2361_v22, %v2338_v1  ;;  %v2394_v56 = vadd.f32 %v2377_v18, %v2370_v63 }
 0x4b2   : > { %vm3026_vm13 = vweird.f32 %v5520_v23 }
 0x4b8   : > { %v2379_v31 = vpop.permute.xlu1 %2378  ;;  %v2383_v10 = vpop.permute.xlu0 %2382 }
 0x4b9   : > { %v2395_v19 = vadd.f32 %v2379_v31, %v2371_v34  ;;  %v2397_v40 = vadd.f32 %v2383_v10, %v2373_v33  ;;  %v6147_v34 = vld [vmem:[#allocation16_spill] sm:$0xff]  ;;  %v6152_v10 = vld [vmem:[#allocation29_spill] sm:$0xff] }
 0x4c0   : > { %v2385_v24 = vpop.permute.xlu1 %2384  ;;  %v2401_v28 = vpop.permute.xlu0 %2400 }
 0x4c1   : > { %v2398_v45 = vadd.f32 %v2385_v24, %v2374_v58  ;;  %v2418_v44 = vadd.f32 %v2401_v28, %v2394_v56 }
 0x4c8   : > { %v2403_v25 = vpop.permute.xlu1 %2402  ;;  %v2407_v59 = vpop.permute.xlu0 %2406 }
 0x4c9   : > { %v2419_v9 = vadd.f32 %v2403_v25, %v2395_v19  ;;  %v2421_v52 = vadd.f32 %v2407_v59, %v2397_v40  ;;  %v2923_v19 = vadd.f32 0.0001, %v6152_v10  ;;  %v2655_v10 = vmul.f32 0.21300554, %v5496_v60 }
 0x4d0   : > { %v2409_v38 = vpop.permute.xlu1 %2408  ;;  %v2425_v32 = vpop.permute.xlu0 %2424 }
 0x4d1   : > { %v2422_v21 = vadd.f32 %v2409_v38, %v2398_v45  ;;  %v2442_v26 = vadd.f32 %v2425_v32, %v2418_v44 }
 0x4d8   : > { %v2427_v20 = vpop.permute.xlu1 %2426  ;;  %v2431_v12 = vpop.permute.xlu0 %2430 }
 0x4d9   : > { %v2443_v54 = vadd.f32 %v2427_v20, %v2419_v9  ;;  %v2445_v11 = vadd.f32 %v2431_v12, %v2421_v52  ;;  %v6153_v20 = vld [vmem:[#allocation18_spill] sm:$0xff] }
 0x4e0   : > { %v2433_v1 = vpop.permute.xlu1 %2432  ;;  %v2449_v63 = vpop.permute.xlu0 %2448 }
 0x4e1   : > { %v2446_v37 = vadd.f32 %v2433_v1, %v2422_v21  ;;  %v2466_v2 = vadd.f32 %v2449_v63, %v2442_v26  ;;  %v6154_v1 = vsub.f32 %v5100_v17, %v4492_v15  ;;  %v5595_v17 = vmul.f32 0.036000773, %v5496_v60 }
 0x4e8   : > { %v2451_v51 = vpop.permute.xlu1 %2450  ;;  %v2455_v30 = vpop.permute.xlu0 %2454 }
 0x4e9   : > { %v2467_v50 = vadd.f32 %v2451_v51, %v2443_v54  ;;  %v2469_v47 = vadd.f32 %v2455_v30, %v2445_v11  ;;  %v2580_v54 = vmul.f32 0.036000773, %v5475_v13  ;;  %v2652_v11 = vmul.f32 0.21300554, %v5475_v13 }
 0x4f0   : > { %v2457_v3 = vpop.permute.xlu1 %2456  ;;  %v2479_v27 = vpop.permute.xlu0 %2478 }
 0x4f1   : > { %v2470_v16 = vadd.f32 %v2457_v3, %v2446_v37  ;;  %v2496_v36 = vadd.f32 %v2479_v27, %v2466_v2  ;;  %v6155_v37 = vld [vmem:[#allocation11_spill] sm:$0xff]  ;;  %v6156_v3 = vld [vmem:[#allocation12_spill] sm:$0xff] }
 0x4f2   : > { %v2925_v2 = vadd.f32 0.0001, %v6155_v37 }
 0x4f3   : > { %v2874_v33 = vsub.f32 %v2496_v36, %v6147_v34  ;;  %v2616_v36 = vmul.f32 0.10936069, %v5475_v13  ;;  %v6157_v34 = vsub.f32 %v5108_v8, %v4523_v41  ;;  %v2688_v41 = vmul.f32 0.26601171, %v5475_v13 }
 0x4f5   : > { %v2928_v48 = vadd.f32 %v2874_v33, %v6148_v6 }
 0x4f7   : > { %v2934_v4 = vadd.f32 0.0009, %v2928_v48 }
 0x4f8   : > { %v2481_v57 = vpop.permute.xlu1 %2480  ;;  %v2511_v22 = vpop.permute.xlu0 %2510 }
 0x4f9   : > { %v5527_v18 = vmul.f32 %v2934_v4, %v2922_v43  ;;  %v2497_v42 = vadd.f32 %v2481_v57, %v2467_v50  ;;  %v2527_v58 = vsel %vm1132_vm0, 0.0, %v2511_v22 }
 0x4fa   : > { %v5531_v56 = vsel %vm1139_vm1, %v2527_v58, 0.0  ;;  %v2619_v58 = vmul.f32 0.10936069, %v5496_v60 }
 0x4fb   : > { %v2875_v61 = vsub.f32 %v2497_v42, %v6150_v14  ;;  %v5535_v62 = vmul.f32 0.036000773, %v5531_v56  ;;  %v5538_v0 = vmul.f32 0.007598758, %v5531_v56  ;;  %v5562_v9 = vmul.f32 0.10936069, %v5531_v56 }
 0x4fc   : > { %v2653_v8 = vmul.f32 0.21300554, %v5531_v56  ;;  %3202 = vrcp.f32 %v5527_v18  ;;  %vm2951_vm3 = vweird.f32 %v5527_v18 }
 0x4fd   : > { %v2929_v31 = vadd.f32 %v2875_v61, %v6151_v29  ;;  %2594 = vrot.lane.b32.xlu0 %v5535_v62, %s3422_s22  ;;  %2558 = vrot.lane.b32.xlu1 %v5538_v0, %s3421_s21  ;;  %v2689_v61 = vmul.f32 0.26601171, %v5531_v56  ;;  %3204 = vrcp.f32 %v5512_v5 }
 0x4ff   : > { %v2935_v40 = vadd.f32 0.0009, %v2929_v31 }
 0x500   : > { %v2513_v24 = vpop.permute.xlu1 %2512  ;;  %v2517_v28 = vpop.permute.xlu0 %2516 }
 0x501   : > { %v5548_v45 = vmul.f32 %v2935_v40, %v2923_v19  ;;  %v2528_v44 = vsel %vm1132_vm0, 0.0, %v2513_v24  ;;  %v2530_v25 = vsel %vm1132_vm0, 0.0, %v2517_v28  ;;  %v2691_v28 = vmul.f32 0.26601171, %v5496_v60 }
 0x502   : > { %v5553_v39 = vsel %vm1139_vm1, %v2528_v44, 0.0  ;;  %v5556_v53 = vsel %vm1139_vm1, %v2530_v25, 0.0 }
 0x503   : > { %v5559_v59 = vmul.f32 0.007598758, %v5553_v39  ;;  %v5565_v52 = vmul.f32 0.007598758, %v5556_v53  ;;  %v5574_v26 = vmul.f32 0.036000773, %v5553_v39  ;;  %3206 = vrcp.f32 %v5548_v45 }
 0x504   : > { %v5592_v15 = vmul.f32 0.036000773, %v5556_v53  ;;  %v2618_v4 = vmul.f32 0.10936069, %v5553_v39  ;;  %v2620_v42 = vmul.f32 0.10936069, %v5556_v53  ;;  %3208 = vrcp.f32 %v5520_v23 }
 0x505   : > { %2560 = vrot.lane.b32.xlu2 %v5559_v59, %s3421_s21  ;;  %2630 = vrot.lane.b32.xlu0 %v5562_v9, %s3423_s23  ;;  %v2654_v14 = vmul.f32 0.21300554, %v5553_v39  ;;  %v2656_v31 = vmul.f32 0.21300554, %v5556_v53  ;;  %v2690_v19 = vmul.f32 0.26601171, %v5553_v39  ;;  %vm2966_vm11 = vweird.f32 %v5548_v45 }
 0x506   : > { %2564 = vrot.lane.b32.xlu1 %v5565_v52, %s3421_s21  ;;  %v2692_v24 = vmul.f32 0.26601171, %v5556_v53 }
 0x508   : > { %v2519_v38 = vpop.permute.xlu1 %2518  ;;  %v2485_v32 = vpop.permute.xlu0 %2484 }
 0x509   : > { %v2499_v21 = vadd.f32 %v2485_v32, %v2469_v47  ;;  %v2531_v43 = vsel %vm1132_vm0, 0.0, %v2519_v38  ;;  %v2540_v38 = vmul.f32 0.0010283801, %v5553_v39 }
 0x50a   : > { %v5615_v57 = vsel %vm1139_vm1, %v2531_v43, 0.0 }
 0x50b   : > { %v2877_v12 = vsub.f32 %v2499_v21, %v6153_v20  ;;  %v5619_v22 = vmul.f32 0.007598758, %v5615_v57  ;;  %v2585_v29 = vmul.f32 0.036000773, %v5615_v57  ;;  %v2621_v40 = vmul.f32 0.10936069, %v5615_v57 }
 0x50c   : > { %v2657_v44 = vmul.f32 0.21300554, %v5615_v57  ;;  %v2693_v21 = vmul.f32 0.26601171, %v5615_v57  ;;  %v2538_v20 = vmul.f32 0.0010283801, %v5475_v13 }
 0x50d   : > { %v2931_v63 = vadd.f32 %v2877_v12, %v6154_v1  ;;  %2592 = vrot.lane.b32.xlu2 %v2580_v54, %s3422_s22  ;;  %2664 = vrot.lane.b32.xlu0 %v2652_v11, %s3424_s24  ;;  %v2539_v13 = vmul.f32 0.0010283801, %v5531_v56 }
 0x50e   : > { %2596 = vrot.lane.b32.xlu1 %v5574_v26, %s3422_s22 }
 0x50f   : > { %v2937_v51 = vadd.f32 0.0009, %v2931_v63 }
 0x510   : > { %v2487_v30 = vpop.permute.xlu1 %2486  ;;  %v2557_v25 = vpop.permute.xlu0 %2556 }
 0x511   : > { %v5587_v50 = vmul.f32 %v2937_v51, %v2925_v2  ;;  %v2500_v47 = vadd.f32 %v2487_v30, %v2470_v16  ;;  %v6158_v16 = vld [vmem:[#allocation62_spill] sm:$0xff]  ;;  %v2574_v12 = vadd.f32 %v2557_v25, %v2538_v20  ;;  %v2542_v51 = vmul.f32 0.0010283801, %v5556_v53 }
 0x512   : > { %v2926_v6 = vadd.f32 0.0001, %v6158_v16 }
 0x513   : > { %v2878_v27 = vsub.f32 %v2500_v47, %v6156_v3  ;;  %v2543_v3 = vmul.f32 0.0010283801, %v5615_v57  ;;  %3210 = vrcp.f32 %v5587_v50  ;;  %vm2996_vm1 = vweird.f32 %v5587_v50 }
 0x515   : > { %v2932_v33 = vadd.f32 %v2878_v27, %v6157_v34  ;;  %2628 = vrot.lane.b32.xlu2 %v2616_v36, %s3423_s23  ;;  %2600 = vrot.lane.b32.xlu0 %v5592_v15, %s3422_s22 }
 0x516   : > { %2598 = vrot.lane.b32.xlu1 %v5595_v17, %s3422_s22 }
 0x517   : > { %v2938_v48 = vadd.f32 0.0009, %v2932_v33 }
 0x519   : > { %v5606_v35 = vmul.f32 %v2938_v48, %v2926_v6 }
 0x51b   : > { %3212 = vrcp.f32 %v5606_v35 }
 0x51d   : > { %2632 = vrot.lane.b32.xlu2 %v2618_v4, %s3423_s23  ;;  %2700 = vrot.lane.b32.xlu0 %v2688_v41, %s3425_s25 }
 0x51e   : > { %2666 = vrot.lane.b32.xlu1 %v2653_v8, %s3424_s24 }
 0x525   : > { %2566 = vrot.lane.b32.xlu2 %v5619_v22, %s3421_s21  ;;  %2636 = vrot.lane.b32.xlu0 %v2620_v42, %s3423_s23 }
 0x526   : > { %2634 = vrot.lane.b32.xlu1 %v2619_v58, %s3423_s23 }
 0x52d   : > { %2668 = vrot.lane.b32.xlu2 %v2654_v14, %s3424_s24  ;;  %2724 = vrot.lane.b32.xlu0 %v2652_v11, %s3426_s26 }
 0x52e   : > { %2702 = vrot.lane.b32.xlu1 %v2689_v61, %s3425_s25 }
 0x535   : > { %2602 = vrot.lane.b32.xlu2 %v2585_v29, %s3422_s22  ;;  %2672 = vrot.lane.b32.xlu0 %v2656_v31, %s3424_s24 }
 0x536   : > { %2670 = vrot.lane.b32.xlu1 %v2655_v10, %s3424_s24 }
 0x53d   : > { %2704 = vrot.lane.b32.xlu2 %v2690_v19, %s3425_s25  ;;  %2748 = vrot.lane.b32.xlu0 %v2616_v36, %s3427_s27 }
 0x53e   : > { %2726 = vrot.lane.b32.xlu1 %v2653_v8, %s3426_s26 }
 0x545   : > { %2638 = vrot.lane.b32.xlu2 %v2621_v40, %s3423_s23  ;;  %2708 = vrot.lane.b32.xlu0 %v2692_v24, %s3425_s25 }
 0x546   : > { %2706 = vrot.lane.b32.xlu1 %v2691_v28, %s3425_s25 }
 0x54d   : > { %2728 = vrot.lane.b32.xlu2 %v2654_v14, %s3426_s26  ;;  %2772 = vrot.lane.b32.xlu0 %v2580_v54, %s3428_s28  ;;  %v2563_v54 = vpop.permute.xlu0 %2562 }
 0x54e   : > { %2750 = vrot.lane.b32.xlu1 %v5562_v9, %s3427_s27 }
 0x555   : > { %2674 = vrot.lane.b32.xlu2 %v2657_v44, %s3424_s24  ;;  %2732 = vrot.lane.b32.xlu0 %v2656_v31, %s3426_s26 }
 0x556   : > { %2730 = vrot.lane.b32.xlu1 %v2655_v10, %s3426_s26 }
 0x55d   : > { %2752 = vrot.lane.b32.xlu2 %v2618_v4, %s3427_s27  ;;  %2796 = vrot.lane.b32.xlu0 %v5480_v55, %s3429_s29 }
 0x55e   : > { %2774 = vrot.lane.b32.xlu1 %v5535_v62, %s3428_s28 }
 0x55f   : > { %v2561_v9 = vpop.permute.xlu2 %2560 }
 0x560   : > { %v2576_v32 = vadd.f32 %v2561_v9, %v2540_v38 }
 0x565   : > { %2710 = vrot.lane.b32.xlu2 %v2693_v21, %s3425_s25  ;;  %2756 = vrot.lane.b32.xlu0 %v2620_v42, %s3427_s27 }
 0x566   : > { %2754 = vrot.lane.b32.xlu1 %v2619_v58, %s3427_s27 }
 0x567   : > { %v2593_v55 = vpop.permute.xlu2 %2592 }
 0x568   : > { %v2610_v11 = vadd.f32 %v2593_v55, %v2574_v12 }
 0x56d   : > { %2776 = vrot.lane.b32.xlu2 %v5574_v26, %s3428_s28  ;;  %2826 = vrot.lane.b32.xlu0 %v2538_v20, %s3430_s30 }
 0x56e   : > { %2798 = vrot.lane.b32.xlu1 %v5538_v0, %s3429_s29 }
 0x56f   : > { %v2629_v62 = vpop.permute.xlu2 %2628  ;;  %v2559_v39 = vpop.permute.xlu1 %2558 }
 0x570   : > { %v2646_v1 = vadd.f32 %v2629_v62, %v2610_v11  ;;  %v2575_v63 = vadd.f32 %v2559_v39, %v2539_v13  ;;  %v2595_v37 = vpop.permute.xlu0 %2594 }
 0x572   : > { %v2611_v2 = vadd.f32 %v2595_v37, %v2575_v63 }
 0x575   : > { %2734 = vrot.lane.b32.xlu2 %v2657_v44, %s3426_s26  ;;  %2780 = vrot.lane.b32.xlu0 %v5592_v15, %s3428_s28 }
 0x576   : > { %2778 = vrot.lane.b32.xlu1 %v5595_v17, %s3428_s28 }
 0x577   : > { %v2633_v26 = vpop.permute.xlu2 %2632 }
 0x578   : > { %v2565_v0 = vpop.permute.xlu1 %2564  ;;  %v2631_v30 = vpop.permute.xlu0 %2630 }
 0x579   : > { %v2578_v56 = vadd.f32 %v2565_v0, %v2542_v51  ;;  %v2647_v47 = vadd.f32 %v2631_v30, %v2611_v2 }
 0x57d   : > { %2800 = vrot.lane.b32.xlu2 %v5559_v59, %s3429_s29  ;;  %2782 = vrot.lane.b32.xlu0 %v2585_v29, %s3428_s28 }
 0x57e   : > { %2828 = vrot.lane.b32.xlu1 %v2539_v13, %s3430_s30 }
 0x57f   : > { %v2567_v27 = vpop.permute.xlu2 %2566 }
 0x580   : > { %v2579_v36 = vadd.f32 %v2567_v27, %v2543_v3  ;;  %v2597_v15 = vpop.permute.xlu1 %2596  ;;  %v2665_v17 = vpop.permute.xlu0 %2664 }
 0x581   : > { %v2612_v34 = vadd.f32 %v2597_v15, %v2576_v32  ;;  %v2682_v33 = vadd.f32 %v2665_v17, %v2646_v1  ;;  %v3203_v27 = vpop.eup %3202 }
 0x582   : > { %vm2952_vm2 = vweird.f32 %v3203_v27 }
 0x583   : > { %v2648_v53 = vadd.f32 %v2633_v26, %v2612_v34  ;;  %vm2953_vm4 = vmor %vm2951_vm3, %vm2952_vm2 }
 0x585   : > { %2758 = vrot.lane.b32.xlu2 %v2621_v40, %s3427_s27  ;;  %2806 = vrot.lane.b32.xlu0 %v5619_v22, %s3429_s29  ;;  %v2541_v22 = vmul.f32 0.0010283801, %v5496_v60 }
 0x586   : > { %2802 = vrot.lane.b32.xlu1 %v5502_v49, %s3429_s29 }
 0x587   : > { %v2669_v59 = vpop.permute.xlu2 %2668  ;;  %v2577_v14 = vadd.f32 %v2563_v54, %v2541_v22 }
 0x588   : > { %v2684_v16 = vadd.f32 %v2669_v59, %v2648_v53  ;;  %v2599_v6 = vpop.permute.xlu1 %2598  ;;  %v2601_v48 = vpop.permute.xlu0 %2600 }
 0x589   : > { %v2614_v43 = vadd.f32 %v2601_v48, %v2578_v56  ;;  %v2613_v49 = vadd.f32 %v2599_v6, %v2577_v14 }
 0x58d   : > { %2830 = vrot.lane.b32.xlu2 %v2540_v38, %s3430_s30 }
 0x58e   : > { %2804 = vrot.lane.b32.xlu1 %v5565_v52, %s3429_s29 }
 0x58f   : > { %v2603_v4 = vpop.permute.xlu2 %2602 }
 0x590   : > { %v2615_v41 = vadd.f32 %v2603_v4, %v2579_v36  ;;  %v2667_v8 = vpop.permute.xlu1 %2666  ;;  %v2701_v57 = vpop.permute.xlu0 %2700  ;;  %v2947_v36 = vmul.f32 %v3203_v27, %v5527_v18 }
 0x591   : > { %v2683_v42 = vadd.f32 %v2667_v8, %v2647_v47  ;;  %v2718_v58 = vadd.f32 %v2701_v57, %v2682_v33  ;;  %v5725_v33 = vpop.eup %3204 }
 0x592   : > { %v2948_v59 = vsub.f32 1.0, %v2947_v36  ;;  %v2977_v6 = vmul.f32 %v5725_v33, %v5512_v5  ;;  %vm2982_vm6 = vweird.f32 %v5725_v33 }
 0x593   : > { %vm5761_vm8 = vmor %vm2981_vm7, %vm2982_vm6 }
 0x594   : > { %v2949_v4 = vmul.f32 %v3203_v27, %v2948_v59  ;;  %v2978_v14 = vsub.f32 1.0, %v2977_v6 }
 0x595   : > { %2832 = vrot.lane.b32.xlu2 %v2541_v22, %s3430_s30 }
 0x596   : > { %2834 = vrot.lane.b32.xlu1 %v2542_v51, %s3430_s30 }
 0x597   : > { %v2705_v61 = vpop.permute.xlu2 %2704 }
 0x598   : > { %v2720_v29 = vadd.f32 %v2705_v61, %v2684_v16  ;;  %v2635_v31 = vpop.permute.xlu1 %2634  ;;  %v2637_v10 = vpop.permute.xlu0 %2636 }
 0x599   : > { %v2649_v19 = vadd.f32 %v2635_v31, %v2613_v49  ;;  %v2650_v52 = vadd.f32 %v2637_v10, %v2614_v43  ;;  %v2950_v49 = vadd.f32 %v3203_v27, %v2949_v4  ;;  %v2864_v31 = vmul.f32 %v5493_v46, %v5499_v7 }
 0x59b   : > { %v2954_v46 = vsel %vm2953_vm4, %v3203_v27, %v2950_v49  ;;  %v2987_v27 = vand.u32 2147483648, %v5512_v5 }
 0x59d   : > { %2836 = vrot.lane.b32.xlu2 %v2543_v3, %s3430_s30 }
 0x59f   : > { %v2639_v40 = vpop.permute.xlu2 %2638 }
 0x5a0   : > { %v5696_v24 = vadd.f32 %v2639_v40, %v2615_v41  ;;  %v2703_v28 = vpop.permute.xlu1 %2702  ;;  %v2725_v44 = vpop.permute.xlu0 %2724 }
 0x5a1   : > { %v2719_v60 = vadd.f32 %v2703_v28, %v2683_v42  ;;  %v2742_v25 = vadd.f32 %v2725_v44, %v2718_v58  ;;  %v6159_v42 = vld [vmem:[#allocation65_spill] sm:$0xff] }
 0x5a2   : > { %v2886_v58 = vmul.f32 2.0, %v6159_v42 }
 0x5a4   : > { %v2892_v28 = vadd.f32 0.0001, %v2886_v58 }
 0x5a7   : > { %v2729_v38 = vpop.permute.xlu2 %2728 }
 0x5a8   : > { %v2744_v9 = vadd.f32 %v2729_v38, %v2720_v29  ;;  %v2671_v32 = vpop.permute.xlu1 %2670  ;;  %v2673_v21 = vpop.permute.xlu0 %2672 }
 0x5a9   : > { %v2685_v20 = vadd.f32 %v2671_v32, %v2649_v19  ;;  %v5698_v12 = vadd.f32 %v2673_v21, %v2650_v52  ;;  %v5734_v29 = vpop.eup %3206  ;;  %v2957_v19 = vand.u32 2147483648, %v5527_v18  ;;  %v2955_v52 = vand.u32 2147483647, %v5527_v18 }
 0x5aa   : > { %v2888_v18 = vmul.f32 2.0, %v2864_v31  ;;  %vm2967_vm10 = vweird.f32 %v5734_v29 }
 0x5ab   : > { %vm2956_vm5 = vcmp.eq.f32.partialorder %v2955_v52, 8.507059e+37  ;;  %vm5793_vm12 = vmor %vm2966_vm11, %vm2967_vm10  ;;  %vm3058_vm11 = vcmask 0  }
 0x5af   : > { %v5700_v55 = vpop.permute.xlu2 %2674 }
 0x5b0   : > { %v2727_v54 = vpop.permute.xlu1 %2726  ;;  %v2749_v11 = vpop.permute.xlu0 %2748 }
 0x5b1   : > { %v5702_v13 = vadd.f32 %v2727_v54, %v2719_v60  ;;  %v2766_v53 = vadd.f32 %v2749_v11, %v2742_v25  ;;  %v2979_v60 = vmul.f32 %v5725_v33, %v2978_v14  ;;  %v2962_v25 = vmul.f32 %v5734_v29, %v5548_v45 }
 0x5b3   : > { %v2963_v36 = vsub.f32 1.0, %v2962_v25 }
 0x5b7   : > { %v2753_v62 = vpop.permute.xlu2 %2752 }
 0x5b8   : > { %v2707_v39 = vpop.permute.xlu1 %2706  ;;  %v5704_v1 = vpop.permute.xlu0 %2708  ;;  %v2768_v22 = vadd.f32 %v2753_v62, %v2744_v9  ;;  %v2958_v9 = vor.u32 1.1754944e-38, %v2957_v19  ;;  %v2980_v62 = vadd.f32 %v5725_v33, %v2979_v60  ;;  %v2972_v60 = vand.u32 2147483648, %v5548_v45 }
 0x5b9   : > { %v5706_v63 = vadd.f32 %v2707_v39, %v2685_v20 }
 0x5ba   : > { %v2959_v11 = vsel %vm2956_vm5, %v2958_v9, %v2954_v46 }
 0x5bf   : > { %v5708_v37 = vpop.permute.xlu2 %2710 }
 0x5c0   : > { %v2751_v2 = vpop.permute.xlu1 %2750  ;;  %v2773_v26 = vpop.permute.xlu0 %2772 }
 0x5c1   : > { %v2790_v16 = vadd.f32 %v2773_v26, %v2766_v53  ;;  %v5750_v26 = vpop.eup %3208 }
 0x5c2   : > { %v5758_v59 = vpop.eup %3210  ;;  %v3022_v4 = vmul.f32 %v5750_v26, %v5520_v23  ;;  %vm3027_vm0 = vweird.f32 %v5750_v26 }
 0x5c3   : > { %v2992_v58 = vmul.f32 %v5758_v59, %v5587_v50  ;;  %v5805_v6 = vpop.eup %3212  ;;  %vm2997_vm2 = vweird.f32 %v5758_v59  ;;  %vm5828_vm3 = vmor %vm3026_vm13, %vm3027_vm0 }
 0x5c4   : > { %vm5836_vm4 = vmor %vm2996_vm1, %vm2997_vm2  ;;  %vm3012_vm7 = vweird.f32 %v5805_v6 }
 0x5c7   : > { %v2777_v51 = vpop.permute.xlu2 %2776 }
 0x5c8   : > { %v5710_v0 = vpop.permute.xlu1 %2730  ;;  %v5712_v30 = vpop.permute.xlu0 %2732  ;;  %v2792_v10 = vadd.f32 %v2777_v51, %v2768_v22  ;;  %v2767_v51 = vadd.f32 %v2751_v2, %v5702_v13  ;;  %v2984_v13 = vsel %vm5761_vm8, %v5725_v33, %v2980_v62  ;;  %vm3011_vm8 = vweird.f32 %v5606_v35 }
 0x5cf   : > { %v5715_v56 = vpop.permute.xlu2 %2734 }
 0x5d0   : > { %v5717_v47 = vpop.permute.xlu1 %2774  ;;  %v2797_v3 = vpop.permute.xlu0 %2796 }
 0x5d1   : > { %v2814_v48 = vadd.f32 %v2797_v3, %v2790_v16  ;;  %v2791_v16 = vadd.f32 %v5717_v47, %v2767_v51  ;;  %v2964_v47 = vmul.f32 %v5734_v29, %v2963_v36 }
 0x5d7   : > { %v2801_v15 = vpop.permute.xlu2 %2800 }
 0x5d8   : > { %v5721_v17 = vpop.permute.xlu1 %2754  ;;  %v5723_v34 = vpop.permute.xlu0 %2756  ;;  %v2816_v44 = vadd.f32 %v2801_v15, %v2792_v10  ;;  %v2985_v15 = vand.u32 2147483647, %v5512_v5  ;;  %v2687_v5 = vadd.f32 %v5700_v55, %v5696_v24  ;;  %v6162_v10 = vld [vmem:[#allocation7_spill] sm:$0xff]  ;;  %v3023_v24 = vsub.f32 1.0, %v3022_v4 }
 0x5d9   : > { %v2887_v19 = vmul.f32 2.0, %v6162_v10  ;;  %v2745_v55 = vadd.f32 %v5710_v0, %v5706_v63  ;;  %v6163_v0 = vld [vmem:[#allocation73_spill] sm:$0xff] }
 0x5da   : > { %vm2986_vm9 = vcmp.eq.f32.partialorder %v2985_v15, 8.507059e+37  ;;  %v2723_v33 = vadd.f32 %v5708_v37, %v2687_v5  ;;  %v2970_v37 = vand.u32 2147483647, %v5548_v45  ;;  %v3024_v51 = vmul.f32 %v5750_v26, %v3023_v24 }
 0x5db   : > { %v2769_v25 = vadd.f32 %v5721_v17, %v2745_v55 }
 0x5dc   : > { %vm2971_vm14 = vcmp.eq.f32.partialorder %v2970_v37, 8.507059e+37  ;;  %v3025_v5 = vadd.f32 %v5750_v26, %v3024_v51 }
 0x5df   : > { %v5730_v43 = vpop.permute.xlu2 %2758 }
 0x5e0   : > { %v2799_v41 = vpop.permute.xlu1 %2798  ;;  %v2827_v8 = vpop.permute.xlu0 %2826 }
 0x5e1   : > { %v2844_v57 = vadd.f32 %v2827_v8, %v2814_v48  ;;  %v2894_v48 = vadd.f32 0.0001, %v2888_v18  ;;  %v2815_v8 = vadd.f32 %v2799_v41, %v2791_v16  ;;  %v2747_v41 = vadd.f32 %v5715_v56, %v2723_v33 }
 0x5e2   : > { %v2891_v56 = vmul.f32 2.0, %v6163_v0  ;;  %v3032_v16 = vand.u32 2147483648, %v5520_v23  ;;  %v2722_v33 = vadd.f32 %v5704_v1, %v5698_v12 }
 0x5e3   : > { %v2880_v61 = vsub.f32 %v2844_v57, %v6159_v42  ;;  %v2988_v57 = vor.u32 1.1754944e-38, %v2987_v27  ;;  %v2771_v46 = vadd.f32 %v5730_v43, %v2747_v41  ;;  %v2973_v43 = vor.u32 1.1754944e-38, %v2972_v60 }
 0x5e4   : > { %v2746_v55 = vadd.f32 %v5712_v30, %v2722_v33 }
 0x5e5   : > { %v2898_v40 = vmul.f32 2.0, %v2880_v61  ;;  %v2989_v61 = vsel %vm2986_vm9, %v2988_v57, %v2984_v13  ;;  %vm3013_vm9 = vmor %vm3011_vm8, %vm3012_vm7 }
 0x5e6   : > { %v2770_v37 = vadd.f32 %v5723_v34, %v2746_v55 }
 0x5e7   : > { %v2904_v7 = vadd.f32 0.0009, %v2898_v40  ;;  %v2831_v38 = vpop.permute.xlu2 %2830  ;;  %v2965_v40 = vadd.f32 %v5734_v29, %v2964_v47 }
 0x5e8   : > { %v2846_v32 = vadd.f32 %v2831_v38, %v2816_v44  ;;  %v2779_v21 = vpop.permute.xlu1 %2778  ;;  %v5746_v20 = vpop.permute.xlu0 %2780  ;;  %v2993_v44 = vsub.f32 1.0, %v2992_v58  ;;  %v6164_v38 = vld [vmem:[#allocation8_spill] sm:$0xff]  ;;  %v3007_v58 = vmul.f32 %v5805_v6, %v5606_v35 }
 0x5e9   : > { %v2910_v54 = vmul.f32 %v2904_v7, %v2892_v28  ;;  %v2893_v7 = vadd.f32 0.0001, %v2887_v19  ;;  %v2889_v9 = vmul.f32 2.0, %v6164_v38  ;;  %v2793_v18 = vadd.f32 %v2779_v21, %v2769_v25 }
 0x5ea   : > { %v2882_v39 = vsub.f32 %v2846_v32, %v2864_v31  ;;  %v2969_v45 = vsel %vm5793_vm12, %v5734_v29, %v2965_v40  ;;  %v2994_v62 = vmul.f32 %v5758_v59, %v2993_v44  ;;  %v3030_v29 = vand.u32 2147483647, %v5520_v23 }
 0x5eb   : > { %v5753_v3 = vmul.f32 %v2959_v11, %v2910_v54  ;;  %v2974_v21 = vsel %vm2971_vm14, %v2973_v43, %v2969_v45  ;;  %v2897_v19 = vadd.f32 0.0001, %v2891_v56  ;;  %v2895_v24 = vadd.f32 0.0001, %v2889_v9  ;;  %v6171_v45 = vld [vmem:[#allocation34_spill] sm:$0xff] }
 0x5ec   : > { %v2900_v53 = vmul.f32 2.0, %v2882_v39  ;;  %v2995_v4 = vadd.f32 %v5758_v59, %v2994_v62  ;;  %vm3031_vm6 = vcmp.eq.f32.partialorder %v3030_v29, 8.507059e+37  ;;  %v3033_v44 = vor.u32 1.1754944e-38, %v3032_v16 }
 0x5ed   : > { %v3015_v43 = vand.u32 2147483647, %v5606_v35 }
 0x5ee   : > { %v2906_v2 = vadd.f32 0.0009, %v2900_v53  ;;  %v2999_v40 = vsel %vm5836_vm4, %v5758_v59, %v2995_v4 }
 0x5ef   : > { %v2833_v42 = vpop.permute.xlu2 %2832  ;;  %vm3016_vm10 = vcmp.eq.f32.partialorder %v3015_v43, 8.507059e+37 }
 0x5f0   : > { %v2912_v22 = vmul.f32 %v2906_v2, %v2894_v48  ;;  %v2829_v14 = vpop.permute.xlu1 %2828  ;;  %v2783_v49 = vpop.permute.xlu0 %2782 }
 0x5f1   : > { %v2845_v31 = vadd.f32 %v2829_v14, %v2815_v8  ;;  %v2795_v54 = vadd.f32 %v2783_v49, %v2771_v46  ;;  %v3037_v8 = vsel %vm3036_vm15, %v5753_v3, 0.0  ;;  %v3000_v14 = vand.u32 2147483647, %v5587_v50 }
 0x5f2   : > { %v2990_v52 = vmul.f32 %v2989_v61, %v2912_v22  ;;  %v3002_v49 = vand.u32 2147483648, %v5587_v50  ;;  %v3008_v46 = vsub.f32 1.0, %v3007_v58 }
 0x5f3   : > { %v2881_v28 = vsub.f32 %v2845_v31, %v6162_v10  ;;  %vm3001_vm5 = vcmp.eq.f32.partialorder %v3000_v14, 8.507059e+37 }
 0x5f4   : > { %v3040_v61 = vsel %vm3036_vm15, %v2990_v52, 0.0  ;;  %v3029_v52 = vsel %vm5828_vm3, %v5750_v26, %v3025_v5  ;;  %v3003_v50 = vor.u32 1.1754944e-38, %v3002_v49 }
 0x5f5   : > { %v2899_v63 = vmul.f32 2.0, %v2881_v28  ;;  %v3034_v26 = vsel %vm3031_vm6, %v3033_v44, %v3029_v52 }
 0x5f7   : > { %v2905_v17 = vadd.f32 0.0009, %v2899_v63  ;;  %v2837_v53 = vpop.permute.xlu2 %2836  ;;  %v3004_v63 = vsel %vm3001_vm5, %v3003_v50, %v2999_v40 }
 0x5f8   : > { %v2803_v11 = vpop.permute.xlu1 %2802  ;;  %v2807_v39 = vpop.permute.xlu0 %2806 }
 0x5f9   : > { %v2911_v27 = vmul.f32 %v2905_v17, %v2893_v7  ;;  %v2817_v36 = vadd.f32 %v2803_v11, %v2793_v18  ;;  %v2819_v15 = vadd.f32 %v2807_v39, %v2795_v54  ;;  %v2890_v17 = vmul.f32 2.0, %v6171_v45 }
 0x5fb   : > { %v2975_v48 = vmul.f32 %v2974_v21, %v2911_v27  ;;  %v2847_v13 = vadd.f32 %v2833_v42, %v2817_v36  ;;  %v2849_v2 = vadd.f32 %v2837_v53, %v2819_v15  ;;  %v2896_v62 = vadd.f32 0.0001, %v2890_v17 }
 0x5fd   : > { %v3038_v57 = vsel %vm3036_vm15, %v2975_v48, 0.0  ;;  %v2883_v47 = vsub.f32 %v2847_v13, %v6164_v38  ;;  %v2885_v42 = vsub.f32 %v2849_v2, %v6163_v0  ;;  %v2794_v0 = vadd.f32 %v5746_v20, %v2770_v37 }
 0x5fe   : > { %v3039_v22 = vadd.f32 %v3038_v57, %v3037_v8  ;;  %v3009_v38 = vmul.f32 %v5805_v6, %v3008_v46  ;;  %v3017_v20 = vand.u32 2147483648, %v5606_v35 }
 0x5ff   : > { %v2901_v3 = vmul.f32 2.0, %v2883_v47  ;;  %v2903_v31 = vmul.f32 2.0, %v2885_v42 }
 0x600   : > { %v2805_v1 = vpop.permute.xlu1 %2804  ;;  %v3041_v23 = vadd.f32 %v3040_v61, %v3039_v22  ;;  %v3010_v34 = vadd.f32 %v5805_v6, %v3009_v38  ;;  %v3018_v27 = vor.u32 1.1754944e-38, %v3017_v20 }
 0x601   : > { %v2907_v41 = vadd.f32 0.0009, %v2901_v3  ;;  %v2909_v28 = vadd.f32 0.0009, %v2903_v31  ;;  %v2818_v7 = vadd.f32 %v2805_v1, %v2794_v0 }
 0x602   : > { %v3014_v39 = vsel %vm3013_vm9, %v5805_v6, %v3010_v34 }
 0x603   : > { %v2913_v60 = vmul.f32 %v2907_v41, %v2895_v24  ;;  %v2915_v25 = vmul.f32 %v2909_v28, %v2897_v19  ;;  %v3019_v15 = vsel %vm3016_vm10, %v3018_v27, %v3014_v39 }
 0x605   : > { %v3005_v30 = vmul.f32 %v3004_v63, %v2913_v60  ;;  %v3035_v56 = vmul.f32 %v3034_v26, %v2915_v25 }
 0x607   : > { %v3042_v59 = vsel %vm3036_vm15, %v3005_v30, 0.0  ;;  %v3046_v16 = vsel %vm3036_vm15, %v3035_v56, 0.0 }
 0x608   : > { %v2835_v9 = vpop.permute.xlu1 %2834  ;;  %v3043_v32 = vadd.f32 %v3042_v59, %v3041_v23 }
 0x609   : > { %v2848_v18 = vadd.f32 %v2835_v9, %v2818_v7 }
 0x60b   : > { %v2884_v54 = vsub.f32 %v2848_v18, %v6171_v45 }
 0x60d   : > { %v2902_v11 = vmul.f32 2.0, %v2884_v54 }
 0x60f   : > { %v2908_v51 = vadd.f32 0.0009, %v2902_v11 }
 0x611   : > { %v2914_v36 = vmul.f32 %v2908_v51, %v2896_v62 }
 0x613   : > { %v3020_v21 = vmul.f32 %v3019_v15, %v2914_v36 }
 0x615   : > { %v3044_v53 = vsel %vm3036_vm15, %v3020_v21, 0.0 }
 0x616   : > { %v3045_v29 = vadd.f32 %v3044_v53, %v3043_v32 }
 0x618   : > { %v3047_v48 = vadd.f32 %v3046_v16, %v3045_v29 }
 0x61a   : > { %3048 = vadd.xlane.f32.xlu0 %v3047_v48 }
 0x68d   : > { %v3049_v35 = vpop.xlane.xlu0 %3048 }
 0x68e   : > { %v3050_v13 = vrot.slane %v3049_v35, 4 }
 0x690   : > { %v3051_v2 = vadd.f32 %v3050_v13, %v3049_v35 }
 0x692   : > { %v3052_v4 = vrot.slane %v3051_v2, 2 }
 0x694   : > { %v3053_v5 = vadd.f32 %v3052_v4, %v3051_v2 }
 0x696   : > { %v3054_v6 = vrot.slane %v3053_v5, 1 }
 0x698   : > { %v3055_v8 = vadd.f32 %v3054_v6, %v3053_v5 }
 0x69a   : > { %3165 = vpush %v3055_v8 }
 0x6cb   : > { %s3166_s6 = spop %3165 }
 0x6cc   : > { %v3057_v57 = vstv %s3166_s6 }
 0x6cd   : > { %3059 = vst.msk [vmem:[%s207_s5] sm:$0x1] %vm3058_vm11, %v3057_v57 }
 0x6ce PF: > { %s12_s11 = sadd.s32 1, %s3418_s11   ;;  %s6172_s9 = smov %s3414_s10 }
 0x6cf   : > { %p9_p5 = scmp.ge.s32.totalorder %s12_s11, 4   ;;  %s6173_s10 = smov %s6175_s12 }
 0x6d1   :  { %11 = sbr.rel (!%p9_p5) target bundleno = 2 (0x2), region = 61 }

</bundles_post_ra>
